<compile_context>
chip_gen: v7x
topology: tpu7x:2x2x1
jax: 0.10.0
libtpu: 0.0.40
codegen_flags: <defaults>
</compile_context>

<pallas_src>
import numpy as np

import jax
import jax.numpy as jnp
from jax.experimental import pallas as pl
from jax.experimental.pallas import tpu as pltpu

# ----------------------------------------------------------------------------
# Model hyper-parameters (small stand-ins for the original 2048/512/256 sizes)
# ----------------------------------------------------------------------------
ATTRIBUTE_GROUPS = {
    "texture": list(range(0, 6)),
    "fabric": list(range(6, 11)),
    "shape": list(range(11, 17)),
    "part": list(range(17, 23)),
    "style": list(range(23, 26)),
}
GROUP_NAMES = list(ATTRIBUTE_GROUPS)
NUM_ATTR = 26
NG = len(GROUP_NAMES)              # 5 attribute groups
C_FEAT = 64                        # stand-in for 2048 backbone channels
C_PROJ = 32                        # stand-in for 512 projection channels
HIDDEN = 32                        # stand-in for hidden_size=256
GE = HIDDEN * 2                    # per-group embedding dim (hidden_size*2)
NUM_LAYERS = 3
FEAT_SIDE = 4                      # backbone feature map is FEAT_SIDE x FEAT_SIDE
HW = FEAT_SIDE * FEAT_SIDE
NUM_PAIRS = NG * (NG - 1)          # 20 ordered cross-attention pairs
STYLE_POS = GROUP_NAMES.index("style")
TOTAL_HIDDEN = GE * NG             # 320
BN_EPS = 1e-5


# ----------------------------------------------------------------------------
# Kernel 1: backbone stub + AttentionModule + projection head  (one launch)
# ----------------------------------------------------------------------------
def _attr_kernel(x_ref, pool_ref, expand_ref, wbb_ref,
                 ws1_ref, bs1_ref, ws2_ref, bs2_ref,
                 wc1_ref, bc1_ref, wc2_ref, bc2_ref,
                 wp_ref, bp_ref, bns_ref, bnh_ref, wl_ref, bl_ref,
                 attr_ref):
    """x_ref: (B*HW, Cin) pooled pixels; pool_ref: (B, B*HW) per-sample mean
    matrix; expand_ref: (B*HW, B) per-sample broadcast matrix."""
    f32 = jnp.float32
    x = x_ref[...]
    # TODO(synk): ResNet-50 backbone replaced by this 1x1 projection stub.
    f = jnp.dot(x, wbb_ref[...], preferred_element_type=f32)            # (B*HW, C_FEAT)

    # spatial attention: Conv1x1 -> ReLU -> Conv1x1 -> Sigmoid
    s = jnp.maximum(jnp.dot(f, ws1_ref[...], preferred_element_type=f32) + bs1_ref[...], 0.0)
    s = jax.nn.sigmoid(jnp.dot(s, ws2_ref[...], preferred_element_type=f32) + bs2_ref[...])

    # channel attention: AdaptiveAvgPool2d -> Conv1x1 -> ReLU -> Conv1x1 -> Sigmoid
    pooled = jnp.dot(pool_ref[...], f, preferred_element_type=f32)       # (B, C_FEAT)
    c = jnp.maximum(jnp.dot(pooled, wc1_ref[...], preferred_element_type=f32) + bc1_ref[...], 0.0)
    c = jax.nn.sigmoid(jnp.dot(c, wc2_ref[...], preferred_element_type=f32) + bc2_ref[...])
    c_full = jnp.dot(expand_ref[...], c, preferred_element_type=f32)     # (B*HW, C_FEAT)

    att = f * s * c_full                                                 # AttentionModule output

    # projection: Conv1x1 -> ReLU -> BN2d(eval) -> AvgPool -> Flatten -> Linear -> ReLU -> Dropout(id)
    h = jnp.maximum(jnp.dot(att, wp_ref[...], preferred_element_type=f32) + bp_ref[...], 0.0)
    h = h * bns_ref[...] + bnh_ref[...]
    hp = jnp.dot(pool_ref[...], h, preferred_element_type=f32)           # (B, C_PROJ)
    y = jnp.dot(hp, wl_ref[...], preferred_element_type=f32) + bl_ref[...]
    attr_ref[...] = jnp.maximum(y, 0.0)                                  # (B, NUM_ATTR)


# ----------------------------------------------------------------------------
# Kernel 2: group encoders + batched cross attention + fusion + predictors
#           + style projector (one launch, lane-dense concatenated outputs)
# ----------------------------------------------------------------------------
def _head_kernel(attr_ref,
                 e0w, e0b, e0s, e0h, e1w, e1b, e1s, e1h, e2w, e2b, e2s, e2h,
                 wq, bq, wk, bk, wv, bv, sblk, sblk_t, mavg,
                 f0w, f0b, f0s, f0h, f1w, f1b, f1s, f1h,
                 pw0, pb0, pw1, pb1, sw0, sb0, sw1, sb1,
                 pred_ref, style_ref):
    f32 = jnp.float32

    def dense(x, w, b):
        return jnp.dot(x, w[...], preferred_element_type=f32) + b[...]

    def enc_layer(x, w, b, s, t):
        # Linear -> ReLU -> Dropout(identity) -> BatchNorm(eval)
        return jnp.maximum(dense(x, w, b), 0.0) * s[...] + t[...]

    def row(mat, j):
        # extract row j of a (B, N) value as (1, N) without unaligned slicing
        idx = jax.lax.broadcasted_iota(jnp.int32, mat.shape, 0)
        return jnp.sum(jnp.where(idx == j, mat, 0.0), axis=0, keepdims=True)

    attr = attr_ref[...]                                                 # (B, 26)
    B = attr.shape[0]

    # --- group encoders: 5 groups fused via block-diagonal weights ---
    x = enc_layer(attr, e0w, e0b, e0s, e0h)                              # (B, NG*HIDDEN)
    x = enc_layer(x, e1w, e1b, e1s, e1h)                                 # (B, NG*HIDDEN)
    emb = enc_layer(x, e2w, e2b, e2s, e2h)                               # (B, NG*GE)

    # --- all 20 pairwise cross attentions, batched into wide matmuls ---
    q = dense(emb, wq, bq)                                               # (B, NUM_PAIRS*GE)
    k = dense(emb, wk, bk)
    v = dense(emb, wv, bv)
    scale = GE ** -0.5
    sb = sblk[...]                                                       # (NUM_PAIRS*GE, NUM_PAIRS)
    sbt = sblk_t[...]                                                    # (NUM_PAIRS, NUM_PAIRS*GE)

    # scores[j][:, p] = <q_p, k_p[j]>; softmax over j (keys = batch rows, as in
    # the PyTorch reference where attn is (B, B)).
    scores = [jnp.dot(q * row(k, j), sb, preferred_element_type=f32) * scale
              for j in range(B)]
    m = scores[0]
    for s_j in scores[1:]:
        m = jnp.maximum(m, s_j)
    exps = [jnp.exp(s_j - m) for s_j in scores]
    denom = exps[0]
    for e_j in exps[1:]:
        denom = denom + e_j

    cross = None
    for j in range(B):
        a_j = exps[j] / denom                                            # (B, NUM_PAIRS)
        w_j = jnp.dot(a_j, sbt, preferred_element_type=f32)              # (B, NUM_PAIRS*GE)
        term = w_j * row(v, j)
        cross = term if cross is None else cross + term

    # mean over the (NG-1) pairs sharing the same query group, added back
    enhanced = emb + jnp.dot(cross, mavg[...], preferred_element_type=f32)   # (B, NG*GE)

    # --- fusion MLP ---
    x = enc_layer(enhanced, f0w, f0b, f0s, f0h)                          # (B, TOTAL_HIDDEN//2)
    fused = enc_layer(x, f1w, f1b, f1s, f1h)                             # (B, TOTAL_HIDDEN//4)

    # --- group predictors, fused into one lane-contiguous (B, 26) slab ---
    ph = jnp.maximum(dense(fused, pw0, pb0), 0.0)                        # (B, NG*HIDDEN)
    pred_ref[...] = dense(ph, pw1, pb1)                                  # (B, NUM_ATTR)

    # --- style projector on the 'style' slice of the enhanced embeddings ---
    st = enhanced[:, STYLE_POS * GE:(STYLE_POS + 1) * GE]                # (B, GE)
    sh = jnp.maximum(dense(st, sw0, sb0), 0.0)
    style_ref[...] = dense(sh, sw1, sb1)                                 # (B, 128)


# ----------------------------------------------------------------------------
# Deterministic parameter initialization (shapes follow the module __init__)
# ----------------------------------------------------------------------------
class KeyGen:
    def __init__(self, key):
        self.key = key

    def __call__(self):
        self.key, sub = jax.random.split(self.key)
        return sub


def _lin(kg, fin, fout):
    w = jax.random.normal(kg(), (fin, fout), jnp.float32) * (fin ** -0.5)
    b = jax.random.normal(kg(), (fout,), jnp.float32) * 0.01
    return {"w": w, "b": b}


def _bn(fout):
    # PyTorch default init: gamma=1, beta=0, running_mean=0, running_var=1 (eval)
    gamma = jnp.ones((fout,), jnp.float32)
    beta = jnp.zeros((fout,), jnp.float32)
    mean = jnp.zeros((fout,), jnp.float32)
    var = jnp.ones((fout,), jnp.float32)
    scale = gamma / jnp.sqrt(var + BN_EPS)
    shift = beta - mean * scale
    return {"scale": scale, "shift": shift}


def init_params(key):
    kg = KeyGen(key)
    p = {}

    # backbone stub: 3 -> C_FEAT channel projection (TODO(synk): ResNet-50)
    p["backbone_proj"] = jax.random.normal(kg(), (3, C_FEAT), jnp.float32) * 0.1

    # AttentionModule(C_FEAT): 1x1 convs stored as (in, out) matrices
    c8 = C_FEAT // 8
    s1, s2 = _lin(kg, C_FEAT, c8), _lin(kg, c8, 1)
    c1, c2 = _lin(kg, C_FEAT, c8), _lin(kg, c8, C_FEAT)
    p["attention1"] = {"ws1": s1["w"], "bs1": s1["b"], "ws2": s2["w"], "bs2": s2["b"],
                       "wc1": c1["w"], "bc1": c1["b"], "wc2": c2["w"], "bc2": c2["b"]}

    # projection: Conv1x1(C_FEAT->C_PROJ) + BN2d + Linear(C_PROJ->NUM_ATTR)
    conv = _lin(kg, C_FEAT, C_PROJ)
    lin = _lin(kg, C_PROJ, NUM_ATTR)
    bn = _bn(C_PROJ)
    p["projection"] = {"wp": conv["w"], "bp": conv["b"],
                       "scale": bn["scale"], "shift": bn["shift"],
                       "wl": lin["w"], "bl": lin["b"]}

    # group encoders: [Linear -> ReLU -> Dropout -> BN1d] x 3 per group
    p["group_encoders"] = {}
    for name, idx in ATTRIBUTE_GROUPS.items():
        layers = []
        current = len(idx)
        for i in range(NUM_LAYERS):
            out_size = HIDDEN if i < NUM_LAYERS - 1 else HIDDEN * 2
            layer = _lin(kg, current, out_size)
            layer.update(_bn(out_size))
            layers.append(layer)
            current = out_size
        p["group_encoders"][name] = layers

    # fusion
    f0 = _lin(kg, TOTAL_HIDDEN, TOTAL_HIDDEN // 2); f0.update(_bn(TOTAL_HIDDEN // 2))
    f1 = _lin(kg, TOTAL_HIDDEN // 2, TOTAL_HIDDEN // 4); f1.update(_bn(TOTAL_HIDDEN // 4))
    p["fusion"] = [f0, f1]

    # group predictors
    p["group_predictors"] = {}
    for name, idx in ATTRIBUTE_GROUPS.items():
        p["group_predictors"][name] = [_lin(kg, TOTAL_HIDDEN // 4, HIDDEN),
                                       _lin(kg, HIDDEN, len(idx))]

    # cross attention (dim = HIDDEN*2) between every ordered pair of groups
    p["cross_attention"] = {}
    for g1 in GROUP_NAMES:
        for g2 in GROUP_NAMES:
            if g1 != g2:
                q, k, v = _lin(kg, GE, GE), _lin(kg, GE, GE), _lin(kg, GE, GE)
                p["cross_attention"][f"{g1}_{g2}"] = {
                    "wq": q["w"], "bq": q["b"],
                    "wk": k["w"], "bk": k["b"],
                    "wv": v["w"], "bv": v["b"]}

    # style projector
    p["style_projector"] = [_lin(kg, GE, HIDDEN), _lin(kg, HIDDEN, 128)]
    return p


# ----------------------------------------------------------------------------
# Host-side fusion of parameters into the block/batched forms the two kernels
# consume (done once, outside jit).
# ----------------------------------------------------------------------------
def build_fused_params(params):
    n = lambda a: np.asarray(a, dtype=np.float32)
    rowv = lambda a: n(a).reshape(1, -1)

    att = params["attention1"]
    proj = params["projection"]
    k1 = dict(
        wbb=n(params["backbone_proj"]),
        ws1=n(att["ws1"]), bs1=rowv(att["bs1"]), ws2=n(att["ws2"]), bs2=rowv(att["bs2"]),
        wc1=n(att["wc1"]), bc1=rowv(att["bc1"]), wc2=n(att["wc2"]), bc2=rowv(att["bc2"]),
        wp=n(proj["wp"]), bp=rowv(proj["bp"]), bns=rowv(proj["scale"]), bnh=rowv(proj["shift"]),
        wl=n(proj["wl"]), bl=rowv(proj["bl"]),
    )

    widths = [len(ATTRIBUTE_GROUPS[g]) for g in GROUP_NAMES]
    offs = np.concatenate([[0], np.cumsum(widths)]).astype(int)

    def fused_encoder_layer(layer_idx, in_blocks, out_w):
        in_total = in_blocks[-1][0] + in_blocks[-1][1]
        W = np.zeros((in_total, NG * out_w), np.float32)
        b = np.zeros((1, NG * out_w), np.float32)
        s = np.ones((1, NG * out_w), np.float32)
        t = np.zeros((1, NG * out_w), np.float32)
        for g, name in enumerate(GROUP_NAMES):
            layer = params["group_encoders"][name][layer_idx]
            st, wd = in_blocks[g]
            c0, c1 = g * out_w, (g + 1) * out_w
            W[st:st + wd, c0:c1] = n(layer["w"])
            b[0, c0:c1] = n(layer["b"])
            s[0, c0:c1] = n(layer["scale"])
            t[0, c0:c1] = n(layer["shift"])
        return W, b, s, t

    e0 = fused_encoder_layer(0, [(int(offs[g]), widths[g]) for g in range(NG)], HIDDEN)
    e1 = fused_encoder_layer(1, [(g * HIDDEN, HIDDEN) for g in range(NG)], HIDDEN)
    e2 = fused_encoder_layer(2, [(g * HIDDEN, HIDDEN) for g in range(NG)], GE)

    # cross attention: block matrices batching all 20 (g1, g2) pairs.
    # column block p of WQ holds wq_p at row block g1(p); WK/WV at g2(p).
    pairs = [(a, b) for a in GROUP_NAMES for b in GROUP_NAMES if a != b]
    WQ = np.zeros((NG * GE, NUM_PAIRS * GE), np.float32)
    WK = np.zeros_like(WQ)
    WV = np.zeros_like(WQ)
    BQ = np.zeros((1, NUM_PAIRS * GE), np.float32)
    BK = np.zeros_like(BQ)
    BV = np.zeros_like(BQ)
    SBLK = np.zeros((NUM_PAIRS * GE, NUM_PAIRS), np.float32)   # per-pair block sum
    MAVG = np.zeros((NUM_PAIRS * GE, NG * GE), np.float32)     # mean over pairs per query group
    eye = np.eye(GE, dtype=np.float32)
    for p_idx, (g1, g2) in enumerate(pairs):
        ca = params["cross_attention"][f"{g1}_{g2}"]
        i1, i2 = GROUP_NAMES.index(g1), GROUP_NAMES.index(g2)
        c0, c1 = p_idx * GE, (p_idx + 1) * GE
        WQ[i1 * GE:(i1 + 1) * GE, c0:c1] = n(ca["wq"]); BQ[0, c0:c1] = n(ca["bq"])
        WK[i2 * GE:(i2 + 1) * GE, c0:c1] = n(ca["wk"]); BK[0, c0:c1] = n(ca["bk"])
        WV[i2 * GE:(i2 + 1) * GE, c0:c1] = n(ca["wv"]); BV[0, c0:c1] = n(ca["bv"])
        SBLK[c0:c1, p_idx] = 1.0
        MAVG[c0:c1, i1 * GE:(i1 + 1) * GE] = eye / (NG - 1)

    fus = params["fusion"]
    gp = params["group_predictors"]
    PW0 = np.concatenate([n(gp[g][0]["w"]) for g in GROUP_NAMES], axis=1)    # (80, NG*HIDDEN)
    PB0 = np.concatenate([n(gp[g][0]["b"]) for g in GROUP_NAMES]).reshape(1, -1)
    PW1 = np.zeros((NG * HIDDEN, NUM_ATTR), np.float32)
    PB1 = np.zeros((1, NUM_ATTR), np.float32)
    for g, name in enumerate(GROUP_NAMES):
        PW1[g * HIDDEN:(g + 1) * HIDDEN, offs[g]:offs[g + 1]] = n(gp[name][1]["w"])
        PB1[0, offs[g]:offs[g + 1]] = n(gp[name][1]["b"])
    sp = params["style_projector"]

    k2 = dict(
        e0w=e0[0], e0b=e0[1], e0s=e0[2], e0h=e0[3],
        e1w=e1[0], e1b=e1[1], e1s=e1[2], e1h=e1[3],
        e2w=e2[0], e2b=e2[1], e2s=e2[2], e2h=e2[3],
        wq=WQ, bq=BQ, wk=WK, bk=BK, wv=WV, bv=BV,
        sblk=SBLK, sblk_t=SBLK.T.copy(), mavg=MAVG,
        f0w=n(fus[0]["w"]), f0b=rowv(fus[0]["b"]), f0s=rowv(fus[0]["scale"]), f0h=rowv(fus[0]["shift"]),
        f1w=n(fus[1]["w"]), f1b=rowv(fus[1]["b"]), f1s=rowv(fus[1]["scale"]), f1h=rowv(fus[1]["shift"]),
        pw0=PW0, pb0=PB0, pw1=PW1, pb1=PB1,
        sw0=n(sp[0]["w"]), sb0=rowv(sp[0]["b"]), sw1=n(sp[1]["w"]), sb1=rowv(sp[1]["b"]),
    )
    to_jnp = lambda d: {k: jnp.asarray(v) for k, v in d.items()}
    return {"k1": to_jnp(k1), "k2": to_jnp(k2)}


# ----------------------------------------------------------------------------
# Forward pass: exactly two pallas_call launches
# ----------------------------------------------------------------------------
_K1_ARGS = ("wbb", "ws1", "bs1", "ws2", "bs2", "wc1", "bc1", "wc2", "bc2",
            "wp", "bp", "bns", "bnh", "wl", "bl")
_K2_ARGS = ("e0w", "e0b", "e0s", "e0h", "e1w", "e1b", "e1s", "e1h",
            "e2w", "e2b", "e2s", "e2h",
            "wq", "bq", "wk", "bk", "wv", "bv", "sblk", "sblk_t", "mavg",
            "f0w", "f0b", "f0s", "f0h", "f1w", "f1b", "f1s", "f1h",
            "pw0", "pb0", "pw1", "pb1", "sw0", "sb0", "sw1", "sb1")


def _cost_estimate(args, out_shapes, flops, transcendentals):
    bytes_accessed = sum(int(np.prod(a.shape)) * 4 for a in args)
    bytes_accessed += sum(int(np.prod(s)) * 4 for s in out_shapes)
    return pl.CostEstimate(flops=int(flops), transcendentals=int(transcendentals),
                           bytes_accessed=int(bytes_accessed))


def style_classifier_forward(fp, x_nchw):
    B, Cin, H, W = x_nchw.shape

    # ---- backbone stub (TODO(synk): ResNet-50): avg-pool to FEAT_SIDE^2 ----
    x = jnp.transpose(x_nchw, (0, 2, 3, 1))                      # NCHW -> NHWC
    ph, pw = H // FEAT_SIDE, W // FEAT_SIDE
    x = x.reshape(B, FEAT_SIDE, ph, FEAT_SIDE, pw, Cin).mean(axis=(2, 4))
    x_flat = x.reshape(B * HW, Cin)                              # (B*HW, Cin)

    # per-sample mean / broadcast matrices (compile-time constants under jit)
    pool = jnp.repeat(jnp.eye(B, dtype=jnp.float32), HW, axis=1) / float(HW)   # (B, B*HW)
    expand = jnp.repeat(jnp.eye(B, dtype=jnp.float32), HW, axis=0)             # (B*HW, B)

    k1 = fp["k1"]
    k1_args = (x_flat, pool, expand) + tuple(k1[name] for name in _K1_ARGS)
    flops1 = 2 * B * HW * C_FEAT * (Cin + C_FEAT // 8 + C_PROJ + 4)
    attributes = pl.pallas_call(
        _attr_kernel,
        out_shape=jax.ShapeDtypeStruct((B, NUM_ATTR), jnp.float32),
        cost_estimate=_cost_estimate(k1_args, [(B, NUM_ATTR)],
                                     flops1, B * (HW + C_FEAT)),
    )(*k1_args)

    k2 = fp["k2"]
    k2_args = (attributes,) + tuple(k2[name] for name in _K2_ARGS)
    flops2 = 2 * B * (NG * GE) * (NUM_PAIRS * GE) * 4 + 4 * B * TOTAL_HIDDEN * TOTAL_HIDDEN
    predictions, style_embedding = pl.pallas_call(
        _head_kernel,
        out_shape=(jax.ShapeDtypeStruct((B, NUM_ATTR), jnp.float32),
                   jax.ShapeDtypeStruct((B, 128), jnp.float32)),
        cost_estimate=_cost_estimate(k2_args, [(B, NUM_ATTR), (B, 128)],
                                     flops2, B * B * NUM_PAIRS),
        compiler_params=pltpu.CompilerParams(vmem_limit_bytes=32 * 1024 * 1024),
    )(*k2_args)

    group_predictions = {name: predictions[:, idx[0]:idx[-1] + 1]
                         for name, idx in ATTRIBUTE_GROUPS.items()}
    return {"predictions": predictions,
            "style_embedding": style_embedding,
            "group_predictions": group_predictions}


# ----------------------------------------------------------------------------
if __name__ == "__main__":
    key = jax.random.PRNGKey(0)
    kparams, kx = jax.random.split(key)
    params = init_params(kparams)
    fused_params = build_fused_params(params)
    x = jax.random.normal(kx, (2, 3, 16, 16), jnp.float32)       # NCHW image input

    fwd = jax.jit(style_classifier_forward)
    out = fwd(fused_params, x)
    out = jax.block_until_ready(out)

    assert out["predictions"].shape == (2, NUM_ATTR)
    assert out["style_embedding"].shape == (2, 128)
    for name, idx in ATTRIBUTE_GROUPS.items():
        assert out["group_predictions"][name].shape == (2, len(idx))
    assert bool(jnp.all(jnp.isfinite(out["predictions"])))
    assert bool(jnp.all(jnp.isfinite(out["style_embedding"])))
    print("KERNEL_OK")
</pallas_src>

<mosaic_0001>
module attributes {stable_mosaic.version = 11 : i64} {
  func.func @_attr_kernel(%arg0: memref<32x3xf32, #tpu.memory_space<vmem>>, %arg1: memref<2x32xf32, #tpu.memory_space<vmem>>, %arg2: memref<32x2xf32, #tpu.memory_space<vmem>>, %arg3: memref<3x64xf32, #tpu.memory_space<vmem>>, %arg4: memref<64x8xf32, #tpu.memory_space<vmem>>, %arg5: memref<1x8xf32, #tpu.memory_space<vmem>>, %arg6: memref<8x1xf32, #tpu.memory_space<vmem>>, %arg7: memref<1x1xf32, #tpu.memory_space<vmem>>, %arg8: memref<64x8xf32, #tpu.memory_space<vmem>>, %arg9: memref<1x8xf32, #tpu.memory_space<vmem>>, %arg10: memref<8x64xf32, #tpu.memory_space<vmem>>, %arg11: memref<1x64xf32, #tpu.memory_space<vmem>>, %arg12: memref<64x32xf32, #tpu.memory_space<vmem>>, %arg13: memref<1x32xf32, #tpu.memory_space<vmem>>, %arg14: memref<1x32xf32, #tpu.memory_space<vmem>>, %arg15: memref<1x32xf32, #tpu.memory_space<vmem>>, %arg16: memref<32x26xf32, #tpu.memory_space<vmem>>, %arg17: memref<1x26xf32, #tpu.memory_space<vmem>>, %arg18: memref<2x26xf32, #tpu.memory_space<vmem>>) attributes {dimension_semantics = [], scalar_prefetch = 0 : i64, scratch_operands = 0 : i64, tpu.core_type = #tpu.core_type<tc>} {
    %c0 = arith.constant 0 : index
    %c0_0 = arith.constant 0 : index
    %0 = vector.load %arg0[%c0, %c0_0] : memref<32x3xf32, #tpu.memory_space<vmem>>, vector<32x3xf32>
    %c0_1 = arith.constant 0 : index
    %c0_2 = arith.constant 0 : index
    %1 = vector.load %arg3[%c0_1, %c0_2] : memref<3x64xf32, #tpu.memory_space<vmem>>, vector<3x64xf32>
    %cst = arith.constant dense<0.000000e+00> : vector<32x64xf32>
    %2 = tpu.matmul %0, %1, %cst {dimension_numbers = #tpu.dot_dimension_numbers<[1], [0], [0], [1], [0, 0, 1, 1], [], []>} : vector<32x3xf32>, vector<3x64xf32>, vector<32x64xf32> -> vector<32x64xf32>
    %c0_3 = arith.constant 0 : index
    %c0_4 = arith.constant 0 : index
    %3 = vector.load %arg4[%c0_3, %c0_4] : memref<64x8xf32, #tpu.memory_space<vmem>>, vector<64x8xf32>
    %cst_5 = arith.constant dense<0.000000e+00> : vector<32x8xf32>
    %4 = tpu.matmul %2, %3, %cst_5 {dimension_numbers = #tpu.dot_dimension_numbers<[1], [0], [0], [1], [0, 0, 1, 1], [], []>} : vector<32x64xf32>, vector<64x8xf32>, vector<32x8xf32> -> vector<32x8xf32>
    %c0_6 = arith.constant 0 : index
    %c0_7 = arith.constant 0 : index
    %5 = vector.load %arg5[%c0_6, %c0_7] : memref<1x8xf32, #tpu.memory_space<vmem>>, vector<1x8xf32>
    %6 = vector.broadcast %5 : vector<1x8xf32> to vector<32x8xf32>
    %7 = arith.addf %4, %6 : vector<32x8xf32>
    %cst_8 = arith.constant 0.000000e+00 : f32
    %8 = vector.broadcast %cst_8 : f32 to vector<32x8xf32>
    %9 = arith.maximumf %7, %8 : vector<32x8xf32>
    %c0_9 = arith.constant 0 : index
    %c0_10 = arith.constant 0 : index
    %10 = vector.load %arg6[%c0_9, %c0_10] : memref<8x1xf32, #tpu.memory_space<vmem>>, vector<8x1xf32>
    %cst_11 = arith.constant dense<0.000000e+00> : vector<32x1xf32>
    %11 = tpu.matmul %9, %10, %cst_11 {dimension_numbers = #tpu.dot_dimension_numbers<[1], [0], [0], [1], [0, 0, 1, 1], [], []>} : vector<32x8xf32>, vector<8x1xf32>, vector<32x1xf32> -> vector<32x1xf32>
    %c0_12 = arith.constant 0 : index
    %c0_13 = arith.constant 0 : index
    %12 = vector.load %arg7[%c0_12, %c0_13] : memref<1x1xf32, #tpu.memory_space<vmem>>, vector<1x1xf32>
    %13 = vector.broadcast %12 : vector<1x1xf32> to vector<32x1xf32>
    %14 = arith.addf %11, %13 : vector<32x1xf32>
    %15 = arith.negf %14 : vector<32x1xf32>
    %16 = math.exp %15 : vector<32x1xf32>
    %cst_14 = arith.constant 1.000000e+00 : f32
    %17 = vector.broadcast %cst_14 : f32 to vector<32x1xf32>
    %18 = arith.addf %17, %16 : vector<32x1xf32>
    %19 = arith.divf %17, %18 : vector<32x1xf32>
    %c0_15 = arith.constant 0 : index
    %c0_16 = arith.constant 0 : index
    %20 = vector.load %arg1[%c0_15, %c0_16] : memref<2x32xf32, #tpu.memory_space<vmem>>, vector<2x32xf32>
    %cst_17 = arith.constant dense<0.000000e+00> : vector<2x64xf32>
    %21 = tpu.matmul %20, %2, %cst_17 {dimension_numbers = #tpu.dot_dimension_numbers<[1], [0], [0], [1], [0, 0, 1, 1], [], []>} : vector<2x32xf32>, vector<32x64xf32>, vector<2x64xf32> -> vector<2x64xf32>
    %c0_18 = arith.constant 0 : index
    %c0_19 = arith.constant 0 : index
    %22 = vector.load %arg8[%c0_18, %c0_19] : memref<64x8xf32, #tpu.memory_space<vmem>>, vector<64x8xf32>
    %cst_20 = arith.constant dense<0.000000e+00> : vector<2x8xf32>
    %23 = tpu.matmul %21, %22, %cst_20 {dimension_numbers = #tpu.dot_dimension_numbers<[1], [0], [0], [1], [0, 0, 1, 1], [], []>} : vector<2x64xf32>, vector<64x8xf32>, vector<2x8xf32> -> vector<2x8xf32>
    %c0_21 = arith.constant 0 : index
    %c0_22 = arith.constant 0 : index
    %24 = vector.load %arg9[%c0_21, %c0_22] : memref<1x8xf32, #tpu.memory_space<vmem>>, vector<1x8xf32>
    %25 = vector.broadcast %24 : vector<1x8xf32> to vector<2x8xf32>
    %26 = arith.addf %23, %25 : vector<2x8xf32>
    %cst_23 = arith.constant 0.000000e+00 : f32
    %27 = vector.broadcast %cst_23 : f32 to vector<2x8xf32>
    %28 = arith.maximumf %26, %27 : vector<2x8xf32>
    %c0_24 = arith.constant 0 : index
    %c0_25 = arith.constant 0 : index
    %29 = vector.load %arg10[%c0_24, %c0_25] : memref<8x64xf32, #tpu.memory_space<vmem>>, vector<8x64xf32>
    %cst_26 = arith.constant dense<0.000000e+00> : vector<2x64xf32>
    %30 = tpu.matmul %28, %29, %cst_26 {dimension_numbers = #tpu.dot_dimension_numbers<[1], [0], [0], [1], [0, 0, 1, 1], [], []>} : vector<2x8xf32>, vector<8x64xf32>, vector<2x64xf32> -> vector<2x64xf32>
    %c0_27 = arith.constant 0 : index
    %c0_28 = arith.constant 0 : index
    %31 = vector.load %arg11[%c0_27, %c0_28] : memref<1x64xf32, #tpu.memory_space<vmem>>, vector<1x64xf32>
    %32 = vector.broadcast %31 : vector<1x64xf32> to vector<2x64xf32>
    %33 = arith.addf %30, %32 : vector<2x64xf32>
    %34 = arith.negf %33 : vector<2x64xf32>
    %35 = math.exp %34 : vector<2x64xf32>
    %cst_29 = arith.constant 1.000000e+00 : f32
    %36 = vector.broadcast %cst_29 : f32 to vector<2x64xf32>
    %37 = arith.addf %36, %35 : vector<2x64xf32>
    %38 = arith.divf %36, %37 : vector<2x64xf32>
    %c0_30 = arith.constant 0 : index
    %c0_31 = arith.constant 0 : index
    %39 = vector.load %arg2[%c0_30, %c0_31] : memref<32x2xf32, #tpu.memory_space<vmem>>, vector<32x2xf32>
    %cst_32 = arith.constant dense<0.000000e+00> : vector<32x64xf32>
    %40 = tpu.matmul %39, %38, %cst_32 {dimension_numbers = #tpu.dot_dimension_numbers<[1], [0], [0], [1], [0, 0, 1, 1], [], []>} : vector<32x2xf32>, vector<2x64xf32>, vector<32x64xf32> -> vector<32x64xf32>
    %41 = vector.broadcast %19 : vector<32x1xf32> to vector<32x64xf32>
    %42 = arith.mulf %2, %41 : vector<32x64xf32>
    %43 = arith.mulf %42, %40 : vector<32x64xf32>
    %c0_33 = arith.constant 0 : index
    %c0_34 = arith.constant 0 : index
    %44 = vector.load %arg12[%c0_33, %c0_34] : memref<64x32xf32, #tpu.memory_space<vmem>>, vector<64x32xf32>
    %cst_35 = arith.constant dense<0.000000e+00> : vector<32x32xf32>
    %45 = tpu.matmul %43, %44, %cst_35 {dimension_numbers = #tpu.dot_dimension_numbers<[1], [0], [0], [1], [0, 0, 1, 1], [], []>} : vector<32x64xf32>, vector<64x32xf32>, vector<32x32xf32> -> vector<32x32xf32>
    %c0_36 = arith.constant 0 : index
    %c0_37 = arith.constant 0 : index
    %46 = vector.load %arg13[%c0_36, %c0_37] : memref<1x32xf32, #tpu.memory_space<vmem>>, vector<1x32xf32>
    %47 = vector.broadcast %46 : vector<1x32xf32> to vector<32x32xf32>
    %48 = arith.addf %45, %47 : vector<32x32xf32>
    %cst_38 = arith.constant 0.000000e+00 : f32
    %49 = vector.broadcast %cst_38 : f32 to vector<32x32xf32>
    %50 = arith.maximumf %48, %49 : vector<32x32xf32>
    %c0_39 = arith.constant 0 : index
    %c0_40 = arith.constant 0 : index
    %51 = vector.load %arg14[%c0_39, %c0_40] : memref<1x32xf32, #tpu.memory_space<vmem>>, vector<1x32xf32>
    %52 = vector.broadcast %51 : vector<1x32xf32> to vector<32x32xf32>
    %53 = arith.mulf %50, %52 : vector<32x32xf32>
    %c0_41 = arith.constant 0 : index
    %c0_42 = arith.constant 0 : index
    %54 = vector.load %arg15[%c0_41, %c0_42] : memref<1x32xf32, #tpu.memory_space<vmem>>, vector<1x32xf32>
    %55 = vector.broadcast %54 : vector<1x32xf32> to vector<32x32xf32>
    %56 = arith.addf %53, %55 : vector<32x32xf32>
    %c0_43 = arith.constant 0 : index
    %c0_44 = arith.constant 0 : index
    %57 = vector.load %arg1[%c0_43, %c0_44] : memref<2x32xf32, #tpu.memory_space<vmem>>, vector<2x32xf32>
    %cst_45 = arith.constant dense<0.000000e+00> : vector<2x32xf32>
    %58 = tpu.matmul %57, %56, %cst_45 {dimension_numbers = #tpu.dot_dimension_numbers<[1], [0], [0], [1], [0, 0, 1, 1], [], []>} : vector<2x32xf32>, vector<32x32xf32>, vector<2x32xf32> -> vector<2x32xf32>
    %c0_46 = arith.constant 0 : index
    %c0_47 = arith.constant 0 : index
    %59 = vector.load %arg16[%c0_46, %c0_47] : memref<32x26xf32, #tpu.memory_space<vmem>>, vector<32x26xf32>
    %cst_48 = arith.constant dense<0.000000e+00> : vector<2x26xf32>
    %60 = tpu.matmul %58, %59, %cst_48 {dimension_numbers = #tpu.dot_dimension_numbers<[1], [0], [0], [1], [0, 0, 1, 1], [], []>} : vector<2x32xf32>, vector<32x26xf32>, vector<2x26xf32> -> vector<2x26xf32>
    %c0_49 = arith.constant 0 : index
    %c0_50 = arith.constant 0 : index
    %61 = vector.load %arg17[%c0_49, %c0_50] : memref<1x26xf32, #tpu.memory_space<vmem>>, vector<1x26xf32>
    %62 = vector.broadcast %61 : vector<1x26xf32> to vector<2x26xf32>
    %63 = arith.addf %60, %62 : vector<2x26xf32>
    %cst_51 = arith.constant 0.000000e+00 : f32
    %64 = vector.broadcast %cst_51 : f32 to vector<2x26xf32>
    %65 = arith.maximumf %63, %64 : vector<2x26xf32>
    %c0_52 = arith.constant 0 : index
    %c0_53 = arith.constant 0 : index
    %66 = vector.load %arg18[%c0_52, %c0_53] : memref<2x26xf32, #tpu.memory_space<vmem>>, vector<2x26xf32>
    tpu.vector_store %arg18[%c0_52, %c0_53], %65 {strides = array<i32>} : memref<2x26xf32, #tpu.memory_space<vmem>>, vector<2x26xf32>,
    return
  }
}

module attributes {stable_mosaic.version = 11 : i64} {
  func.func @_head_kernel(%arg0: memref<2x26xf32, #tpu.memory_space<vmem>>, %arg1: memref<26x160xf32, #tpu.memory_space<vmem>>, %arg2: memref<1x160xf32, #tpu.memory_space<vmem>>, %arg3: memref<1x160xf32, #tpu.memory_space<vmem>>, %arg4: memref<1x160xf32, #tpu.memory_space<vmem>>, %arg5: memref<160x160xf32, #tpu.memory_space<vmem>>, %arg6: memref<1x160xf32, #tpu.memory_space<vmem>>, %arg7: memref<1x160xf32, #tpu.memory_space<vmem>>, %arg8: memref<1x160xf32, #tpu.memory_space<vmem>>, %arg9: memref<160x320xf32, #tpu.memory_space<vmem>>, %arg10: memref<1x320xf32, #tpu.memory_space<vmem>>, %arg11: memref<1x320xf32, #tpu.memory_space<vmem>>, %arg12: memref<1x320xf32, #tpu.memory_space<vmem>>, %arg13: memref<320x1280xf32, #tpu.memory_space<vmem>>, %arg14: memref<1x1280xf32, #tpu.memory_space<vmem>>, %arg15: memref<320x1280xf32, #tpu.memory_space<vmem>>, %arg16: memref<1x1280xf32, #tpu.memory_space<vmem>>, %arg17: memref<320x1280xf32, #tpu.memory_space<vmem>>, %arg18: memref<1x1280xf32, #tpu.memory_space<vmem>>, %arg19: memref<1280x20xf32, #tpu.memory_space<vmem>>, %arg20: memref<20x1280xf32, #tpu.memory_space<vmem>>, %arg21: memref<1280x320xf32, #tpu.memory_space<vmem>>, %arg22: memref<320x160xf32, #tpu.memory_space<vmem>>, %arg23: memref<1x160xf32, #tpu.memory_space<vmem>>, %arg24: memref<1x160xf32, #tpu.memory_space<vmem>>, %arg25: memref<1x160xf32, #tpu.memory_space<vmem>>, %arg26: memref<160x80xf32, #tpu.memory_space<vmem>>, %arg27: memref<1x80xf32, #tpu.memory_space<vmem>>, %arg28: memref<1x80xf32, #tpu.memory_space<vmem>>, %arg29: memref<1x80xf32, #tpu.memory_space<vmem>>, %arg30: memref<80x160xf32, #tpu.memory_space<vmem>>, %arg31: memref<1x160xf32, #tpu.memory_space<vmem>>, %arg32: memref<160x26xf32, #tpu.memory_space<vmem>>, %arg33: memref<1x26xf32, #tpu.memory_space<vmem>>, %arg34: memref<64x32xf32, #tpu.memory_space<vmem>>, %arg35: memref<1x32xf32, #tpu.memory_space<vmem>>, %arg36: memref<32x128xf32, #tpu.memory_space<vmem>>, %arg37: memref<1x128xf32, #tpu.memory_space<vmem>>, %arg38: memref<2x26xf32, #tpu.memory_space<vmem>>, %arg39: memref<2x128xf32, #tpu.memory_space<vmem>>) attributes {dimension_semantics = [], scalar_prefetch = 0 : i64, scratch_operands = 0 : i64, tpu.core_type = #tpu.core_type<tc>} {
    %c0 = arith.constant 0 : index
    %c0_0 = arith.constant 0 : index
    %0 = vector.load %arg0[%c0, %c0_0] : memref<2x26xf32, #tpu.memory_space<vmem>>, vector<2x26xf32>
    %c0_1 = arith.constant 0 : index
    %c0_2 = arith.constant 0 : index
    %1 = vector.load %arg1[%c0_1, %c0_2] : memref<26x160xf32, #tpu.memory_space<vmem>>, vector<26x160xf32>
    %cst = arith.constant dense<0.000000e+00> : vector<2x160xf32>
    %2 = tpu.matmul %0, %1, %cst {dimension_numbers = #tpu.dot_dimension_numbers<[1], [0], [0], [1], [0, 0, 1, 1], [], []>} : vector<2x26xf32>, vector<26x160xf32>, vector<2x160xf32> -> vector<2x160xf32>
    %c0_3 = arith.constant 0 : index
    %c0_4 = arith.constant 0 : index
    %3 = vector.load %arg2[%c0_3, %c0_4] : memref<1x160xf32, #tpu.memory_space<vmem>>, vector<1x160xf32>
    %4 = vector.broadcast %3 : vector<1x160xf32> to vector<2x160xf32>
    %5 = arith.addf %2, %4 : vector<2x160xf32>
    %cst_5 = arith.constant 0.000000e+00 : f32
    %6 = vector.broadcast %cst_5 : f32 to vector<2x160xf32>
    %7 = arith.maximumf %5, %6 : vector<2x160xf32>
    %c0_6 = arith.constant 0 : index
    %c0_7 = arith.constant 0 : index
    %8 = vector.load %arg3[%c0_6, %c0_7] : memref<1x160xf32, #tpu.memory_space<vmem>>, vector<1x160xf32>
    %9 = vector.broadcast %8 : vector<1x160xf32> to vector<2x160xf32>
    %10 = arith.mulf %7, %9 : vector<2x160xf32>
    %c0_8 = arith.constant 0 : index
    %c0_9 = arith.constant 0 : index
    %11 = vector.load %arg4[%c0_8, %c0_9] : memref<1x160xf32, #tpu.memory_space<vmem>>, vector<1x160xf32>
    %12 = vector.broadcast %11 : vector<1x160xf32> to vector<2x160xf32>
    %13 = arith.addf %10, %12 : vector<2x160xf32>
    %c0_10 = arith.constant 0 : index
    %c0_11 = arith.constant 0 : index
    %14 = vector.load %arg5[%c0_10, %c0_11] : memref<160x160xf32, #tpu.memory_space<vmem>>, vector<160x160xf32>
    %cst_12 = arith.constant dense<0.000000e+00> : vector<2x160xf32>
    %15 = tpu.matmul %13, %14, %cst_12 {dimension_numbers = #tpu.dot_dimension_numbers<[1], [0], [0], [1], [0, 0, 1, 1], [], []>} : vector<2x160xf32>, vector<160x160xf32>, vector<2x160xf32> -> vector<2x160xf32>
    %c0_13 = arith.constant 0 : index
    %c0_14 = arith.constant 0 : index
    %16 = vector.load %arg6[%c0_13, %c0_14] : memref<1x160xf32, #tpu.memory_space<vmem>>, vector<1x160xf32>
    %17 = vector.broadcast %16 : vector<1x160xf32> to vector<2x160xf32>
    %18 = arith.addf %15, %17 : vector<2x160xf32>
    %cst_15 = arith.constant 0.000000e+00 : f32
    %19 = vector.broadcast %cst_15 : f32 to vector<2x160xf32>
    %20 = arith.maximumf %18, %19 : vector<2x160xf32>
    %c0_16 = arith.constant 0 : index
    %c0_17 = arith.constant 0 : index
    %21 = vector.load %arg7[%c0_16, %c0_17] : memref<1x160xf32, #tpu.memory_space<vmem>>, vector<1x160xf32>
    %22 = vector.broadcast %21 : vector<1x160xf32> to vector<2x160xf32>
    %23 = arith.mulf %20, %22 : vector<2x160xf32>
    %c0_18 = arith.constant 0 : index
    %c0_19 = arith.constant 0 : index
    %24 = vector.load %arg8[%c0_18, %c0_19] : memref<1x160xf32, #tpu.memory_space<vmem>>, vector<1x160xf32>
    %25 = vector.broadcast %24 : vector<1x160xf32> to vector<2x160xf32>
    %26 = arith.addf %23, %25 : vector<2x160xf32>
    %c0_20 = arith.constant 0 : index
    %c0_21 = arith.constant 0 : index
    %27 = vector.load %arg9[%c0_20, %c0_21] : memref<160x320xf32, #tpu.memory_space<vmem>>, vector<160x320xf32>
    %cst_22 = arith.constant dense<0.000000e+00> : vector<2x320xf32>
    %28 = tpu.matmul %26, %27, %cst_22 {dimension_numbers = #tpu.dot_dimension_numbers<[1], [0], [0], [1], [0, 0, 1, 1], [], []>} : vector<2x160xf32>, vector<160x320xf32>, vector<2x320xf32> -> vector<2x320xf32>
    %c0_23 = arith.constant 0 : index
    %c0_24 = arith.constant 0 : index
    %29 = vector.load %arg10[%c0_23, %c0_24] : memref<1x320xf32, #tpu.memory_space<vmem>>, vector<1x320xf32>
    %30 = vector.broadcast %29 : vector<1x320xf32> to vector<2x320xf32>
    %31 = arith.addf %28, %30 : vector<2x320xf32>
    %cst_25 = arith.constant 0.000000e+00 : f32
    %32 = vector.broadcast %cst_25 : f32 to vector<2x320xf32>
    %33 = arith.maximumf %31, %32 : vector<2x320xf32>
    %c0_26 = arith.constant 0 : index
    %c0_27 = arith.constant 0 : index
    %34 = vector.load %arg11[%c0_26, %c0_27] : memref<1x320xf32, #tpu.memory_space<vmem>>, vector<1x320xf32>
    %35 = vector.broadcast %34 : vector<1x320xf32> to vector<2x320xf32>
    %36 = arith.mulf %33, %35 : vector<2x320xf32>
    %c0_28 = arith.constant 0 : index
    %c0_29 = arith.constant 0 : index
    %37 = vector.load %arg12[%c0_28, %c0_29] : memref<1x320xf32, #tpu.memory_space<vmem>>, vector<1x320xf32>
    %38 = vector.broadcast %37 : vector<1x320xf32> to vector<2x320xf32>
    %39 = arith.addf %36, %38 : vector<2x320xf32>
    %c0_30 = arith.constant 0 : index
    %c0_31 = arith.constant 0 : index
    %40 = vector.load %arg13[%c0_30, %c0_31] : memref<320x1280xf32, #tpu.memory_space<vmem>>, vector<320x1280xf32>
    %cst_32 = arith.constant dense<0.000000e+00> : vector<2x1280xf32>
    %41 = tpu.matmul %39, %40, %cst_32 {dimension_numbers = #tpu.dot_dimension_numbers<[1], [0], [0], [1], [0, 0, 1, 1], [], []>} : vector<2x320xf32>, vector<320x1280xf32>, vector<2x1280xf32> -> vector<2x1280xf32>
    %c0_33 = arith.constant 0 : index
    %c0_34 = arith.constant 0 : index
    %42 = vector.load %arg14[%c0_33, %c0_34] : memref<1x1280xf32, #tpu.memory_space<vmem>>, vector<1x1280xf32>
    %43 = vector.broadcast %42 : vector<1x1280xf32> to vector<2x1280xf32>
    %44 = arith.addf %41, %43 : vector<2x1280xf32>
    %c0_35 = arith.constant 0 : index
    %c0_36 = arith.constant 0 : index
    %45 = vector.load %arg15[%c0_35, %c0_36] : memref<320x1280xf32, #tpu.memory_space<vmem>>, vector<320x1280xf32>
    %cst_37 = arith.constant dense<0.000000e+00> : vector<2x1280xf32>
    %46 = tpu.matmul %39, %45, %cst_37 {dimension_numbers = #tpu.dot_dimension_numbers<[1], [0], [0], [1], [0, 0, 1, 1], [], []>} : vector<2x320xf32>, vector<320x1280xf32>, vector<2x1280xf32> -> vector<2x1280xf32>
    %c0_38 = arith.constant 0 : index
    %c0_39 = arith.constant 0 : index
    %47 = vector.load %arg16[%c0_38, %c0_39] : memref<1x1280xf32, #tpu.memory_space<vmem>>, vector<1x1280xf32>
    %48 = vector.broadcast %47 : vector<1x1280xf32> to vector<2x1280xf32>
    %49 = arith.addf %46, %48 : vector<2x1280xf32>
    %c0_40 = arith.constant 0 : index
    %c0_41 = arith.constant 0 : index
    %50 = vector.load %arg17[%c0_40, %c0_41] : memref<320x1280xf32, #tpu.memory_space<vmem>>, vector<320x1280xf32>
    %cst_42 = arith.constant dense<0.000000e+00> : vector<2x1280xf32>
    %51 = tpu.matmul %39, %50, %cst_42 {dimension_numbers = #tpu.dot_dimension_numbers<[1], [0], [0], [1], [0, 0, 1, 1], [], []>} : vector<2x320xf32>, vector<320x1280xf32>, vector<2x1280xf32> -> vector<2x1280xf32>
    %c0_43 = arith.constant 0 : index
    %c0_44 = arith.constant 0 : index
    %52 = vector.load %arg18[%c0_43, %c0_44] : memref<1x1280xf32, #tpu.memory_space<vmem>>, vector<1x1280xf32>
    %53 = vector.broadcast %52 : vector<1x1280xf32> to vector<2x1280xf32>
    %54 = arith.addf %51, %53 : vector<2x1280xf32>
    %c0_45 = arith.constant 0 : index
    %c0_46 = arith.constant 0 : index
    %55 = vector.load %arg19[%c0_45, %c0_46] : memref<1280x20xf32, #tpu.memory_space<vmem>>, vector<1280x20xf32>
    %c0_47 = arith.constant 0 : index
    %c0_48 = arith.constant 0 : index
    %56 = vector.load %arg20[%c0_47, %c0_48] : memref<20x1280xf32, #tpu.memory_space<vmem>>, vector<20x1280xf32>
    %57 = tpu.iota {dimensions = array<i32: 0>} : vector<2x1280xi32>
    %c0_i32 = arith.constant 0 : i32
    %58 = vector.broadcast %c0_i32 : i32 to vector<2x1280xi32>
    %59 = arith.cmpi eq, %57, %58 : vector<2x1280xi32>
    %cst_49 = arith.constant 0.000000e+00 : f32
    %60 = vector.broadcast %cst_49 : f32 to vector<2x1280xf32>
    %61 = arith.select %59, %49, %60 : vector<2x1280xi1>, vector<2x1280xf32>
    %cst_50 = arith.constant dense<0.000000e+00> : vector<1280xf32>
    %62 = vector.multi_reduction <add>, %61, %cst_50 [0] : vector<2x1280xf32> to vector<1280xf32>
    %63 = vector.shape_cast %62 : vector<1280xf32> to vector<1x1280xf32>
    %64 = vector.broadcast %63 : vector<1x1280xf32> to vector<2x1280xf32>
    %65 = arith.mulf %44, %64 : vector<2x1280xf32>
    %cst_51 = arith.constant dense<0.000000e+00> : vector<2x20xf32>
    %66 = tpu.matmul %65, %55, %cst_51 {dimension_numbers = #tpu.dot_dimension_numbers<[1], [0], [0], [1], [0, 0, 1, 1], [], []>} : vector<2x1280xf32>, vector<1280x20xf32>, vector<2x20xf32> -> vector<2x20xf32>
    %cst_52 = arith.constant 1.250000e-01 : f32
    %67 = vector.broadcast %cst_52 : f32 to vector<2x20xf32>
    %68 = arith.mulf %66, %67 : vector<2x20xf32>
    %69 = tpu.iota {dimensions = array<i32: 0>} : vector<2x1280xi32>
    %c1_i32 = arith.constant 1 : i32
    %70 = vector.broadcast %c1_i32 : i32 to vector<2x1280xi32>
    %71 = arith.cmpi eq, %69, %70 : vector<2x1280xi32>
    %cst_53 = arith.constant 0.000000e+00 : f32
    %72 = vector.broadcast %cst_53 : f32 to vector<2x1280xf32>
    %73 = arith.select %71, %49, %72 : vector<2x1280xi1>, vector<2x1280xf32>
    %cst_54 = arith.constant dense<0.000000e+00> : vector<1280xf32>
    %74 = vector.multi_reduction <add>, %73, %cst_54 [0] : vector<2x1280xf32> to vector<1280xf32>
    %75 = vector.shape_cast %74 : vector<1280xf32> to vector<1x1280xf32>
    %76 = vector.broadcast %75 : vector<1x1280xf32> to vector<2x1280xf32>
    %77 = arith.mulf %44, %76 : vector<2x1280xf32>
    %cst_55 = arith.constant dense<0.000000e+00> : vector<2x20xf32>
    %78 = tpu.matmul %77, %55, %cst_55 {dimension_numbers = #tpu.dot_dimension_numbers<[1], [0], [0], [1], [0, 0, 1, 1], [], []>} : vector<2x1280xf32>, vector<1280x20xf32>, vector<2x20xf32> -> vector<2x20xf32>
    %cst_56 = arith.constant 1.250000e-01 : f32
    %79 = vector.broadcast %cst_56 : f32 to vector<2x20xf32>
    %80 = arith.mulf %78, %79 : vector<2x20xf32>
    %81 = arith.maximumf %68, %80 : vector<2x20xf32>
    %82 = arith.subf %68, %81 : vector<2x20xf32>
    %83 = math.exp %82 : vector<2x20xf32>
    %84 = arith.subf %80, %81 : vector<2x20xf32>
    %85 = math.exp %84 : vector<2x20xf32>
    %86 = arith.addf %83, %85 : vector<2x20xf32>
    %87 = arith.divf %83, %86 : vector<2x20xf32>
    %cst_57 = arith.constant dense<0.000000e+00> : vector<2x1280xf32>
    %88 = tpu.matmul %87, %56, %cst_57 {dimension_numbers = #tpu.dot_dimension_numbers<[1], [0], [0], [1], [0, 0, 1, 1], [], []>} : vector<2x20xf32>, vector<20x1280xf32>, vector<2x1280xf32> -> vector<2x1280xf32>
    %89 = tpu.iota {dimensions = array<i32: 0>} : vector<2x1280xi32>
    %c0_i32_58 = arith.constant 0 : i32
    %90 = vector.broadcast %c0_i32_58 : i32 to vector<2x1280xi32>
    %91 = arith.cmpi eq, %89, %90 : vector<2x1280xi32>
    %cst_59 = arith.constant 0.000000e+00 : f32
    %92 = vector.broadcast %cst_59 : f32 to vector<2x1280xf32>
    %93 = arith.select %91, %54, %92 : vector<2x1280xi1>, vector<2x1280xf32>
    %cst_60 = arith.constant dense<0.000000e+00> : vector<1280xf32>
    %94 = vector.multi_reduction <add>, %93, %cst_60 [0] : vector<2x1280xf32> to vector<1280xf32>
    %95 = vector.shape_cast %94 : vector<1280xf32> to vector<1x1280xf32>
    %96 = vector.broadcast %95 : vector<1x1280xf32> to vector<2x1280xf32>
    %97 = arith.mulf %88, %96 : vector<2x1280xf32>
    %98 = arith.divf %85, %86 : vector<2x20xf32>
    %cst_61 = arith.constant dense<0.000000e+00> : vector<2x1280xf32>
    %99 = tpu.matmul %98, %56, %cst_61 {dimension_numbers = #tpu.dot_dimension_numbers<[1], [0], [0], [1], [0, 0, 1, 1], [], []>} : vector<2x20xf32>, vector<20x1280xf32>, vector<2x1280xf32> -> vector<2x1280xf32>
    %100 = tpu.iota {dimensions = array<i32: 0>} : vector<2x1280xi32>
    %c1_i32_62 = arith.constant 1 : i32
    %101 = vector.broadcast %c1_i32_62 : i32 to vector<2x1280xi32>
    %102 = arith.cmpi eq, %100, %101 : vector<2x1280xi32>
    %cst_63 = arith.constant 0.000000e+00 : f32
    %103 = vector.broadcast %cst_63 : f32 to vector<2x1280xf32>
    %104 = arith.select %102, %54, %103 : vector<2x1280xi1>, vector<2x1280xf32>
    %cst_64 = arith.constant dense<0.000000e+00> : vector<1280xf32>
    %105 = vector.multi_reduction <add>, %104, %cst_64 [0] : vector<2x1280xf32> to vector<1280xf32>
    %106 = vector.shape_cast %105 : vector<1280xf32> to vector<1x1280xf32>
    %107 = vector.broadcast %106 : vector<1x1280xf32> to vector<2x1280xf32>
    %108 = arith.mulf %99, %107 : vector<2x1280xf32>
    %109 = arith.addf %97, %108 : vector<2x1280xf32>
    %c0_65 = arith.constant 0 : index
    %c0_66 = arith.constant 0 : index
    %110 = vector.load %arg21[%c0_65, %c0_66] : memref<1280x320xf32, #tpu.memory_space<vmem>>, vector<1280x320xf32>
    %cst_67 = arith.constant dense<0.000000e+00> : vector<2x320xf32>
    %111 = tpu.matmul %109, %110, %cst_67 {dimension_numbers = #tpu.dot_dimension_numbers<[1], [0], [0], [1], [0, 0, 1, 1], [], []>} : vector<2x1280xf32>, vector<1280x320xf32>, vector<2x320xf32> -> vector<2x320xf32>
    %112 = arith.addf %39, %111 : vector<2x320xf32>
    %c0_68 = arith.constant 0 : index
    %c0_69 = arith.constant 0 : index
    %113 = vector.load %arg22[%c0_68, %c0_69] : memref<320x160xf32, #tpu.memory_space<vmem>>, vector<320x160xf32>
    %cst_70 = arith.constant dense<0.000000e+00> : vector<2x160xf32>
    %114 = tpu.matmul %112, %113, %cst_70 {dimension_numbers = #tpu.dot_dimension_numbers<[1], [0], [0], [1], [0, 0, 1, 1], [], []>} : vector<2x320xf32>, vector<320x160xf32>, vector<2x160xf32> -> vector<2x160xf32>
    %c0_71 = arith.constant 0 : index
    %c0_72 = arith.constant 0 : index
    %115 = vector.load %arg23[%c0_71, %c0_72] : memref<1x160xf32, #tpu.memory_space<vmem>>, vector<1x160xf32>
    %116 = vector.broadcast %115 : vector<1x160xf32> to vector<2x160xf32>
    %117 = arith.addf %114, %116 : vector<2x160xf32>
    %cst_73 = arith.constant 0.000000e+00 : f32
    %118 = vector.broadcast %cst_73 : f32 to vector<2x160xf32>
    %119 = arith.maximumf %117, %118 : vector<2x160xf32>
    %c0_74 = arith.constant 0 : index
    %c0_75 = arith.constant 0 : index
    %120 = vector.load %arg24[%c0_74, %c0_75] : memref<1x160xf32, #tpu.memory_space<vmem>>, vector<1x160xf32>
    %121 = vector.broadcast %120 : vector<1x160xf32> to vector<2x160xf32>
    %122 = arith.mulf %119, %121 : vector<2x160xf32>
    %c0_76 = arith.constant 0 : index
    %c0_77 = arith.constant 0 : index
    %123 = vector.load %arg25[%c0_76, %c0_77] : memref<1x160xf32, #tpu.memory_space<vmem>>, vector<1x160xf32>
    %124 = vector.broadcast %123 : vector<1x160xf32> to vector<2x160xf32>
    %125 = arith.addf %122, %124 : vector<2x160xf32>
    %c0_78 = arith.constant 0 : index
    %c0_79 = arith.constant 0 : index
    %126 = vector.load %arg26[%c0_78, %c0_79] : memref<160x80xf32, #tpu.memory_space<vmem>>, vector<160x80xf32>
    %cst_80 = arith.constant dense<0.000000e+00> : vector<2x80xf32>
    %127 = tpu.matmul %125, %126, %cst_80 {dimension_numbers = #tpu.dot_dimension_numbers<[1], [0], [0], [1], [0, 0, 1, 1], [], []>} : vector<2x160xf32>, vector<160x80xf32>, vector<2x80xf32> -> vector<2x80xf32>
    %c0_81 = arith.constant 0 : index
    %c0_82 = arith.constant 0 : index
    %128 = vector.load %arg27[%c0_81, %c0_82] : memref<1x80xf32, #tpu.memory_space<vmem>>, vector<1x80xf32>
    %129 = vector.broadcast %128 : vector<1x80xf32> to vector<2x80xf32>
    %130 = arith.addf %127, %129 : vector<2x80xf32>
    %cst_83 = arith.constant 0.000000e+00 : f32
    %131 = vector.broadcast %cst_83 : f32 to vector<2x80xf32>
    %132 = arith.maximumf %130, %131 : vector<2x80xf32>
    %c0_84 = arith.constant 0 : index
    %c0_85 = arith.constant 0 : index
    %133 = vector.load %arg28[%c0_84, %c0_85] : memref<1x80xf32, #tpu.memory_space<vmem>>, vector<1x80xf32>
    %134 = vector.broadcast %133 : vector<1x80xf32> to vector<2x80xf32>
    %135 = arith.mulf %132, %134 : vector<2x80xf32>
    %c0_86 = arith.constant 0 : index
    %c0_87 = arith.constant 0 : index
    %136 = vector.load %arg29[%c0_86, %c0_87] : memref<1x80xf32, #tpu.memory_space<vmem>>, vector<1x80xf32>
    %137 = vector.broadcast %136 : vector<1x80xf32> to vector<2x80xf32>
    %138 = arith.addf %135, %137 : vector<2x80xf32>
    %c0_88 = arith.constant 0 : index
    %c0_89 = arith.constant 0 : index
    %139 = vector.load %arg30[%c0_88, %c0_89] : memref<80x160xf32, #tpu.memory_space<vmem>>, vector<80x160xf32>
    %cst_90 = arith.constant dense<0.000000e+00> : vector<2x160xf32>
    %140 = tpu.matmul %138, %139, %cst_90 {dimension_numbers = #tpu.dot_dimension_numbers<[1], [0], [0], [1], [0, 0, 1, 1], [], []>} : vector<2x80xf32>, vector<80x160xf32>, vector<2x160xf32> -> vector<2x160xf32>
    %c0_91 = arith.constant 0 : index
    %c0_92 = arith.constant 0 : index
    %141 = vector.load %arg31[%c0_91, %c0_92] : memref<1x160xf32, #tpu.memory_space<vmem>>, vector<1x160xf32>
    %142 = vector.broadcast %141 : vector<1x160xf32> to vector<2x160xf32>
    %143 = arith.addf %140, %142 : vector<2x160xf32>
    %cst_93 = arith.constant 0.000000e+00 : f32
    %144 = vector.broadcast %cst_93 : f32 to vector<2x160xf32>
    %145 = arith.maximumf %143, %144 : vector<2x160xf32>
    %c0_94 = arith.constant 0 : index
    %c0_95 = arith.constant 0 : index
    %146 = vector.load %arg32[%c0_94, %c0_95] : memref<160x26xf32, #tpu.memory_space<vmem>>, vector<160x26xf32>
    %cst_96 = arith.constant dense<0.000000e+00> : vector<2x26xf32>
    %147 = tpu.matmul %145, %146, %cst_96 {dimension_numbers = #tpu.dot_dimension_numbers<[1], [0], [0], [1], [0, 0, 1, 1], [], []>} : vector<2x160xf32>, vector<160x26xf32>, vector<2x26xf32> -> vector<2x26xf32>
    %c0_97 = arith.constant 0 : index
    %c0_98 = arith.constant 0 : index
    %148 = vector.load %arg33[%c0_97, %c0_98] : memref<1x26xf32, #tpu.memory_space<vmem>>, vector<1x26xf32>
    %149 = vector.broadcast %148 : vector<1x26xf32> to vector<2x26xf32>
    %150 = arith.addf %147, %149 : vector<2x26xf32>
    %c0_99 = arith.constant 0 : index
    %c0_100 = arith.constant 0 : index
    %151 = vector.load %arg38[%c0_99, %c0_100] : memref<2x26xf32, #tpu.memory_space<vmem>>, vector<2x26xf32>
    tpu.vector_store %arg38[%c0_99, %c0_100], %150 {strides = array<i32>} : memref<2x26xf32, #tpu.memory_space<vmem>>, vector<2x26xf32>,
    %152 = vector.extract_strided_slice %112 {offsets = [0, 256], sizes = [2, 64], strides = [1, 1]} : vector<2x320xf32> to vector<2x64xf32>
    %c0_101 = arith.constant 0 : index
    %c0_102 = arith.constant 0 : index
    %153 = vector.load %arg34[%c0_101, %c0_102] : memref<64x32xf32, #tpu.memory_space<vmem>>, vector<64x32xf32>
    %cst_103 = arith.constant dense<0.000000e+00> : vector<2x32xf32>
    %154 = tpu.matmul %152, %153, %cst_103 {dimension_numbers = #tpu.dot_dimension_numbers<[1], [0], [0], [1], [0, 0, 1, 1], [], []>} : vector<2x64xf32>, vector<64x32xf32>, vector<2x32xf32> -> vector<2x32xf32>
    %c0_104 = arith.constant 0 : index
    %c0_105 = arith.constant 0 : index
    %155 = vector.load %arg35[%c0_104, %c0_105] : memref<1x32xf32, #tpu.memory_space<vmem>>, vector<1x32xf32>
    %156 = vector.broadcast %155 : vector<1x32xf32> to vector<2x32xf32>
    %157 = arith.addf %154, %156 : vector<2x32xf32>
    %cst_106 = arith.constant 0.000000e+00 : f32
    %158 = vector.broadcast %cst_106 : f32 to vector<2x32xf32>
    %159 = arith.maximumf %157, %158 : vector<2x32xf32>
    %c0_107 = arith.constant 0 : index
    %c0_108 = arith.constant 0 : index
    %160 = vector.load %arg36[%c0_107, %c0_108] : memref<32x128xf32, #tpu.memory_space<vmem>>, vector<32x128xf32>
    %cst_109 = arith.constant dense<0.000000e+00> : vector<2x128xf32>
    %161 = tpu.matmul %159, %160, %cst_109 {dimension_numbers = #tpu.dot_dimension_numbers<[1], [0], [0], [1], [0, 0, 1, 1], [], []>} : vector<2x32xf32>, vector<32x128xf32>, vector<2x128xf32> -> vector<2x128xf32>
    %c0_110 = arith.constant 0 : index
    %c0_111 = arith.constant 0 : index
    %162 = vector.load %arg37[%c0_110, %c0_111] : memref<1x128xf32, #tpu.memory_space<vmem>>, vector<1x128xf32>
    %163 = vector.broadcast %162 : vector<1x128xf32> to vector<2x128xf32>
    %164 = arith.addf %161, %163 : vector<2x128xf32>
    %c0_112 = arith.constant 0 : index
    %c0_113 = arith.constant 0 : index
    %165 = vector.load %arg39[%c0_112, %c0_113] : memref<2x128xf32, #tpu.memory_space<vmem>>, vector<2x128xf32>
    tpu.vector_store %arg39[%c0_112, %c0_113], %164 {strides = array<i32>} : memref<2x128xf32, #tpu.memory_space<vmem>>, vector<2x128xf32>,
    return
  }
}

</mosaic_0001>

<bundles_post_ra>
// kernel: style_classifier_forward.2
= control target key start
LH: loop header
LB: loop body
LE: loop exit
PB: predicated region body
PF: predicated region fallthrough
CT: control target
= control target key end

     0   :  { %s2194_s0 = inlined_call_operand.vmem [shape: f32[32,3], index: 0, kind: input, shape index: {}]   ;;  %s2195_s1 = inlined_call_operand.vmem [shape: f32[2,32], index: 1, kind: input, shape index: {}]   ;;  %s2196_s2 = inlined_call_operand.vmem [shape: f32[32,2], index: 2, kind: input, shape index: {}]   ;;  %s2197_s3 = inlined_call_operand.hbm [shape: f32[3,64], index: 3, kind: input, shape index: {}]   ;;  %s2198_s4 = inlined_call_operand.vmem [shape: f32[64,8], index: 4, kind: input, shape index: {}]   ;;  %s2199_s5 = inlined_call_operand.hbm [shape: f32[1,8], index: 5, kind: input, shape index: {}]   ;;  %s2200_s6 = inlined_call_operand.vmem [shape: f32[8,1], index: 6, kind: input, shape index: {}]   ;;  %s2201_s7 = inlined_call_operand.<no memory space> [shape: f32[1,1], index: 7, kind: input, shape index: {}]   ;;  %s2202_s8 = inlined_call_operand.vmem [shape: f32[64,8], index: 8, kind: input, shape index: {}]   ;;  %s2203_s9 = inlined_call_operand.hbm [shape: f32[1,8], index: 9, kind: input, shape index: {}]   ;;  %s2204_s10 = inlined_call_operand.hbm [shape: f32[8,64], index: 10, kind: input, shape index: {}]   ;;  %s2205_s11 = inlined_call_operand.hbm [shape: f32[1,64], index: 11, kind: input, shape index: {}]   ;;  %s2206_s12 = inlined_call_operand.vmem [shape: f32[64,32], index: 12, kind: input, shape index: {}]   ;;  %s2207_s13 = inlined_call_operand.hbm [shape: f32[1,32], index: 13, kind: input, shape index: {}]   ;;  %s2208_s14 = inlined_call_operand.hbm [shape: f32[1,32], index: 14, kind: input, shape index: {}]   ;;  %s2209_s15 = inlined_call_operand.hbm [shape: f32[1,32], index: 15, kind: input, shape index: {}]   ;;  %s2210_s16 = inlined_call_operand.hbm [shape: f32[32,26], index: 16, kind: input, shape index: {}]   ;;  %s2211_s17 = inlined_call_operand.hbm [shape: f32[1,26], index: 17, kind: input, shape index: {}]   ;;  %s2212_s18 = inlined_call_operand.vmem [shape: f32[2,26], index: 18, kind: output, shape index: {}]  }
   0x1   :  { %2215 = sst [smem:[#allocation25_spill]] %s2194_s0  ;;  %v23_v0 = vstv %s2201_s7 }
   0x2   :  { %2216 = sst [smem:[#allocation26_spill]] %s2195_s1  ;;  %24 = vst [vmem:[#allocation2] sm:$0x1] %v23_v0 }
   0x3   :  { %2217 = sst [smem:[#allocation27_spill]] %s2196_s2 }
   0x4   :  { %25 = vsyncpa [#allocation4], 0 }
   0x5   :  { %26 = vsyncpa [#allocation6], 0 }
   0x6   :  { %27 = vsyncpa [#allocation9], 0 }
   0x7   :  { %28 = vsyncpa [#allocation12], 0 }
   0x8   :  { %29 = vsyncpa [#allocation15], 0 }
   0x9   :  { %30 = vsyncpa [#allocation18], 0  ;;  %s1785_s29 = smov [#allocation5]   ;;  %s1786_s0 = smov [#allocation8]  }
   0xa   :  { %s55_s30 = sshll.u32 %s1785_s29, 4  ;;  %s81_s19 = sshll.u32 %s1786_s0, 4  ;;  %s56_s30 = int_to_ptr.vmem [resolvable:$true] %s55_s30  ;;  %s82_s19 = int_to_ptr.vmem [resolvable:$true] %s81_s19 }
   0xb   :  { %s1553_s21 = scalar_lea.hbm %s2199_s5, 16 }
   0xc   :  { %p1554_p0 = scmp.ne.s32.totalorder %s2199_s5, %s1553_s21  ;;  %p1557_p1 = scmp.lt.u32.totalorder %s1553_s21, %s2199_s5 }
   0xe   :  { %p1559_p2 = pnand %p1557_p1, %p1554_p0 }
  0x10   :  { %1562 = shalt.err (!%p1559_p2)
}
  0x11   :  { %s1563_s24 = scalar_lea.vmem %s56_s30, 16  ;;  %s1567_s25 = scalar_lea.vmem %s56_s30, 32 }
  0x12   :  { %p1564_p3 = scmp.ne.s32.totalorder %s56_s30, %s1563_s24  ;;  %p1568_p4 = scmp.lt.s32.totalorder %s56_s30, %s56_s30 }
  0x13   :  { %p1569_p5 = scmp.lt.s32.totalorder %s1567_s25, %s1563_s24 }
  0x15   :  { %p1570_p6 = por %p1569_p5, %p1568_p4 }
  0x17   :  { %p1571_p7 = pnand %p1570_p6, %p1564_p3 }
  0x19   :  { %1574 = shalt.err (!%p1571_p7)
}
  0x1a   :  { %58 = dma.hbm_to_vmem [thread:$0]  %s2199_s5, 16, %s56_s30, [#allocation6]  }
  0x1b   :  { %s1575_s0 = scalar_lea.hbm %s2204_s10, 128 }
  0x1c   :  { %p1576_p8 = scmp.ne.s32.totalorder %s2204_s10, %s1575_s0  ;;  %p1579_p9 = scmp.lt.u32.totalorder %s1575_s0, %s2204_s10 }
  0x1e   :  { %p1581_p10 = pnand %p1579_p9, %p1576_p8 }
  0x20   :  { %1584 = shalt.err (!%p1581_p10)
}
  0x21   :  { %s1585_s2 = scalar_lea.vmem %s82_s19, 128  ;;  %p1590_p12 = scmp.lt.s32.totalorder %s82_s19, %s82_s19 }
  0x22   :  { %p1586_p11 = scmp.ne.s32.totalorder %s82_s19, %s1585_s2  ;;  %p1591_p13 = scmp.lt.s32.totalorder %s1585_s2, %s1585_s2 }
  0x24   :  { %p1592_p0 = por %p1591_p13, %p1590_p12 }
  0x26   :  { %p1593_p1 = pnand %p1592_p0, %p1586_p11 }
  0x28   :  { %1596 = shalt.err (!%p1593_p1)
}
  0x29   :  { %84 = dma.hbm_to_vmem [thread:$0]  %s2204_s10, 128, %s82_s19, [#allocation9]  }
  0x2a   :  { %s1787_s7 = smov [#allocation11]   ;;  %s1788_s24 = smov [#allocation14]  }
  0x2b   :  { %s103_s23 = sshll.u32 %s1787_s7, 4  ;;  %s123_s25 = sshll.u32 %s1788_s24, 4  ;;  %s104_s23 = int_to_ptr.vmem [resolvable:$true] %s103_s23  ;;  %s124_s25 = int_to_ptr.vmem [resolvable:$true] %s123_s25 }
  0x2c   :  { %s1597_s28 = scalar_lea.hbm %s2207_s13, 16 }
  0x2d   :  { %p1598_p2 = scmp.ne.s32.totalorder %s2207_s13, %s1597_s28  ;;  %p1601_p3 = scmp.lt.u32.totalorder %s1597_s28, %s2207_s13 }
  0x2f   :  { %p1603_p4 = pnand %p1601_p3, %p1598_p2 }
  0x31   :  { %1606 = shalt.err (!%p1603_p4)
}
  0x32   :  { %s1607_s10 = scalar_lea.vmem %s104_s23, 16  ;;  %s1611_s19 = scalar_lea.vmem %s104_s23, 32 }
  0x33   :  { %p1608_p5 = scmp.ne.s32.totalorder %s104_s23, %s1607_s10  ;;  %p1612_p6 = scmp.lt.s32.totalorder %s104_s23, %s104_s23 }
  0x34   :  { %p1613_p7 = scmp.lt.s32.totalorder %s1611_s19, %s1607_s10 }
  0x36   :  { %p1614_p8 = por %p1613_p7, %p1612_p6 }
  0x38   :  { %p1615_p9 = pnand %p1614_p8, %p1608_p5 }
  0x3a   :  { %1618 = shalt.err (!%p1615_p9)
}
  0x3b   :  { %106 = dma.hbm_to_vmem [thread:$0]  %s2207_s13, 16, %s104_s23, [#allocation12]  }
  0x3c   :  { %s1619_s30 = scalar_lea.hbm %s2209_s15, 16 }
  0x3d   :  { %p1620_p10 = scmp.ne.s32.totalorder %s2209_s15, %s1619_s30  ;;  %p1623_p11 = scmp.lt.u32.totalorder %s1619_s30, %s2209_s15 }
  0x3f   :  { %p1625_p12 = pnand %p1623_p11, %p1620_p10 }
  0x41   :  { %1628 = shalt.err (!%p1625_p12)
}
  0x42   :  { %s1629_s28 = scalar_lea.vmem %s124_s25, 16  ;;  %s1633_s29 = scalar_lea.vmem %s124_s25, 32 }
  0x43   :  { %p1630_p13 = scmp.ne.s32.totalorder %s124_s25, %s1629_s28  ;;  %p1634_p0 = scmp.lt.s32.totalorder %s124_s25, %s124_s25 }
  0x44   :  { %p1635_p1 = scmp.lt.s32.totalorder %s1633_s29, %s1629_s28 }
  0x46   :  { %p1636_p2 = por %p1635_p1, %p1634_p0 }
  0x48   :  { %p1637_p3 = pnand %p1636_p2, %p1630_p13 }
  0x4a   :  { %1640 = shalt.err (!%p1637_p3)
}
  0x4b   :  { %126 = dma.hbm_to_vmem [thread:$0]  %s2209_s15, 16, %s124_s25, [#allocation15]  }
  0x4c   :  { %s1789_s0 = smov [#allocation3]   ;;  %s1790_s20 = smov [#allocation7]  }
  0x4d   :  { %s43_s1 = sshll.u32 %s1789_s0, 4  ;;  %s71_s10 = sshll.u32 %s1790_s20, 4  ;;  %s44_s1 = int_to_ptr.vmem [resolvable:$true] %s43_s1  ;;  %s72_s10 = int_to_ptr.vmem [resolvable:$true] %s71_s10 }
  0x4e   :  { %s1641_s22 = scalar_lea.hbm %s2197_s3, 64 }
  0x4f   :  { %p1642_p4 = scmp.ne.s32.totalorder %s2197_s3, %s1641_s22  ;;  %p1645_p5 = scmp.lt.u32.totalorder %s1641_s22, %s2197_s3 }
  0x51   :  { %p1647_p6 = pnand %p1645_p5, %p1642_p4 }
  0x53   :  { %1650 = shalt.err (!%p1647_p6)
}
  0x54   :  { %s1651_s15 = scalar_lea.vmem %s44_s1, 64  ;;  %p1656_p8 = scmp.lt.s32.totalorder %s44_s1, %s44_s1 }
  0x55   :  { %p1652_p7 = scmp.ne.s32.totalorder %s44_s1, %s1651_s15  ;;  %p1657_p9 = scmp.lt.s32.totalorder %s1651_s15, %s1651_s15 }
  0x57   :  { %p1658_p10 = por %p1657_p9, %p1656_p8 }
  0x59   :  { %p1659_p11 = pnand %p1658_p10, %p1652_p7 }
  0x5b   :  { %1662 = shalt.err (!%p1659_p11)
}
  0x5c   :  { %46 = dma.hbm_to_vmem [thread:$0]  %s2197_s3, 64, %s44_s1, [#allocation4]  }
  0x5d   :  { %s1663_s28 = scalar_lea.hbm %s2203_s9, 16 }
  0x5e   :  { %p1664_p12 = scmp.ne.s32.totalorder %s2203_s9, %s1663_s28  ;;  %p1667_p13 = scmp.lt.u32.totalorder %s1663_s28, %s2203_s9 }
  0x60   :  { %p1669_p0 = pnand %p1667_p13, %p1664_p12 }
  0x62   :  { %1672 = shalt.err (!%p1669_p0)
}
  0x63   :  { %s1673_s20 = scalar_lea.vmem %s72_s10, 16  ;;  %s1677_s19 = scalar_lea.vmem %s72_s10, 32 }
  0x64   :  { %p1674_p1 = scmp.ne.s32.totalorder %s72_s10, %s1673_s20  ;;  %p1678_p2 = scmp.lt.s32.totalorder %s72_s10, %s72_s10 }
  0x65   :  { %p1679_p3 = scmp.lt.s32.totalorder %s1677_s19, %s1673_s20 }
  0x67   :  { %p1680_p4 = por %p1679_p3, %p1678_p2 }
  0x69   :  { %p1681_p5 = pnand %p1680_p4, %p1674_p1 }
  0x6b   :  { %1684 = shalt.err (!%p1681_p5)
}
  0x6c   :  { %74 = dma.hbm_to_vmem [thread:$0]  %s2203_s9, 16, %s72_s10, [#allocation6]  }
  0x6d   :  { %s1791_s21 = smov [#allocation10]   ;;  %s1792_s2 = smov [#allocation13]  }
  0x6e   :  { %s91_s22 = sshll.u32 %s1791_s21, 4  ;;  %s113_s5 = sshll.u32 %s1792_s2, 4  ;;  %s92_s22 = int_to_ptr.vmem [resolvable:$true] %s91_s22  ;;  %s114_s5 = int_to_ptr.vmem [resolvable:$true] %s113_s5 }
  0x6f   :  { %s1685_s15 = scalar_lea.hbm %s2205_s11, 16 }
  0x70   :  { %p1686_p6 = scmp.ne.s32.totalorder %s2205_s11, %s1685_s15  ;;  %p1689_p7 = scmp.lt.u32.totalorder %s1685_s15, %s2205_s11 }
  0x72   :  { %p1691_p8 = pnand %p1689_p7, %p1686_p6 }
  0x74   :  { %1694 = shalt.err (!%p1691_p8)
}
  0x75   :  { %s1695_s9 = scalar_lea.vmem %s92_s22, 16  ;;  %s1699_s10 = scalar_lea.vmem %s92_s22, 32 }
  0x76   :  { %p1696_p9 = scmp.ne.s32.totalorder %s92_s22, %s1695_s9  ;;  %p1700_p10 = scmp.lt.s32.totalorder %s92_s22, %s92_s22 }
  0x77   :  { %p1701_p11 = scmp.lt.s32.totalorder %s1699_s10, %s1695_s9 }
  0x79   :  { %p1702_p12 = por %p1701_p11, %p1700_p10 }
  0x7b   :  { %p1703_p13 = pnand %p1702_p12, %p1696_p9 }
  0x7d   :  { %1706 = shalt.err (!%p1703_p13)
}
  0x7e   :  { %94 = dma.hbm_to_vmem [thread:$0]  %s2205_s11, 16, %s92_s22, [#allocation9]  }
  0x7f   :  { %s1707_s0 = scalar_lea.hbm %s2208_s14, 16 }
  0x80   :  { %p1708_p0 = scmp.ne.s32.totalorder %s2208_s14, %s1707_s0  ;;  %p1711_p1 = scmp.lt.u32.totalorder %s1707_s0, %s2208_s14 }
  0x82   :  { %p1713_p2 = pnand %p1711_p1, %p1708_p0 }
  0x84   :  { %1716 = shalt.err (!%p1713_p2)
}
  0x85   :  { %s1717_s21 = scalar_lea.vmem %s114_s5, 16  ;;  %s1721_s2 = scalar_lea.vmem %s114_s5, 32 }
  0x86   :  { %p1718_p3 = scmp.ne.s32.totalorder %s114_s5, %s1717_s21  ;;  %p1722_p4 = scmp.lt.s32.totalorder %s114_s5, %s114_s5 }
  0x87   :  { %p1723_p5 = scmp.lt.s32.totalorder %s1721_s2, %s1717_s21 }
  0x89   :  { %p1724_p6 = por %p1723_p5, %p1722_p4 }
  0x8b   :  { %p1725_p7 = pnand %p1724_p6, %p1718_p3 }
  0x8d   :  { %1728 = shalt.err (!%p1725_p7)
}
  0x8e   :  { %116 = dma.hbm_to_vmem [thread:$0]  %s2208_s14, 16, %s114_s5, [#allocation12]  }
  0x8f   :  { %s1793_s30 = smov [#allocation16]   ;;  %s1729_s24 = scalar_lea.hbm %s2210_s16, 512 }
  0x90   :  { %s132_s7 = sshll.u32 %s1793_s30, 4  ;;  %p1730_p8 = scmp.ne.s32.totalorder %s2210_s16, %s1729_s24  ;;  %s133_s7 = int_to_ptr.vmem [resolvable:$true] %s132_s7 }
  0x91   :  { %p1733_p9 = scmp.lt.u32.totalorder %s1729_s24, %s2210_s16 }
  0x93   :  { %p1735_p10 = pnand %p1733_p9, %p1730_p8 }
  0x95   :  { %1738 = shalt.err (!%p1735_p10)
}
  0x96   :  { %s1739_s28 = scalar_lea.vmem %s133_s7, 512  ;;  %p1744_p12 = scmp.lt.s32.totalorder %s133_s7, %s133_s7 }
  0x97   :  { %p1740_p11 = scmp.ne.s32.totalorder %s133_s7, %s1739_s28  ;;  %p1745_p13 = scmp.lt.s32.totalorder %s1739_s28, %s1739_s28 }
  0x99   :  { %p1746_p0 = por %p1745_p13, %p1744_p12 }
  0x9b   :  { %p1747_p1 = pnand %p1746_p0, %p1740_p11 }
  0x9d   :  { %1750 = shalt.err (!%p1747_p1)
}
  0x9e   :  { %s1794_s14 = smov 128   ;;  %s1795_s5 = smov 8  }
  0x9f   :  { %138 = dma.hbm_to_vmem [thread:$0]  %s2210_s16, 512, %s133_s7, [#allocation15], %s1794_s14, %s1794_s14, %s1795_s5  }
  0xa0   :  { %s1796_s23 = smov [#allocation17]   ;;  %s1751_s3 = scalar_lea.hbm %s2211_s17, 16 }
  0xa1   :  { %s145_s0 = sshll.u32 %s1796_s23, 4  ;;  %p1752_p2 = scmp.ne.s32.totalorder %s2211_s17, %s1751_s3  ;;  %s146_s0 = int_to_ptr.vmem [resolvable:$true] %s145_s0 }
  0xa2   :  { %p1755_p3 = scmp.lt.u32.totalorder %s1751_s3, %s2211_s17 }
  0xa4   :  { %p1757_p4 = pnand %p1755_p3, %p1752_p2 }
  0xa6   :  { %1760 = shalt.err (!%p1757_p4)
}
  0xa7   :  { %s1761_s22 = scalar_lea.vmem %s146_s0, 16  ;;  %s1765_s16 = scalar_lea.vmem %s146_s0, 32 }
  0xa8   :  { %p1762_p5 = scmp.ne.s32.totalorder %s146_s0, %s1761_s22  ;;  %p1766_p6 = scmp.lt.s32.totalorder %s146_s0, %s146_s0 }
  0xa9   :  { %p1767_p7 = scmp.lt.s32.totalorder %s1765_s16, %s1761_s22 }
  0xab   :  { %p1768_p8 = por %p1767_p7, %p1766_p6 }
  0xad   :  { %p1769_p9 = pnand %p1768_p8, %p1762_p5 }
  0xaf   :  { %1772 = shalt.err (!%p1769_p9)
}
  0xb0   :  { %148 = dma.hbm_to_vmem [thread:$0]  %s2211_s17, 16, %s146_s0, [#allocation18]  }
  0xb1   :  { %1773 = dma.done.wait [#allocation4], 64  }
  0xb2   :  { %1774 = vsyncadd [#allocation4], 4294967232 }
  0xb3   :  { %1775 = dma.done.wait [#allocation6], 32  }
  0xb4   :  { %1776 = vsyncadd [#allocation6], 4294967264 }
  0xb5   :  { %1777 = dma.done.wait [#allocation9], 144  }
  0xb6   :  { %1778 = vsyncadd [#allocation9], 4294967152 }
  0xb7   :  { %1779 = dma.done.wait [#allocation12], 32  }
  0xb8   :  { %1780 = vsyncadd [#allocation12], 4294967264 }
  0xb9   :  { %1781 = dma.done.wait [#allocation15], 528  }
  0xba   :  { %1782 = vsyncadd [#allocation15], 4294966768 }
  0xbb   :  { %1783 = dma.done.wait [#allocation18], 16  }
  0xbc   :  { %1784 = vsyncadd [#allocation18], 4294967280  ;;  %vm197_vm0 = vcmask 1042432   ;;  %vm184_vm1 = vcmask 23552   ;;  %v183_v1 = vld [vmem:[#allocation3] sm:$0x7] }
  0xbd   :  { %s2218_s24 = sld [smem:[#allocation25_spill]]  ;;  %1328 = vmatprep.subr.msk.mxu0 %vm197_vm0, %v183_v1  ;;  %v286_v5 = vld [vmem:[%s2198_s4] sm:$0xff]  ;;  %v287_v6 = vld [vmem:[%s2198_s4 + $0x8] sm:$0xff]  ;;  %v288_v7 = vld [vmem:[%s2198_s4 + $0x10] sm:$0xff]  ;;  %vm301_vm2 = vcmask 523264   ;;  %v1797_v25 = vmov 0.0|0.0  }
  0xbe   :  { %1329 = vmatpush3.msk.msra.mxu0 %vm197_vm0, %v183_v1  ;;  %v289_v8 = vld [vmem:[%s2198_s4 + $0x18] sm:$0xff]  ;;  %v1453_v9 = vpack.c.bf16 %v287_v6, %v286_v5  ;;  %v290_v12 = vld [vmem:[%s2198_s4 + $0x20] sm:$0xff]  ;;  %v291_v13 = vld [vmem:[%s2198_s4 + $0x28] sm:$0xff]  ;;  %vm1798_vm3 = vmmov 0   ;;  %v1799_v26 = vmov 0.0   ;;  %vm411_vm4 = vcmask 64512  }
  0xbf   :  { %v1457_v10 = vpack.c.bf16 %v289_v8, %v288_v7  ;;  %v1461_v14 = vpack.c.bf16 %v291_v13, %v290_v12  ;;  %v292_v15 = vld [vmem:[%s2198_s4 + $0x30] sm:$0xff]  ;;  %v293_v16 = vld [vmem:[%s2198_s4 + $0x38] sm:$0xff]  ;;  %v403_v24 = vld [vmem:[%s2200_s6] sm:$0xff]  ;;  %s2219_s14 = sld [smem:[#allocation26_spill]]  ;;  %vm534_vm5 = vcmask 261120   ;;  %v1800_v53 = vmov 0  }
  0xc0   :  { %1454 = vmatprep.subr.bf16.mxu1 %v1453_v9  ;;  %v1465_v17 = vpack.c.bf16 %v293_v16, %v292_v15  ;;  %1358 = vmatprep.subr.mxu0 %v403_v24  ;;  %v608_v27 = vld [vmem:[%s2202_s8] sm:$0xff]  ;;  %v609_v28 = vld [vmem:[%s2202_s8 + $0x8] sm:$0xff]  ;;  %v610_v29 = vld [vmem:[%s2202_s8 + $0x10] sm:$0xff]  ;;  %s2220_s21 = sld [smem:[#allocation27_spill]]  ;;  %vm788_vm6 = vcmask 15360   ;;  %vm801_vm7 = vcmask 1041408  }
  0xc1   :  { %1456 = vmatpush3.bf16.msra.mxu1 %v1453_v9  ;;  %v1476_v30 = vpack.c.bf16 %v609_v28, %v608_v27  ;;  %v611_v31 = vld [vmem:[%s2202_s8 + $0x18] sm:$0xff]  ;;  %v1228_v33 = vld [vmem:[#allocation5] ss:$0 sm:$0xff]  ;;  %v613_v48 = vld [vmem:[%s2202_s8 + $0x28] sm:$0xff]  ;;  %1531 = vset.pattern.permute.xlu0 %v1800_v53  ;;  %vm1211_vm8 = vcmask 205824  }
  0xc2   :  { %1458 = vmatprep.subr.bf16.mxu1 %v1457_v10  ;;  %v1479_v32 = vpack.c.bf16 %v611_v31, %v610_v29  ;;  %v612_v47 = vld [vmem:[%s2202_s8 + $0x20] sm:$0xff]  ;;  %v614_v50 = vld [vmem:[%s2202_s8 + $0x30] sm:$0xff]  ;;  %v615_v51 = vld [vmem:[%s2202_s8 + $0x38] sm:$0xff]  ;;  %1532 = vset.pattern.permute.xlu1 %v1800_v53 }
  0xc3   :  { %v179_v2 = vld [vmem:[%s2218_s24] sm:$0xff]  ;;  %v180_v3 = vld [vmem:[%s2218_s24 + $0x8] sm:$0xff]  ;;  %v181_v4 = vld [vmem:[%s2218_s24 + $0x10] sm:$0xff]  ;;  %v1482_v49 = vpack.c.bf16 %v613_v48, %v612_v47  ;;  %v1485_v52 = vpack.c.bf16 %v615_v51, %v614_v50 }
  0xc4   :  { %1330 = vmatprep.mubr.msk.f32.mxu0 %vm184_vm1, %v179_v2  ;;  %v182_v11 = vld [vmem:[%s2218_s24 + $0x18] sm:$0xff]  ;;  %v1233_v54 = vld [vmem:[#allocation2] ss:$0 sm:$0xff]  ;;  %v923_v48 = vld [vmem:[%s2206_s12 + $0x28] sm:$0xff] }
  0xc5   :  { %1331 = vmatmul.mubr.msk.f32.vlgmr.msra.gmra.mrb[0].mxu0 %vm184_vm1, %v180_v3  ;;  %1460 = vmatpush3.bf16.msra.mxu1 %v1457_v10  ;;  %v2110_v46 = vld [vmem:[%s2219_s14] sm:$0x3]  ;;  %v924_v51 = vld [vmem:[%s2206_s12 + $0x30] sm:$0xff] }
  0xc6   :  { %1333 = vmatprep.mubr.msk.f32.mxu0 %vm184_vm1, %v181_v4  ;;  %1462 = vmatprep.subr.bf16.mxu1 %v1461_v14  ;;  %v784_v29 = vld [vmem:[%s2220_s21] sm:$0xff] }
  0xc7   :  { %1359 = vmatpush3.msra.mxu0 %v403_v24  ;;  %v922_v47 = vld [vmem:[%s2206_s12 + $0x20] sm:$0xff] }
  0xc8   :  { %1469 = vmatprep.subr.bf16.mxu0 %v1797_v25  ;;  %v1495_v50 = vpack.c.bf16 %v923_v48, %v922_v47 }
  0xc9   :  { %1334 = vmatmul.mubr.msk.f32.gmra.mrb[2].mxu0 %vm184_vm1, %v182_v11  ;;  %1464 = vmatpush3.bf16.msra.mxu1 %v1461_v14 }
  0xca   :  { %1466 = vmatprep.subr.bf16.mxu1 %v1465_v17 }
  0xcd   :  { %1468 = vmatpush3.bf16.msra.mxu1 %v1465_v17  ;;  %v697_v17 = vld [vmem:[#allocation8] sm:$0xff] }
  0xce   :  { %1475 = vmatprep.subr.bf16.mxu1 %v1797_v25 }
 0x198   :  { %v2059_v18 = vpop.f32.mrb[0].mxu0 }
 0x199   :  { %v2061_v19 = vpop.f32.mrb[1].mxu0 }
 0x19a   :  { %v1470_v20 = vpack.c.bf16 %v2059_v18, %v2061_v19  ;;  %1352 = vmatprep.mubr.msk.f32.mxu1 %vm301_vm2, %v2061_v19 }
 0x19b   :  { %1353 = vmatmul.mubr.msk.f32.vlgmr.msra.gmra.mrb[0].mxu1 %vm301_vm2, %v2059_v18 }
 0x19c   :  { %v2069_v21 = vpop.f32.mrb[2].mxu0  ;;  %1477 = vmatpush3.bf16.msra.mxu1 %v1476_v30  ;;  %v1245_v30 = vld [vmem:[#allocation10] ss:$0 sm:$0xff] }
 0x19d   :  { %v2071_v22 = vpop.f32.mrb[3].mxu0  ;;  %1478 = vmatprep.subr.bf16.mxu1 %v1797_v25 }
 0x19e   :  { %v1473_v23 = vpack.c.bf16 %v2069_v21, %v2071_v22  ;;  %1355 = vmatprep.mubr.msk.f32.mxu1 %vm301_vm2, %v2071_v22 }
 0x19f   :  { %1356 = vmatmul.mubr.msk.f32.gmra.mrb[2].mxu1 %vm301_vm2, %v2069_v21 }
 0x1a0   :  { %1393 = vmatprep.mubr.msk.f32.mxu1 %vm1798_vm3, %v1799_v26  ;;  %1480 = vmatpush3.bf16.msra.mxu1 %v1479_v32 }
 0x1a1   :  { %1481 = vmatprep.subr.bf16.mxu1 %v1797_v25 }
 0x1a4   :  { %1483 = vmatpush3.bf16.msra.mxu1 %v1482_v49  ;;  %v787_v49 = vld [vmem:[%s2220_s21 + $0x18] sm:$0xff] }
 0x1a5   :  { %1484 = vmatprep.subr.bf16.mxu1 %v1797_v25 }
 0x1a8   :  { %1486 = vmatpush3.bf16.msra.mxu1 %v1485_v52  ;;  %v925_v52 = vld [vmem:[%s2206_s12 + $0x38] sm:$0xff] }
 0x1a9   :  { %1503 = vmatprep.subr.bf16.mxu1 %v1797_v25  ;;  %v1499_v53 = vpack.c.bf16 %v925_v52, %v924_v51 }
 0x26e   :  { %v1354_v34 = vpop.f32.mrb[0].mxu1 }
 0x26f   :  { %v386_v35 = vadd.f32 %v1354_v34, %v1228_v33  ;;  %v380_v36 = vpop.f32.mrb[1].mxu1 }
 0x270   :  { %v381_v37 = vadd.f32 %v1228_v33, %v380_v36 }
 0x271   :  { %v400_v40 = vmax.f32 %v386_v35, 0.0 }
 0x272   :  { %v399_v38 = vmax.f32 %v381_v37, 0.0  ;;  %v1357_v39 = vpop.f32.mrb[2].mxu1  ;;  %v918_v37 = vld [vmem:[%s2206_s12] sm:$0xff] }
 0x273   :  { %v396_v41 = vadd.f32 %v1357_v39, %v1228_v33  ;;  %v390_v42 = vpop.f32.mrb[3].mxu1  ;;  %v920_v39 = vld [vmem:[%s2206_s12 + $0x10] sm:$0xff] }
 0x274   :  { %v391_v43 = vadd.f32 %v1228_v33, %v390_v42  ;;  %1360 = vmatprep.mubr.msk.f32.mxu0 %vm411_vm4, %v399_v38  ;;  %v919_v38 = vld [vmem:[%s2206_s12 + $0x8] sm:$0xff] }
 0x275   :  { %1361 = vmatmul.mubr.msk.f32.vlgmr.msra.gmra.mrb[4].mxu0 %vm411_vm4, %v400_v40  ;;  %v402_v45 = vmax.f32 %v396_v41, 0.0  ;;  %v921_v40 = vld [vmem:[%s2206_s12 + $0x18] sm:$0xff]  ;;  %v1487_v41 = vpack.c.bf16 %v919_v38, %v918_v37 }
 0x276   :  { %v401_v44 = vmax.f32 %v391_v43, 0.0  ;;  %1471 = vmatpush3.bf16.msra.mxu0 %v1470_v20  ;;  %v1243_v20 = vld [vmem:[#allocation7] ss:$0 sm:$0xff]  ;;  %v785_v43 = vld [vmem:[%s2220_s21 + $0x8] sm:$0xff]  ;;  %v1129_v37 = vld [vmem:[#allocation16 + $0x18] sm:$0xff] }
 0x277   :  { %1472 = vmatprep.subr.bf16.mxu0 %v1797_v25 }
 0x278   :  { %1363 = vmatprep.mubr.msk.f32.mxu0 %vm411_vm4, %v401_v44  ;;  %v786_v44 = vld [vmem:[%s2220_s21 + $0x10] sm:$0xff] }
 0x279   :  { %1364 = vmatmul.mubr.msk.f32.gmra.mrb[6].mxu0 %vm411_vm4, %v402_v45  ;;  %v1491_v45 = vpack.c.bf16 %v921_v40, %v920_v39 }
 0x27a   :  { %1474 = vmatpush3.bf16.msra.mxu0 %v1473_v23  ;;  %1374 = vmatprep.mubr.msk.f32.mxu0 %vm1798_vm3, %v1799_v26 }
 0x27b   :  { %1396 = vmatprep.subr.mxu0 %v1799_v26 }
 0x27d   :  { %1375 = vmatmul.mubr.msk.f32.vlgmr.msra.gmra.mrb[8].mxu0 %vm534_vm5, %v2110_v46 }
 0x27e   :  { %1398 = vmatprep.mubr.msk.f32.mxu0 %vm1798_vm3, %v1799_v26  ;;  %1397 = vmatpush3.msra.mxu0 %v697_v17 }
 0x348   :  { %v1362_v55 = vpop.f32.mrb[4].mxu0 }
 0x349   :  { %v496_v56 = vadd.f32 %v1362_v55, %v1233_v54  ;;  %v490_v57 = vpop.f32.mrb[5].mxu0 }
 0x34a   :  { %v491_v58 = vadd.f32 %v1233_v54, %v490_v57 }
 0x34b   :  { %v1239_v59 = vmul.f32 -1.442695, %v496_v56 }
 0x34c   :  { %v1238_v60 = vmul.f32 -1.442695, %v491_v58  ;;  %v1365_v61 = vpop.f32.mrb[6].mxu0 }
 0x34d   :  { %1533 = vpow2.f32 %v1239_v59  ;;  %v506_v62 = vadd.f32 %v1365_v61, %v1233_v54  ;;  %v500_v63 = vpop.f32.mrb[7].mxu0 }
 0x34e   :  { %1535 = vpow2.f32 %v1238_v60  ;;  %v501_v0 = vadd.f32 %v1233_v54, %v500_v63 }
 0x34f   :  { %v1241_v1 = vmul.f32 -1.442695, %v506_v62 }
 0x350   :  { %v1240_v2 = vmul.f32 -1.442695, %v501_v0  ;;  %v604_v3 = vpop.f32.mrb[8].mxu0 }
 0x351   :  { %1537 = vpow2.f32 %v1241_v1  ;;  %v1376_v4 = vpop.f32.mrb[9].mxu0  ;;  %1394 = vmatmul.mubr.msk.f32.vlgmr.msra.gmra.mrb[4].mxu1 %vm301_vm2, %v604_v3 }
 0x352   :  { %1539 = vpow2.f32 %v1240_v2  ;;  %1439 = vmatprep.mubr.msk.f32.mxu1 %vm1798_vm3, %v1799_v26 }
 0x357   :  { %v1534_v5 = vpop.eup %1533 }
 0x358   :  { %v1536_v6 = vpop.eup %1535  ;;  %v522_v8 = vadd.f32 1.0, %v1534_v5 }
 0x359   :  { %v521_v7 = vadd.f32 1.0, %v1536_v6 }
 0x35b   :  { %v1538_v9 = vpop.eup %1537  ;;  %1541 = vrcp.f32 %v521_v7 }
 0x35c   :  { %v1540_v10 = vpop.eup %1539  ;;  %1543 = vrcp.f32 %v522_v8  ;;  %v524_v12 = vadd.f32 1.0, %v1538_v9  ;;  %v1258_v8 = vld [vmem:[#allocation13] ss:$0 sm:$0xff] }
 0x35d   :  { %v523_v11 = vadd.f32 1.0, %v1540_v10 }
 0x35f   :  { %1545 = vrcp.f32 %v523_v11 }
 0x360   :  { %1547 = vrcp.f32 %v524_v12 }
 0x365   :  { %v1542_v13 = vpop.eup %1541 }
 0x366   :  { %892 = vperm.xlu0 %1531, %v1542_v13   ;;  %v1544_v14 = vpop.eup %1543 }
 0x369   :  { %v1546_v15 = vpop.eup %1545 }
 0x36a   :  { %897 = vperm.xlu0 %1531, %v1544_v14   ;;  %902 = vperm.xlu1 %1532, %v1546_v15   ;;  %v1548_v16 = vpop.eup %1547 }
 0x36e   :  { %907 = vperm.xlu1 %1532, %v1548_v16  }
 0x3e5   :  { %v893_v54 = vpop.permute.xlu0 %892 }
 0x3e6   :  { %v910_v58 = vmul.f32 %v893_v54, %v2061_v19 }
 0x3e9   :  { %v903_v55 = vpop.permute.xlu1 %902  ;;  %v898_v56 = vpop.permute.xlu0 %897 }
 0x3ea   :  { %v911_v57 = vmul.f32 %v2059_v18, %v898_v56  ;;  %v912_v1 = vmul.f32 %v903_v55, %v2071_v22  ;;  %v1253_v18 = vld [vmem:[#allocation11] ss:$0 sm:$0xff]  ;;  %v1259_v22 = vld [vmem:[#allocation14] ss:$0 sm:$0xff] }
 0x3ed   :  { %v908_v59 = vpop.permute.xlu1 %907 }
 0x3ee   :  { %v913_v0 = vmul.f32 %v2069_v21, %v908_v59 }
 0x424   :  { %v692_v23 = vpop.f32.mrb[4].mxu1 }
 0x425   :  { %v693_v24 = vadd.f32 %v1243_v20, %v692_v23  ;;  %v1395_v27 = vpop.f32.mrb[5].mxu1 }
 0x427   :  { %v696_v28 = vmax.f32 %v693_v24, 0.0 }
 0x429   :  { %1399 = vmatmul.mubr.msk.f32.vlgmr.msra.gmra.mrb[10].mxu0 %vm411_vm4, %v696_v28 }
 0x42a   :  { %1403 = vmatprep.mubr.msk.f32.mxu0 %vm788_vm6, %v784_v29 }
 0x4fc   :  { %v774_v31 = vpop.f32.mrb[10].mxu0 }
 0x4fd   :  { %v775_v32 = vadd.f32 %v1245_v30, %v774_v31  ;;  %v1400_v33 = vpop.f32.mrb[11].mxu0 }
 0x4fe   :  { %v1127_v33 = vld [vmem:[#allocation16 + $0x8] sm:$0xff] }
 0x4ff   :  { %v1247_v34 = vmul.f32 -1.442695, %v775_v32  ;;  %v1126_v32 = vld [vmem:[#allocation16] sm:$0xff] }
 0x501   :  { %1549 = vpow2.f32 %v1247_v34 }
 0x50b   :  { %v1550_v35 = vpop.eup %1549 }
 0x50c   :  { %v781_v36 = vadd.f32 1.0, %v1550_v35  ;;  %v1510_v35 = vpack.c.bf16 %v1127_v33, %v1126_v32 }
 0x50e   :  { %1551 = vrcp.f32 %v781_v36  ;;  %v1128_v36 = vld [vmem:[#allocation16 + $0x10] sm:$0xff] }
 0x50f   :  { %v1513_v38 = vpack.c.bf16 %v1129_v37, %v1128_v36 }
 0x518   :  { %v1552_v42 = vpop.eup %1551 }
 0x519   :  { %1401 = vmatprep.subr.msk.mxu0 %vm801_vm7, %v1552_v42 }
 0x51a   :  { %1402 = vmatpush3.msk.msra.mxu0 %vm801_vm7, %v1552_v42 }
 0x51b   :  { %1404 = vmatmul.mubr.msk.f32.vlgmr.msra.gmra.mrb[12].mxu0 %vm788_vm6, %v785_v43  ;;  %1488 = vmatprep.subr.bf16.mxu0 %v1487_v41 }
 0x51c   :  { %1406 = vmatprep.mubr.msk.f32.mxu0 %vm788_vm6, %v786_v44  ;;  %1490 = vmatpush3.bf16.msra.mxu0 %v1487_v41  ;;  %v1261_v41 = vld [vmem:[#allocation17] ss:$0 sm:$0xff] }
 0x51d   :  { %1492 = vmatprep.subr.bf16.mxu0 %v1491_v45 }
 0x51f   :  { %1407 = vmatmul.mubr.msk.f32.gmra.mrb[14].mxu0 %vm788_vm6, %v787_v49 }
 0x520   :  { %1494 = vmatpush3.bf16.msra.mxu0 %v1491_v45 }
 0x521   :  { %1496 = vmatprep.subr.bf16.mxu0 %v1495_v50 }
 0x524   :  { %1498 = vmatpush3.bf16.msra.mxu0 %v1495_v50 }
 0x525   :  { %1500 = vmatprep.subr.bf16.mxu0 %v1499_v53 }
 0x528   :  { %1502 = vmatpush3.bf16.msra.mxu0 %v1499_v53 }
 0x5ee   :  { %v1405_v60 = vpop.f32.mrb[12].mxu0 }
 0x5ef   :  { %v915_v61 = vmul.f32 %v1405_v60, %v911_v57  ;;  %v871_v62 = vpop.f32.mrb[13].mxu0 }
 0x5f0   :  { %v914_v63 = vmul.f32 %v910_v58, %v871_v62 }
 0x5f2   :  { %v1408_v2 = vpop.f32.mrb[14].mxu0  ;;  %1425 = vmatprep.mubr.msk.f32.mxu0 %vm301_vm2, %v914_v63 }
 0x5f3   :  { %v917_v3 = vmul.f32 %v1408_v2, %v913_v0  ;;  %v881_v4 = vpop.f32.mrb[15].mxu0  ;;  %1426 = vmatmul.mubr.msk.f32.vlgmr.msra.gmra.mrb[16].mxu0 %vm301_vm2, %v915_v61 }
 0x5f4   :  { %v916_v5 = vmul.f32 %v912_v1, %v881_v4 }
 0x5f6   :  { %1428 = vmatprep.mubr.msk.f32.mxu0 %vm301_vm2, %v916_v5 }
 0x5f7   :  { %1429 = vmatmul.mubr.msk.f32.gmra.mrb[18].mxu0 %vm301_vm2, %v917_v3 }
 0x6c6   :  { %v1427_v19 = vpop.f32.mrb[16].mxu0 }
 0x6c7   :  { %v1017_v6 = vadd.f32 %v1427_v19, %v1253_v18  ;;  %v1011_v7 = vpop.f32.mrb[17].mxu0 }
 0x6c8   :  { %v1012_v21 = vadd.f32 %v1253_v18, %v1011_v7 }
 0x6c9   :  { %v1031_v9 = vmax.f32 %v1017_v6, 0.0 }
 0x6ca   :  { %v1030_v10 = vmax.f32 %v1012_v21, 0.0  ;;  %v1430_v11 = vpop.f32.mrb[18].mxu0 }
 0x6cb   :  { %v1042_v12 = vmul.f32 %v1258_v8, %v1031_v9  ;;  %v1027_v13 = vadd.f32 %v1430_v11, %v1253_v18  ;;  %v1021_v14 = vpop.f32.mrb[19].mxu0 }
 0x6cc   :  { %v1041_v15 = vmul.f32 %v1258_v8, %v1030_v10  ;;  %v1022_v16 = vadd.f32 %v1253_v18, %v1021_v14 }
 0x6cd   :  { %v1053_v17 = vadd.f32 %v1259_v22, %v1042_v12  ;;  %v1033_v20 = vmax.f32 %v1027_v13, 0.0 }
 0x6ce   :  { %v1052_v23 = vadd.f32 %v1259_v22, %v1041_v15  ;;  %v1032_v24 = vmax.f32 %v1022_v16, 0.0 }
 0x6cf   :  { %v1044_v27 = vmul.f32 %v1258_v8, %v1033_v20 }
 0x6d0   :  { %v1504_v28 = vpack.c.bf16 %v1053_v17, %v1052_v23  ;;  %v1043_v29 = vmul.f32 %v1258_v8, %v1032_v24 }
 0x6d1   :  { %v1055_v30 = vadd.f32 %v1259_v22, %v1044_v27 }
 0x6d2   :  { %v1054_v31 = vadd.f32 %v1259_v22, %v1043_v29  ;;  %1505 = vmatpush3.bf16.msra.mxu1 %v1504_v28 }
 0x6d3   :  { %1506 = vmatprep.subr.bf16.mxu1 %v1797_v25 }
 0x6d4   :  { %v1507_v34 = vpack.c.bf16 %v1055_v30, %v1054_v31 }
 0x6d6   :  { %1508 = vmatpush3.bf16.msra.mxu1 %v1507_v34 }
 0x6d7   :  { %1509 = vmatprep.subr.bf16.mxu1 %v1797_v25 }
 0x6d9   :  { %1440 = vmatmul.mubr.msk.f32.vlgmr.msra.gmra.mrb[6].mxu1 %vm534_vm5, %v2110_v46 }
 0x6da   :  { %1511 = vmatpush3.bf16.msra.mxu1 %v1510_v35  ;;  %1450 = vmatprep.mubr.msk.f32.mxu1 %vm1798_vm3, %v1799_v26 }
 0x6db   :  { %1512 = vmatprep.subr.bf16.mxu1 %v1797_v25 }
 0x6de   :  { %1514 = vmatpush3.bf16.msra.mxu1 %v1513_v38 }
 0x7ac   :  { %v1122_v39 = vpop.f32.mrb[6].mxu1 }
 0x7ad   :  { %v1441_v40 = vpop.f32.mrb[7].mxu1  ;;  %1451 = vmatmul.mubr.msk.f32.vlgmr.msra.gmra.mrb[8].mxu1 %vm534_vm5, %v1122_v39 }
 0x880   :  { %v1206_v42 = vpop.f32.mrb[8].mxu1 }
 0x881   :  { %v1207_v43 = vadd.f32 %v1261_v41, %v1206_v42  ;;  %v1452_v44 = vpop.f32.mrb[9].mxu1 }
 0x883   :  { %v1210_v45 = vmax.f32 %v1207_v43, 0.0 }
 0x885   :  { %1212 = vst.msk [vmem:[%s2212_s18] sm:$0x3] %vm1211_vm8, %v1210_v45 }
 0x886   :  { %1217 = vsyncpa [#allocation4], 1 }
 0x887   :  { %1218 = vsyncpa [#allocation6], 1 }
 0x888   :  { %1219 = vsyncpa [#allocation9], 1 }
 0x889   :  { %1220 = vsyncpa [#allocation12], 1 }
 0x88a   :  { %1221 = vsyncpa [#allocation15], 1 }
 0x88b   :  { %1222 = vsyncpa [#allocation18], 1 }

// kernel: style_classifier_forward.3
= control target key start
LH: loop header
LB: loop body
LE: loop exit
PB: predicated region body
PF: predicated region fallthrough
CT: control target
= control target key end

     0   :  { %s11408_s6 = smov 1   ;;  %s11409_s10 = smov 2   ;;  %s14684_s0 = inlined_call_operand.smem [shape: u32[40], index: -1, kind: input, shape index: {}] }
   0x1   :  { %s11463_s5 = sld [smem:[%s14684_s0]]   ;;  %s11410_s14 = smov 3  }
   0x2   :  { %s11468_s9 = sld [smem:[%s14684_s0 + %s11408_s6]]   ;;  %s11411_s18 = smov 4  }
   0x3   :  { %s11473_s13 = sld [smem:[%s14684_s0 + %s11409_s10]]   ;;  %s11412_s22 = smov 5  }
   0x4   :  { %s11478_s17 = sld [smem:[%s14684_s0 + %s11410_s14]]   ;;  %s11413_s26 = smov 6  }
   0x5   :  { %s11483_s21 = sld [smem:[%s14684_s0 + %s11411_s18]]   ;;  %s11414_s30 = smov 7  }
   0x6   :  { %s11488_s25 = sld [smem:[%s14684_s0 + %s11412_s22]]   ;;  %s11415_s4 = smov 8  }
   0x7   :  { %s11493_s29 = sld [smem:[%s14684_s0 + %s11413_s26]]   ;;  %s11416_s10 = smov 9  }
   0x8   :  { %s11498_s3 = sld [smem:[%s14684_s0 + %s11414_s30]]   ;;  %s11417_s15 = smov 10  }
   0x9   :  { %s11503_s8 = sld [smem:[%s14684_s0 + %s11415_s4]]   ;;  %s11418_s20 = smov 11  }
   0xa   :  { %s11508_s14 = sld [smem:[%s14684_s0 + %s11416_s10]]   ;;  %s11419_s26 = smov 12  }
   0xb   :  { %s11513_s19 = sld [smem:[%s14684_s0 + %s11417_s15]]   ;;  %s11420_s1 = smov 13  }
   0xc   :  { %s11518_s24 = sld [smem:[%s14684_s0 + %s11418_s20]]   ;;  %s11421_s7 = smov 14  }
   0xd   :  { %s11523_s30 = sld [smem:[%s14684_s0 + %s11419_s26]]   ;;  %s11422_s15 = smov 15  }
   0xe   :  { %s11528_s6 = sld [smem:[%s14684_s0 + %s11420_s1]]   ;;  %s11423_s22 = smov 16  }
   0xf   :  { %s11533_s12 = sld [smem:[%s14684_s0 + %s11421_s7]]   ;;  %s11424_s28 = smov 17  }
  0x10   :  { %s11538_s20 = sld [smem:[%s14684_s0 + %s11422_s15]]   ;;  %s11425_s7 = smov 18  }
  0x11   :  { %s11543_s27 = sld [smem:[%s14684_s0 + %s11423_s22]]   ;;  %s11426_s15 = smov 19  }
  0x12   :  { %s11548_s4 = sld [smem:[%s14684_s0 + %s11424_s28]]   ;;  %s11427_s22 = smov 20  }
  0x13   :  { %14741 = sst [smem:[#allocation8_spill]] %s11523_s30  ;;  %s11428_s28 = smov 21  }
  0x14   :  { %s11568_s30 = sld [smem:[%s14684_s0 + %s11428_s28]]   ;;  %s11432_s28 = smov 25  }
  0x15   :  { %14742 = sst [smem:[#allocation9_spill]] %s11533_s12 }
  0x16   :  { %14743 = sst [smem:[#allocation10_spill]] %s11538_s20 }
  0x17   :  { %14744 = sst [smem:[#allocation11_spill]] %s11543_s27 }
  0x18   :  { %s11553_s12 = sld [smem:[%s14684_s0 + %s11425_s7]]   ;;  %s11429_s7 = smov 22  }
  0x19   :  { %s11558_s20 = sld [smem:[%s14684_s0 + %s11426_s15]]   ;;  %s11430_s15 = smov 23  }
  0x1a   :  { %s11563_s27 = sld [smem:[%s14684_s0 + %s11427_s22]]   ;;  %s11431_s22 = smov 24  }
  0x1b   :  { %14748 = sst [smem:[#allocation15_spill]] %s11568_s30 }
  0x1c   :  { %s11588_s30 = sld [smem:[%s14684_s0 + %s11432_s28]]   ;;  %s11436_s28 = smov 29  }
  0x1e   :  { %14745 = sst [smem:[#allocation12_spill]] %s11553_s12 }
  0x1f   :  { %14746 = sst [smem:[#allocation13_spill]] %s11558_s20 }
  0x20   :  { %14747 = sst [smem:[#allocation14_spill]] %s11563_s27 }
  0x21   :  { %s11573_s12 = sld [smem:[%s14684_s0 + %s11429_s7]]   ;;  %s11433_s7 = smov 26  }
  0x22   :  { %s11578_s20 = sld [smem:[%s14684_s0 + %s11430_s15]]   ;;  %s11434_s15 = smov 27  }
  0x23   :  { %s11583_s27 = sld [smem:[%s14684_s0 + %s11431_s22]]   ;;  %s11435_s22 = smov 28  }
  0x24   :  { %14752 = sst [smem:[#allocation19_spill]] %s11588_s30 }
  0x25   :  { %s11608_s30 = sld [smem:[%s14684_s0 + %s11436_s28]]   ;;  %s11440_s28 = smov 33  }
  0x27   :  { %14749 = sst [smem:[#allocation16_spill]] %s11573_s12 }
  0x28   :  { %14750 = sst [smem:[#allocation17_spill]] %s11578_s20 }
  0x29   :  { %14751 = sst [smem:[#allocation18_spill]] %s11583_s27 }
  0x2a   :  { %s11593_s12 = sld [smem:[%s14684_s0 + %s11433_s7]]   ;;  %s11437_s7 = smov 30  }
  0x2b   :  { %s11598_s20 = sld [smem:[%s14684_s0 + %s11434_s15]]   ;;  %s11438_s15 = smov 31  }
  0x2c   :  { %s11603_s27 = sld [smem:[%s14684_s0 + %s11435_s22]]   ;;  %s11439_s22 = smov 32  }
  0x2d   :  { %14756 = sst [smem:[#allocation23_spill]] %s11608_s30 }
  0x2e   :  { %s11628_s30 = sld [smem:[%s14684_s0 + %s11440_s28]]   ;;  %s11444_s28 = smov 37  }
  0x30   :  { %14753 = sst [smem:[#allocation20_spill]] %s11593_s12 }
  0x31   :  { %14754 = sst [smem:[#allocation21_spill]] %s11598_s20 }
  0x32   :  { %14755 = sst [smem:[#allocation22_spill]] %s11603_s27 }
  0x33   :  { %s11613_s12 = sld [smem:[%s14684_s0 + %s11437_s7]]   ;;  %s11441_s7 = smov 34  }
  0x34   :  { %s11618_s20 = sld [smem:[%s14684_s0 + %s11438_s15]]   ;;  %s11442_s15 = smov 35  }
  0x35   :  { %s11623_s27 = sld [smem:[%s14684_s0 + %s11439_s22]]   ;;  %s11443_s22 = smov 36  }
  0x36   :  { %14760 = sst [smem:[#allocation27_spill]] %s11628_s30 }
  0x37   :  { %s11648_s30 = sld [smem:[%s14684_s0 + %s11444_s28]]  }
  0x39   :  { %14757 = sst [smem:[#allocation24_spill]] %s11613_s12 }
  0x3a   :  { %14758 = sst [smem:[#allocation25_spill]] %s11618_s20 }
  0x3b   :  { %14759 = sst [smem:[#allocation26_spill]] %s11623_s27 }
  0x3c   :  { %s11633_s12 = sld [smem:[%s14684_s0 + %s11441_s7]]   ;;  %s11445_s7 = smov 38  }
  0x3d   :  { %s11638_s20 = sld [smem:[%s14684_s0 + %s11442_s15]]   ;;  %s11446_s15 = smov 39  }
  0x3e   :  { %s11643_s27 = sld [smem:[%s14684_s0 + %s11443_s22]]  }
  0x42   :  { %14761 = sst [smem:[#allocation28_spill]] %s11633_s12 }
  0x43   :  { %14762 = sst [smem:[#allocation29_spill]] %s11638_s20 }
  0x44   :  { %s11653_s12 = sld [smem:[%s14684_s0 + %s11445_s7]]  }
  0x45   :  { %s11658_s20 = sld [smem:[%s14684_s0 + %s11446_s15]]  }
  0x46   :  { %85 = vsyncpa [#allocation3], 0 }
  0x47   :  { %86 = vsyncpa [#allocation4], 0  ;;  %s11447_s22 = smov [#allocation2]   ;;  %s11360_s26 = scalar_lea.hbm %s11548_s4, 51200 }
  0x48   :  { %s126_s23 = sshll.u32 %s11447_s22, 4  ;;  %p11361_p0 = scmp.ne.s32.totalorder %s11548_s4, %s11360_s26  ;;  %s127_s23 = int_to_ptr.vmem [resolvable:$true] %s126_s23 }
  0x49   :  { %p11364_p1 = scmp.lt.u32.totalorder %s11360_s26, %s11548_s4 }
  0x4b   :  { %p11366_p2 = pnand %p11364_p1, %p11361_p0 }
  0x4d   :  { %11369 = shalt.err (!%p11366_p2)
}
  0x4e   :  { %s11370_s28 = scalar_lea.vmem %s127_s23, 51200  ;;  %p11375_p4 = scmp.lt.s32.totalorder %s127_s23, %s127_s23 }
  0x4f   :  { %p11371_p3 = scmp.ne.s32.totalorder %s127_s23, %s11370_s28  ;;  %p11376_p5 = scmp.lt.s32.totalorder %s11370_s28, %s11370_s28 }
  0x51   :  { %p11377_p6 = por %p11376_p5, %p11375_p4 }
  0x53   :  { %p11378_p7 = pnand %p11377_p6, %p11371_p3 }
  0x55   :  { %11381 = shalt.err (!%p11378_p7)
}
  0x56   :  { %s11448_s0 = smov 1280   ;;  %s11449_s1 = smov 80  }
  0x57   :  { %132 = dma.hbm_to_vmem [thread:$0]  %s11548_s4, 51200, %s127_s23, [#allocation3], %s11448_s0, %s11448_s0, %s11449_s1  }
  0x58   :  { %11404 = dma.done.wait [#allocation3], 51200  }
  0x59   :  { %11405 = vsyncadd [#allocation3], 4294916096  ;;  %v14699_v0 = vmov 0.0   ;;  %vm201_vm0 = vcmask 1041408   ;;  %v178_v1 = vld [vmem:[%s11468_s9 + $0x8] sm:$0xff]  ;;  %v180_v2 = vld [vmem:[%s11468_s9 + $0x18] sm:$0xff] }
  0x5a   :  { %272 = vmatprep.mubr.f32.mxu0 %v14699_v0  ;;  %v177_v3 = vld [vmem:[%s11468_s9] sm:$0xff]  ;;  %v8895_v4 = vpack.c.bf16 %v180_v2, %v178_v1  ;;  %v179_v5 = vld [vmem:[%s11468_s9 + $0x10] sm:$0xff]  ;;  %v182_v6 = vld [vmem:[%s11468_s9 + $0x28] sm:$0xff]  ;;  %vm11451_vm1 = vmmov 1   ;;  %vm197_vm3 = vcmask 211968   ;;  %vm361_vm4 = vcmask 261120  }
  0x5b   :  { %v184_v7 = vld [vmem:[%s11468_s9 + $0x38] sm:$0x3]  ;;  %v8897_v8 = vpack.c.bf16 %v179_v5, %v177_v3  ;;  %vm11672_vm2 = vmpackc.low %vm201_vm0, %vm11451_vm1  ;;  %v181_v11 = vld [vmem:[%s11468_s9 + $0x20] sm:$0xff]  ;;  %vm1184_vm5 = vcmask 523264   ;;  %vm5316_vm8 = vcmask 1043456   ;;  %vm5312_vm9 = vcmask 162816  }
  0x5c   :  { %v8899_v9 = vpack.c.bf16 %v184_v7, %v182_v6  ;;  %v183_v12 = vld [vmem:[%s11468_s9 + $0x30] sm:$0x3]  ;;  %8896 = vmatprep.subr.bf16.mxu0 %v8895_v4  ;;  %v310_v13 = vld [vmem:[%s11488_s25 + $0x8] sm:$0xff]  ;;  %v312_v14 = vld [vmem:[%s11488_s25 + $0x18] sm:$0xff]  ;;  %s14773_s9 = sld [smem:[#allocation10_spill]]  ;;  %vm11453_vm10 = vmmov 0  }
  0x5d   :  { %v309_v15 = vld [vmem:[%s11488_s25] sm:$0xff]  ;;  %8898 = vmatpush1.bf16.msra.mxu0 %v8897_v8  ;;  %v8902_v16 = vpack.c.bf16 %v183_v12, %v181_v11  ;;  %v8905_v17 = vpack.c.bf16 %v312_v14, %v310_v13  ;;  %v311_v18 = vld [vmem:[%s11488_s25 + $0x10] sm:$0xff]  ;;  %v314_v19 = vld [vmem:[%s11488_s25 + $0x28] sm:$0xff]  ;;  %s14890_s4 = sld [smem:[#allocation18_spill]]  ;;  %s14891_s2 = sld [smem:[#allocation19_spill]]  ;;  %vm7855_vm11 = vcmask 654336  }
  0x5e   :  { %v316_v20 = vld [vmem:[%s11488_s25 + $0x38] sm:$0xff]  ;;  %8901 = vmatprep.subr.msk.bf16.mxu0 %vm11672_vm2, %v8899_v9  ;;  %v8907_v21 = vpack.c.bf16 %v311_v18, %v309_v15  ;;  %v313_v23 = vld [vmem:[%s11488_s25 + $0x20] sm:$0xff]  ;;  %v315_v24 = vld [vmem:[%s11488_s25 + $0x30] sm:$0xff]  ;;  %s14892_s7 = sld [smem:[#allocation21_spill]]  ;;  %s14893_s10 = sld [smem:[#allocation22_spill]] }
  0x5f   :  { %v8909_v22 = vpack.c.bf16 %v316_v20, %v314_v19  ;;  %v318_v25 = vld [vmem:[%s11488_s25 + $0x48] sm:$0xff]  ;;  %8906 = vmatprep.subr.bf16.mxu1 %v8905_v17  ;;  %v320_v26 = vld [vmem:[%s11488_s25 + $0x58] sm:$0xff]  ;;  %v8911_v27 = vpack.c.bf16 %v315_v24, %v313_v23  ;;  %v176_v28 = vld [vmem:[%s11463_s5] sm:$0x3]  ;;  %s14768_s5 = sld [smem:[#allocation8_spill]]  ;;  %s14894_s11 = sld [smem:[#allocation26_spill]] }
  0x60   :  { %8908 = vmatpush1.bf16.msra.mxu1 %v8907_v21  ;;  %v8913_v29 = vpack.c.bf16 %v320_v26, %v318_v25  ;;  %v317_v30 = vld [vmem:[%s11488_s25 + $0x40] sm:$0xff]  ;;  %v319_v31 = vld [vmem:[%s11488_s25 + $0x50] sm:$0xff]  ;;  %v322_v32 = vld [vmem:[%s11488_s25 + $0x68] sm:$0xff]  ;;  %s14896_s15 = sld [smem:[#allocation25_spill]]  ;;  %s11454_s16 = smov [#allocation5]  }
  0x61   :  { %8904 = vmatpush1.bf16.msk.msra.mxu0 %vm11672_vm2, %v8902_v16  ;;  %8910 = vmatprep.subr.bf16.mxu1 %v8909_v22  ;;  %v324_v33 = vld [vmem:[%s11488_s25 + $0x78] sm:$0xff]  ;;  %v8915_v34 = vpack.c.bf16 %v319_v31, %v317_v30  ;;  %v321_v36 = vld [vmem:[%s11488_s25 + $0x60] sm:$0xff]  ;;  %v323_v37 = vld [vmem:[%s11488_s25 + $0x70] sm:$0xff]  ;;  %v14697_v16 = vmov 0.0|0.0   ;;  %s8213_s18 = sshll.u32 %s11454_s16, 4  ;;  %s8214_s18 = int_to_ptr.vmem [resolvable:$true] %s8213_s18 }
  0x62   :  { %v8917_v35 = vpack.c.bf16 %v324_v33, %v322_v32  ;;  %v326_v38 = vld [vmem:[%s11488_s25 + $0x88] sm:$0xff]  ;;  %v328_v39 = vld [vmem:[%s11488_s25 + $0x98] sm:$0xff]  ;;  %v8919_v40 = vpack.c.bf16 %v323_v37, %v321_v36  ;;  %v325_v42 = vld [vmem:[%s11488_s25 + $0x80] sm:$0xff]  ;;  %s11382_s22 = scalar_lea.vmem %s8214_s18, 32  ;;  %p11387_p9 = scmp.lt.s32.totalorder %s8214_s18, %s8214_s18 }
  0x63   :  { %v8921_v41 = vpack.c.bf16 %v328_v39, %v326_v38  ;;  %v327_v43 = vld [vmem:[%s11488_s25 + $0x90] sm:$0xff]  ;;  %v330_v44 = vld [vmem:[%s11488_s25 + $0xa8] sm:$0xff]  ;;  %v332_v45 = vld [vmem:[%s11488_s25 + $0xb8] sm:$0xff]  ;;  %p11383_p8 = scmp.ne.s32.totalorder %s8214_s18, %s11382_s22  ;;  %p11388_p10 = scmp.lt.s32.totalorder %s11382_s22, %s11382_s22 }
  0x64   :  { %8265 = vmatmul.mubr.msk.f32.vlgmr.msra.gmra.mrb[0].mxu0 %vm197_vm3, %v176_v28  ;;  %8912 = vmatpush1.bf16.msra.mxu1 %v8911_v27  ;;  %v8923_v46 = vpack.c.bf16 %v327_v43, %v325_v42  ;;  %v8925_v47 = vpack.c.bf16 %v332_v45, %v330_v44  ;;  %v329_v48 = vld [vmem:[%s11488_s25 + $0xa0] sm:$0xff]  ;;  %v331_v49 = vld [vmem:[%s11488_s25 + $0xb0] sm:$0xff]  ;;  %v334_v50 = vld [vmem:[%s11488_s25 + $0xc8] sm:$0xff] }
  0x65   :  { %8914 = vmatprep.subr.bf16.mxu1 %v8913_v29  ;;  %v336_v51 = vld [vmem:[%s11488_s25 + $0xd8] sm:$0xff]  ;;  %v8927_v52 = vpack.c.bf16 %v331_v49, %v329_v48  ;;  %v333_v54 = vld [vmem:[%s11488_s25 + $0xc0] sm:$0xff]  ;;  %v335_v55 = vld [vmem:[%s11488_s25 + $0xd0] sm:$0xff]  ;;  %p11389_p11 = por %p11388_p10, %p11387_p9 }
  0x66   :  { %v8929_v53 = vpack.c.bf16 %v336_v51, %v334_v50  ;;  %v338_v56 = vld [vmem:[%s11488_s25 + $0xe8] sm:$0xff]  ;;  %v340_v57 = vld [vmem:[%s11488_s25 + $0xf8] sm:$0xff]  ;;  %v8931_v58 = vpack.c.bf16 %v335_v55, %v333_v54  ;;  %v337_v60 = vld [vmem:[%s11488_s25 + $0xe0] sm:$0xff] }
  0x67   :  { %v8933_v59 = vpack.c.bf16 %v340_v57, %v338_v56  ;;  %v339_v61 = vld [vmem:[%s11488_s25 + $0xf0] sm:$0xff]  ;;  %v342_v63 = vld [vmem:[%s11488_s25 + $0x108] sm:$0xff]  ;;  %v344_v1 = vld [vmem:[%s11488_s25 + $0x118] sm:$0xff]  ;;  %p11390_p12 = pnand %p11389_p11, %p11383_p8 }
  0x68   :  { %8916 = vmatpush1.bf16.msra.mxu1 %v8915_v34  ;;  %v8935_v62 = vpack.c.bf16 %v339_v61, %v337_v60  ;;  %v8937_v2 = vpack.c.bf16 %v344_v1, %v342_v63  ;;  %v341_v3 = vld [vmem:[%s11488_s25 + $0x100] sm:$0xff]  ;;  %v343_v4 = vld [vmem:[%s11488_s25 + $0x110] sm:$0xff]  ;;  %v346_v6 = vld [vmem:[%s11488_s25 + $0x128] sm:$0xff] }
  0x69   :  { %8918 = vmatprep.subr.bf16.mxu1 %v8917_v35  ;;  %v8939_v5 = vpack.c.bf16 %v343_v4, %v341_v3  ;;  %v348_v7 = vld [vmem:[%s11488_s25 + $0x138] sm:$0xff]  ;;  %v345_v9 = vld [vmem:[%s11488_s25 + $0x120] sm:$0xff]  ;;  %v347_v10 = vld [vmem:[%s11488_s25 + $0x130] sm:$0xff]  ;;  %s14867_s25 = sld [smem:[#allocation14_spill]] }
  0x6a   :  { %v8941_v8 = vpack.c.bf16 %v348_v7, %v346_v6  ;;  %v8943_v11 = vpack.c.bf16 %v347_v10, %v345_v9  ;;  %v467_v12 = vld [vmem:[%s11508_s14 + $0x8] sm:$0xff]  ;;  %v470_v13 = vld [vmem:[%s11508_s14 + $0x20] sm:$0xff]  ;;  %v469_v17 = vld [vmem:[%s11508_s14 + $0x18] sm:$0xff] }
  0x6b   :  { %v466_v14 = vld [vmem:[%s11508_s14] sm:$0xff]  ;;  %v8945_v15 = vpack.c.bf16 %v470_v13, %v467_v12  ;;  %v473_v19 = vld [vmem:[%s11508_s14 + $0x38] sm:$0xff]  ;;  %v476_v20 = vld [vmem:[%s11508_s14 + $0x50] sm:$0xff] }
  0x6c   :  { %8920 = vmatpush1.bf16.msra.mxu1 %v8919_v40  ;;  %v8947_v18 = vpack.c.bf16 %v469_v17, %v466_v14  ;;  %v472_v21 = vld [vmem:[%s11508_s14 + $0x30] sm:$0xff]  ;;  %v8949_v22 = vpack.c.bf16 %v476_v20, %v473_v19  ;;  %v475_v23 = vld [vmem:[%s11508_s14 + $0x48] sm:$0xff]  ;;  %v482_v26 = vld [vmem:[%s11508_s14 + $0x80] sm:$0xff] }
  0x6d   :  { %8922 = vmatprep.subr.bf16.mxu1 %v8921_v41  ;;  %8946 = vmatprep.subr.bf16.mxu0 %v8945_v15  ;;  %v8951_v24 = vpack.c.bf16 %v475_v23, %v472_v21  ;;  %v479_v25 = vld [vmem:[%s11508_s14 + $0x68] sm:$0xff]  ;;  %v478_v28 = vld [vmem:[%s11508_s14 + $0x60] sm:$0xff]  ;;  %v481_v29 = vld [vmem:[%s11508_s14 + $0x78] sm:$0xff] }
  0x6e   :  { %8948 = vmatpush1.bf16.msra.mxu0 %v8947_v18  ;;  %v8953_v27 = vpack.c.bf16 %v482_v26, %v479_v25  ;;  %v8955_v30 = vpack.c.bf16 %v481_v29, %v478_v28  ;;  %v485_v31 = vld [vmem:[%s11508_s14 + $0x98] sm:$0xff]  ;;  %v488_v32 = vld [vmem:[%s11508_s14 + $0xb0] sm:$0xff]  ;;  %v487_v35 = vld [vmem:[%s11508_s14 + $0xa8] sm:$0xff] }
  0x6f   :  { %8950 = vmatprep.subr.bf16.mxu0 %v8949_v22  ;;  %v8957_v33 = vpack.c.bf16 %v488_v32, %v485_v31  ;;  %v484_v34 = vld [vmem:[%s11508_s14 + $0x90] sm:$0xff]  ;;  %v491_v37 = vld [vmem:[%s11508_s14 + $0xc8] sm:$0xff]  ;;  %v494_v38 = vld [vmem:[%s11508_s14 + $0xe0] sm:$0xff] }
  0x70   :  { %8924 = vmatpush1.bf16.msra.mxu1 %v8923_v46  ;;  %v8959_v36 = vpack.c.bf16 %v487_v35, %v484_v34  ;;  %v8961_v39 = vpack.c.bf16 %v494_v38, %v491_v37  ;;  %v490_v40 = vld [vmem:[%s11508_s14 + $0xc0] sm:$0xff]  ;;  %v493_v41 = vld [vmem:[%s11508_s14 + $0xd8] sm:$0xff]  ;;  %v500_v44 = vld [vmem:[%s11508_s14 + $0x110] sm:$0xff] }
  0x71   :  { %8926 = vmatprep.subr.bf16.mxu1 %v8925_v47  ;;  %v8963_v42 = vpack.c.bf16 %v493_v41, %v490_v40  ;;  %v497_v43 = vld [vmem:[%s11508_s14 + $0xf8] sm:$0xff]  ;;  %v496_v46 = vld [vmem:[%s11508_s14 + $0xf0] sm:$0xff]  ;;  %v499_v47 = vld [vmem:[%s11508_s14 + $0x108] sm:$0xff] }
  0x72   :  { %8952 = vmatpush1.bf16.msra.mxu0 %v8951_v24  ;;  %v8965_v45 = vpack.c.bf16 %v500_v44, %v497_v43  ;;  %v8967_v48 = vpack.c.bf16 %v499_v47, %v496_v46  ;;  %v503_v49 = vld [vmem:[%s11508_s14 + $0x128] sm:$0xff]  ;;  %v506_v50 = vld [vmem:[%s11508_s14 + $0x140] sm:$0xff]  ;;  %v509_v55 = vld [vmem:[%s11508_s14 + $0x158] sm:$0xff] }
  0x73   :  { %8954 = vmatprep.subr.bf16.mxu0 %v8953_v27  ;;  %v8969_v51 = vpack.c.bf16 %v506_v50, %v503_v49  ;;  %v512_v56 = vld [vmem:[%s11508_s14 + $0x170] sm:$0xff]  ;;  %v185_v61 = vld [vmem:[%s11473_s13] sm:$0x3]  ;;  %v471_v17 = vld [vmem:[%s11508_s14 + $0x28] sm:$0xff]  ;;  %s14774_s13 = sld [smem:[#allocation11_spill]] }
  0x74   :  { %8928 = vmatpush1.bf16.msra.mxu1 %v8927_v52  ;;  %v502_v52 = vld [vmem:[%s11508_s14 + $0x120] sm:$0xff]  ;;  %v8973_v57 = vpack.c.bf16 %v512_v56, %v509_v55  ;;  %v468_v15 = vld [vmem:[%s11508_s14 + $0x10] sm:$0xff]  ;;  %v477_v23 = vld [vmem:[%s11508_s14 + $0x58] sm:$0xff] }
  0x75   :  { %8930 = vmatprep.subr.bf16.mxu1 %v8929_v53  ;;  %v505_v53 = vld [vmem:[%s11508_s14 + $0x138] sm:$0xff]  ;;  %v281_v1 = vld [vmem:[%s11478_s17] sm:$0x3]  ;;  %v8986_v20 = vpack.c.bf16 %v471_v17, %v468_v15  ;;  %v480_v25 = vld [vmem:[%s11508_s14 + $0x70] sm:$0xff]  ;;  %s14775_s17 = sld [smem:[#allocation9_spill]] }
  0x76   :  { %8956 = vmatpush1.bf16.msra.mxu0 %v8955_v30  ;;  %v8971_v54 = vpack.c.bf16 %v505_v53, %v502_v52  ;;  %v295_v7 = vld [vmem:[%s11483_s21] sm:$0x3]  ;;  %v483_v26 = vld [vmem:[%s11508_s14 + $0x88] sm:$0xff]  ;;  %v489_v29 = vld [vmem:[%s11508_s14 + $0xb8] sm:$0xff]  ;;  %s14790_s21 = sld [smem:[#allocation13_spill]] }
  0x77   :  { %8958 = vmatprep.subr.bf16.mxu0 %v8957_v33  ;;  %v474_v22 = vld [vmem:[%s11508_s14 + $0x40] sm:$0xff]  ;;  %v8992_v27 = vpack.c.bf16 %v483_v26, %v480_v25  ;;  %v492_v31 = vld [vmem:[%s11508_s14 + $0xd0] sm:$0xff]  ;;  %v495_v32 = vld [vmem:[%s11508_s14 + $0xe8] sm:$0xff] }
  0x78   :  { %8932 = vmatpush1.bf16.msra.mxu1 %v8931_v58  ;;  %v187_v58 = vlaneseq  ;;  %v8989_v24 = vpack.c.bf16 %v477_v23, %v474_v22  ;;  %v486_v28 = vld [vmem:[%s11508_s14 + $0xa0] sm:$0xff]  ;;  %v8998_v33 = vpack.c.bf16 %v495_v32, %v492_v31  ;;  %v501_v35 = vld [vmem:[%s11508_s14 + $0x118] sm:$0xff]  ;;  %v504_v37 = vld [vmem:[%s11508_s14 + $0x130] sm:$0xff] }
  0x79   :  { %8934 = vmatprep.subr.bf16.mxu1 %v8933_v59  ;;  %v8995_v30 = vpack.c.bf16 %v489_v29, %v486_v28  ;;  %v498_v34 = vld [vmem:[%s11508_s14 + $0x100] sm:$0xff]  ;;  %v507_v38 = vld [vmem:[%s11508_s14 + $0x148] sm:$0xff]  ;;  %v508_v40 = vld [vmem:[%s11508_s14 + $0x150] sm:$0xff] }
  0x7a   :  { %8960 = vmatpush1.bf16.msra.mxu0 %v8959_v36  ;;  %v11754_v59 = vshrl.u32 %v187_v58, 7  ;;  %v9001_v36 = vpack.c.bf16 %v501_v35, %v498_v34  ;;  %v511_v41 = vld [vmem:[%s11508_s14 + $0x168] sm:$0xff]  ;;  %v513_v44 = vld [vmem:[%s11508_s14 + $0x178] sm:$0xff]  ;;  %v518_v47 = vld [vmem:[%s11508_s14 + $0x1a0] sm:$0xff] }
  0x7b   :  { %8962 = vmatprep.subr.bf16.mxu0 %v8961_v39  ;;  %v9004_v39 = vpack.c.bf16 %v507_v38, %v504_v37  ;;  %v8975_v43 = vpack.c.bf16 %v511_v41, %v508_v40  ;;  %v515_v46 = vld [vmem:[%s11508_s14 + $0x188] sm:$0xff]  ;;  %v514_v49 = vld [vmem:[%s11508_s14 + $0x180] sm:$0xff]  ;;  %v517_v50 = vld [vmem:[%s11508_s14 + $0x198] sm:$0xff] }
  0x7c   :  { %8936 = vmatpush1.bf16.msra.mxu1 %v8935_v62  ;;  %14765 = vst [vmem:[#allocation30_spill] sm:$0xff] %v11754_v59  ;;  %v11757_v60 = vsub.s32 0, %v11754_v59  ;;  %v11761_v62 = vsub.s32 1, %v11754_v59  ;;  %v8979_v52 = vpack.c.bf16 %v517_v50, %v514_v49  ;;  %v519_v53 = vld [vmem:[%s11508_s14 + $0x1a8] sm:$0xff]  ;;  %v521_v55 = vld [vmem:[%s11508_s14 + $0x1b8] sm:$0xff]  ;;  %v524_v56 = vld [vmem:[%s11508_s14 + $0x1d0] sm:$0xff] }
  0x7d   :  { %8938 = vmatprep.subr.bf16.mxu1 %v8937_v2  ;;  %v520_v58 = vld [vmem:[%s11508_s14 + $0x1b0] sm:$0xff]  ;;  %v730_v25 = vld [vmem:[%s11528_s6] sm:$0xff]  ;;  %v751_v31 = vld [vmem:[%s11528_s6 + $0xa8] sm:$0xff]  ;;  %vm4418_vm6 = vcmp.eq.s32.totalorder %v11754_v59, 0  ;;  %vm4860_vm7 = vcmp.eq.s32.totalorder %v11754_v59, 1 }
  0x7e   :  { %8964 = vmatpush1.bf16.msra.mxu0 %v8963_v42  ;;  %14766 = vst [vmem:[#allocation31_spill] sm:$0xff] %v11757_v60  ;;  %14767 = vst [vmem:[#allocation32_spill] sm:$0xff] %v11761_v62  ;;  %v190_v63 = vrot.slane %v185_v61, %v11757_v60  ;;  %v194_v2 = vrot.slane %v185_v61, %v11761_v62  ;;  %v290_v9 = vrot.slane %v281_v1, %v11761_v62  ;;  %v510_v42 = vld [vmem:[%s11508_s14 + $0x160] sm:$0xff]  ;;  %v523_v61 = vld [vmem:[%s11508_s14 + $0x1c8] sm:$0xff] }
  0x7f   :  { %8966 = vmatprep.subr.bf16.mxu0 %v8965_v45  ;;  %v304_v12 = vrot.slane %v295_v7, %v11761_v62  ;;  %v300_v14 = vrot.slane %v295_v7, %v11757_v60  ;;  %v9007_v45 = vpack.c.bf16 %v513_v44, %v510_v42  ;;  %v740_v26 = vld [vmem:[%s11528_s6 + $0x50] sm:$0xff]  ;;  %v753_v34 = vld [vmem:[%s11528_s6 + $0xb8] sm:$0xff]  ;;  %v763_v35 = vld [vmem:[%s11528_s6 + $0x108] sm:$0xff] }
  0x80   :  { %8940 = vmatpush1.bf16.msra.mxu1 %v8939_v5  ;;  %v286_v5 = vrot.slane %v281_v1, %v11757_v60  ;;  %v8983_v1 = vpack.c.bf16 %v523_v61, %v520_v58  ;;  %v732_v29 = vld [vmem:[%s11528_s6 + $0x10] sm:$0xff]  ;;  %v9017_v37 = vpack.c.bf16 %v740_v26, %v730_v25  ;;  %v783_v49 = vld [vmem:[%s11528_s6 + $0x1a8] sm:$0xff]  ;;  %v801_v61 = vld [vmem:[%s11528_s6 + $0x238] sm:$0xff] }
  0x81   :  { %8942 = vmatprep.subr.bf16.mxu1 %v8941_v8  ;;  %v760_v40 = vld [vmem:[%s11528_s6 + $0xf0] sm:$0xff]  ;;  %v791_v58 = vld [vmem:[%s11528_s6 + $0x1e8] sm:$0xff]  ;;  %v833_v25 = vld [vmem:[%s11528_s6 + $0x338] sm:$0xff] }
  0x82   :  { %8968 = vmatpush1.bf16.msra.mxu0 %v8967_v48  ;;  %v8977_v48 = vpack.c.bf16 %v518_v47, %v515_v46  ;;  %v752_v44 = vld [vmem:[%s11528_s6 + $0xb0] sm:$0xff]  ;;  %v771_v46 = vld [vmem:[%s11528_s6 + $0x148] sm:$0xff]  ;;  %v781_v47 = vld [vmem:[%s11528_s6 + $0x198] sm:$0xff] }
  0x83   :  { %8970 = vmatprep.subr.bf16.mxu0 %v8969_v51  ;;  %v516_v51 = vld [vmem:[%s11508_s14 + $0x190] sm:$0xff]  ;;  %v843_v26 = vld [vmem:[%s11528_s6 + $0x388] sm:$0xff] }
  0x84   :  { %8944 = vmatpush1.bf16.msra.mxu1 %v8943_v11 }
  0x85   :  { %8985 = vmatprep.subr.bf16.mxu1 %v14697_v16 }
  0x86   :  { %8972 = vmatpush1.bf16.msra.mxu0 %v8971_v54  ;;  %v9010_v54 = vpack.c.bf16 %v519_v53, %v516_v51  ;;  %v780_v53 = vld [vmem:[%s11528_s6 + $0x190] sm:$0xff] }
  0x87   :  { %8974 = vmatprep.subr.bf16.mxu0 %v8973_v57  ;;  %v8981_v57 = vpack.c.bf16 %v524_v56, %v521_v55  ;;  %v772_v56 = vld [vmem:[%s11528_s6 + $0x150] sm:$0xff] }
  0x8a   :  { %8976 = vmatpush1.bf16.msra.mxu0 %v8975_v43  ;;  %v9099_v43 = vpack.c.bf16 %v763_v35, %v753_v34  ;;  %v842_v34 = vld [vmem:[%s11528_s6 + $0x380] sm:$0xff]  ;;  %v851_v35 = vld [vmem:[%s11528_s6 + $0x3c8] sm:$0xff] }
  0x8b   :  { %8978 = vmatprep.subr.bf16.mxu0 %v8977_v48  ;;  %v773_v48 = vld [vmem:[%s11528_s6 + $0x158] sm:$0xff] }
  0x8c   :  { %v9103_v55 = vpack.c.bf16 %v783_v49, %v773_v48  ;;  %v881_v48 = vld [vmem:[%s11528_s6 + $0x4b8] sm:$0xff] }
  0x8d   :  { %v873_v49 = vld [vmem:[%s11528_s6 + $0x478] sm:$0xff] }
  0x8e   :  { %8980 = vmatpush1.bf16.msra.mxu0 %v8979_v52  ;;  %v770_v52 = vld [vmem:[%s11528_s6 + $0x140] sm:$0xff] }
  0x8f   :  { %8982 = vmatprep.subr.bf16.mxu0 %v8981_v57  ;;  %v782_v57 = vld [vmem:[%s11528_s6 + $0x1a0] sm:$0xff] }
  0x92   :  { %8984 = vmatpush1.bf16.msra.mxu0 %v8983_v1  ;;  %v803_v1 = vld [vmem:[%s11528_s6 + $0x248] sm:$0xff] }
 0x137   :  { %v274_v3 = vpop.f32.mrb[0].mxu0 }
 0x138   :  { %v275_v4 = vadd.f32 %v274_v3, %v190_v63  ;;  %v276_v6 = vpop.f32.mrb[1].mxu0  ;;  %v522_v63 = vld [vmem:[%s11508_s14 + $0x1c0] sm:$0xff] }
 0x139   :  { %v277_v8 = vadd.f32 %v276_v6, %v194_v2  ;;  %v525_v2 = vld [vmem:[%s11508_s14 + $0x1d8] sm:$0xff]  ;;  %s14881_s14 = sld [smem:[#allocation28_spill]] }
 0x13a   :  { %v279_v10 = vmax.f32 %v275_v4, 0.0  ;;  %v9013_v3 = vpack.c.bf16 %v525_v2, %v522_v63  ;;  %v731_v4 = vld [vmem:[%s11528_s6 + $0x8] sm:$0xff]  ;;  %v733_v6 = vld [vmem:[%s11528_s6 + $0x18] sm:$0xff]  ;;  %v9025_v2 = vpack.c.bf16 %v780_v53, %v770_v52  ;;  %v870_v53 = vld [vmem:[%s11528_s6 + $0x460] sm:$0xff] }
 0x13b   :  { %v280_v11 = vmax.f32 %v277_v8, 0.0  ;;  %v743_v8 = vld [vmem:[%s11528_s6 + $0x68] sm:$0xff]  ;;  %v793_v63 = vld [vmem:[%s11528_s6 + $0x1f8] sm:$0xff] }
 0x13c   :  { %v293_v13 = vmul.f32 %v286_v5, %v279_v10  ;;  %v741_v5 = vld [vmem:[%s11528_s6 + $0x58] sm:$0xff]  ;;  %v349_v10 = vld [vmem:[%s11493_s29] sm:$0x3]  ;;  %s14868_s29 = sld [smem:[#allocation15_spill]] }
 0x13d   :  { %v294_v18 = vmul.f32 %v290_v9, %v280_v11  ;;  %v9015_v7 = vpack.c.bf16 %v741_v5, %v731_v4  ;;  %v9095_v9 = vpack.c.bf16 %v743_v8, %v733_v6  ;;  %v354_v11 = vrot.slane %v349_v10, %v11757_v60  ;;  %v790_v4 = vld [vmem:[%s11528_s6 + $0x1e0] sm:$0xff]  ;;  %v800_v5 = vld [vmem:[%s11528_s6 + $0x230] sm:$0xff] }
 0x13e   :  { %v307_v21 = vadd.f32 %v300_v14, %v293_v13  ;;  %v358_v13 = vrot.slane %v349_v10, %v11761_v62  ;;  %v9027_v6 = vpack.c.bf16 %v801_v61, %v791_v58  ;;  %v792_v8 = vld [vmem:[%s11528_s6 + $0x1f0] sm:$0xff]  ;;  %v811_v10 = vld [vmem:[%s11528_s6 + $0x288] sm:$0xff]  ;;  %v882_v58 = vld [vmem:[%s11528_s6 + $0x4c0] sm:$0xff] }
 0x13f   :  { %v308_v19 = vadd.f32 %v304_v12, %v294_v18  ;;  %9016 = vmatprep.subr.bf16.mxu0 %v9015_v7  ;;  %v438_v12 = vld [vmem:[%s11498_s3] sm:$0x3]  ;;  %v9107_v7 = vpack.c.bf16 %v803_v1, %v793_v63  ;;  %v891_v61 = vld [vmem:[%s11528_s6 + $0x508] sm:$0xff]  ;;  %v901_v63 = vld [vmem:[%s11528_s6 + $0x558] sm:$0xff]  ;;  %s14869_s3 = sld [smem:[#allocation12_spill]] }
 0x140   :  { %v443_v17 = vrot.slane %v438_v12, %v11757_v60  ;;  %v452_v18 = vld [vmem:[%s11503_s8] sm:$0x3]  ;;  %v893_v1 = vld [vmem:[%s11528_s6 + $0x518] sm:$0xff]  ;;  %s14880_s8 = sld [smem:[#allocation16_spill]] }
 0x141   :  { %8266 = vmatprep.mubr.msk.f32.mxu1 %vm361_vm4, %v308_v19  ;;  %v457_v28 = vrot.slane %v452_v18, %v11757_v60 }
 0x142   :  { %430 = vmatmul.mubr.f32.vlgmr.msra.gmra.mrb[0].mxu1 %v307_v21  ;;  %v447_v21 = vrot.slane %v438_v12, %v11761_v62  ;;  %v813_v12 = vld [vmem:[%s11528_s6 + $0x298] sm:$0xff] }
 0x143   :  { %8987 = vmatpush1.bf16.msra.mxu1 %v8986_v20 }
 0x144   :  { %8988 = vmatprep.subr.bf16.mxu1 %v14697_v16 }
 0x147   :  { %8990 = vmatpush1.bf16.msra.mxu1 %v8989_v24  ;;  %v461_v24 = vrot.slane %v452_v18, %v11761_v62  ;;  %v820_v18 = vld [vmem:[%s11528_s6 + $0x2d0] sm:$0xff] }
 0x148   :  { %8991 = vmatprep.subr.bf16.mxu1 %v14697_v16 }
 0x14b   :  { %8993 = vmatpush1.bf16.msra.mxu1 %v8992_v27 }
 0x14c   :  { %8994 = vmatprep.subr.bf16.mxu1 %v14697_v16 }
 0x14f   :  { %8996 = vmatpush1.bf16.msra.mxu1 %v8995_v30  ;;  %v742_v30 = vld [vmem:[%s11528_s6 + $0x60] sm:$0xff] }
 0x150   :  { %8997 = vmatprep.subr.bf16.mxu1 %v14697_v16  ;;  %v9097_v38 = vpack.c.bf16 %v742_v30, %v732_v29  ;;  %v830_v29 = vld [vmem:[%s11528_s6 + $0x320] sm:$0xff]  ;;  %v840_v30 = vld [vmem:[%s11528_s6 + $0x370] sm:$0xff] }
 0x153   :  { %8999 = vmatpush1.bf16.msra.mxu1 %v8998_v33  ;;  %v761_v33 = vld [vmem:[%s11528_s6 + $0xf8] sm:$0xff] }
 0x154   :  { %9000 = vmatprep.subr.bf16.mxu1 %v14697_v16  ;;  %v9019_v42 = vpack.c.bf16 %v761_v33, %v751_v31  ;;  %v832_v33 = vld [vmem:[%s11528_s6 + $0x330] sm:$0xff] }
 0x157   :  { %9002 = vmatpush1.bf16.msra.mxu1 %v9001_v36 }
 0x158   :  { %9003 = vmatprep.subr.bf16.mxu1 %v14697_v16 }
 0x15b   :  { %9005 = vmatpush1.bf16.msra.mxu1 %v9004_v39  ;;  %v750_v39 = vld [vmem:[%s11528_s6 + $0xa0] sm:$0xff] }
 0x15c   :  { %9006 = vmatprep.subr.bf16.mxu1 %v14697_v16  ;;  %v9021_v50 = vpack.c.bf16 %v760_v40, %v750_v39  ;;  %v9037_v39 = vpack.c.bf16 %v840_v30, %v830_v29  ;;  %v9117_v40 = vpack.c.bf16 %v842_v34, %v832_v33  ;;  %v930_v30 = vld [vmem:[%s11528_s6 + $0x640] sm:$0xff]  ;;  %v932_v34 = vld [vmem:[%s11528_s6 + $0x650] sm:$0xff] }
 0x15f   :  { %9008 = vmatpush1.bf16.msra.mxu1 %v9007_v45  ;;  %v762_v45 = vld [vmem:[%s11528_s6 + $0x100] sm:$0xff] }
 0x160   :  { %9009 = vmatprep.subr.bf16.mxu1 %v14697_v16  ;;  %v9101_v51 = vpack.c.bf16 %v762_v45, %v752_v44  ;;  %v852_v45 = vld [vmem:[%s11528_s6 + $0x3d0] sm:$0xff] }
 0x163   :  { %9011 = vmatpush1.bf16.msra.mxu1 %v9010_v54  ;;  %v9023_v54 = vpack.c.bf16 %v781_v47, %v771_v46  ;;  %v862_v46 = vld [vmem:[%s11528_s6 + $0x420] sm:$0xff]  ;;  %v871_v47 = vld [vmem:[%s11528_s6 + $0x468] sm:$0xff] }
 0x164   :  { %9012 = vmatprep.subr.bf16.mxu1 %v14697_v16  ;;  %v9121_v52 = vpack.c.bf16 %v862_v46, %v852_v45  ;;  %v952_v46 = vld [vmem:[%s11528_s6 + $0x6f0] sm:$0xff]  ;;  %v12848_v16 = vld [vmem:[#allocation2 + $0xa78] sm:$0xff] }
 0x167   :  { %9014 = vmatpush1.bf16.msra.mxu1 %v9013_v3  ;;  %v9105_v3 = vpack.c.bf16 %v782_v57, %v772_v56  ;;  %v872_v57 = vld [vmem:[%s11528_s6 + $0x470] sm:$0xff] }
 0x168   :  { %9096 = vmatprep.subr.bf16.mxu1 %v9095_v9  ;;  %v802_v9 = vld [vmem:[%s11528_s6 + $0x240] sm:$0xff] }
 0x215   :  { %v431_v14 = vpop.f32.mrb[0].mxu1 }
 0x216   :  { %v432_v15 = vadd.f32 %v431_v14, %v354_v11  ;;  %v433_v19 = vpop.f32.mrb[1].mxu1  ;;  %v821_v11 = vld [vmem:[%s11528_s6 + $0x2d8] sm:$0xff]  ;;  %v9029_v14 = vpack.c.bf16 %v800_v5, %v790_v4  ;;  %v9125_v4 = vpack.c.bf16 %v882_v58, %v872_v57  ;;  %v890_v5 = vld [vmem:[%s11528_s6 + $0x500] sm:$0xff]  ;;  %v972_v58 = vld [vmem:[%s11528_s6 + $0x790] sm:$0xff] }
 0x217   :  { %v434_v20 = vadd.f32 %v433_v19, %v358_v13  ;;  %v823_v13 = vld [vmem:[%s11528_s6 + $0x2e8] sm:$0xff]  ;;  %v9031_v19 = vpack.c.bf16 %v821_v11, %v811_v10  ;;  %v902_v10 = vld [vmem:[%s11528_s6 + $0x560] sm:$0xff] }
 0x218   :  { %v436_v22 = vmax.f32 %v432_v15, 0.0  ;;  %v9109_v15 = vpack.c.bf16 %v802_v9, %v792_v8  ;;  %v892_v9 = vld [vmem:[%s11528_s6 + $0x510] sm:$0xff]  ;;  %v911_v11 = vld [vmem:[%s11528_s6 + $0x5a8] sm:$0xff] }
 0x219   :  { %v437_v23 = vmax.f32 %v434_v20, 0.0  ;;  %v9111_v20 = vpack.c.bf16 %v823_v13, %v813_v12  ;;  %v921_v12 = vld [vmem:[%s11528_s6 + $0x5f8] sm:$0xff] }
 0x21a   :  { %v450_v27 = vmul.f32 %v443_v17, %v436_v22  ;;  %v810_v17 = vld [vmem:[%s11528_s6 + $0x280] sm:$0xff]  ;;  %v913_v13 = vld [vmem:[%s11528_s6 + $0x5b8] sm:$0xff] }
 0x21b   :  { %v451_v32 = vmul.f32 %v447_v21, %v437_v23  ;;  %v812_v21 = vld [vmem:[%s11528_s6 + $0x290] sm:$0xff]  ;;  %v822_v22 = vld [vmem:[%s11528_s6 + $0x2e0] sm:$0xff]  ;;  %v831_v23 = vld [vmem:[%s11528_s6 + $0x328] sm:$0xff] }
 0x21c   :  { %v464_v41 = vadd.f32 %v457_v28, %v450_v27  ;;  %v9033_v27 = vpack.c.bf16 %v820_v18, %v810_v17  ;;  %v9113_v28 = vpack.c.bf16 %v822_v22, %v812_v21  ;;  %v9129_v17 = vpack.c.bf16 %v902_v10, %v892_v9  ;;  %v910_v18 = vld [vmem:[%s11528_s6 + $0x5a0] sm:$0xff]  ;;  %v912_v22 = vld [vmem:[%s11528_s6 + $0x5b0] sm:$0xff] }
 0x21d   :  { %v465_v36 = vadd.f32 %v461_v24, %v451_v32  ;;  %v841_v24 = vld [vmem:[%s11528_s6 + $0x378] sm:$0xff]  ;;  %v9115_v32 = vpack.c.bf16 %v843_v26, %v833_v25  ;;  %v1000_v9 = vld [vmem:[%s11528_s6 + $0x870] sm:$0xff] }
 0x21e   :  { %v9035_v31 = vpack.c.bf16 %v841_v24, %v831_v23  ;;  %v922_v23 = vld [vmem:[%s11528_s6 + $0x600] sm:$0xff]  ;;  %v931_v24 = vld [vmem:[%s11528_s6 + $0x648] sm:$0xff]  ;;  %v941_v25 = vld [vmem:[%s11528_s6 + $0x698] sm:$0xff] }
 0x21f   :  { %8267 = vmatprep.mubr.msk.f32.mxu0 %vm361_vm4, %v465_v36  ;;  %8268 = vmatprep.mubr.msk.f32.mxu1 %vm361_vm4, %v465_v36  ;;  %v861_v36 = vld [vmem:[%s11528_s6 + $0x418] sm:$0xff]  ;;  %v9133_v29 = vpack.c.bf16 %v922_v23, %v912_v22  ;;  %v992_v10 = vld [vmem:[%s11528_s6 + $0x830] sm:$0xff] }
 0x220   :  { %611 = vmatmul.mubr.f32.vlgmr.msra.gmra.mrb[2].mxu0 %v464_v41  ;;  %682 = vmatmul.mubr.f32.vlgmr.msra.gmra.mrb[2].mxu1 %v464_v41  ;;  %v850_v41 = vld [vmem:[%s11528_s6 + $0x3c0] sm:$0xff]  ;;  %v933_v26 = vld [vmem:[%s11528_s6 + $0x658] sm:$0xff] }
 0x221   :  { %9018 = vmatpush1.bf16.msra.mxu0 %v9017_v37  ;;  %9098 = vmatpush1.bf16.msra.mxu1 %v9097_v38  ;;  %v853_v37 = vld [vmem:[%s11528_s6 + $0x3d8] sm:$0xff]  ;;  %v863_v38 = vld [vmem:[%s11528_s6 + $0x428] sm:$0xff] }
 0x222   :  { %9020 = vmatprep.subr.bf16.mxu0 %v9019_v42  ;;  %9100 = vmatprep.subr.bf16.mxu1 %v9099_v43  ;;  %v860_v42 = vld [vmem:[%s11528_s6 + $0x410] sm:$0xff]  ;;  %v9039_v43 = vpack.c.bf16 %v861_v36, %v851_v35  ;;  %v9119_v44 = vpack.c.bf16 %v863_v38, %v853_v37  ;;  %v942_v35 = vld [vmem:[%s11528_s6 + $0x6a0] sm:$0xff]  ;;  %v951_v36 = vld [vmem:[%s11528_s6 + $0x6e8] sm:$0xff] }
 0x223   :  { %v961_v37 = vld [vmem:[%s11528_s6 + $0x738] sm:$0xff] }
 0x224   :  { %v953_v38 = vld [vmem:[%s11528_s6 + $0x6f8] sm:$0xff] }
 0x225   :  { %9022 = vmatpush1.bf16.msra.mxu0 %v9021_v50  ;;  %9102 = vmatpush1.bf16.msra.mxu1 %v9101_v51  ;;  %v883_v50 = vld [vmem:[%s11528_s6 + $0x4c8] sm:$0xff]  ;;  %v9041_v51 = vpack.c.bf16 %v860_v42, %v850_v41  ;;  %v9137_v41 = vpack.c.bf16 %v942_v35, %v932_v34  ;;  %v950_v42 = vld [vmem:[%s11528_s6 + $0x6e0] sm:$0xff]  ;;  %v1040_v34 = vld [vmem:[%s11528_s6 + $0x9b0] sm:$0xff] }
 0x226   :  { %9024 = vmatprep.subr.bf16.mxu0 %v9023_v54  ;;  %9104 = vmatprep.subr.bf16.mxu1 %v9103_v55  ;;  %v880_v54 = vld [vmem:[%s11528_s6 + $0x4b0] sm:$0xff]  ;;  %v9043_v55 = vpack.c.bf16 %v881_v48, %v871_v47  ;;  %v9123_v56 = vpack.c.bf16 %v883_v50, %v873_v49  ;;  %v962_v47 = vld [vmem:[%s11528_s6 + $0x740] sm:$0xff]  ;;  %v971_v48 = vld [vmem:[%s11528_s6 + $0x788] sm:$0xff] }
 0x227   :  { %v981_v49 = vld [vmem:[%s11528_s6 + $0x7d8] sm:$0xff]  ;;  %v1032_v35 = vld [vmem:[%s11528_s6 + $0x970] sm:$0xff] }
 0x228   :  { %v973_v50 = vld [vmem:[%s11528_s6 + $0x798] sm:$0xff] }
 0x229   :  { %9026 = vmatpush1.bf16.msra.mxu0 %v9025_v2  ;;  %9106 = vmatpush1.bf16.msra.mxu1 %v9105_v3  ;;  %v903_v2 = vld [vmem:[%s11528_s6 + $0x568] sm:$0xff]  ;;  %v9045_v3 = vpack.c.bf16 %v880_v54, %v870_v53  ;;  %v9141_v53 = vpack.c.bf16 %v962_v47, %v952_v46  ;;  %v970_v54 = vld [vmem:[%s11528_s6 + $0x780] sm:$0xff] }
 0x22a   :  { %9028 = vmatprep.subr.bf16.mxu0 %v9027_v6  ;;  %9108 = vmatprep.subr.bf16.mxu1 %v9107_v7  ;;  %v900_v6 = vld [vmem:[%s11528_s6 + $0x550] sm:$0xff]  ;;  %v9047_v7 = vpack.c.bf16 %v901_v63, %v891_v61  ;;  %v9127_v8 = vpack.c.bf16 %v903_v2, %v893_v1  ;;  %v982_v61 = vld [vmem:[%s11528_s6 + $0x7e0] sm:$0xff]  ;;  %v991_v63 = vld [vmem:[%s11528_s6 + $0x828] sm:$0xff] }
 0x22b   :  { %v1001_v1 = vld [vmem:[%s11528_s6 + $0x878] sm:$0xff]  ;;  %v11957_v47 = vld [vmem:[%s11518_s24] sm:$0x7]  ;;  %s14887_s24 = sld [smem:[#allocation29_spill]] }
 0x22c   :  { %v993_v2 = vld [vmem:[%s11528_s6 + $0x838] sm:$0xff] }
 0x22d   :  { %9030 = vmatpush1.bf16.msra.mxu0 %v9029_v14  ;;  %9110 = vmatpush1.bf16.msra.mxu1 %v9109_v15  ;;  %v923_v14 = vld [vmem:[%s11528_s6 + $0x608] sm:$0xff]  ;;  %v9049_v15 = vpack.c.bf16 %v900_v6, %v890_v5  ;;  %v9145_v5 = vpack.c.bf16 %v982_v61, %v972_v58  ;;  %v990_v6 = vld [vmem:[%s11528_s6 + $0x820] sm:$0xff] }
 0x22e   :  { %9032 = vmatprep.subr.bf16.mxu0 %v9031_v19  ;;  %9112 = vmatprep.subr.bf16.mxu1 %v9111_v20  ;;  %v920_v19 = vld [vmem:[%s11528_s6 + $0x5f0] sm:$0xff]  ;;  %v9051_v20 = vpack.c.bf16 %v921_v12, %v911_v11  ;;  %v9131_v21 = vpack.c.bf16 %v923_v14, %v913_v13  ;;  %v1002_v11 = vld [vmem:[%s11528_s6 + $0x880] sm:$0xff]  ;;  %v9069_v12 = vpack.c.bf16 %v1000_v9, %v990_v6  ;;  %v1011_v14 = vld [vmem:[%s11528_s6 + $0x8c8] sm:$0xff] }
 0x22f   :  { %v9149_v13 = vpack.c.bf16 %v1002_v11, %v992_v10  ;;  %v1052_v6 = vld [vmem:[%s11528_s6 + $0xa10] sm:$0xff]  ;;  %v1081_v10 = vld [vmem:[%s11528_s6 + $0xaf8] sm:$0xff] }
 0x230   :  { %v1073_v11 = vld [vmem:[%s11528_s6 + $0xab8] sm:$0xff] }
 0x231   :  { %9034 = vmatpush1.bf16.msra.mxu0 %v9033_v27  ;;  %9114 = vmatpush1.bf16.msra.mxu1 %v9113_v28  ;;  %v943_v27 = vld [vmem:[%s11528_s6 + $0x6a8] sm:$0xff]  ;;  %v9053_v28 = vpack.c.bf16 %v920_v19, %v910_v18 }
 0x232   :  { %9036 = vmatprep.subr.bf16.mxu0 %v9035_v31  ;;  %9116 = vmatprep.subr.bf16.mxu1 %v9115_v32  ;;  %v940_v31 = vld [vmem:[%s11528_s6 + $0x690] sm:$0xff]  ;;  %v9055_v32 = vpack.c.bf16 %v941_v25, %v931_v24  ;;  %v9135_v33 = vpack.c.bf16 %v943_v27, %v933_v26  ;;  %v1023_v19 = vld [vmem:[%s11528_s6 + $0x928] sm:$0xff]  ;;  %v1022_v25 = vld [vmem:[%s11528_s6 + $0x920] sm:$0xff] }
 0x233   :  { %v1012_v24 = vld [vmem:[%s11528_s6 + $0x8d0] sm:$0xff]  ;;  %v1031_v27 = vld [vmem:[%s11528_s6 + $0x968] sm:$0xff] }
 0x234   :  { %v9153_v26 = vpack.c.bf16 %v1022_v25, %v1012_v24  ;;  %v1082_v24 = vld [vmem:[%s11528_s6 + $0xb00] sm:$0xff]  ;;  %v1091_v25 = vld [vmem:[%s11528_s6 + $0xb48] sm:$0xff] }
 0x235   :  { %9038 = vmatpush1.bf16.msra.mxu0 %v9037_v39  ;;  %9118 = vmatpush1.bf16.msra.mxu1 %v9117_v40  ;;  %v963_v39 = vld [vmem:[%s11528_s6 + $0x748] sm:$0xff]  ;;  %v9057_v40 = vpack.c.bf16 %v940_v31, %v930_v30 }
 0x236   :  { %9040 = vmatprep.subr.bf16.mxu0 %v9039_v43  ;;  %9120 = vmatprep.subr.bf16.mxu1 %v9119_v44  ;;  %v960_v43 = vld [vmem:[%s11528_s6 + $0x730] sm:$0xff]  ;;  %v9059_v44 = vpack.c.bf16 %v961_v37, %v951_v36  ;;  %v9139_v45 = vpack.c.bf16 %v963_v39, %v953_v38  ;;  %v1043_v31 = vld [vmem:[%s11528_s6 + $0x9c8] sm:$0xff]  ;;  %v1042_v36 = vld [vmem:[%s11528_s6 + $0x9c0] sm:$0xff] }
 0x237   :  { %v9157_v38 = vpack.c.bf16 %v1042_v36, %v1032_v35  ;;  %v1051_v39 = vld [vmem:[%s11528_s6 + $0xa08] sm:$0xff]  ;;  %v1092_v36 = vld [vmem:[%s11528_s6 + $0xb50] sm:$0xff] }
 0x239   :  { %9042 = vmatpush1.bf16.msra.mxu0 %v9041_v51  ;;  %9122 = vmatpush1.bf16.msra.mxu1 %v9121_v52  ;;  %v983_v51 = vld [vmem:[%s11528_s6 + $0x7e8] sm:$0xff]  ;;  %v9061_v52 = vpack.c.bf16 %v960_v43, %v950_v42 }
 0x23a   :  { %9044 = vmatprep.subr.bf16.mxu0 %v9043_v55  ;;  %9124 = vmatprep.subr.bf16.mxu1 %v9123_v56  ;;  %v980_v55 = vld [vmem:[%s11528_s6 + $0x7d0] sm:$0xff]  ;;  %v9063_v56 = vpack.c.bf16 %v981_v49, %v971_v48  ;;  %v9143_v57 = vpack.c.bf16 %v983_v51, %v973_v50  ;;  %v1063_v43 = vld [vmem:[%s11528_s6 + $0xa68] sm:$0xff] }
 0x23d   :  { %9046 = vmatpush1.bf16.msra.mxu0 %v9045_v3  ;;  %9126 = vmatpush1.bf16.msra.mxu1 %v9125_v4  ;;  %v1003_v3 = vld [vmem:[%s11528_s6 + $0x888] sm:$0xff]  ;;  %v9065_v4 = vpack.c.bf16 %v980_v55, %v970_v54 }
 0x23e   :  { %9048 = vmatprep.subr.bf16.mxu0 %v9047_v7  ;;  %9128 = vmatprep.subr.bf16.mxu1 %v9127_v8  ;;  %v9067_v7 = vpack.c.bf16 %v1001_v1, %v991_v63  ;;  %v9147_v8 = vpack.c.bf16 %v1003_v3, %v993_v2  ;;  %v1050_v1 = vld [vmem:[%s11528_s6 + $0xa00] sm:$0xff]  ;;  %v1060_v2 = vld [vmem:[%s11528_s6 + $0xa50] sm:$0xff] }
 0x241   :  { %9050 = vmatpush1.bf16.msra.mxu0 %v9049_v15  ;;  %9130 = vmatpush1.bf16.msra.mxu1 %v9129_v17  ;;  %v1021_v15 = vld [vmem:[%s11528_s6 + $0x918] sm:$0xff] }
 0x242   :  { %9052 = vmatprep.subr.bf16.mxu0 %v9051_v20  ;;  %9132 = vmatprep.subr.bf16.mxu1 %v9131_v21  ;;  %v1013_v17 = vld [vmem:[%s11528_s6 + $0x8d8] sm:$0xff]  ;;  %v9071_v18 = vpack.c.bf16 %v1021_v15, %v1011_v14  ;;  %v1010_v20 = vld [vmem:[%s11528_s6 + $0x8c0] sm:$0xff]  ;;  %v1020_v21 = vld [vmem:[%s11528_s6 + $0x910] sm:$0xff]  ;;  %v9081_v14 = vpack.c.bf16 %v1060_v2, %v1050_v1 }
 0x243   :  { %v9151_v22 = vpack.c.bf16 %v1023_v19, %v1013_v17  ;;  %v9073_v23 = vpack.c.bf16 %v1020_v21, %v1010_v20  ;;  %v1070_v17 = vld [vmem:[%s11528_s6 + $0xaa0] sm:$0xff] }
 0x245   :  { %9054 = vmatpush1.bf16.msra.mxu0 %v9053_v28  ;;  %9134 = vmatpush1.bf16.msra.mxu1 %v9133_v29  ;;  %v1041_v28 = vld [vmem:[%s11528_s6 + $0x9b8] sm:$0xff] }
 0x246   :  { %9056 = vmatprep.subr.bf16.mxu0 %v9055_v32  ;;  %9136 = vmatprep.subr.bf16.mxu1 %v9135_v33  ;;  %v1033_v29 = vld [vmem:[%s11528_s6 + $0x978] sm:$0xff]  ;;  %v9075_v30 = vpack.c.bf16 %v1041_v28, %v1031_v27  ;;  %v1030_v32 = vld [vmem:[%s11528_s6 + $0x960] sm:$0xff]  ;;  %v1103_v28 = vld [vmem:[%s11528_s6 + $0xba8] sm:$0xff] }
 0x247   :  { %v9155_v33 = vpack.c.bf16 %v1043_v31, %v1033_v29  ;;  %v9077_v37 = vpack.c.bf16 %v1040_v34, %v1030_v32  ;;  %v1093_v27 = vld [vmem:[%s11528_s6 + $0xb58] sm:$0xff]  ;;  %v1090_v31 = vld [vmem:[%s11528_s6 + $0xb40] sm:$0xff]  ;;  %v1100_v32 = vld [vmem:[%s11528_s6 + $0xb90] sm:$0xff] }
 0x248   :  { %v9167_v35 = vpack.c.bf16 %v1103_v28, %v1093_v27 }
 0x249   :  { %9058 = vmatpush1.bf16.msra.mxu0 %v9057_v40  ;;  %9138 = vmatpush1.bf16.msra.mxu1 %v9137_v41  ;;  %v1061_v40 = vld [vmem:[%s11528_s6 + $0xa58] sm:$0xff] }
 0x24a   :  { %9060 = vmatprep.subr.bf16.mxu0 %v9059_v44  ;;  %9140 = vmatprep.subr.bf16.mxu1 %v9139_v45  ;;  %v1053_v41 = vld [vmem:[%s11528_s6 + $0xa18] sm:$0xff]  ;;  %v9079_v42 = vpack.c.bf16 %v1061_v40, %v1051_v39  ;;  %v526_v45 = vld [vmem:[%s11513_s19] sm:$0x7]  ;;  %s14886_s19 = sld [smem:[#allocation20_spill]] }
 0x24b   :  { %v9159_v44 = vpack.c.bf16 %v1063_v43, %v1053_v41  ;;  %v531_v46 = vrot.slane %v526_v45, %v11757_v60  ;;  %v535_v48 = vrot.slane %v526_v45, %v11761_v62  ;;  %v1121_v39 = vld [vmem:[%s11528_s6 + $0xc38] sm:$0xff]  ;;  %v1123_v41 = vld [vmem:[%s11528_s6 + $0xc48] sm:$0xff] }
 0x24c   :  { %v1113_v40 = vld [vmem:[%s11528_s6 + $0xbf8] sm:$0xff] }
 0x24d   :  { %9062 = vmatpush1.bf16.msra.mxu0 %v9061_v52  ;;  %9142 = vmatpush1.bf16.msra.mxu1 %v9141_v53  ;;  %v695_v52 = vrot.slane %v11957_v47, %v11757_v60  ;;  %v11963_v53 = vld [vmem:[%s14768_s5] sm:$0x7] }
 0x24e   :  { %9064 = vmatprep.subr.bf16.mxu0 %v9063_v56  ;;  %9144 = vmatprep.subr.bf16.mxu1 %v9143_v57  ;;  %v699_v57 = vrot.slane %v11957_v47, %v11761_v62  ;;  %v719_v63 = vrot.slane %v11963_v53, %v11761_v62 }
 0x251   :  { %9066 = vmatpush1.bf16.msra.mxu0 %v9065_v4  ;;  %9146 = vmatpush1.bf16.msra.mxu1 %v9145_v5  ;;  %v715_v4 = vrot.slane %v11963_v53, %v11757_v60  ;;  %v11974_v5 = vsub.s32 2, %v11754_v59 }
 0x252   :  { %9068 = vmatprep.subr.bf16.mxu0 %v9067_v7  ;;  %9148 = vmatprep.subr.bf16.mxu1 %v9147_v8  ;;  %v1062_v7 = vld [vmem:[%s11528_s6 + $0xa60] sm:$0xff]  ;;  %v1071_v8 = vld [vmem:[%s11528_s6 + $0xaa8] sm:$0xff] }
 0x253   :  { %14769 = vst [vmem:[#allocation33_spill] sm:$0xff] %v11974_v5  ;;  %v9161_v15 = vpack.c.bf16 %v1062_v7, %v1052_v6  ;;  %v539_v20 = vrot.slane %v526_v45, %v11974_v5  ;;  %v9083_v21 = vpack.c.bf16 %v1081_v10, %v1071_v8  ;;  %v1120_v45 = vld [vmem:[%s11528_s6 + $0xc30] sm:$0xff]  ;;  %v746_v7 = vld [vmem:[%s11528_s6 + $0x80] sm:$0xff]  ;;  %v755_v8 = vld [vmem:[%s11528_s6 + $0xc8] sm:$0xff] }
 0x254   :  { %v736_v6 = vld [vmem:[%s11528_s6 + $0x30] sm:$0xff]  ;;  %v767_v10 = vld [vmem:[%s11528_s6 + $0x128] sm:$0xff] }
 0x255   :  { %9070 = vmatpush1.bf16.msra.mxu0 %v9069_v12  ;;  %9150 = vmatpush1.bf16.msra.mxu1 %v9149_v13  ;;  %v1083_v12 = vld [vmem:[%s11528_s6 + $0xb08] sm:$0xff] }
 0x256   :  { %9072 = vmatprep.subr.bf16.mxu0 %v9071_v18  ;;  %9152 = vmatprep.subr.bf16.mxu1 %v9151_v22  ;;  %v1080_v18 = vld [vmem:[%s11528_s6 + $0xaf0] sm:$0xff]  ;;  %v9163_v22 = vpack.c.bf16 %v1083_v12, %v1073_v11 }
 0x257   :  { %v9085_v29 = vpack.c.bf16 %v1080_v18, %v1070_v17  ;;  %v764_v17 = vld [vmem:[%s11528_s6 + $0x110] sm:$0xff] }
 0x258   :  { %v756_v18 = vld [vmem:[%s11528_s6 + $0xd0] sm:$0xff] }
 0x259   :  { %9074 = vmatpush1.bf16.msra.mxu0 %v9073_v23  ;;  %9154 = vmatpush1.bf16.msra.mxu1 %v9153_v26  ;;  %v1072_v23 = vld [vmem:[%s11528_s6 + $0xab0] sm:$0xff]  ;;  %v1101_v26 = vld [vmem:[%s11528_s6 + $0xb98] sm:$0xff] }
 0x25a   :  { %9076 = vmatprep.subr.bf16.mxu0 %v9075_v30  ;;  %9156 = vmatprep.subr.bf16.mxu1 %v9155_v33  ;;  %v9165_v30 = vpack.c.bf16 %v1082_v24, %v1072_v23  ;;  %v9087_v34 = vpack.c.bf16 %v1101_v26, %v1091_v25  ;;  %v775_v23 = vld [vmem:[%s11528_s6 + $0x168] sm:$0xff]  ;;  %v785_v24 = vld [vmem:[%s11528_s6 + $0x1b8] sm:$0xff] }
 0x25b   :  { %v777_v25 = vld [vmem:[%s11528_s6 + $0x178] sm:$0xff]  ;;  %v787_v26 = vld [vmem:[%s11528_s6 + $0x1c8] sm:$0xff] }
 0x25d   :  { %9078 = vmatpush1.bf16.msra.mxu0 %v9077_v37  ;;  %9158 = vmatpush1.bf16.msra.mxu1 %v9157_v38  ;;  %v1102_v37 = vld [vmem:[%s11528_s6 + $0xba0] sm:$0xff]  ;;  %v1111_v38 = vld [vmem:[%s11528_s6 + $0xbe8] sm:$0xff] }
 0x25e   :  { %9080 = vmatprep.subr.bf16.mxu0 %v9079_v42  ;;  %9160 = vmatprep.subr.bf16.mxu1 %v9159_v44  ;;  %v9089_v42 = vpack.c.bf16 %v1100_v32, %v1090_v31  ;;  %v9169_v43 = vpack.c.bf16 %v1102_v37, %v1092_v36  ;;  %v1110_v44 = vld [vmem:[%s11528_s6 + $0xbe0] sm:$0xff]  ;;  %v784_v31 = vld [vmem:[%s11528_s6 + $0x1b0] sm:$0xff]  ;;  %v805_v36 = vld [vmem:[%s11528_s6 + $0x258] sm:$0xff] }
 0x25f   :  { %v776_v32 = vld [vmem:[%s11528_s6 + $0x170] sm:$0xff]  ;;  %v797_v37 = vld [vmem:[%s11528_s6 + $0x218] sm:$0xff] }
 0x2f3   :  { %v612_v49 = vpop.f32.mrb[2].mxu0  ;;  %v683_v50 = vpop.f32.mrb[2].mxu1 }
 0x2f4   :  { %v613_v51 = vadd.f32 %v612_v49, %v531_v46  ;;  %v614_v54 = vpop.f32.mrb[3].mxu0  ;;  %v685_v55 = vpop.f32.mrb[3].mxu1  ;;  %v684_v33 = vadd.f32 %v683_v50, %v539_v20  ;;  %v9091_v49 = vpack.c.bf16 %v1121_v39, %v1111_v38  ;;  %v9171_v50 = vpack.c.bf16 %v1123_v41, %v1113_v40  ;;  %v807_v38 = vld [vmem:[%s11528_s6 + $0x268] sm:$0xff] }
 0x2f5   :  { %v615_v56 = vadd.f32 %v614_v54, %v535_v48  ;;  %v703_v48 = vrot.slane %v11957_v47, %v11974_v5  ;;  %v735_v54 = vld [vmem:[%s11528_s6 + $0x28] sm:$0xff]  ;;  %v745_v55 = vld [vmem:[%s11528_s6 + $0x78] sm:$0xff]  ;;  %v9093_v47 = vpack.c.bf16 %v1120_v45, %v1110_v44  ;;  %v796_v44 = vld [vmem:[%s11528_s6 + $0x210] sm:$0xff]  ;;  %v9267_v45 = vpack.c.bf16 %v807_v38, %v797_v37 }
 0x2f6   :  { %v687_v58 = vmax.f32 %v613_v51, 0.0  ;;  %v689_v46 = vmax.f32 %v684_v33, 0.0  ;;  %v1112_v51 = vld [vmem:[%s11528_s6 + $0xbf0] sm:$0xff]  ;;  %v9175_v1 = vpack.c.bf16 %v745_v55, %v735_v54  ;;  %v9263_v33 = vpack.c.bf16 %v787_v26, %v777_v25 }
 0x2f7   :  { %v688_v61 = vmax.f32 %v615_v56, 0.0  ;;  %v737_v56 = vld [vmem:[%s11528_s6 + $0x38] sm:$0xff]  ;;  %v856_v25 = vld [vmem:[%s11528_s6 + $0x3f0] sm:$0xff] }
 0x2f8   :  { %v707_v3 = vmul.f32 %v695_v52, %v687_v58  ;;  %v1122_v52 = vld [vmem:[%s11528_s6 + $0xc40] sm:$0xff]  ;;  %v723_v58 = vrot.slane %v11963_v53, %v11974_v5  ;;  %v765_v53 = vld [vmem:[%s11528_s6 + $0x118] sm:$0xff]  ;;  %v876_v37 = vld [vmem:[%s11528_s6 + $0x490] sm:$0xff] }
 0x2f9   :  { %v708_v9 = vmul.f32 %v699_v57, %v688_v61  ;;  %v747_v57 = vld [vmem:[%s11528_s6 + $0x88] sm:$0xff]  ;;  %v9173_v61 = vpack.c.bf16 %v1122_v52, %v1112_v51  ;;  %v9179_v20 = vpack.c.bf16 %v765_v53, %v755_v8  ;;  %v834_v8 = vld [vmem:[%s11528_s6 + $0x340] sm:$0xff]  ;;  %v844_v53 = vld [vmem:[%s11528_s6 + $0x390] sm:$0xff] }
 0x2fa   :  { %v11986_v19 = vadd.f32 %v715_v4, %v707_v3  ;;  %v9255_v2 = vpack.c.bf16 %v747_v57, %v737_v56  ;;  %v734_v3 = vld [vmem:[%s11528_s6 + $0x20] sm:$0xff]  ;;  %v744_v4 = vld [vmem:[%s11528_s6 + $0x70] sm:$0xff]  ;;  %v827_v51 = vld [vmem:[%s11528_s6 + $0x308] sm:$0xff] }
 0x2fb   :  { %v11982_v13 = vadd.f32 %v719_v63, %v708_v9  ;;  %v709_v63 = vmul.f32 %v703_v48, %v689_v46  ;;  %v757_v9 = vld [vmem:[%s11528_s6 + $0xd8] sm:$0xff]  ;;  %v9177_v11 = vpack.c.bf16 %v744_v4, %v734_v3  ;;  %v806_v46 = vld [vmem:[%s11528_s6 + $0x260] sm:$0xff]  ;;  %v815_v48 = vld [vmem:[%s11528_s6 + $0x2a8] sm:$0xff] }
 0x2fc   :  { %14771 = vst [vmem:[#allocation35_spill] sm:$0xff] %v11986_v19  ;;  %v9269_v54 = vpack.c.bf16 %v806_v46, %v796_v44  ;;  %v814_v56 = vld [vmem:[%s11528_s6 + $0x2a0] sm:$0xff]  ;;  %v824_v57 = vld [vmem:[%s11528_s6 + $0x2f0] sm:$0xff]  ;;  %v847_v3 = vld [vmem:[%s11528_s6 + $0x3a8] sm:$0xff] }
 0x2fd   :  { %14770 = vst [vmem:[#allocation34_spill] sm:$0xff] %v11982_v13  ;;  %1252 = vmatprep.mubr.f32.mxu0 %v11982_v13  ;;  %1394 = vmatprep.mubr.f32.mxu1 %v11982_v13  ;;  %v12029_v12 = vadd.f32 %v723_v58, %v709_v63  ;;  %v816_v58 = vld [vmem:[%s11528_s6 + $0x2b0] sm:$0xff]  ;;  %v835_v63 = vld [vmem:[%s11528_s6 + $0x348] sm:$0xff]  ;;  %v9193_v4 = vpack.c.bf16 %v824_v57, %v814_v56  ;;  %v917_v56 = vld [vmem:[%s11528_s6 + $0x5d8] sm:$0xff] }
 0x2fe   :  { %1253 = vmatmul.mubr.f32.vlgmr.msra.gmra.mrb[4].mxu0 %v11986_v19  ;;  %1395 = vmatmul.mubr.f32.vlgmr.msra.gmra.mrb[4].mxu1 %v11986_v19  ;;  %v927_v57 = vld [vmem:[%s11528_s6 + $0x628] sm:$0xff] }
 0x2ff   :  { %9082 = vmatpush1.bf16.msra.mxu0 %v9081_v14  ;;  %9162 = vmatpush1.bf16.msra.mxu1 %v9161_v15  ;;  %14772 = vst [vmem:[#allocation36_spill] sm:$0xff] %v12029_v12  ;;  %v9257_v14 = vpack.c.bf16 %v746_v7, %v736_v6  ;;  %v754_v15 = vld [vmem:[%s11528_s6 + $0xc0] sm:$0xff] }
 0x300   :  { %9084 = vmatprep.subr.bf16.mxu0 %v9083_v21  ;;  %9164 = vmatprep.subr.bf16.mxu1 %v9163_v22  ;;  %v9259_v21 = vpack.c.bf16 %v767_v10, %v757_v9  ;;  %v766_v22 = vld [vmem:[%s11528_s6 + $0x120] sm:$0xff]  ;;  %v9181_v27 = vpack.c.bf16 %v764_v17, %v754_v15  ;;  %v836_v9 = vld [vmem:[%s11528_s6 + $0x350] sm:$0xff]  ;;  %v865_v15 = vld [vmem:[%s11528_s6 + $0x438] sm:$0xff] }
 0x301   :  { %1323 = vmatprep.mubr.f32.mxu0 %v14699_v0  ;;  %1465 = vmatprep.mubr.f32.mxu1 %v14699_v0  ;;  %v9261_v28 = vpack.c.bf16 %v766_v22, %v756_v18  ;;  %v857_v17 = vld [vmem:[%s11528_s6 + $0x3f8] sm:$0xff]  ;;  %v867_v18 = vld [vmem:[%s11528_s6 + $0x448] sm:$0xff] }
 0x302   :  { %v9279_v26 = vpack.c.bf16 %v867_v18, %v857_v17  ;;  %v936_v17 = vld [vmem:[%s11528_s6 + $0x670] sm:$0xff] }
 0x303   :  { %9086 = vmatpush1.bf16.msra.mxu0 %v9085_v29  ;;  %9166 = vmatpush1.bf16.msra.mxu1 %v9165_v30  ;;  %v9183_v29 = vpack.c.bf16 %v785_v24, %v775_v23  ;;  %v774_v30 = vld [vmem:[%s11528_s6 + $0x160] sm:$0xff]  ;;  %v864_v24 = vld [vmem:[%s11528_s6 + $0x430] sm:$0xff] }
 0x304   :  { %9088 = vmatprep.subr.bf16.mxu0 %v9087_v34  ;;  %9168 = vmatprep.subr.bf16.mxu1 %v9167_v35  ;;  %v786_v34 = vld [vmem:[%s11528_s6 + $0x1c0] sm:$0xff]  ;;  %v795_v35 = vld [vmem:[%s11528_s6 + $0x208] sm:$0xff]  ;;  %v9185_v39 = vpack.c.bf16 %v784_v31, %v774_v30  ;;  %v877_v30 = vld [vmem:[%s11528_s6 + $0x498] sm:$0xff] }
 0x305   :  { %v9265_v40 = vpack.c.bf16 %v786_v34, %v776_v32  ;;  %v9187_v41 = vpack.c.bf16 %v805_v36, %v795_v35  ;;  %v854_v23 = vld [vmem:[%s11528_s6 + $0x3e0] sm:$0xff]  ;;  %v887_v31 = vld [vmem:[%s11528_s6 + $0x4e8] sm:$0xff]  ;;  %v884_v36 = vld [vmem:[%s11528_s6 + $0x4d0] sm:$0xff] }
 0x306   :  { %v9201_v32 = vpack.c.bf16 %v864_v24, %v854_v23  ;;  %v874_v35 = vld [vmem:[%s11528_s6 + $0x480] sm:$0xff]  ;;  %v9283_v38 = vpack.c.bf16 %v887_v31, %v877_v30  ;;  %v957_v23 = vld [vmem:[%s11528_s6 + $0x718] sm:$0xff]  ;;  %v967_v24 = vld [vmem:[%s11528_s6 + $0x768] sm:$0xff] }
 0x307   :  { %9090 = vmatpush1.bf16.msra.mxu0 %v9089_v42  ;;  %9170 = vmatpush1.bf16.msra.mxu1 %v9169_v43  ;;  %v794_v42 = vld [vmem:[%s11528_s6 + $0x200] sm:$0xff]  ;;  %v804_v43 = vld [vmem:[%s11528_s6 + $0x250] sm:$0xff]  ;;  %v9205_v44 = vpack.c.bf16 %v884_v36, %v874_v35  ;;  %v9299_v31 = vpack.c.bf16 %v967_v24, %v957_v23  ;;  %v977_v35 = vld [vmem:[%s11528_s6 + $0x7b8] sm:$0xff] }
 0x308   :  { %9092 = vmatprep.subr.bf16.mxu0 %v9091_v49  ;;  %9172 = vmatprep.subr.bf16.mxu1 %v9171_v50  ;;  %v825_v49 = vld [vmem:[%s11528_s6 + $0x2f8] sm:$0xff]  ;;  %v9189_v52 = vpack.c.bf16 %v804_v43, %v794_v42  ;;  %v907_v43 = vld [vmem:[%s11528_s6 + $0x588] sm:$0xff]  ;;  %v956_v30 = vld [vmem:[%s11528_s6 + $0x710] sm:$0xff] }
 0x309   :  { %v817_v50 = vld [vmem:[%s11528_s6 + $0x2b8] sm:$0xff]  ;;  %v9191_v55 = vpack.c.bf16 %v825_v49, %v815_v48  ;;  %v894_v48 = vld [vmem:[%s11528_s6 + $0x520] sm:$0xff]  ;;  %v904_v49 = vld [vmem:[%s11528_s6 + $0x570] sm:$0xff] }
 0x30a   :  { %v897_v42 = vld [vmem:[%s11528_s6 + $0x538] sm:$0xff]  ;;  %v987_v36 = vld [vmem:[%s11528_s6 + $0x808] sm:$0xff]  ;;  %v1036_v23 = vld [vmem:[%s11528_s6 + $0x990] sm:$0xff] }
 0x30b   :  { %9094 = vmatpush1.bf16.msra.mxu0 %v9093_v47  ;;  %9174 = vmatpush1.bf16.msra.mxu1 %v9173_v61  ;;  %v9271_v47 = vpack.c.bf16 %v827_v51, %v817_v50  ;;  %v826_v61 = vld [vmem:[%s11528_s6 + $0x300] sm:$0xff]  ;;  %v896_v50 = vld [vmem:[%s11528_s6 + $0x530] sm:$0xff]  ;;  %v9287_v51 = vpack.c.bf16 %v907_v43, %v897_v42  ;;  %v9303_v43 = vpack.c.bf16 %v987_v36, %v977_v35 }
 0x30c   :  { %9176 = vmatprep.subr.bf16.mxu0 %v9175_v1  ;;  %9256 = vmatprep.subr.bf16.mxu1 %v9255_v2  ;;  %v845_v1 = vld [vmem:[%s11528_s6 + $0x398] sm:$0xff]  ;;  %v9273_v6 = vpack.c.bf16 %v826_v61, %v816_v58  ;;  %v9209_v58 = vpack.c.bf16 %v904_v49, %v894_v48  ;;  %v976_v42 = vld [vmem:[%s11528_s6 + $0x7b0] sm:$0xff]  ;;  %v1007_v49 = vld [vmem:[%s11528_s6 + $0x8a8] sm:$0xff] }
 0x30d   :  { %v837_v2 = vld [vmem:[%s11528_s6 + $0x358] sm:$0xff]  ;;  %v9195_v7 = vpack.c.bf16 %v845_v1, %v835_v63  ;;  %v914_v63 = vld [vmem:[%s11528_s6 + $0x5c0] sm:$0xff]  ;;  %v924_v1 = vld [vmem:[%s11528_s6 + $0x610] sm:$0xff] }
 0x30e   :  { %8269 = vmatmul.mubr.msk.f32.vlgmr.msra.gmra.mrb[4].mxu0 %vm1184_vm5, %v12029_v12  ;;  %8270 = vmatmul.mubr.msk.f32.vlgmr.msra.gmra.mrb[4].mxu1 %vm1184_vm5, %v12029_v12  ;;  %v9275_v10 = vpack.c.bf16 %v847_v3, %v837_v2  ;;  %v916_v2 = vld [vmem:[%s11528_s6 + $0x5d0] sm:$0xff]  ;;  %v9291_v3 = vpack.c.bf16 %v927_v57, %v917_v56  ;;  %v997_v48 = vld [vmem:[%s11528_s6 + $0x858] sm:$0xff] }
 0x30f   :  { %9178 = vmatpush1.bf16.msra.mxu0 %v9177_v11  ;;  %1536 = vmatprep.mubr.f32.mxu0 %v11982_v13  ;;  %v846_v11 = vld [vmem:[%s11528_s6 + $0x3a0] sm:$0xff]  ;;  %v996_v56 = vld [vmem:[%s11528_s6 + $0x850] sm:$0xff]  ;;  %v9307_v57 = vpack.c.bf16 %v1007_v49, %v997_v48 }
 0x310   :  { %9258 = vmatpush1.bf16.msra.mxu1 %v9257_v14  ;;  %1678 = vmatprep.mubr.f32.mxu1 %v11982_v13  ;;  %v855_v14 = vld [vmem:[%s11528_s6 + $0x3e8] sm:$0xff]  ;;  %v1056_v35 = vld [vmem:[%s11528_s6 + $0xa30] sm:$0xff] }
 0x311   :  { %9180 = vmatprep.subr.bf16.mxu0 %v9179_v20  ;;  %9260 = vmatprep.subr.bf16.mxu1 %v9259_v21  ;;  %v9197_v20 = vpack.c.bf16 %v844_v53, %v834_v8  ;;  %v9277_v21 = vpack.c.bf16 %v846_v11, %v836_v9  ;;  %v9199_v22 = vpack.c.bf16 %v865_v15, %v855_v14  ;;  %v937_v8 = vld [vmem:[%s11528_s6 + $0x678] sm:$0xff]  ;;  %v947_v53 = vld [vmem:[%s11528_s6 + $0x6c8] sm:$0xff]  ;;  %v934_v14 = vld [vmem:[%s11528_s6 + $0x660] sm:$0xff] }
 0x312   :  { %v9213_v9 = vpack.c.bf16 %v924_v1, %v914_v63  ;;  %v944_v15 = vld [vmem:[%s11528_s6 + $0x6b0] sm:$0xff]  ;;  %v9295_v18 = vpack.c.bf16 %v947_v53, %v937_v8  ;;  %v1017_v63 = vld [vmem:[%s11528_s6 + $0x8f8] sm:$0xff]  ;;  %v1027_v1 = vld [vmem:[%s11528_s6 + $0x948] sm:$0xff] }
 0x313   :  { %9182 = vmatpush1.bf16.msra.mxu0 %v9181_v27  ;;  %v866_v27 = vld [vmem:[%s11528_s6 + $0x440] sm:$0xff]  ;;  %v1016_v8 = vld [vmem:[%s11528_s6 + $0x8f0] sm:$0xff]  ;;  %v9311_v53 = vpack.c.bf16 %v1027_v1, %v1017_v63 }
 0x314   :  { %9262 = vmatpush1.bf16.msra.mxu1 %v9261_v28  ;;  %9184 = vmatprep.subr.bf16.mxu0 %v9183_v29  ;;  %v875_v28 = vld [vmem:[%s11528_s6 + $0x488] sm:$0xff]  ;;  %v885_v29 = vld [vmem:[%s11528_s6 + $0x4d8] sm:$0xff]  ;;  %v1076_v48 = vld [vmem:[%s11528_s6 + $0xad0] sm:$0xff] }
 0x315   :  { %9264 = vmatprep.subr.bf16.mxu1 %v9263_v33  ;;  %v9281_v33 = vpack.c.bf16 %v866_v27, %v856_v25  ;;  %v9203_v34 = vpack.c.bf16 %v885_v29, %v875_v28  ;;  %v9217_v25 = vpack.c.bf16 %v944_v15, %v934_v14  ;;  %v954_v28 = vld [vmem:[%s11528_s6 + $0x700] sm:$0xff]  ;;  %v964_v29 = vld [vmem:[%s11528_s6 + $0x750] sm:$0xff]  ;;  %v1037_v14 = vld [vmem:[%s11528_s6 + $0x998] sm:$0xff] }
 0x316   :  { %v1047_v15 = vld [vmem:[%s11528_s6 + $0x9e8] sm:$0xff]  ;;  %v1096_v63 = vld [vmem:[%s11528_s6 + $0xb70] sm:$0xff] }
 0x317   :  { %9186 = vmatpush1.bf16.msra.mxu0 %v9185_v39  ;;  %v886_v39 = vld [vmem:[%s11528_s6 + $0x4e0] sm:$0xff]  ;;  %v9315_v24 = vpack.c.bf16 %v1047_v15, %v1037_v14  ;;  %v1116_v14 = vld [vmem:[%s11528_s6 + $0xc10] sm:$0xff] }
 0x318   :  { %9266 = vmatpush1.bf16.msra.mxu1 %v9265_v40  ;;  %9188 = vmatprep.subr.bf16.mxu0 %v9187_v41  ;;  %v895_v40 = vld [vmem:[%s11528_s6 + $0x528] sm:$0xff]  ;;  %v905_v41 = vld [vmem:[%s11528_s6 + $0x578] sm:$0xff] }
 0x319   :  { %9268 = vmatprep.subr.bf16.mxu1 %v9267_v45  ;;  %v9285_v45 = vpack.c.bf16 %v886_v39, %v876_v37  ;;  %v9207_v46 = vpack.c.bf16 %v905_v41, %v895_v40  ;;  %v9221_v37 = vpack.c.bf16 %v964_v29, %v954_v28  ;;  %v974_v40 = vld [vmem:[%s11528_s6 + $0x7a0] sm:$0xff]  ;;  %v984_v41 = vld [vmem:[%s11528_s6 + $0x7f0] sm:$0xff]  ;;  %v1057_v28 = vld [vmem:[%s11528_s6 + $0xa38] sm:$0xff] }
 0x31a   :  { %v1067_v29 = vld [vmem:[%s11528_s6 + $0xa88] sm:$0xff] }
 0x31b   :  { %9190 = vmatpush1.bf16.msra.mxu0 %v9189_v52  ;;  %v906_v52 = vld [vmem:[%s11528_s6 + $0x580] sm:$0xff]  ;;  %v9319_v36 = vpack.c.bf16 %v1067_v29, %v1057_v28 }
 0x31c   :  { %9270 = vmatpush1.bf16.msra.mxu1 %v9269_v54  ;;  %9192 = vmatprep.subr.bf16.mxu0 %v9191_v55  ;;  %v915_v54 = vld [vmem:[%s11528_s6 + $0x5c8] sm:$0xff]  ;;  %v925_v55 = vld [vmem:[%s11528_s6 + $0x618] sm:$0xff]  ;;  %v1898_v29 = vld [vmem:[%s14773_s9] sm:$0xff] }
 0x31d   :  { %9272 = vmatprep.subr.bf16.mxu1 %v9271_v47  ;;  %v9289_v47 = vpack.c.bf16 %v906_v52, %v896_v50  ;;  %v9211_v61 = vpack.c.bf16 %v925_v55, %v915_v54  ;;  %v9225_v50 = vpack.c.bf16 %v984_v41, %v974_v40  ;;  %v994_v54 = vld [vmem:[%s11528_s6 + $0x840] sm:$0xff]  ;;  %v1004_v55 = vld [vmem:[%s11528_s6 + $0x890] sm:$0xff]  ;;  %v1077_v40 = vld [vmem:[%s11528_s6 + $0xad8] sm:$0xff] }
 0x31e   :  { %v1087_v41 = vld [vmem:[%s11528_s6 + $0xb28] sm:$0xff] }
 0x31f   :  { %9194 = vmatpush1.bf16.msra.mxu0 %v9193_v4  ;;  %v926_v4 = vld [vmem:[%s11528_s6 + $0x620] sm:$0xff]  ;;  %v9323_v49 = vpack.c.bf16 %v1087_v41, %v1077_v40  ;;  %v1928_v41 = vld [vmem:[%s14773_s9 + $0xf0] sm:$0xff] }
 0x320   :  { %9274 = vmatpush1.bf16.msra.mxu1 %v9273_v6  ;;  %9196 = vmatprep.subr.bf16.mxu0 %v9195_v7  ;;  %v935_v6 = vld [vmem:[%s11528_s6 + $0x668] sm:$0xff]  ;;  %v945_v7 = vld [vmem:[%s11528_s6 + $0x6b8] sm:$0xff] }
 0x321   :  { %9276 = vmatprep.subr.bf16.mxu1 %v9275_v10  ;;  %v9293_v10 = vpack.c.bf16 %v926_v4, %v916_v2  ;;  %v9215_v11 = vpack.c.bf16 %v945_v7, %v935_v6  ;;  %v9229_v2 = vpack.c.bf16 %v1004_v55, %v994_v54  ;;  %v1014_v6 = vld [vmem:[%s11528_s6 + $0x8e0] sm:$0xff]  ;;  %v1024_v7 = vld [vmem:[%s11528_s6 + $0x930] sm:$0xff]  ;;  %v1097_v54 = vld [vmem:[%s11528_s6 + $0xb78] sm:$0xff] }
 0x322   :  { %v1107_v55 = vld [vmem:[%s11528_s6 + $0xbc8] sm:$0xff] }
 0x323   :  { %9198 = vmatpush1.bf16.msra.mxu0 %v9197_v20  ;;  %v946_v20 = vld [vmem:[%s11528_s6 + $0x6c0] sm:$0xff]  ;;  %v9327_v1 = vpack.c.bf16 %v1107_v55, %v1097_v54 }
 0x324   :  { %9278 = vmatpush1.bf16.msra.mxu1 %v9277_v21  ;;  %9200 = vmatprep.subr.bf16.mxu0 %v9199_v22  ;;  %v955_v21 = vld [vmem:[%s11528_s6 + $0x708] sm:$0xff]  ;;  %v965_v22 = vld [vmem:[%s11528_s6 + $0x758] sm:$0xff]  ;;  %v1938_v54 = vld [vmem:[%s14773_s9 + $0x140] sm:$0xff] }
 0x325   :  { %9280 = vmatprep.subr.bf16.mxu1 %v9279_v26  ;;  %v9297_v26 = vpack.c.bf16 %v946_v20, %v936_v17  ;;  %v9219_v27 = vpack.c.bf16 %v965_v22, %v955_v21  ;;  %v9233_v17 = vpack.c.bf16 %v1024_v7, %v1014_v6  ;;  %v1034_v21 = vld [vmem:[%s11528_s6 + $0x980] sm:$0xff]  ;;  %v1044_v22 = vld [vmem:[%s11528_s6 + $0x9d0] sm:$0xff]  ;;  %v1117_v6 = vld [vmem:[%s11528_s6 + $0xc18] sm:$0xff] }
 0x326   :  { %v1127_v7 = vld [vmem:[%s11528_s6 + $0xc68] sm:$0xff] }
 0x327   :  { %9202 = vmatpush1.bf16.msra.mxu0 %v9201_v32  ;;  %v966_v32 = vld [vmem:[%s11528_s6 + $0x760] sm:$0xff]  ;;  %v9331_v15 = vpack.c.bf16 %v1127_v7, %v1117_v6 }
 0x328   :  { %9282 = vmatpush1.bf16.msra.mxu1 %v9281_v33  ;;  %9204 = vmatprep.subr.bf16.mxu0 %v9203_v34  ;;  %v975_v33 = vld [vmem:[%s11528_s6 + $0x7a8] sm:$0xff]  ;;  %v985_v34 = vld [vmem:[%s11528_s6 + $0x7f8] sm:$0xff]  ;;  %v1958_v6 = vld [vmem:[%s14773_s9 + $0x1e0] sm:$0xff] }
 0x329   :  { %9284 = vmatprep.subr.bf16.mxu1 %v9283_v38  ;;  %v9301_v38 = vpack.c.bf16 %v966_v32, %v956_v30  ;;  %v9223_v39 = vpack.c.bf16 %v985_v34, %v975_v33  ;;  %v9237_v30 = vpack.c.bf16 %v1044_v22, %v1034_v21  ;;  %v1054_v33 = vld [vmem:[%s11528_s6 + $0xa20] sm:$0xff]  ;;  %v1064_v34 = vld [vmem:[%s11528_s6 + $0xa70] sm:$0xff]  ;;  %v1899_v21 = vld [vmem:[%s14773_s9 + $0x8] sm:$0xff] }
 0x32a   :  { %v1909_v22 = vld [vmem:[%s14773_s9 + $0x58] sm:$0xff] }
 0x32b   :  { %9206 = vmatpush1.bf16.msra.mxu0 %v9205_v44  ;;  %v986_v44 = vld [vmem:[%s11528_s6 + $0x800] sm:$0xff]  ;;  %v9415_v28 = vpack.c.bf16 %v1909_v22, %v1899_v21 }
 0x32c   :  { %9286 = vmatpush1.bf16.msra.mxu1 %v9285_v45  ;;  %9208 = vmatprep.subr.bf16.mxu0 %v9207_v46  ;;  %v995_v45 = vld [vmem:[%s11528_s6 + $0x848] sm:$0xff]  ;;  %v1005_v46 = vld [vmem:[%s11528_s6 + $0x898] sm:$0xff]  ;;  %v1978_v21 = vld [vmem:[%s14773_s9 + $0x280] sm:$0xff] }
 0x32d   :  { %9288 = vmatprep.subr.bf16.mxu1 %v9287_v51  ;;  %v9305_v51 = vpack.c.bf16 %v986_v44, %v976_v42  ;;  %v9227_v52 = vpack.c.bf16 %v1005_v46, %v995_v45  ;;  %v9241_v42 = vpack.c.bf16 %v1064_v34, %v1054_v33  ;;  %v1074_v45 = vld [vmem:[%s11528_s6 + $0xac0] sm:$0xff]  ;;  %v1084_v46 = vld [vmem:[%s11528_s6 + $0xb10] sm:$0xff]  ;;  %v1919_v34 = vld [vmem:[%s14773_s9 + $0xa8] sm:$0xff] }
 0x32f   :  { %9210 = vmatpush1.bf16.msra.mxu0 %v9209_v58  ;;  %v1006_v58 = vld [vmem:[%s11528_s6 + $0x8a0] sm:$0xff] }
 0x330   :  { %9290 = vmatpush1.bf16.msra.mxu1 %v9289_v47  ;;  %9212 = vmatprep.subr.bf16.mxu0 %v9211_v61  ;;  %v1015_v47 = vld [vmem:[%s11528_s6 + $0x8e8] sm:$0xff]  ;;  %v1025_v61 = vld [vmem:[%s11528_s6 + $0x938] sm:$0xff] }
 0x331   :  { %9292 = vmatprep.subr.bf16.mxu1 %v9291_v3  ;;  %v9309_v3 = vpack.c.bf16 %v1006_v58, %v996_v56  ;;  %v9231_v4 = vpack.c.bf16 %v1025_v61, %v1015_v47  ;;  %v9245_v56 = vpack.c.bf16 %v1084_v46, %v1074_v45  ;;  %v1094_v47 = vld [vmem:[%s11528_s6 + $0xb60] sm:$0xff]  ;;  %v1104_v61 = vld [vmem:[%s11528_s6 + $0xbb0] sm:$0xff]  ;;  %v1939_v45 = vld [vmem:[%s14773_s9 + $0x148] sm:$0xff] }
 0x332   :  { %v1949_v46 = vld [vmem:[%s14773_s9 + $0x198] sm:$0xff] }
 0x333   :  { %9214 = vmatpush1.bf16.msra.mxu0 %v9213_v9  ;;  %v1026_v9 = vld [vmem:[%s11528_s6 + $0x940] sm:$0xff]  ;;  %v9423_v55 = vpack.c.bf16 %v1949_v46, %v1939_v45 }
 0x334   :  { %9294 = vmatpush1.bf16.msra.mxu1 %v9293_v10  ;;  %9216 = vmatprep.subr.bf16.mxu0 %v9215_v11  ;;  %v1035_v10 = vld [vmem:[%s11528_s6 + $0x988] sm:$0xff]  ;;  %v1045_v11 = vld [vmem:[%s11528_s6 + $0x9d8] sm:$0xff]  ;;  %v2018_v45 = vld [vmem:[%s14773_s9 + $0x3c0] sm:$0xff] }
 0x335   :  { %9296 = vmatprep.subr.bf16.mxu1 %v9295_v18  ;;  %v9313_v18 = vpack.c.bf16 %v1026_v9, %v1016_v8  ;;  %v9235_v20 = vpack.c.bf16 %v1045_v11, %v1035_v10  ;;  %v9249_v8 = vpack.c.bf16 %v1104_v61, %v1094_v47  ;;  %v1114_v10 = vld [vmem:[%s11528_s6 + $0xc00] sm:$0xff]  ;;  %v1124_v11 = vld [vmem:[%s11528_s6 + $0xc50] sm:$0xff]  ;;  %v1959_v47 = vld [vmem:[%s14773_s9 + $0x1e8] sm:$0xff] }
 0x336   :  { %v1969_v61 = vld [vmem:[%s14773_s9 + $0x238] sm:$0xff] }
 0x337   :  { %9218 = vmatpush1.bf16.msra.mxu0 %v9217_v25  ;;  %v1046_v25 = vld [vmem:[%s11528_s6 + $0x9e0] sm:$0xff]  ;;  %v9427_v7 = vpack.c.bf16 %v1969_v61, %v1959_v47 }
 0x338   :  { %9298 = vmatpush1.bf16.msra.mxu1 %v9297_v26  ;;  %9220 = vmatprep.subr.bf16.mxu0 %v9219_v27  ;;  %v1055_v26 = vld [vmem:[%s11528_s6 + $0xa28] sm:$0xff]  ;;  %v1065_v27 = vld [vmem:[%s11528_s6 + $0xa78] sm:$0xff]  ;;  %v2038_v47 = vld [vmem:[%s14773_s9 + $0x460] sm:$0xff] }
 0x339   :  { %9300 = vmatprep.subr.bf16.mxu1 %v9299_v31  ;;  %v9317_v31 = vpack.c.bf16 %v1046_v25, %v1036_v23  ;;  %v9239_v32 = vpack.c.bf16 %v1065_v27, %v1055_v26  ;;  %v9253_v23 = vpack.c.bf16 %v1124_v11, %v1114_v10  ;;  %v738_v26 = vld [vmem:[%s11528_s6 + $0x40] sm:$0xff]  ;;  %v748_v27 = vld [vmem:[%s11528_s6 + $0x90] sm:$0xff]  ;;  %v1979_v10 = vld [vmem:[%s14773_s9 + $0x288] sm:$0xff] }
 0x33a   :  { %v9337_v33 = vpack.c.bf16 %v748_v27, %v738_v26  ;;  %v1989_v11 = vld [vmem:[%s14773_s9 + $0x2d8] sm:$0xff]  ;;  %v1999_v26 = vld [vmem:[%s14773_s9 + $0x328] sm:$0xff] }
 0x33b   :  { %9222 = vmatpush1.bf16.msra.mxu0 %v9221_v37  ;;  %v1066_v37 = vld [vmem:[%s11528_s6 + $0xa80] sm:$0xff]  ;;  %v9431_v22 = vpack.c.bf16 %v1989_v11, %v1979_v10  ;;  %v2009_v27 = vld [vmem:[%s14773_s9 + $0x378] sm:$0xff] }
 0x33c   :  { %9302 = vmatpush1.bf16.msra.mxu1 %v9301_v38  ;;  %9224 = vmatprep.subr.bf16.mxu0 %v9223_v39  ;;  %v1075_v38 = vld [vmem:[%s11528_s6 + $0xac8] sm:$0xff]  ;;  %v1085_v39 = vld [vmem:[%s11528_s6 + $0xb18] sm:$0xff]  ;;  %v2058_v10 = vld [vmem:[%s14773_s9 + $0x500] sm:$0xff] }
 0x33d   :  { %9304 = vmatprep.subr.bf16.mxu1 %v9303_v43  ;;  %v9321_v43 = vpack.c.bf16 %v1066_v37, %v1056_v35  ;;  %v9243_v44 = vpack.c.bf16 %v1085_v39, %v1075_v38  ;;  %v1929_v35 = vld [vmem:[%s14773_s9 + $0xf8] sm:$0xff]  ;;  %v758_v37 = vld [vmem:[%s11528_s6 + $0xe0] sm:$0xff]  ;;  %v768_v38 = vld [vmem:[%s11528_s6 + $0x130] sm:$0xff] }
 0x33e   :  { %v1918_v39 = vld [vmem:[%s14773_s9 + $0xa0] sm:$0xff] }
 0x33f   :  { %9226 = vmatpush1.bf16.msra.mxu0 %v9225_v50  ;;  %v1086_v50 = vld [vmem:[%s11528_s6 + $0xb20] sm:$0xff] }
 0x340   :  { %9306 = vmatpush1.bf16.msra.mxu1 %v9305_v51  ;;  %9228 = vmatprep.subr.bf16.mxu0 %v9227_v52  ;;  %v1095_v51 = vld [vmem:[%s11528_s6 + $0xb68] sm:$0xff]  ;;  %v1105_v52 = vld [vmem:[%s11528_s6 + $0xbb8] sm:$0xff] }
 0x341   :  { %9308 = vmatprep.subr.bf16.mxu1 %v9307_v57  ;;  %v9325_v57 = vpack.c.bf16 %v1086_v50, %v1076_v48  ;;  %v9247_v58 = vpack.c.bf16 %v1105_v52, %v1095_v51  ;;  %v9341_v48 = vpack.c.bf16 %v768_v38, %v758_v37  ;;  %v778_v51 = vld [vmem:[%s11528_s6 + $0x180] sm:$0xff]  ;;  %v788_v52 = vld [vmem:[%s11528_s6 + $0x1d0] sm:$0xff]  ;;  %v869_v37 = vld [vmem:[%s11528_s6 + $0x458] sm:$0xff] }
 0x342   :  { %v2019_v38 = vld [vmem:[%s14773_s9 + $0x3c8] sm:$0xff] }
 0x343   :  { %9230 = vmatpush1.bf16.msra.mxu0 %v9229_v2  ;;  %v1106_v2 = vld [vmem:[%s11528_s6 + $0xbc0] sm:$0xff] }
 0x344   :  { %9310 = vmatpush1.bf16.msra.mxu1 %v9309_v3  ;;  %9232 = vmatprep.subr.bf16.mxu0 %v9231_v4  ;;  %v1115_v3 = vld [vmem:[%s11528_s6 + $0xc08] sm:$0xff]  ;;  %v1125_v4 = vld [vmem:[%s11528_s6 + $0xc58] sm:$0xff] }
 0x345   :  { %9312 = vmatprep.subr.bf16.mxu1 %v9311_v53  ;;  %v9329_v53 = vpack.c.bf16 %v1106_v2, %v1096_v63  ;;  %v9251_v9 = vpack.c.bf16 %v1125_v4, %v1115_v3  ;;  %v9345_v63 = vpack.c.bf16 %v788_v52, %v778_v51  ;;  %v798_v3 = vld [vmem:[%s11528_s6 + $0x220] sm:$0xff]  ;;  %v808_v4 = vld [vmem:[%s11528_s6 + $0x270] sm:$0xff]  ;;  %v2039_v51 = vld [vmem:[%s14773_s9 + $0x468] sm:$0xff] }
 0x346   :  { %v2049_v52 = vld [vmem:[%s14773_s9 + $0x4b8] sm:$0xff] }
 0x347   :  { %9234 = vmatpush1.bf16.msra.mxu0 %v9233_v17  ;;  %v1126_v17 = vld [vmem:[%s11528_s6 + $0xc60] sm:$0xff]  ;;  %v9443_v61 = vpack.c.bf16 %v2049_v52, %v2039_v51 }
 0x348   :  { %9314 = vmatpush1.bf16.msra.mxu1 %v9313_v18  ;;  %9236 = vmatprep.subr.bf16.mxu0 %v9235_v20  ;;  %v739_v18 = vld [vmem:[%s11528_s6 + $0x48] sm:$0xff]  ;;  %v749_v20 = vld [vmem:[%s11528_s6 + $0x98] sm:$0xff]  ;;  %v2118_v51 = vld [vmem:[%s14773_s9 + $0x6e0] sm:$0xff] }
 0x349   :  { %9316 = vmatprep.subr.bf16.mxu1 %v9315_v24  ;;  %v9333_v24 = vpack.c.bf16 %v1126_v17, %v1116_v14  ;;  %v9335_v25 = vpack.c.bf16 %v749_v20, %v739_v18  ;;  %v9349_v14 = vpack.c.bf16 %v808_v4, %v798_v3  ;;  %v818_v18 = vld [vmem:[%s11528_s6 + $0x2c0] sm:$0xff]  ;;  %v828_v20 = vld [vmem:[%s11528_s6 + $0x310] sm:$0xff]  ;;  %v2059_v3 = vld [vmem:[%s14773_s9 + $0x508] sm:$0xff] }
 0x34a   :  { %v2069_v4 = vld [vmem:[%s14773_s9 + $0x558] sm:$0xff] }
 0x34b   :  { %9238 = vmatpush1.bf16.msra.mxu0 %v9237_v30  ;;  %v1908_v30 = vld [vmem:[%s14773_s9 + $0x50] sm:$0xff]  ;;  %v9447_v11 = vpack.c.bf16 %v2069_v4, %v2059_v3  ;;  %v2138_v3 = vld [vmem:[%s14773_s9 + $0x780] sm:$0xff] }
 0x34c   :  { %9318 = vmatpush1.bf16.msra.mxu1 %v9317_v31  ;;  %9240 = vmatprep.subr.bf16.mxu0 %v9239_v32  ;;  %v759_v31 = vld [vmem:[%s11528_s6 + $0xe8] sm:$0xff]  ;;  %v769_v32 = vld [vmem:[%s11528_s6 + $0x138] sm:$0xff] }
 0x34d   :  { %9320 = vmatprep.subr.bf16.mxu1 %v9319_v36  ;;  %v9417_v36 = vpack.c.bf16 %v1908_v30, %v1898_v29  ;;  %v9339_v40 = vpack.c.bf16 %v769_v32, %v759_v31  ;;  %v838_v31 = vld [vmem:[%s11528_s6 + $0x360] sm:$0xff]  ;;  %v848_v32 = vld [vmem:[%s11528_s6 + $0x3b0] sm:$0xff] }
 0x34e   :  { %1537 = vmatmul.mubr.f32.vlgmr.msra.gmra.mrb[6].mxu0 %v11986_v19 }
 0x34f   :  { %1679 = vmatmul.mubr.f32.vlgmr.msra.gmra.mrb[6].mxu1 %v11986_v19  ;;  %9242 = vmatpush1.bf16.msra.mxu0 %v9241_v42  ;;  %v779_v42 = vld [vmem:[%s11528_s6 + $0x188] sm:$0xff] }
 0x350   :  { %9322 = vmatpush1.bf16.msra.mxu1 %v9321_v43  ;;  %9244 = vmatprep.subr.bf16.mxu0 %v9243_v44  ;;  %v789_v43 = vld [vmem:[%s11528_s6 + $0x1d8] sm:$0xff]  ;;  %v9419_v44 = vpack.c.bf16 %v1929_v35, %v1919_v34  ;;  %v9435_v34 = vpack.c.bf16 %v2009_v27, %v1999_v26  ;;  %v2008_v35 = vld [vmem:[%s14773_s9 + $0x370] sm:$0xff]  ;;  %v2078_v26 = vld [vmem:[%s14773_s9 + $0x5a0] sm:$0xff] }
 0x351   :  { %9324 = vmatprep.subr.bf16.mxu1 %v9323_v49  ;;  %1607 = vmatprep.mubr.f32.mxu0 %v14699_v0  ;;  %v9421_v49 = vpack.c.bf16 %v1928_v41, %v1918_v39  ;;  %v9343_v50 = vpack.c.bf16 %v789_v43, %v779_v42  ;;  %v2029_v39 = vld [vmem:[%s14773_s9 + $0x418] sm:$0xff]  ;;  %v858_v43 = vld [vmem:[%s11528_s6 + $0x400] sm:$0xff] }
 0x352   :  { %1749 = vmatprep.mubr.f32.mxu1 %v14699_v0  ;;  %v9439_v46 = vpack.c.bf16 %v2029_v39, %v2019_v38  ;;  %v2098_v38 = vld [vmem:[%s14773_s9 + $0x640] sm:$0xff] }
 0x353   :  { %9246 = vmatpush1.bf16.msra.mxu0 %v9245_v56  ;;  %v1948_v56 = vld [vmem:[%s14773_s9 + $0x190] sm:$0xff] }
 0x354   :  { %9326 = vmatpush1.bf16.msra.mxu1 %v9325_v57  ;;  %9248 = vmatprep.subr.bf16.mxu0 %v9247_v58  ;;  %v799_v57 = vld [vmem:[%s11528_s6 + $0x228] sm:$0xff]  ;;  %v809_v58 = vld [vmem:[%s11528_s6 + $0x278] sm:$0xff] }
 0x355   :  { %9328 = vmatprep.subr.bf16.mxu1 %v9327_v1  ;;  %v9425_v1 = vpack.c.bf16 %v1948_v56, %v1938_v54  ;;  %v9347_v2 = vpack.c.bf16 %v809_v58, %v799_v57  ;;  %v878_v57 = vld [vmem:[%s11528_s6 + $0x4a0] sm:$0xff]  ;;  %v888_v58 = vld [vmem:[%s11528_s6 + $0x4f0] sm:$0xff] }
 0x357   :  { %9250 = vmatpush1.bf16.msra.mxu0 %v9249_v8  ;;  %v1968_v8 = vld [vmem:[%s14773_s9 + $0x230] sm:$0xff] }
 0x358   :  { %9330 = vmatpush1.bf16.msra.mxu1 %v9329_v53  ;;  %9252 = vmatprep.subr.bf16.mxu0 %v9251_v9  ;;  %v819_v53 = vld [vmem:[%s11528_s6 + $0x2c8] sm:$0xff]  ;;  %v829_v9 = vld [vmem:[%s11528_s6 + $0x318] sm:$0xff] }
 0x359   :  { %9332 = vmatprep.subr.bf16.mxu1 %v9331_v15  ;;  %v9429_v15 = vpack.c.bf16 %v1968_v8, %v1958_v6  ;;  %v9351_v17 = vpack.c.bf16 %v829_v9, %v819_v53  ;;  %v9365_v6 = vpack.c.bf16 %v888_v58, %v878_v57  ;;  %v898_v53 = vld [vmem:[%s11528_s6 + $0x540] sm:$0xff]  ;;  %v908_v9 = vld [vmem:[%s11528_s6 + $0x590] sm:$0xff]  ;;  %v2139_v57 = vld [vmem:[%s14773_s9 + $0x788] sm:$0xff] }
 0x35a   :  { %v2149_v58 = vld [vmem:[%s14773_s9 + $0x7d8] sm:$0xff] }
 0x35b   :  { %9254 = vmatpush1.bf16.msra.mxu0 %v9253_v23  ;;  %v1988_v23 = vld [vmem:[%s14773_s9 + $0x2d0] sm:$0xff]  ;;  %v9463_v4 = vpack.c.bf16 %v2149_v58, %v2139_v57  ;;  %v2218_v57 = vld [vmem:[%s14773_s9 + $0xa00] sm:$0xff] }
 0x35c   :  { %9334 = vmatpush1.bf16.msra.mxu1 %v9333_v24  ;;  %9336 = vmatprep.subr.bf16.mxu0 %v9335_v25  ;;  %v839_v24 = vld [vmem:[%s11528_s6 + $0x368] sm:$0xff]  ;;  %v849_v25 = vld [vmem:[%s11528_s6 + $0x3b8] sm:$0xff]  ;;  %v9433_v29 = vpack.c.bf16 %v1988_v23, %v1978_v21  ;;  %v9369_v21 = vpack.c.bf16 %v908_v9, %v898_v53 }
 0x35d   :  { %9416 = vmatprep.subr.bf16.mxu1 %v9415_v28  ;;  %v9353_v28 = vpack.c.bf16 %v828_v20, %v818_v18  ;;  %v9355_v30 = vpack.c.bf16 %v849_v25, %v839_v24  ;;  %v2079_v18 = vld [vmem:[%s14773_s9 + $0x5a8] sm:$0xff]  ;;  %v2089_v20 = vld [vmem:[%s14773_s9 + $0x5f8] sm:$0xff]  ;;  %v918_v24 = vld [vmem:[%s11528_s6 + $0x5e0] sm:$0xff] }
 0x35e   :  { %8271 = vmatmul.mubr.msk.f32.vlgmr.msra.gmra.mrb[6].mxu0 %vm1184_vm5, %v12029_v12  ;;  %v928_v25 = vld [vmem:[%s11528_s6 + $0x630] sm:$0xff]  ;;  %v9451_v27 = vpack.c.bf16 %v2089_v20, %v2079_v18  ;;  %v2159_v53 = vld [vmem:[%s14773_s9 + $0x828] sm:$0xff]  ;;  %v2169_v9 = vld [vmem:[%s14773_s9 + $0x878] sm:$0xff] }
 0x35f   :  { %8272 = vmatmul.mubr.msk.f32.vlgmr.msra.gmra.mrb[6].mxu1 %vm1184_vm5, %v12029_v12  ;;  %9338 = vmatpush1.bf16.msra.mxu0 %v9337_v33  ;;  %v1998_v33 = vld [vmem:[%s14773_s9 + $0x320] sm:$0xff]  ;;  %v9467_v20 = vpack.c.bf16 %v2169_v9, %v2159_v53 }
 0x360   :  { %1820 = vmatprep.mubr.f32.mxu0 %v11982_v13  ;;  %9418 = vmatpush1.bf16.msra.mxu1 %v9417_v36  ;;  %v859_v36 = vld [vmem:[%s11528_s6 + $0x408] sm:$0xff]  ;;  %v9437_v41 = vpack.c.bf16 %v2008_v35, %v1998_v33  ;;  %v9373_v33 = vpack.c.bf16 %v928_v25, %v918_v24  ;;  %v2158_v18 = vld [vmem:[%s14773_s9 + $0x820] sm:$0xff]  ;;  %v2189_v25 = vld [vmem:[%s14773_s9 + $0x918] sm:$0xff] }
 0x361   :  { %2416 = vmatprep.mubr.f32.mxu1 %v11982_v13  ;;  %9340 = vmatprep.subr.bf16.mxu0 %v9339_v40  ;;  %v9357_v40 = vpack.c.bf16 %v848_v32, %v838_v31  ;;  %v9359_v42 = vpack.c.bf16 %v869_v37, %v859_v36  ;;  %v2099_v31 = vld [vmem:[%s14773_s9 + $0x648] sm:$0xff]  ;;  %v2109_v32 = vld [vmem:[%s14773_s9 + $0x698] sm:$0xff]  ;;  %v938_v36 = vld [vmem:[%s11528_s6 + $0x680] sm:$0xff] }
 0x362   :  { %9420 = vmatprep.subr.bf16.mxu1 %v9419_v44  ;;  %v868_v44 = vld [vmem:[%s11528_s6 + $0x450] sm:$0xff]  ;;  %v9455_v39 = vpack.c.bf16 %v2109_v32, %v2099_v31  ;;  %v2179_v24 = vld [vmem:[%s14773_s9 + $0x8c8] sm:$0xff]  ;;  %v2178_v31 = vld [vmem:[%s14773_s9 + $0x8c0] sm:$0xff] }
 0x363   :  { %9342 = vmatpush1.bf16.msra.mxu0 %v9341_v48  ;;  %v2028_v48 = vld [vmem:[%s14773_s9 + $0x410] sm:$0xff]  ;;  %v9361_v54 = vpack.c.bf16 %v868_v44, %v858_v43  ;;  %v2119_v43 = vld [vmem:[%s14773_s9 + $0x6e8] sm:$0xff]  ;;  %v2129_v44 = vld [vmem:[%s14773_s9 + $0x738] sm:$0xff]  ;;  %v9471_v32 = vpack.c.bf16 %v2189_v25, %v2179_v24 }
 0x364   :  { %9422 = vmatpush1.bf16.msra.mxu1 %v9421_v49  ;;  %9344 = vmatprep.subr.bf16.mxu0 %v9343_v50  ;;  %v879_v49 = vld [vmem:[%s11528_s6 + $0x4a8] sm:$0xff]  ;;  %v889_v50 = vld [vmem:[%s11528_s6 + $0x4f8] sm:$0xff]  ;;  %v948_v37 = vld [vmem:[%s11528_s6 + $0x6d0] sm:$0xff]  ;;  %v9459_v52 = vpack.c.bf16 %v2129_v44, %v2119_v43 }
 0x365   :  { %9424 = vmatprep.subr.bf16.mxu1 %v9423_v55  ;;  %v9441_v55 = vpack.c.bf16 %v2028_v48, %v2018_v45  ;;  %v9363_v56 = vpack.c.bf16 %v889_v50, %v879_v49  ;;  %v9377_v45 = vpack.c.bf16 %v948_v37, %v938_v36  ;;  %v958_v49 = vld [vmem:[%s11528_s6 + $0x720] sm:$0xff]  ;;  %v968_v50 = vld [vmem:[%s11528_s6 + $0x770] sm:$0xff]  ;;  %v2199_v36 = vld [vmem:[%s14773_s9 + $0x968] sm:$0xff] }
 0x366   :  { %v2209_v37 = vld [vmem:[%s14773_s9 + $0x9b8] sm:$0xff]  ;;  %v2198_v43 = vld [vmem:[%s14773_s9 + $0x960] sm:$0xff] }
 0x367   :  { %9346 = vmatpush1.bf16.msra.mxu0 %v9345_v63  ;;  %v2048_v63 = vld [vmem:[%s14773_s9 + $0x4b0] sm:$0xff]  ;;  %v9475_v44 = vpack.c.bf16 %v2209_v37, %v2199_v36  ;;  %v2238_v53 = vld [vmem:[%s14773_s9 + $0xaa0] sm:$0xff] }
 0x368   :  { %9426 = vmatpush1.bf16.msra.mxu1 %v9425_v1  ;;  %9348 = vmatprep.subr.bf16.mxu0 %v9347_v2  ;;  %v899_v1 = vld [vmem:[%s11528_s6 + $0x548] sm:$0xff]  ;;  %v909_v2 = vld [vmem:[%s11528_s6 + $0x598] sm:$0xff]  ;;  %v2258_v24 = vld [vmem:[%s14773_s9 + $0xb40] sm:$0xff] }
 0x369   :  { %9428 = vmatprep.subr.bf16.mxu1 %v9427_v7  ;;  %v9445_v7 = vpack.c.bf16 %v2048_v63, %v2038_v47  ;;  %v9367_v8 = vpack.c.bf16 %v909_v2, %v899_v1  ;;  %v9381_v47 = vpack.c.bf16 %v968_v50, %v958_v49  ;;  %v978_v1 = vld [vmem:[%s11528_s6 + $0x7c0] sm:$0xff]  ;;  %v988_v2 = vld [vmem:[%s11528_s6 + $0x810] sm:$0xff]  ;;  %v2219_v49 = vld [vmem:[%s14773_s9 + $0xa08] sm:$0xff] }
 0x36a   :  { %v2229_v50 = vld [vmem:[%s14773_s9 + $0xa58] sm:$0xff]  ;;  %v2278_v36 = vld [vmem:[%s14773_s9 + $0xbe0] sm:$0xff] }
 0x36b   :  { %9350 = vmatpush1.bf16.msra.mxu0 %v9349_v14  ;;  %v2068_v14 = vld [vmem:[%s14773_s9 + $0x550] sm:$0xff]  ;;  %v9479_v58 = vpack.c.bf16 %v2229_v50, %v2219_v49  ;;  %v1902_v50 = vld [vmem:[%s14773_s9 + $0x20] sm:$0xff] }
 0x36c   :  { %9430 = vmatpush1.bf16.msra.mxu1 %v9429_v15  ;;  %9352 = vmatprep.subr.bf16.mxu0 %v9351_v17  ;;  %v919_v15 = vld [vmem:[%s11528_s6 + $0x5e8] sm:$0xff]  ;;  %v929_v17 = vld [vmem:[%s11528_s6 + $0x638] sm:$0xff] }
 0x36d   :  { %9432 = vmatprep.subr.bf16.mxu1 %v9431_v22  ;;  %v9449_v22 = vpack.c.bf16 %v2068_v14, %v2058_v10  ;;  %v9371_v23 = vpack.c.bf16 %v929_v17, %v919_v15  ;;  %v9385_v10 = vpack.c.bf16 %v988_v2, %v978_v1  ;;  %v998_v15 = vld [vmem:[%s11528_s6 + $0x860] sm:$0xff]  ;;  %v1008_v17 = vld [vmem:[%s11528_s6 + $0x8b0] sm:$0xff]  ;;  %v2239_v1 = vld [vmem:[%s14773_s9 + $0xaa8] sm:$0xff] }
 0x36e   :  { %v2249_v2 = vld [vmem:[%s14773_s9 + $0xaf8] sm:$0xff] }
 0x36f   :  { %9354 = vmatpush1.bf16.msra.mxu0 %v9353_v28  ;;  %v2088_v28 = vld [vmem:[%s14773_s9 + $0x5f0] sm:$0xff]  ;;  %v9483_v9 = vpack.c.bf16 %v2249_v2, %v2239_v1 }
 0x370   :  { %9434 = vmatpush1.bf16.msra.mxu1 %v9433_v29  ;;  %9356 = vmatprep.subr.bf16.mxu0 %v9355_v30  ;;  %v939_v29 = vld [vmem:[%s11528_s6 + $0x688] sm:$0xff]  ;;  %v949_v30 = vld [vmem:[%s11528_s6 + $0x6d8] sm:$0xff]  ;;  %v1932_v2 = vld [vmem:[%s14773_s9 + $0x110] sm:$0xff] }
 0x371   :  { %9436 = vmatprep.subr.bf16.mxu1 %v9435_v34  ;;  %v9453_v34 = vpack.c.bf16 %v2088_v28, %v2078_v26  ;;  %v9375_v35 = vpack.c.bf16 %v949_v30, %v939_v29  ;;  %v9389_v26 = vpack.c.bf16 %v1008_v17, %v998_v15  ;;  %v1018_v29 = vld [vmem:[%s11528_s6 + $0x900] sm:$0xff]  ;;  %v1028_v30 = vld [vmem:[%s11528_s6 + $0x950] sm:$0xff]  ;;  %v2259_v15 = vld [vmem:[%s14773_s9 + $0xb48] sm:$0xff] }
 0x372   :  { %v2269_v17 = vld [vmem:[%s14773_s9 + $0xb98] sm:$0xff] }
 0x373   :  { %9358 = vmatpush1.bf16.msra.mxu0 %v9357_v40  ;;  %v2108_v40 = vld [vmem:[%s14773_s9 + $0x690] sm:$0xff]  ;;  %v9487_v25 = vpack.c.bf16 %v2269_v17, %v2259_v15  ;;  %v1942_v15 = vld [vmem:[%s14773_s9 + $0x160] sm:$0xff] }
 0x374   :  { %9438 = vmatpush1.bf16.msra.mxu1 %v9437_v41  ;;  %9360 = vmatprep.subr.bf16.mxu0 %v9359_v42  ;;  %v959_v41 = vld [vmem:[%s11528_s6 + $0x728] sm:$0xff]  ;;  %v969_v42 = vld [vmem:[%s11528_s6 + $0x778] sm:$0xff] }
 0x375   :  { %9440 = vmatprep.subr.bf16.mxu1 %v9439_v46  ;;  %v9457_v46 = vpack.c.bf16 %v2108_v40, %v2098_v38  ;;  %v9379_v48 = vpack.c.bf16 %v969_v42, %v959_v41  ;;  %v9393_v38 = vpack.c.bf16 %v1028_v30, %v1018_v29  ;;  %v1038_v41 = vld [vmem:[%s11528_s6 + $0x9a0] sm:$0xff]  ;;  %v1048_v42 = vld [vmem:[%s11528_s6 + $0x9f0] sm:$0xff]  ;;  %v2279_v29 = vld [vmem:[%s14773_s9 + $0xbe8] sm:$0xff] }
 0x376   :  { %v2289_v30 = vld [vmem:[%s14773_s9 + $0xc38] sm:$0xff] }
 0x377   :  { %9362 = vmatpush1.bf16.msra.mxu0 %v9361_v54  ;;  %v2128_v54 = vld [vmem:[%s14773_s9 + $0x730] sm:$0xff]  ;;  %v9491_v37 = vpack.c.bf16 %v2289_v30, %v2279_v29  ;;  %v1962_v29 = vld [vmem:[%s14773_s9 + $0x200] sm:$0xff] }
 0x378   :  { %9442 = vmatpush1.bf16.msra.mxu1 %v9441_v55  ;;  %9364 = vmatprep.subr.bf16.mxu0 %v9363_v56  ;;  %v979_v55 = vld [vmem:[%s11528_s6 + $0x7c8] sm:$0xff]  ;;  %v989_v56 = vld [vmem:[%s11528_s6 + $0x818] sm:$0xff] }
 0x379   :  { %9444 = vmatprep.subr.bf16.mxu1 %v9443_v61  ;;  %v9461_v61 = vpack.c.bf16 %v2128_v54, %v2118_v51  ;;  %v9383_v63 = vpack.c.bf16 %v989_v56, %v979_v55  ;;  %v9397_v51 = vpack.c.bf16 %v1048_v42, %v1038_v41  ;;  %v1058_v55 = vld [vmem:[%s11528_s6 + $0xa40] sm:$0xff]  ;;  %v1068_v56 = vld [vmem:[%s11528_s6 + $0xa90] sm:$0xff]  ;;  %v1903_v41 = vld [vmem:[%s14773_s9 + $0x28] sm:$0xff] }
 0x37a   :  { %v1913_v42 = vld [vmem:[%s14773_s9 + $0x78] sm:$0xff] }
 0x37b   :  { %9366 = vmatpush1.bf16.msra.mxu0 %v9365_v6  ;;  %v2148_v6 = vld [vmem:[%s14773_s9 + $0x7d0] sm:$0xff]  ;;  %v9575_v49 = vpack.c.bf16 %v1913_v42, %v1903_v41  ;;  %v1982_v41 = vld [vmem:[%s14773_s9 + $0x2a0] sm:$0xff] }
 0x37c   :  { %9446 = vmatpush1.bf16.msra.mxu1 %v9445_v7  ;;  %9368 = vmatprep.subr.bf16.mxu0 %v9367_v8  ;;  %v999_v7 = vld [vmem:[%s11528_s6 + $0x868] sm:$0xff]  ;;  %v1009_v8 = vld [vmem:[%s11528_s6 + $0x8b8] sm:$0xff] }
 0x37d   :  { %9448 = vmatprep.subr.bf16.mxu1 %v9447_v11  ;;  %v9465_v11 = vpack.c.bf16 %v2148_v6, %v2138_v3  ;;  %v9387_v14 = vpack.c.bf16 %v1009_v8, %v999_v7  ;;  %v9401_v3 = vpack.c.bf16 %v1068_v56, %v1058_v55  ;;  %v1078_v7 = vld [vmem:[%s11528_s6 + $0xae0] sm:$0xff]  ;;  %v1088_v8 = vld [vmem:[%s11528_s6 + $0xb30] sm:$0xff]  ;;  %v1923_v56 = vld [vmem:[%s14773_s9 + $0xc8] sm:$0xff] }
 0x37f   :  { %9370 = vmatpush1.bf16.msra.mxu0 %v9369_v21  ;;  %v2168_v21 = vld [vmem:[%s14773_s9 + $0x870] sm:$0xff] }
 0x380   :  { %9450 = vmatpush1.bf16.msra.mxu1 %v9449_v22  ;;  %9372 = vmatprep.subr.bf16.mxu0 %v9371_v23  ;;  %v1019_v22 = vld [vmem:[%s11528_s6 + $0x908] sm:$0xff]  ;;  %v1029_v23 = vld [vmem:[%s11528_s6 + $0x958] sm:$0xff] }
 0x381   :  { %9452 = vmatprep.subr.bf16.mxu1 %v9451_v27  ;;  %v9469_v27 = vpack.c.bf16 %v2168_v21, %v2158_v18  ;;  %v9391_v28 = vpack.c.bf16 %v1029_v23, %v1019_v22  ;;  %v9405_v18 = vpack.c.bf16 %v1088_v8, %v1078_v7  ;;  %v1098_v22 = vld [vmem:[%s11528_s6 + $0xb80] sm:$0xff]  ;;  %v1108_v23 = vld [vmem:[%s11528_s6 + $0xbd0] sm:$0xff]  ;;  %v1943_v7 = vld [vmem:[%s14773_s9 + $0x168] sm:$0xff] }
 0x382   :  { %v1953_v8 = vld [vmem:[%s14773_s9 + $0x1b8] sm:$0xff] }
 0x383   :  { %9374 = vmatpush1.bf16.msra.mxu0 %v9373_v33  ;;  %v2188_v33 = vld [vmem:[%s14773_s9 + $0x910] sm:$0xff]  ;;  %v9583_v17 = vpack.c.bf16 %v1953_v8, %v1943_v7  ;;  %v2022_v7 = vld [vmem:[%s14773_s9 + $0x3e0] sm:$0xff] }
 0x384   :  { %9454 = vmatpush1.bf16.msra.mxu1 %v9453_v34  ;;  %9376 = vmatprep.subr.bf16.mxu0 %v9375_v35  ;;  %v1039_v34 = vld [vmem:[%s11528_s6 + $0x9a8] sm:$0xff]  ;;  %v1049_v35 = vld [vmem:[%s11528_s6 + $0x9f8] sm:$0xff] }
 0x385   :  { %9456 = vmatprep.subr.bf16.mxu1 %v9455_v39  ;;  %v9473_v39 = vpack.c.bf16 %v2188_v33, %v2178_v31  ;;  %v9395_v40 = vpack.c.bf16 %v1049_v35, %v1039_v34  ;;  %v9409_v31 = vpack.c.bf16 %v1108_v23, %v1098_v22  ;;  %v1118_v34 = vld [vmem:[%s11528_s6 + $0xc20] sm:$0xff]  ;;  %v1128_v35 = vld [vmem:[%s11528_s6 + $0xc70] sm:$0xff]  ;;  %v1963_v22 = vld [vmem:[%s14773_s9 + $0x208] sm:$0xff] }
 0x386   :  { %v1973_v23 = vld [vmem:[%s14773_s9 + $0x258] sm:$0xff] }
 0x387   :  { %9378 = vmatpush1.bf16.msra.mxu0 %v9377_v45  ;;  %v2208_v45 = vld [vmem:[%s14773_s9 + $0x9b0] sm:$0xff]  ;;  %v9587_v30 = vpack.c.bf16 %v1973_v23, %v1963_v22  ;;  %v2042_v22 = vld [vmem:[%s14773_s9 + $0x480] sm:$0xff] }
 0x388   :  { %9458 = vmatpush1.bf16.msra.mxu1 %v9457_v46  ;;  %9380 = vmatprep.subr.bf16.mxu0 %v9379_v48  ;;  %v1059_v46 = vld [vmem:[%s11528_s6 + $0xa48] sm:$0xff]  ;;  %v1069_v48 = vld [vmem:[%s11528_s6 + $0xa98] sm:$0xff] }
 0x389   :  { %9460 = vmatprep.subr.bf16.mxu1 %v9459_v52  ;;  %v9477_v52 = vpack.c.bf16 %v2208_v45, %v2198_v43  ;;  %v9399_v54 = vpack.c.bf16 %v1069_v48, %v1059_v46  ;;  %v9413_v43 = vpack.c.bf16 %v1128_v35, %v1118_v34  ;;  %v1900_v46 = vld [vmem:[%s14773_s9 + $0x10] sm:$0xff]  ;;  %v1910_v48 = vld [vmem:[%s14773_s9 + $0x60] sm:$0xff]  ;;  %v1983_v34 = vld [vmem:[%s14773_s9 + $0x2a8] sm:$0xff] }
 0x38a   :  { %v9497_v55 = vpack.c.bf16 %v1910_v48, %v1900_v46  ;;  %v1993_v35 = vld [vmem:[%s14773_s9 + $0x2f8] sm:$0xff]  ;;  %v2003_v46 = vld [vmem:[%s14773_s9 + $0x348] sm:$0xff] }
 0x38b   :  { %9382 = vmatpush1.bf16.msra.mxu0 %v9381_v47  ;;  %v2228_v47 = vld [vmem:[%s14773_s9 + $0xa50] sm:$0xff]  ;;  %v9591_v42 = vpack.c.bf16 %v1993_v35, %v1983_v34  ;;  %v2013_v48 = vld [vmem:[%s14773_s9 + $0x398] sm:$0xff]  ;;  %v2062_v34 = vld [vmem:[%s14773_s9 + $0x520] sm:$0xff] }
 0x38c   :  { %9462 = vmatpush1.bf16.msra.mxu1 %v9461_v61  ;;  %9384 = vmatprep.subr.bf16.mxu0 %v9383_v63  ;;  %v1079_v61 = vld [vmem:[%s11528_s6 + $0xae8] sm:$0xff]  ;;  %v1089_v63 = vld [vmem:[%s11528_s6 + $0xb38] sm:$0xff] }
 0x38d   :  { %9464 = vmatprep.subr.bf16.mxu1 %v9463_v4  ;;  %v9481_v4 = vpack.c.bf16 %v2228_v47, %v2218_v57  ;;  %v9403_v6 = vpack.c.bf16 %v1089_v63, %v1079_v61  ;;  %v1933_v57 = vld [vmem:[%s14773_s9 + $0x118] sm:$0xff]  ;;  %v1920_v47 = vld [vmem:[%s14773_s9 + $0xb0] sm:$0xff]  ;;  %v1930_v61 = vld [vmem:[%s14773_s9 + $0x100] sm:$0xff] }
 0x38e   :  { %v1922_v63 = vld [vmem:[%s14773_s9 + $0xc0] sm:$0xff] }
 0x38f   :  { %9386 = vmatpush1.bf16.msra.mxu0 %v9385_v10  ;;  %v2248_v10 = vld [vmem:[%s14773_s9 + $0xaf0] sm:$0xff] }
 0x390   :  { %9466 = vmatpush1.bf16.msra.mxu1 %v9465_v11  ;;  %9388 = vmatprep.subr.bf16.mxu0 %v9387_v14  ;;  %v1099_v11 = vld [vmem:[%s11528_s6 + $0xb88] sm:$0xff]  ;;  %v1109_v14 = vld [vmem:[%s11528_s6 + $0xbd8] sm:$0xff] }
 0x391   :  { %9468 = vmatprep.subr.bf16.mxu1 %v9467_v20  ;;  %v9485_v20 = vpack.c.bf16 %v2248_v10, %v2238_v53  ;;  %v9407_v21 = vpack.c.bf16 %v1109_v14, %v1099_v11  ;;  %v9501_v53 = vpack.c.bf16 %v1930_v61, %v1920_v47  ;;  %v1940_v11 = vld [vmem:[%s14773_s9 + $0x150] sm:$0xff]  ;;  %v1950_v14 = vld [vmem:[%s14773_s9 + $0x1a0] sm:$0xff]  ;;  %v2031_v47 = vld [vmem:[%s14773_s9 + $0x428] sm:$0xff] }
 0x392   :  { %v2023_v61 = vld [vmem:[%s14773_s9 + $0x3e8] sm:$0xff] }
 0x393   :  { %9390 = vmatpush1.bf16.msra.mxu0 %v9389_v26  ;;  %v2268_v26 = vld [vmem:[%s14773_s9 + $0xb90] sm:$0xff] }
 0x394   :  { %9470 = vmatpush1.bf16.msra.mxu1 %v9469_v27  ;;  %9392 = vmatprep.subr.bf16.mxu0 %v9391_v28  ;;  %v1119_v27 = vld [vmem:[%s11528_s6 + $0xc28] sm:$0xff]  ;;  %v1129_v28 = vld [vmem:[%s11528_s6 + $0xc78] sm:$0xff]  ;;  %s14888_s6 = sld [smem:[#allocation24_spill]] }
 0x395   :  { %9472 = vmatprep.subr.bf16.mxu1 %v9471_v32  ;;  %v9489_v32 = vpack.c.bf16 %v2268_v26, %v2258_v24  ;;  %v9411_v33 = vpack.c.bf16 %v1129_v28, %v1119_v27  ;;  %v9505_v24 = vpack.c.bf16 %v1950_v14, %v1940_v11  ;;  %v1960_v27 = vld [vmem:[%s14773_s9 + $0x1f0] sm:$0xff]  ;;  %v1970_v28 = vld [vmem:[%s14773_s9 + $0x240] sm:$0xff]  ;;  %v2043_v11 = vld [vmem:[%s14773_s9 + $0x488] sm:$0xff] }
 0x396   :  { %v2053_v14 = vld [vmem:[%s14773_s9 + $0x4d8] sm:$0xff] }
 0x397   :  { %9394 = vmatpush1.bf16.msra.mxu0 %v9393_v38  ;;  %v2288_v38 = vld [vmem:[%s14773_s9 + $0xc30] sm:$0xff]  ;;  %v9603_v23 = vpack.c.bf16 %v2053_v14, %v2043_v11  ;;  %v2122_v11 = vld [vmem:[%s14773_s9 + $0x700] sm:$0xff] }
 0x398   :  { %9474 = vmatpush1.bf16.msra.mxu1 %v9473_v39  ;;  %9396 = vmatprep.subr.bf16.mxu0 %v9395_v40  ;;  %v1901_v39 = vld [vmem:[%s14773_s9 + $0x18] sm:$0xff]  ;;  %v1911_v40 = vld [vmem:[%s14773_s9 + $0x68] sm:$0xff] }
 0x399   :  { %9476 = vmatprep.subr.bf16.mxu1 %v9475_v44  ;;  %v9493_v44 = vpack.c.bf16 %v2288_v38, %v2278_v36  ;;  %v9495_v45 = vpack.c.bf16 %v1911_v40, %v1901_v39  ;;  %v9509_v36 = vpack.c.bf16 %v1970_v28, %v1960_v27  ;;  %v1980_v39 = vld [vmem:[%s14773_s9 + $0x290] sm:$0xff]  ;;  %v1990_v40 = vld [vmem:[%s14773_s9 + $0x2e0] sm:$0xff]  ;;  %v2063_v27 = vld [vmem:[%s14773_s9 + $0x528] sm:$0xff] }
 0x39a   :  { %v2073_v28 = vld [vmem:[%s14773_s9 + $0x578] sm:$0xff] }
 0x39b   :  { %9398 = vmatpush1.bf16.msra.mxu0 %v9397_v51  ;;  %v1912_v51 = vld [vmem:[%s14773_s9 + $0x70] sm:$0xff]  ;;  %v9607_v35 = vpack.c.bf16 %v2073_v28, %v2063_v27  ;;  %v2142_v27 = vld [vmem:[%s14773_s9 + $0x7a0] sm:$0xff] }
 0x39c   :  { %9478 = vmatpush1.bf16.msra.mxu1 %v9477_v52  ;;  %9400 = vmatprep.subr.bf16.mxu0 %v9399_v54  ;;  %v1921_v52 = vld [vmem:[%s14773_s9 + $0xb8] sm:$0xff]  ;;  %v1931_v54 = vld [vmem:[%s14773_s9 + $0x108] sm:$0xff] }
 0x39d   :  { %9480 = vmatprep.subr.bf16.mxu1 %v9479_v58  ;;  %v9577_v58 = vpack.c.bf16 %v1912_v51, %v1902_v50  ;;  %v9499_v1 = vpack.c.bf16 %v1931_v54, %v1921_v52  ;;  %v2000_v52 = vld [vmem:[%s14773_s9 + $0x330] sm:$0xff]  ;;  %v2010_v54 = vld [vmem:[%s14773_s9 + $0x380] sm:$0xff] }
 0x39e   :  { %1821 = vmatmul.mubr.f32.vlgmr.msra.gmra.mrb[8].mxu0 %v11986_v19 }
 0x39f   :  { %2417 = vmatmul.mubr.f32.vlgmr.msra.gmra.mrb[8].mxu1 %v11986_v19  ;;  %9402 = vmatpush1.bf16.msra.mxu0 %v9401_v3  ;;  %v1941_v3 = vld [vmem:[%s14773_s9 + $0x158] sm:$0xff] }
 0x3a0   :  { %9482 = vmatpush1.bf16.msra.mxu1 %v9481_v4  ;;  %9404 = vmatprep.subr.bf16.mxu0 %v9403_v6  ;;  %v1951_v4 = vld [vmem:[%s14773_s9 + $0x1a8] sm:$0xff]  ;;  %v9579_v6 = vpack.c.bf16 %v1933_v57, %v1923_v56  ;;  %v9595_v56 = vpack.c.bf16 %v2013_v48, %v2003_v46  ;;  %v2012_v57 = vld [vmem:[%s14773_s9 + $0x390] sm:$0xff]  ;;  %v2082_v46 = vld [vmem:[%s14773_s9 + $0x5c0] sm:$0xff] }
 0x3a1   :  { %9484 = vmatprep.subr.bf16.mxu1 %v9483_v9  ;;  %1891 = vmatprep.mubr.f32.mxu0 %v14699_v0  ;;  %v9581_v9 = vpack.c.bf16 %v1932_v2, %v1922_v63  ;;  %v9503_v10 = vpack.c.bf16 %v1951_v4, %v1941_v3  ;;  %v2033_v63 = vld [vmem:[%s14773_s9 + $0x438] sm:$0xff]  ;;  %v2020_v4 = vld [vmem:[%s14773_s9 + $0x3d0] sm:$0xff] }
 0x3a2   :  { %2487 = vmatprep.mubr.f32.mxu1 %v14699_v0  ;;  %v9599_v8 = vpack.c.bf16 %v2033_v63, %v2023_v61  ;;  %v2102_v61 = vld [vmem:[%s14773_s9 + $0x660] sm:$0xff] }
 0x3a3   :  { %9406 = vmatpush1.bf16.msra.mxu0 %v9405_v18  ;;  %v1952_v18 = vld [vmem:[%s14773_s9 + $0x1b0] sm:$0xff] }
 0x3a4   :  { %9486 = vmatpush1.bf16.msra.mxu1 %v9485_v20  ;;  %9408 = vmatprep.subr.bf16.mxu0 %v9407_v21  ;;  %v1961_v20 = vld [vmem:[%s14773_s9 + $0x1f8] sm:$0xff]  ;;  %v1971_v21 = vld [vmem:[%s14773_s9 + $0x248] sm:$0xff] }
 0x3a5   :  { %9488 = vmatprep.subr.bf16.mxu1 %v9487_v25  ;;  %v9585_v25 = vpack.c.bf16 %v1952_v18, %v1942_v15  ;;  %v9507_v26 = vpack.c.bf16 %v1971_v21, %v1961_v20  ;;  %v2040_v20 = vld [vmem:[%s14773_s9 + $0x470] sm:$0xff]  ;;  %v2050_v21 = vld [vmem:[%s14773_s9 + $0x4c0] sm:$0xff] }
 0x3a7   :  { %9410 = vmatpush1.bf16.msra.mxu0 %v9409_v31  ;;  %v1972_v31 = vld [vmem:[%s14773_s9 + $0x250] sm:$0xff] }
 0x3a8   :  { %9490 = vmatpush1.bf16.msra.mxu1 %v9489_v32  ;;  %9412 = vmatprep.subr.bf16.mxu0 %v9411_v33  ;;  %v1981_v32 = vld [vmem:[%s14773_s9 + $0x298] sm:$0xff]  ;;  %v1991_v33 = vld [vmem:[%s14773_s9 + $0x2e8] sm:$0xff] }
 0x3a9   :  { %9492 = vmatprep.subr.bf16.mxu1 %v9491_v37  ;;  %v9589_v37 = vpack.c.bf16 %v1972_v31, %v1962_v29  ;;  %v9511_v38 = vpack.c.bf16 %v1991_v33, %v1981_v32  ;;  %v9525_v29 = vpack.c.bf16 %v2050_v21, %v2040_v20  ;;  %v2060_v32 = vld [vmem:[%s14773_s9 + $0x510] sm:$0xff]  ;;  %v2070_v33 = vld [vmem:[%s14773_s9 + $0x560] sm:$0xff]  ;;  %v2143_v20 = vld [vmem:[%s14773_s9 + $0x7a8] sm:$0xff] }
 0x3aa   :  { %v2153_v21 = vld [vmem:[%s14773_s9 + $0x7f8] sm:$0xff] }
 0x3ab   :  { %9414 = vmatpush1.bf16.msra.mxu0 %v9413_v43  ;;  %v1992_v43 = vld [vmem:[%s14773_s9 + $0x2f0] sm:$0xff]  ;;  %v9623_v28 = vpack.c.bf16 %v2153_v21, %v2143_v20 }
 0x3ac   :  { %9494 = vmatpush1.bf16.msra.mxu1 %v9493_v44  ;;  %9496 = vmatprep.subr.bf16.mxu0 %v9495_v45  ;;  %v2001_v44 = vld [vmem:[%s14773_s9 + $0x338] sm:$0xff]  ;;  %v2011_v45 = vld [vmem:[%s14773_s9 + $0x388] sm:$0xff]  ;;  %v9593_v50 = vpack.c.bf16 %v1992_v43, %v1982_v41  ;;  %v9529_v41 = vpack.c.bf16 %v2070_v33, %v2060_v32 }
 0x3ad   :  { %9576 = vmatprep.subr.bf16.mxu1 %v9575_v49  ;;  %v9513_v49 = vpack.c.bf16 %v1990_v40, %v1980_v39  ;;  %v9515_v51 = vpack.c.bf16 %v2011_v45, %v2001_v44  ;;  %v2083_v39 = vld [vmem:[%s14773_s9 + $0x5c8] sm:$0xff]  ;;  %v2093_v40 = vld [vmem:[%s14773_s9 + $0x618] sm:$0xff]  ;;  %v2080_v44 = vld [vmem:[%s14773_s9 + $0x5b0] sm:$0xff] }
 0x3ae   :  { %8273 = vmatmul.mubr.msk.f32.vlgmr.msra.gmra.mrb[8].mxu0 %vm1184_vm5, %v12029_v12  ;;  %v2090_v45 = vld [vmem:[%s14773_s9 + $0x600] sm:$0xff]  ;;  %v9611_v48 = vpack.c.bf16 %v2093_v40, %v2083_v39  ;;  %v2163_v32 = vld [vmem:[%s14773_s9 + $0x848] sm:$0xff]  ;;  %v2173_v33 = vld [vmem:[%s14773_s9 + $0x898] sm:$0xff] }
 0x3af   :  { %8274 = vmatmul.mubr.msk.f32.vlgmr.msra.gmra.mrb[8].mxu1 %vm1184_vm5, %v12029_v12  ;;  %9498 = vmatpush1.bf16.msra.mxu0 %v9497_v55  ;;  %v2002_v55 = vld [vmem:[%s14773_s9 + $0x340] sm:$0xff]  ;;  %v9627_v40 = vpack.c.bf16 %v2173_v33, %v2163_v32 }
 0x3b0   :  { %2558 = vmatprep.mubr.f32.mxu0 %v11982_v13  ;;  %9578 = vmatpush1.bf16.msra.mxu1 %v9577_v58  ;;  %v2021_v58 = vld [vmem:[%s14773_s9 + $0x3d8] sm:$0xff]  ;;  %v9597_v2 = vpack.c.bf16 %v2012_v57, %v2002_v55  ;;  %v9533_v55 = vpack.c.bf16 %v2090_v45, %v2080_v44  ;;  %v2162_v39 = vld [vmem:[%s14773_s9 + $0x840] sm:$0xff]  ;;  %v2183_v44 = vld [vmem:[%s14773_s9 + $0x8e8] sm:$0xff] }
 0x3b1   :  { %2700 = vmatprep.mubr.f32.mxu1 %v11982_v13  ;;  %9500 = vmatprep.subr.bf16.mxu0 %v9499_v1  ;;  %v9517_v1 = vpack.c.bf16 %v2010_v54, %v2000_v52  ;;  %v9519_v3 = vpack.c.bf16 %v2031_v47, %v2021_v58  ;;  %v2103_v52 = vld [vmem:[%s14773_s9 + $0x668] sm:$0xff]  ;;  %v2113_v54 = vld [vmem:[%s14773_s9 + $0x6b8] sm:$0xff]  ;;  %v2100_v58 = vld [vmem:[%s14773_s9 + $0x650] sm:$0xff] }
 0x3b2   :  { %9580 = vmatprep.subr.bf16.mxu1 %v9579_v6  ;;  %v2030_v6 = vld [vmem:[%s14773_s9 + $0x420] sm:$0xff]  ;;  %v9615_v63 = vpack.c.bf16 %v2113_v54, %v2103_v52  ;;  %v2193_v45 = vld [vmem:[%s14773_s9 + $0x938] sm:$0xff] }
 0x3b3   :  { %9502 = vmatpush1.bf16.msra.mxu0 %v9501_v53  ;;  %v2032_v53 = vld [vmem:[%s14773_s9 + $0x430] sm:$0xff]  ;;  %v9521_v15 = vpack.c.bf16 %v2030_v6, %v2020_v4  ;;  %v2110_v47 = vld [vmem:[%s14773_s9 + $0x6a0] sm:$0xff]  ;;  %v2123_v4 = vld [vmem:[%s14773_s9 + $0x708] sm:$0xff] }
 0x3b4   :  { %9582 = vmatpush1.bf16.msra.mxu1 %v9581_v9  ;;  %9504 = vmatprep.subr.bf16.mxu0 %v9503_v10  ;;  %v2041_v9 = vld [vmem:[%s14773_s9 + $0x478] sm:$0xff]  ;;  %v2051_v10 = vld [vmem:[%s14773_s9 + $0x4c8] sm:$0xff]  ;;  %v2182_v52 = vld [vmem:[%s14773_s9 + $0x8e0] sm:$0xff] }
 0x3b5   :  { %9584 = vmatprep.subr.bf16.mxu1 %v9583_v17  ;;  %v9601_v17 = vpack.c.bf16 %v2032_v53, %v2022_v7  ;;  %v9523_v18 = vpack.c.bf16 %v2051_v10, %v2041_v9  ;;  %v2133_v6 = vld [vmem:[%s14773_s9 + $0x758] sm:$0xff]  ;;  %v9537_v7 = vpack.c.bf16 %v2110_v47, %v2100_v58  ;;  %v2120_v9 = vld [vmem:[%s14773_s9 + $0x6f0] sm:$0xff]  ;;  %v2130_v10 = vld [vmem:[%s14773_s9 + $0x740] sm:$0xff] }
 0x3b6   :  { %v9619_v14 = vpack.c.bf16 %v2133_v6, %v2123_v4  ;;  %v2201_v58 = vld [vmem:[%s14773_s9 + $0x978] sm:$0xff]  ;;  %v2211_v47 = vld [vmem:[%s14773_s9 + $0x9c8] sm:$0xff] }
 0x3b7   :  { %9506 = vmatpush1.bf16.msra.mxu0 %v9505_v24  ;;  %v2052_v24 = vld [vmem:[%s14773_s9 + $0x4d0] sm:$0xff]  ;;  %v9555_v6 = vpack.c.bf16 %v2211_v47, %v2201_v58  ;;  %v2293_v58 = vld [vmem:[%s14773_s9 + $0xc58] sm:$0xff] }
 0x3b8   :  { %9586 = vmatpush1.bf16.msra.mxu1 %v9585_v25  ;;  %9508 = vmatprep.subr.bf16.mxu0 %v9507_v26  ;;  %v2061_v25 = vld [vmem:[%s14773_s9 + $0x518] sm:$0xff]  ;;  %v2071_v26 = vld [vmem:[%s14773_s9 + $0x568] sm:$0xff] }
 0x3b9   :  { %9588 = vmatprep.subr.bf16.mxu1 %v9587_v30  ;;  %v9605_v30 = vpack.c.bf16 %v2052_v24, %v2042_v22  ;;  %v9527_v31 = vpack.c.bf16 %v2071_v26, %v2061_v25  ;;  %v9541_v22 = vpack.c.bf16 %v2130_v10, %v2120_v9  ;;  %v2140_v25 = vld [vmem:[%s14773_s9 + $0x790] sm:$0xff]  ;;  %v2150_v26 = vld [vmem:[%s14773_s9 + $0x7e0] sm:$0xff] }
 0x3ba   :  { %v2212_v10 = vld [vmem:[%s14773_s9 + $0x9d0] sm:$0xff] }
 0x3bb   :  { %9510 = vmatpush1.bf16.msra.mxu0 %v9509_v36  ;;  %v2072_v36 = vld [vmem:[%s14773_s9 + $0x570] sm:$0xff] }
 0x3bc   :  { %9590 = vmatpush1.bf16.msra.mxu1 %v9589_v37  ;;  %9512 = vmatprep.subr.bf16.mxu0 %v9511_v38  ;;  %v2081_v37 = vld [vmem:[%s14773_s9 + $0x5b8] sm:$0xff]  ;;  %v2091_v38 = vld [vmem:[%s14773_s9 + $0x608] sm:$0xff] }
 0x3bd   :  { %9592 = vmatprep.subr.bf16.mxu1 %v9591_v42  ;;  %v9609_v42 = vpack.c.bf16 %v2072_v36, %v2062_v34  ;;  %v9531_v43 = vpack.c.bf16 %v2091_v38, %v2081_v37  ;;  %v9545_v34 = vpack.c.bf16 %v2150_v26, %v2140_v25  ;;  %v2160_v37 = vld [vmem:[%s14773_s9 + $0x830] sm:$0xff]  ;;  %v2170_v38 = vld [vmem:[%s14773_s9 + $0x880] sm:$0xff] }
 0x3be   :  { %v2232_v26 = vld [vmem:[%s14773_s9 + $0xa70] sm:$0xff] }
 0x3bf   :  { %9514 = vmatpush1.bf16.msra.mxu0 %v9513_v49  ;;  %v2092_v49 = vld [vmem:[%s14773_s9 + $0x610] sm:$0xff] }
 0x3c0   :  { %9594 = vmatpush1.bf16.msra.mxu1 %v9593_v50  ;;  %9516 = vmatprep.subr.bf16.mxu0 %v9515_v51  ;;  %v2101_v50 = vld [vmem:[%s14773_s9 + $0x658] sm:$0xff]  ;;  %v2111_v51 = vld [vmem:[%s14773_s9 + $0x6a8] sm:$0xff] }
 0x3c1   :  { %9596 = vmatprep.subr.bf16.mxu1 %v9595_v56  ;;  %v9613_v56 = vpack.c.bf16 %v2092_v49, %v2082_v46  ;;  %v9535_v57 = vpack.c.bf16 %v2111_v51, %v2101_v50  ;;  %v9549_v46 = vpack.c.bf16 %v2170_v38, %v2160_v37  ;;  %v2180_v50 = vld [vmem:[%s14773_s9 + $0x8d0] sm:$0xff]  ;;  %v2190_v51 = vld [vmem:[%s14773_s9 + $0x920] sm:$0xff] }
 0x3c2   :  { %v2252_v38 = vld [vmem:[%s14773_s9 + $0xb10] sm:$0xff] }
 0x3c3   :  { %9518 = vmatpush1.bf16.msra.mxu0 %v9517_v1  ;;  %v2112_v1 = vld [vmem:[%s14773_s9 + $0x6b0] sm:$0xff] }
 0x3c4   :  { %9598 = vmatpush1.bf16.msra.mxu1 %v9597_v2  ;;  %9520 = vmatprep.subr.bf16.mxu0 %v9519_v3  ;;  %v2121_v2 = vld [vmem:[%s14773_s9 + $0x6f8] sm:$0xff]  ;;  %v2131_v3 = vld [vmem:[%s14773_s9 + $0x748] sm:$0xff] }
 0x3c5   :  { %9600 = vmatprep.subr.bf16.mxu1 %v9599_v8  ;;  %v9617_v8 = vpack.c.bf16 %v2112_v1, %v2102_v61  ;;  %v9539_v53 = vpack.c.bf16 %v2131_v3, %v2121_v2  ;;  %v2203_v1 = vld [vmem:[%s14773_s9 + $0x988] sm:$0xff]  ;;  %v2213_v2 = vld [vmem:[%s14773_s9 + $0x9d8] sm:$0xff]  ;;  %v9553_v3 = vpack.c.bf16 %v2190_v51, %v2180_v50  ;;  %v2272_v51 = vld [vmem:[%s14773_s9 + $0xbb0] sm:$0xff] }
 0x3c6   :  { %v9635_v9 = vpack.c.bf16 %v2213_v2, %v2203_v1 }
 0x3c7   :  { %9522 = vmatpush1.bf16.msra.mxu0 %v9521_v15  ;;  %v2132_v15 = vld [vmem:[%s14773_s9 + $0x750] sm:$0xff] }
 0x3c8   :  { %9602 = vmatpush1.bf16.msra.mxu1 %v9601_v17  ;;  %9524 = vmatprep.subr.bf16.mxu0 %v9523_v18  ;;  %v2141_v17 = vld [vmem:[%s14773_s9 + $0x798] sm:$0xff]  ;;  %v2151_v18 = vld [vmem:[%s14773_s9 + $0x7e8] sm:$0xff] }
 0x3c9   :  { %9604 = vmatprep.subr.bf16.mxu1 %v9603_v23  ;;  %v9621_v23 = vpack.c.bf16 %v2132_v15, %v2122_v11  ;;  %v9543_v24 = vpack.c.bf16 %v2151_v18, %v2141_v17  ;;  %v2221_v11 = vld [vmem:[%s14773_s9 + $0xa18] sm:$0xff]  ;;  %v2223_v15 = vld [vmem:[%s14773_s9 + $0xa28] sm:$0xff] }
 0x3ca   :  { %v2233_v17 = vld [vmem:[%s14773_s9 + $0xa78] sm:$0xff] }
 0x3cb   :  { %9526 = vmatpush1.bf16.msra.mxu0 %v9525_v29  ;;  %v2152_v29 = vld [vmem:[%s14773_s9 + $0x7f0] sm:$0xff]  ;;  %v9639_v25 = vpack.c.bf16 %v2233_v17, %v2223_v15 }
 0x3cc   :  { %9606 = vmatpush1.bf16.msra.mxu1 %v9605_v30  ;;  %9528 = vmatprep.subr.bf16.mxu0 %v9527_v31  ;;  %v2161_v30 = vld [vmem:[%s14773_s9 + $0x838] sm:$0xff]  ;;  %v2171_v31 = vld [vmem:[%s14773_s9 + $0x888] sm:$0xff] }
 0x3cd   :  { %9608 = vmatprep.subr.bf16.mxu1 %v9607_v35  ;;  %v9625_v35 = vpack.c.bf16 %v2152_v29, %v2142_v27  ;;  %v9547_v36 = vpack.c.bf16 %v2171_v31, %v2161_v30  ;;  %v2241_v27 = vld [vmem:[%s14773_s9 + $0xab8] sm:$0xff]  ;;  %v2243_v29 = vld [vmem:[%s14773_s9 + $0xac8] sm:$0xff] }
 0x3ce   :  { %v2253_v30 = vld [vmem:[%s14773_s9 + $0xb18] sm:$0xff] }
 0x3cf   :  { %9530 = vmatpush1.bf16.msra.mxu0 %v9529_v41  ;;  %v2172_v41 = vld [vmem:[%s14773_s9 + $0x890] sm:$0xff]  ;;  %v9643_v37 = vpack.c.bf16 %v2253_v30, %v2243_v29 }
 0x3d0   :  { %9610 = vmatpush1.bf16.msra.mxu1 %v9609_v42  ;;  %9532 = vmatprep.subr.bf16.mxu0 %v9531_v43  ;;  %v2181_v42 = vld [vmem:[%s14773_s9 + $0x8d8] sm:$0xff]  ;;  %v2191_v43 = vld [vmem:[%s14773_s9 + $0x928] sm:$0xff]  ;;  %v1924_v30 = vld [vmem:[%s14773_s9 + $0xd0] sm:$0xff] }
 0x3d1   :  { %9612 = vmatprep.subr.bf16.mxu1 %v9611_v48  ;;  %v9629_v48 = vpack.c.bf16 %v2172_v41, %v2162_v39  ;;  %v9551_v49 = vpack.c.bf16 %v2191_v43, %v2181_v42  ;;  %v2261_v39 = vld [vmem:[%s14773_s9 + $0xb58] sm:$0xff]  ;;  %v2263_v41 = vld [vmem:[%s14773_s9 + $0xb68] sm:$0xff] }
 0x3d2   :  { %v2273_v42 = vld [vmem:[%s14773_s9 + $0xbb8] sm:$0xff] }
 0x3d3   :  { %9534 = vmatpush1.bf16.msra.mxu0 %v9533_v55  ;;  %v9647_v50 = vpack.c.bf16 %v2273_v42, %v2263_v41 }
 0x3d4   :  { %9614 = vmatpush1.bf16.msra.mxu1 %v9613_v56  ;;  %9536 = vmatprep.subr.bf16.mxu0 %v9535_v57  ;;  %v9631_v56 = vpack.c.bf16 %v2193_v45, %v2183_v44  ;;  %v2192_v57 = vld [vmem:[%s14773_s9 + $0x930] sm:$0xff] }
 0x3d5   :  { %9616 = vmatprep.subr.bf16.mxu1 %v9615_v63  ;;  %v9633_v4 = vpack.c.bf16 %v2192_v57, %v2182_v52  ;;  %v2281_v52 = vld [vmem:[%s14773_s9 + $0xbf8] sm:$0xff]  ;;  %v2283_v57 = vld [vmem:[%s14773_s9 + $0xc08] sm:$0xff] }
 0x3d7   :  { %9538 = vmatpush1.bf16.msra.mxu0 %v9537_v7  ;;  %v2200_v7 = vld [vmem:[%s14773_s9 + $0x970] sm:$0xff] }
 0x3d8   :  { %9618 = vmatpush1.bf16.msra.mxu1 %v9617_v8  ;;  %9540 = vmatprep.subr.bf16.mxu0 %v9539_v53  ;;  %v2210_v8 = vld [vmem:[%s14773_s9 + $0x9c0] sm:$0xff] }
 0x3d9   :  { %9620 = vmatprep.subr.bf16.mxu1 %v9619_v14  ;;  %v2202_v53 = vld [vmem:[%s14773_s9 + $0x980] sm:$0xff]  ;;  %v2231_v14 = vld [vmem:[%s14773_s9 + $0xa68] sm:$0xff]  ;;  %v9557_v18 = vpack.c.bf16 %v2210_v8, %v2200_v7  ;;  %v9651_v7 = vpack.c.bf16 %v2293_v58, %v2283_v57  ;;  %v2292_v8 = vld [vmem:[%s14773_s9 + $0xc50] sm:$0xff] }
 0x3da   :  { %v9637_v20 = vpack.c.bf16 %v2212_v10, %v2202_v53  ;;  %v9559_v21 = vpack.c.bf16 %v2231_v14, %v2221_v11  ;;  %v1905_v53 = vld [vmem:[%s14773_s9 + $0x38] sm:$0xff]  ;;  %v1907_v10 = vld [vmem:[%s14773_s9 + $0x48] sm:$0xff] }
 0x3db   :  { %9542 = vmatpush1.bf16.msra.mxu0 %v9541_v22  ;;  %v2220_v22 = vld [vmem:[%s14773_s9 + $0xa10] sm:$0xff]  ;;  %v1917_v11 = vld [vmem:[%s14773_s9 + $0x98] sm:$0xff] }
 0x3dc   :  { %9622 = vmatpush1.bf16.msra.mxu1 %v9621_v23  ;;  %9544 = vmatprep.subr.bf16.mxu0 %v9543_v24  ;;  %v2230_v23 = vld [vmem:[%s14773_s9 + $0xa60] sm:$0xff] }
 0x3dd   :  { %9624 = vmatprep.subr.bf16.mxu1 %v9623_v28  ;;  %v2222_v24 = vld [vmem:[%s14773_s9 + $0xa20] sm:$0xff]  ;;  %v2251_v28 = vld [vmem:[%s14773_s9 + $0xb08] sm:$0xff]  ;;  %v9561_v31 = vpack.c.bf16 %v2230_v23, %v2220_v22  ;;  %v1916_v23 = vld [vmem:[%s14773_s9 + $0x90] sm:$0xff] }
 0x3de   :  { %v9641_v32 = vpack.c.bf16 %v2232_v26, %v2222_v24  ;;  %v9563_v33 = vpack.c.bf16 %v2251_v28, %v2241_v27  ;;  %v1906_v22 = vld [vmem:[%s14773_s9 + $0x40] sm:$0xff]  ;;  %v1925_v24 = vld [vmem:[%s14773_s9 + $0xd8] sm:$0xff]  ;;  %v1927_v27 = vld [vmem:[%s14773_s9 + $0xe8] sm:$0xff] }
 0x3df   :  { %9546 = vmatpush1.bf16.msra.mxu0 %v9545_v34  ;;  %v2240_v34 = vld [vmem:[%s14773_s9 + $0xab0] sm:$0xff]  ;;  %v1937_v28 = vld [vmem:[%s14773_s9 + $0x138] sm:$0xff]  ;;  %v9737_v29 = vpack.c.bf16 %v1916_v23, %v1906_v22  ;;  %v2015_v22 = vld [vmem:[%s14773_s9 + $0x3a8] sm:$0xff] }
 0x3e0   :  { %9626 = vmatpush1.bf16.msra.mxu1 %v9625_v35  ;;  %9548 = vmatprep.subr.bf16.mxu0 %v9547_v36  ;;  %v2250_v35 = vld [vmem:[%s14773_s9 + $0xb00] sm:$0xff]  ;;  %v2007_v23 = vld [vmem:[%s14773_s9 + $0x368] sm:$0xff] }
 0x3e1   :  { %v12484_v54 = vpop.f32.mrb[4].mxu0  ;;  %v12486_v55 = vpop.f32.mrb[4].mxu1  ;;  %9628 = vmatprep.subr.bf16.mxu1 %v9627_v40  ;;  %v2242_v36 = vld [vmem:[%s14773_s9 + $0xac0] sm:$0xff]  ;;  %v2271_v40 = vld [vmem:[%s14773_s9 + $0xba8] sm:$0xff]  ;;  %v9565_v43 = vpack.c.bf16 %v2250_v35, %v2240_v34  ;;  %v1936_v34 = vld [vmem:[%s14773_s9 + $0x130] sm:$0xff] }
 0x3e2   :  { %v12491_v61 = vpop.f32.mrb[5].mxu0  ;;  %v12493_v63 = vpop.f32.mrb[5].mxu1  ;;  %v9645_v44 = vpack.c.bf16 %v2252_v38, %v2242_v36  ;;  %v9567_v45 = vpack.c.bf16 %v2271_v40, %v2261_v39  ;;  %v1945_v35 = vld [vmem:[%s14773_s9 + $0x178] sm:$0xff]  ;;  %v1955_v36 = vld [vmem:[%s14773_s9 + $0x1c8] sm:$0xff] }
 0x3e3   :  { %9550 = vmatpush1.bf16.msra.mxu0 %v9549_v46  ;;  %v2260_v46 = vld [vmem:[%s14773_s9 + $0xb50] sm:$0xff]  ;;  %v1947_v38 = vld [vmem:[%s14773_s9 + $0x188] sm:$0xff]  ;;  %v1957_v39 = vld [vmem:[%s14773_s9 + $0x1d8] sm:$0xff]  ;;  %v9663_v42 = vpack.c.bf16 %v1955_v36, %v1945_v35 }
 0x3e4   :  { %9630 = vmatpush1.bf16.msra.mxu1 %v9629_v48  ;;  %9552 = vmatprep.subr.bf16.mxu0 %v9551_v49  ;;  %v2270_v48 = vld [vmem:[%s14773_s9 + $0xba0] sm:$0xff]  ;;  %v2027_v35 = vld [vmem:[%s14773_s9 + $0x408] sm:$0xff]  ;;  %v2037_v36 = vld [vmem:[%s14773_s9 + $0x458] sm:$0xff] }
 0x3e5   :  { %9632 = vmatprep.subr.bf16.mxu1 %v9631_v56  ;;  %v2262_v49 = vld [vmem:[%s14773_s9 + $0xb60] sm:$0xff]  ;;  %v2291_v56 = vld [vmem:[%s14773_s9 + $0xc48] sm:$0xff]  ;;  %v9569_v47 = vpack.c.bf16 %v2270_v48, %v2260_v46  ;;  %v9743_v46 = vpack.c.bf16 %v1957_v39, %v1947_v38  ;;  %v1956_v48 = vld [vmem:[%s14773_s9 + $0x1d0] sm:$0xff] }
 0x3e6   :  { %v9649_v1 = vpack.c.bf16 %v2272_v51, %v2262_v49  ;;  %v9571_v2 = vpack.c.bf16 %v2291_v56, %v2281_v52  ;;  %v1965_v49 = vld [vmem:[%s14773_s9 + $0x218] sm:$0xff]  ;;  %v1967_v51 = vld [vmem:[%s14773_s9 + $0x228] sm:$0xff] }
 0x3e7   :  { %9554 = vmatpush1.bf16.msra.mxu0 %v9553_v3  ;;  %v2280_v3 = vld [vmem:[%s14773_s9 + $0xbf0] sm:$0xff]  ;;  %v1977_v52 = vld [vmem:[%s14773_s9 + $0x278] sm:$0xff] }
 0x3e8   :  { %9634 = vmatpush1.bf16.msra.mxu1 %v9633_v4  ;;  %9556 = vmatprep.subr.bf16.mxu0 %v9555_v6  ;;  %v2290_v4 = vld [vmem:[%s14773_s9 + $0xc40] sm:$0xff] }
 0x3e9   :  { %9636 = vmatprep.subr.bf16.mxu1 %v9635_v9  ;;  %v2282_v6 = vld [vmem:[%s14773_s9 + $0xc00] sm:$0xff]  ;;  %v1915_v9 = vld [vmem:[%s14773_s9 + $0x88] sm:$0xff]  ;;  %v9573_v14 = vpack.c.bf16 %v2290_v4, %v2280_v3  ;;  %v9747_v3 = vpack.c.bf16 %v1977_v52, %v1967_v51  ;;  %v1976_v4 = vld [vmem:[%s14773_s9 + $0x270] sm:$0xff] }
 0x3ea   :  { %v9653_v15 = vpack.c.bf16 %v2292_v8, %v2282_v6  ;;  %v9655_v17 = vpack.c.bf16 %v1915_v9, %v1905_v53  ;;  %v1985_v6 = vld [vmem:[%s14773_s9 + $0x2b8] sm:$0xff]  ;;  %v1987_v8 = vld [vmem:[%s14773_s9 + $0x2c8] sm:$0xff] }
 0x3eb   :  { %9558 = vmatpush1.bf16.msra.mxu0 %v9557_v18  ;;  %v1904_v18 = vld [vmem:[%s14773_s9 + $0x30] sm:$0xff]  ;;  %v1997_v53 = vld [vmem:[%s14773_s9 + $0x318] sm:$0xff] }
 0x3ec   :  { %9638 = vmatpush1.bf16.msra.mxu1 %v9637_v20  ;;  %9560 = vmatprep.subr.bf16.mxu0 %v9559_v21  ;;  %v1914_v20 = vld [vmem:[%s14773_s9 + $0x80] sm:$0xff]  ;;  %v9735_v21 = vpack.c.bf16 %v1917_v11, %v1907_v10 }
 0x3ed   :  { %9640 = vmatprep.subr.bf16.mxu1 %v9639_v25  ;;  %v1935_v25 = vld [vmem:[%s14773_s9 + $0x128] sm:$0xff]  ;;  %v9657_v26 = vpack.c.bf16 %v1914_v20, %v1904_v18  ;;  %v9751_v18 = vpack.c.bf16 %v1997_v53, %v1987_v8  ;;  %v1996_v20 = vld [vmem:[%s14773_s9 + $0x310] sm:$0xff] }
 0x3ee   :  { %2559 = vmatmul.mubr.f32.vlgmr.msra.gmra.mrb[10].mxu0 %v11986_v19 }
 0x3ef   :  { %2701 = vmatmul.mubr.f32.vlgmr.msra.gmra.mrb[10].mxu1 %v11986_v19  ;;  %9562 = vmatpush1.bf16.msra.mxu0 %v9561_v31  ;;  %v1934_v31 = vld [vmem:[%s14773_s9 + $0x120] sm:$0xff] }
 0x3f0   :  { %9642 = vmatpush1.bf16.msra.mxu1 %v9641_v32  ;;  %9564 = vmatprep.subr.bf16.mxu0 %v9563_v33  ;;  %v1926_v32 = vld [vmem:[%s14773_s9 + $0xe0] sm:$0xff]  ;;  %v9659_v33 = vpack.c.bf16 %v1935_v25, %v1925_v24  ;;  %v9661_v40 = vpack.c.bf16 %v1934_v31, %v1924_v30  ;;  %v2017_v24 = vld [vmem:[%s14773_s9 + $0x3b8] sm:$0xff] }
 0x3f1   :  { %9644 = vmatprep.subr.bf16.mxu1 %v9643_v37  ;;  %2629 = vmatprep.mubr.f32.mxu0 %v14699_v0  ;;  %v9739_v37 = vpack.c.bf16 %v1937_v28, %v1927_v27  ;;  %v9741_v41 = vpack.c.bf16 %v1936_v34, %v1926_v32  ;;  %v2004_v28 = vld [vmem:[%s14773_s9 + $0x350] sm:$0xff]  ;;  %v2006_v30 = vld [vmem:[%s14773_s9 + $0x360] sm:$0xff]  ;;  %v9755_v31 = vpack.c.bf16 %v2017_v24, %v2007_v23  ;;  %v2035_v34 = vld [vmem:[%s14773_s9 + $0x448] sm:$0xff] }
 0x3f2   :  { %2771 = vmatprep.mubr.f32.mxu1 %v14699_v0  ;;  %v2016_v32 = vld [vmem:[%s14773_s9 + $0x3b0] sm:$0xff] }
 0x3f3   :  { %9566 = vmatpush1.bf16.msra.mxu0 %v9565_v43  ;;  %v1944_v43 = vld [vmem:[%s14773_s9 + $0x170] sm:$0xff]  ;;  %v9757_v38 = vpack.c.bf16 %v2016_v32, %v2006_v30  ;;  %v2105_v30 = vld [vmem:[%s14773_s9 + $0x678] sm:$0xff]  ;;  %v2107_v32 = vld [vmem:[%s14773_s9 + $0x688] sm:$0xff] }
 0x3f4   :  { %9646 = vmatpush1.bf16.msra.mxu1 %v9645_v44  ;;  %9568 = vmatprep.subr.bf16.mxu0 %v9567_v45  ;;  %v1954_v44 = vld [vmem:[%s14773_s9 + $0x1c0] sm:$0xff] }
 0x3f5   :  { %9648 = vmatprep.subr.bf16.mxu1 %v9647_v50  ;;  %v1946_v45 = vld [vmem:[%s14773_s9 + $0x180] sm:$0xff]  ;;  %v1975_v50 = vld [vmem:[%s14773_s9 + $0x268] sm:$0xff]  ;;  %v9665_v56 = vpack.c.bf16 %v1954_v44, %v1944_v43  ;;  %v9759_v43 = vpack.c.bf16 %v2037_v36, %v2027_v35  ;;  %v2036_v44 = vld [vmem:[%s14773_s9 + $0x450] sm:$0xff] }
 0x3f6   :  { %v9745_v57 = vpack.c.bf16 %v1956_v48, %v1946_v45  ;;  %v9667_v58 = vpack.c.bf16 %v1975_v50, %v1965_v49  ;;  %v2045_v45 = vld [vmem:[%s14773_s9 + $0x498] sm:$0xff]  ;;  %v2047_v48 = vld [vmem:[%s14773_s9 + $0x4a8] sm:$0xff] }
 0x3f7   :  { %9570 = vmatpush1.bf16.msra.mxu0 %v9569_v47  ;;  %v1964_v47 = vld [vmem:[%s14773_s9 + $0x210] sm:$0xff]  ;;  %v2057_v49 = vld [vmem:[%s14773_s9 + $0x4f8] sm:$0xff] }
 0x3f8   :  { %9650 = vmatpush1.bf16.msra.mxu1 %v9649_v1  ;;  %9572 = vmatprep.subr.bf16.mxu0 %v9571_v2  ;;  %v1974_v1 = vld [vmem:[%s14773_s9 + $0x260] sm:$0xff] }
 0x3f9   :  { %9652 = vmatprep.subr.bf16.mxu1 %v9651_v7  ;;  %v1966_v2 = vld [vmem:[%s14773_s9 + $0x220] sm:$0xff]  ;;  %v1995_v7 = vld [vmem:[%s14773_s9 + $0x308] sm:$0xff]  ;;  %v9669_v9 = vpack.c.bf16 %v1974_v1, %v1964_v47  ;;  %v9763_v47 = vpack.c.bf16 %v2057_v49, %v2047_v48  ;;  %v2056_v1 = vld [vmem:[%s14773_s9 + $0x4f0] sm:$0xff] }
 0x3fa   :  { %v9749_v10 = vpack.c.bf16 %v1976_v4, %v1966_v2  ;;  %v9671_v11 = vpack.c.bf16 %v1995_v7, %v1985_v6  ;;  %v2065_v2 = vld [vmem:[%s14773_s9 + $0x538] sm:$0xff]  ;;  %v2067_v4 = vld [vmem:[%s14773_s9 + $0x548] sm:$0xff] }
 0x3fb   :  { %9574 = vmatpush1.bf16.msra.mxu0 %v9573_v14  ;;  %v1984_v14 = vld [vmem:[%s14773_s9 + $0x2b0] sm:$0xff]  ;;  %v2077_v6 = vld [vmem:[%s14773_s9 + $0x598] sm:$0xff] }
 0x3fc   :  { %9654 = vmatpush1.bf16.msra.mxu1 %v9653_v15  ;;  %9656 = vmatprep.subr.bf16.mxu0 %v9655_v17  ;;  %v1994_v15 = vld [vmem:[%s14773_s9 + $0x300] sm:$0xff] }
 0x3fd   :  { %9736 = vmatprep.subr.bf16.mxu1 %v9735_v21  ;;  %v1986_v17 = vld [vmem:[%s14773_s9 + $0x2c0] sm:$0xff]  ;;  %v2005_v21 = vld [vmem:[%s14773_s9 + $0x358] sm:$0xff]  ;;  %v9673_v25 = vpack.c.bf16 %v1994_v15, %v1984_v14  ;;  %v9767_v14 = vpack.c.bf16 %v2077_v6, %v2067_v4  ;;  %v2076_v15 = vld [vmem:[%s14773_s9 + $0x590] sm:$0xff] }
 0x3fe   :  { %8275 = vmatmul.mubr.msk.f32.vlgmr.msra.gmra.mrb[10].mxu0 %vm1184_vm5, %v12029_v12  ;;  %v9675_v27 = vpack.c.bf16 %v2015_v22, %v2005_v21  ;;  %v2097_v21 = vld [vmem:[%s14773_s9 + $0x638] sm:$0xff] }
 0x3ff   :  { %8276 = vmatmul.mubr.msk.f32.vlgmr.msra.gmra.mrb[10].mxu1 %vm1184_vm5, %v12029_v12  ;;  %9658 = vmatpush1.bf16.msra.mxu0 %v9657_v26  ;;  %v9753_v26 = vpack.c.bf16 %v1996_v20, %v1986_v17  ;;  %v2085_v17 = vld [vmem:[%s14773_s9 + $0x5d8] sm:$0xff]  ;;  %v2087_v20 = vld [vmem:[%s14773_s9 + $0x5e8] sm:$0xff] }
 0x400   :  { %2842 = vmatprep.mubr.f32.mxu0 %v11982_v13  ;;  %9738 = vmatpush1.bf16.msra.mxu1 %v9737_v29  ;;  %v2014_v29 = vld [vmem:[%s14773_s9 + $0x3a0] sm:$0xff] }
 0x401   :  { %2984 = vmatprep.mubr.f32.mxu1 %v11982_v13  ;;  %9660 = vmatprep.subr.bf16.mxu0 %v9659_v33  ;;  %v2025_v33 = vld [vmem:[%s14773_s9 + $0x3f8] sm:$0xff] }
 0x402   :  { %9740 = vmatprep.subr.bf16.mxu1 %v9739_v37  ;;  %v9677_v37 = vpack.c.bf16 %v2014_v29, %v2004_v28  ;;  %v9679_v39 = vpack.c.bf16 %v2035_v34, %v2025_v33  ;;  %v9771_v28 = vpack.c.bf16 %v2097_v21, %v2087_v20  ;;  %v2096_v29 = vld [vmem:[%s14773_s9 + $0x630] sm:$0xff]  ;;  %v2117_v33 = vld [vmem:[%s14773_s9 + $0x6d8] sm:$0xff] }
 0x403   :  { %9662 = vmatpush1.bf16.msra.mxu0 %v9661_v40  ;;  %v2024_v40 = vld [vmem:[%s14773_s9 + $0x3f0] sm:$0xff] }
 0x404   :  { %9742 = vmatpush1.bf16.msra.mxu1 %v9741_v41  ;;  %9664 = vmatprep.subr.bf16.mxu0 %v9663_v42  ;;  %v2034_v41 = vld [vmem:[%s14773_s9 + $0x440] sm:$0xff] }
 0x405   :  { %9744 = vmatprep.subr.bf16.mxu1 %v9743_v46  ;;  %v2026_v42 = vld [vmem:[%s14773_s9 + $0x400] sm:$0xff]  ;;  %v2055_v46 = vld [vmem:[%s14773_s9 + $0x4e8] sm:$0xff]  ;;  %v9681_v50 = vpack.c.bf16 %v2034_v41, %v2024_v40  ;;  %v9775_v40 = vpack.c.bf16 %v2117_v33, %v2107_v32  ;;  %v2116_v41 = vld [vmem:[%s14773_s9 + $0x6d0] sm:$0xff] }
 0x406   :  { %v9761_v51 = vpack.c.bf16 %v2036_v44, %v2026_v42  ;;  %v9683_v52 = vpack.c.bf16 %v2055_v46, %v2045_v45  ;;  %v2125_v42 = vld [vmem:[%s14773_s9 + $0x718] sm:$0xff]  ;;  %v2127_v44 = vld [vmem:[%s14773_s9 + $0x728] sm:$0xff] }
 0x407   :  { %9666 = vmatpush1.bf16.msra.mxu0 %v9665_v56  ;;  %v2044_v56 = vld [vmem:[%s14773_s9 + $0x490] sm:$0xff]  ;;  %v2137_v45 = vld [vmem:[%s14773_s9 + $0x778] sm:$0xff] }
 0x408   :  { %9746 = vmatpush1.bf16.msra.mxu1 %v9745_v57  ;;  %9668 = vmatprep.subr.bf16.mxu0 %v9667_v58  ;;  %v2054_v57 = vld [vmem:[%s14773_s9 + $0x4e0] sm:$0xff] }
 0x409   :  { %9748 = vmatprep.subr.bf16.mxu1 %v9747_v3  ;;  %v2046_v58 = vld [vmem:[%s14773_s9 + $0x4a0] sm:$0xff]  ;;  %v2075_v3 = vld [vmem:[%s14773_s9 + $0x588] sm:$0xff]  ;;  %v9685_v7 = vpack.c.bf16 %v2054_v57, %v2044_v56  ;;  %v9779_v56 = vpack.c.bf16 %v2137_v45, %v2127_v44  ;;  %v2136_v57 = vld [vmem:[%s14773_s9 + $0x770] sm:$0xff] }
 0x40a   :  { %v9765_v8 = vpack.c.bf16 %v2056_v1, %v2046_v58  ;;  %v9687_v53 = vpack.c.bf16 %v2075_v3, %v2065_v2  ;;  %v2145_v58 = vld [vmem:[%s14773_s9 + $0x7b8] sm:$0xff]  ;;  %v2147_v1 = vld [vmem:[%s14773_s9 + $0x7c8] sm:$0xff] }
 0x40b   :  { %9670 = vmatpush1.bf16.msra.mxu0 %v9669_v9  ;;  %v2064_v9 = vld [vmem:[%s14773_s9 + $0x530] sm:$0xff]  ;;  %v2157_v2 = vld [vmem:[%s14773_s9 + $0x818] sm:$0xff]  ;;  %v2207_v44 = vld [vmem:[%s14773_s9 + $0x9a8] sm:$0xff] }
 0x40c   :  { %9750 = vmatpush1.bf16.msra.mxu1 %v9749_v10  ;;  %9672 = vmatprep.subr.bf16.mxu0 %v9671_v11  ;;  %v2074_v10 = vld [vmem:[%s14773_s9 + $0x580] sm:$0xff]  ;;  %v2217_v45 = vld [vmem:[%s14773_s9 + $0x9f8] sm:$0xff] }
 0x40d   :  { %9752 = vmatprep.subr.bf16.mxu1 %v9751_v18  ;;  %v2066_v11 = vld [vmem:[%s14773_s9 + $0x540] sm:$0xff]  ;;  %v2095_v18 = vld [vmem:[%s14773_s9 + $0x628] sm:$0xff]  ;;  %v9689_v22 = vpack.c.bf16 %v2074_v10, %v2064_v9  ;;  %v9783_v9 = vpack.c.bf16 %v2157_v2, %v2147_v1  ;;  %v2156_v10 = vld [vmem:[%s14773_s9 + $0x810] sm:$0xff] }
 0x40e   :  { %v9769_v23 = vpack.c.bf16 %v2076_v15, %v2066_v11  ;;  %v9691_v24 = vpack.c.bf16 %v2095_v18, %v2085_v17  ;;  %v2165_v11 = vld [vmem:[%s14773_s9 + $0x858] sm:$0xff]  ;;  %v2167_v15 = vld [vmem:[%s14773_s9 + $0x868] sm:$0xff] }
 0x40f   :  { %9674 = vmatpush1.bf16.msra.mxu0 %v9673_v25  ;;  %v2084_v25 = vld [vmem:[%s14773_s9 + $0x5d0] sm:$0xff]  ;;  %v2177_v17 = vld [vmem:[%s14773_s9 + $0x8b8] sm:$0xff]  ;;  %v2235_v1 = vld [vmem:[%s14773_s9 + $0xa88] sm:$0xff] }
 0x410   :  { %9754 = vmatpush1.bf16.msra.mxu1 %v9753_v26  ;;  %9676 = vmatprep.subr.bf16.mxu0 %v9675_v27  ;;  %v2094_v26 = vld [vmem:[%s14773_s9 + $0x620] sm:$0xff]  ;;  %v2227_v2 = vld [vmem:[%s14773_s9 + $0xa48] sm:$0xff] }
 0x411   :  { %9756 = vmatprep.subr.bf16.mxu1 %v9755_v31  ;;  %v2086_v27 = vld [vmem:[%s14773_s9 + $0x5e0] sm:$0xff]  ;;  %v2115_v31 = vld [vmem:[%s14773_s9 + $0x6c8] sm:$0xff]  ;;  %v9693_v34 = vpack.c.bf16 %v2094_v26, %v2084_v25  ;;  %v9787_v25 = vpack.c.bf16 %v2177_v17, %v2167_v15  ;;  %v2176_v26 = vld [vmem:[%s14773_s9 + $0x8b0] sm:$0xff] }
 0x412   :  { %v9773_v35 = vpack.c.bf16 %v2096_v29, %v2086_v27  ;;  %v9695_v36 = vpack.c.bf16 %v2115_v31, %v2105_v30  ;;  %v2185_v27 = vld [vmem:[%s14773_s9 + $0x8f8] sm:$0xff]  ;;  %v2187_v29 = vld [vmem:[%s14773_s9 + $0x908] sm:$0xff] }
 0x413   :  { %9678 = vmatpush1.bf16.msra.mxu0 %v9677_v37  ;;  %v2104_v37 = vld [vmem:[%s14773_s9 + $0x670] sm:$0xff]  ;;  %v2197_v30 = vld [vmem:[%s14773_s9 + $0x958] sm:$0xff]  ;;  %v2255_v15 = vld [vmem:[%s14773_s9 + $0xb28] sm:$0xff] }
 0x414   :  { %9758 = vmatpush1.bf16.msra.mxu1 %v9757_v38  ;;  %9680 = vmatprep.subr.bf16.mxu0 %v9679_v39  ;;  %v2114_v38 = vld [vmem:[%s14773_s9 + $0x6c0] sm:$0xff]  ;;  %v2247_v17 = vld [vmem:[%s14773_s9 + $0xae8] sm:$0xff] }
 0x415   :  { %9760 = vmatprep.subr.bf16.mxu1 %v9759_v43  ;;  %v2106_v39 = vld [vmem:[%s14773_s9 + $0x680] sm:$0xff]  ;;  %v2135_v43 = vld [vmem:[%s14773_s9 + $0x768] sm:$0xff]  ;;  %v9697_v46 = vpack.c.bf16 %v2114_v38, %v2104_v37  ;;  %v9791_v38 = vpack.c.bf16 %v2197_v30, %v2187_v29 }
 0x416   :  { %v9777_v48 = vpack.c.bf16 %v2116_v41, %v2106_v39  ;;  %v9699_v49 = vpack.c.bf16 %v2135_v43, %v2125_v42  ;;  %v2196_v39 = vld [vmem:[%s14773_s9 + $0x950] sm:$0xff]  ;;  %v2215_v41 = vld [vmem:[%s14773_s9 + $0x9e8] sm:$0xff] }
 0x417   :  { %9682 = vmatpush1.bf16.msra.mxu0 %v9681_v50  ;;  %v2124_v50 = vld [vmem:[%s14773_s9 + $0x710] sm:$0xff]  ;;  %v2275_v29 = vld [vmem:[%s14773_s9 + $0xbc8] sm:$0xff] }
 0x418   :  { %9762 = vmatpush1.bf16.msra.mxu1 %v9761_v51  ;;  %9684 = vmatprep.subr.bf16.mxu0 %v9683_v52  ;;  %v2134_v51 = vld [vmem:[%s14773_s9 + $0x760] sm:$0xff]  ;;  %v2267_v30 = vld [vmem:[%s14773_s9 + $0xb88] sm:$0xff] }
 0x419   :  { %9764 = vmatprep.subr.bf16.mxu1 %v9763_v47  ;;  %v2126_v52 = vld [vmem:[%s14773_s9 + $0x720] sm:$0xff]  ;;  %v2155_v47 = vld [vmem:[%s14773_s9 + $0x808] sm:$0xff]  ;;  %v9701_v3 = vpack.c.bf16 %v2134_v51, %v2124_v50  ;;  %v2204_v51 = vld [vmem:[%s14773_s9 + $0x990] sm:$0xff] }
 0x41a   :  { %v9781_v4 = vpack.c.bf16 %v2136_v57, %v2126_v52  ;;  %v9703_v6 = vpack.c.bf16 %v2155_v47, %v2145_v58  ;;  %v2214_v52 = vld [vmem:[%s14773_s9 + $0x9e0] sm:$0xff]  ;;  %v9795_v57 = vpack.c.bf16 %v2217_v45, %v2207_v44  ;;  %v2216_v58 = vld [vmem:[%s14773_s9 + $0x9f0] sm:$0xff]  ;;  %v2225_v47 = vld [vmem:[%s14773_s9 + $0xa38] sm:$0xff] }
 0x41b   :  { %9686 = vmatpush1.bf16.msra.mxu0 %v9685_v7  ;;  %v2144_v7 = vld [vmem:[%s14773_s9 + $0x7b0] sm:$0xff]  ;;  %v2295_v44 = vld [vmem:[%s14773_s9 + $0xc68] sm:$0xff] }
 0x41c   :  { %9766 = vmatpush1.bf16.msra.mxu1 %v9765_v8  ;;  %9688 = vmatprep.subr.bf16.mxu0 %v9687_v53  ;;  %v2154_v8 = vld [vmem:[%s14773_s9 + $0x800] sm:$0xff]  ;;  %v2287_v45 = vld [vmem:[%s14773_s9 + $0xc28] sm:$0xff] }
 0x41d   :  { %9768 = vmatprep.subr.bf16.mxu1 %v9767_v14  ;;  %v2146_v53 = vld [vmem:[%s14773_s9 + $0x7c0] sm:$0xff]  ;;  %v2175_v14 = vld [vmem:[%s14773_s9 + $0x8a8] sm:$0xff]  ;;  %v9705_v18 = vpack.c.bf16 %v2154_v8, %v2144_v7  ;;  %v9719_v7 = vpack.c.bf16 %v2235_v1, %v2225_v47  ;;  %v2224_v8 = vld [vmem:[%s14773_s9 + $0xa30] sm:$0xff] }
 0x41e   :  { %v9785_v20 = vpack.c.bf16 %v2156_v10, %v2146_v53  ;;  %v9707_v21 = vpack.c.bf16 %v2175_v14, %v2165_v11  ;;  %v2234_v53 = vld [vmem:[%s14773_s9 + $0xa80] sm:$0xff]  ;;  %v2236_v11 = vld [vmem:[%s14773_s9 + $0xa90] sm:$0xff]  ;;  %v2245_v14 = vld [vmem:[%s14773_s9 + $0xad8] sm:$0xff] }
 0x41f   :  { %9690 = vmatpush1.bf16.msra.mxu0 %v9689_v22  ;;  %v2164_v22 = vld [vmem:[%s14773_s9 + $0x850] sm:$0xff]  ;;  %v3063_v1 = vld [vmem:[#allocation2 + $0x8] sm:$0xff] }
 0x420   :  { %9770 = vmatpush1.bf16.msra.mxu1 %v9769_v23  ;;  %9692 = vmatprep.subr.bf16.mxu0 %v9691_v24  ;;  %v2174_v23 = vld [vmem:[%s14773_s9 + $0x8a0] sm:$0xff]  ;;  %v2296_v47 = vld [vmem:[%s14773_s9 + $0xc70] sm:$0xff] }
 0x421   :  { %9772 = vmatprep.subr.bf16.mxu1 %v9771_v28  ;;  %v2166_v24 = vld [vmem:[%s14773_s9 + $0x860] sm:$0xff]  ;;  %v2195_v28 = vld [vmem:[%s14773_s9 + $0x948] sm:$0xff]  ;;  %v9709_v31 = vpack.c.bf16 %v2174_v23, %v2164_v22  ;;  %v9723_v22 = vpack.c.bf16 %v2255_v15, %v2245_v14  ;;  %v2244_v23 = vld [vmem:[%s14773_s9 + $0xad0] sm:$0xff] }
 0x422   :  { %v9789_v32 = vpack.c.bf16 %v2176_v26, %v2166_v24  ;;  %v9711_v33 = vpack.c.bf16 %v2195_v28, %v2185_v27  ;;  %v2254_v24 = vld [vmem:[%s14773_s9 + $0xb20] sm:$0xff]  ;;  %v2256_v27 = vld [vmem:[%s14773_s9 + $0xb30] sm:$0xff]  ;;  %v2265_v28 = vld [vmem:[%s14773_s9 + $0xb78] sm:$0xff] }
 0x423   :  { %9694 = vmatpush1.bf16.msra.mxu0 %v9693_v34  ;;  %v2184_v34 = vld [vmem:[%s14773_s9 + $0x8f0] sm:$0xff]  ;;  %v3074_v14 = vld [vmem:[#allocation2 + $0x60] sm:$0xff]  ;;  %v3083_v15 = vld [vmem:[#allocation2 + $0xa8] sm:$0xff] }
 0x424   :  { %9774 = vmatpush1.bf16.msra.mxu1 %v9773_v35  ;;  %9696 = vmatprep.subr.bf16.mxu0 %v9695_v36  ;;  %v2194_v35 = vld [vmem:[%s14773_s9 + $0x940] sm:$0xff] }
 0x425   :  { %9776 = vmatprep.subr.bf16.mxu1 %v9775_v40  ;;  %v2186_v36 = vld [vmem:[%s14773_s9 + $0x900] sm:$0xff]  ;;  %v2205_v40 = vld [vmem:[%s14773_s9 + $0x998] sm:$0xff] }
 0x426   :  { %v9715_v50 = vpack.c.bf16 %v2215_v41, %v2205_v40  ;;  %v2276_v40 = vld [vmem:[%s14773_s9 + $0xbd0] sm:$0xff]  ;;  %v2285_v41 = vld [vmem:[%s14773_s9 + $0xc18] sm:$0xff] }
 0x427   :  { %9698 = vmatpush1.bf16.msra.mxu0 %v9697_v46 }
 0x428   :  { %9778 = vmatpush1.bf16.msra.mxu1 %v9777_v48  ;;  %9700 = vmatprep.subr.bf16.mxu0 %v9699_v49  ;;  %v9713_v48 = vpack.c.bf16 %v2194_v35, %v2184_v34  ;;  %v9793_v49 = vpack.c.bf16 %v2196_v39, %v2186_v36  ;;  %v9727_v34 = vpack.c.bf16 %v2275_v29, %v2265_v28  ;;  %v2264_v35 = vld [vmem:[%s14773_s9 + $0xb70] sm:$0xff]  ;;  %v2274_v36 = vld [vmem:[%s14773_s9 + $0xbc0] sm:$0xff]  ;;  %v3103_v28 = vld [vmem:[#allocation2 + $0x148] sm:$0xff] }
 0x429   :  { %9780 = vmatprep.subr.bf16.mxu1 %v9779_v56  ;;  %v2206_v56 = vld [vmem:[%s14773_s9 + $0x9a0] sm:$0xff]  ;;  %v3113_v29 = vld [vmem:[#allocation2 + $0x198] sm:$0xff] }
 0x42b   :  { %9702 = vmatpush1.bf16.msra.mxu0 %v9701_v3  ;;  %v2237_v3 = vld [vmem:[%s14773_s9 + $0xa98] sm:$0xff] }
 0x42c   :  { %9782 = vmatpush1.bf16.msra.mxu1 %v9781_v4  ;;  %9704 = vmatprep.subr.bf16.mxu0 %v9703_v6  ;;  %v9717_v4 = vpack.c.bf16 %v2214_v52, %v2204_v51  ;;  %v9797_v6 = vpack.c.bf16 %v2216_v58, %v2206_v56  ;;  %v9799_v10 = vpack.c.bf16 %v2237_v3, %v2227_v2  ;;  %v2284_v52 = vld [vmem:[%s14773_s9 + $0xc10] sm:$0xff]  ;;  %v2294_v56 = vld [vmem:[%s14773_s9 + $0xc60] sm:$0xff]  ;;  %v3073_v2 = vld [vmem:[#allocation2 + $0x58] sm:$0xff] }
 0x42d   :  { %9784 = vmatprep.subr.bf16.mxu1 %v9783_v9  ;;  %v2226_v9 = vld [vmem:[%s14773_s9 + $0xa40] sm:$0xff]  ;;  %v9731_v51 = vpack.c.bf16 %v2295_v44, %v2285_v41  ;;  %v3065_v3 = vld [vmem:[#allocation2 + $0x18] sm:$0xff]  ;;  %v3123_v44 = vld [vmem:[#allocation2 + $0x1e8] sm:$0xff] }
 0x42e   :  { %v3114_v41 = vld [vmem:[#allocation2 + $0x1a0] sm:$0xff] }
 0x42f   :  { %9706 = vmatpush1.bf16.msra.mxu0 %v9705_v18  ;;  %v2257_v18 = vld [vmem:[%s14773_s9 + $0xb38] sm:$0xff] }
 0x430   :  { %9786 = vmatpush1.bf16.msra.mxu1 %v9785_v20  ;;  %9708 = vmatprep.subr.bf16.mxu0 %v9707_v21  ;;  %v9721_v20 = vpack.c.bf16 %v2234_v53, %v2224_v8  ;;  %v9801_v21 = vpack.c.bf16 %v2236_v11, %v2226_v9  ;;  %v9803_v26 = vpack.c.bf16 %v2257_v18, %v2247_v17  ;;  %v3062_v53 = vld [vmem:[#allocation2] sm:$0xff]  ;;  %v3072_v9 = vld [vmem:[#allocation2 + $0x50] sm:$0xff]  ;;  %v3093_v17 = vld [vmem:[#allocation2 + $0xf8] sm:$0xff] }
 0x431   :  { %v12662_v37 = vpop.f32.mrb[6].mxu0  ;;  %9788 = vmatprep.subr.bf16.mxu1 %v9787_v25  ;;  %v2246_v25 = vld [vmem:[%s14773_s9 + $0xae0] sm:$0xff]  ;;  %v9815_v8 = vpack.c.bf16 %v3073_v2, %v3063_v1  ;;  %v3064_v11 = vld [vmem:[#allocation2 + $0x10] sm:$0xff]  ;;  %v9817_v18 = vpack.c.bf16 %v3072_v9, %v3062_v53  ;;  %v3143_v2 = vld [vmem:[#allocation2 + $0x288] sm:$0xff] }
 0x432   :  { %v12667_v42 = vpop.f32.mrb[6].mxu1  ;;  %v12669_v43 = vpop.f32.mrb[7].mxu0  ;;  %v3134_v1 = vld [vmem:[#allocation2 + $0x240] sm:$0xff] }
 0x433   :  { %v12673_v46 = vpop.f32.mrb[7].mxu1  ;;  %9710 = vmatpush1.bf16.msra.mxu0 %v9709_v31  ;;  %v2277_v31 = vld [vmem:[%s14773_s9 + $0xbd8] sm:$0xff]  ;;  %v3142_v9 = vld [vmem:[#allocation2 + $0x280] sm:$0xff] }
 0x434   :  { %9790 = vmatpush1.bf16.msra.mxu1 %v9789_v32  ;;  %9712 = vmatprep.subr.bf16.mxu0 %v9711_v33  ;;  %v9725_v32 = vpack.c.bf16 %v2254_v24, %v2244_v23  ;;  %v9805_v33 = vpack.c.bf16 %v2256_v27, %v2246_v25  ;;  %v9807_v39 = vpack.c.bf16 %v2277_v31, %v2267_v30  ;;  %v3082_v23 = vld [vmem:[#allocation2 + $0xa0] sm:$0xff]  ;;  %v3092_v24 = vld [vmem:[#allocation2 + $0xf0] sm:$0xff]  ;;  %v3105_v31 = vld [vmem:[#allocation2 + $0x158] sm:$0xff] }
 0x435   :  { %9792 = vmatprep.subr.bf16.mxu1 %v9791_v38  ;;  %v2266_v38 = vld [vmem:[%s14773_s9 + $0xb80] sm:$0xff]  ;;  %v3084_v25 = vld [vmem:[#allocation2 + $0xb0] sm:$0xff] }
 0x436   :  { %v3094_v27 = vld [vmem:[#allocation2 + $0x100] sm:$0xff] }
 0x437   :  { %9714 = vmatpush1.bf16.msra.mxu0 %v9713_v48  ;;  %v2297_v48 = vld [vmem:[%s14773_s9 + $0xc78] sm:$0xff] }
 0x438   :  { %9794 = vmatpush1.bf16.msra.mxu1 %v9793_v49  ;;  %9716 = vmatprep.subr.bf16.mxu0 %v9715_v50  ;;  %v9729_v49 = vpack.c.bf16 %v2274_v36, %v2264_v35  ;;  %v9809_v50 = vpack.c.bf16 %v2276_v40, %v2266_v38  ;;  %v9811_v58 = vpack.c.bf16 %v2297_v48, %v2287_v45  ;;  %v3102_v36 = vld [vmem:[#allocation2 + $0x140] sm:$0xff]  ;;  %v3112_v38 = vld [vmem:[#allocation2 + $0x190] sm:$0xff]  ;;  %v3133_v45 = vld [vmem:[#allocation2 + $0x238] sm:$0xff] }
 0x439   :  { %9796 = vmatprep.subr.bf16.mxu1 %v9795_v57  ;;  %v2286_v57 = vld [vmem:[%s14773_s9 + $0xc20] sm:$0xff]  ;;  %v9823_v35 = vpack.c.bf16 %v3113_v29, %v3103_v28  ;;  %v3125_v48 = vld [vmem:[#allocation2 + $0x1f8] sm:$0xff] }
 0x43a   :  { %v3174_v29 = vld [vmem:[#allocation2 + $0x380] sm:$0xff] }
 0x43b   :  { %9718 = vmatpush1.bf16.msra.mxu0 %v9717_v4  ;;  %v3075_v4 = vld [vmem:[#allocation2 + $0x68] sm:$0xff] }
 0x43c   :  { %9798 = vmatpush1.bf16.msra.mxu1 %v9797_v6  ;;  %9720 = vmatprep.subr.bf16.mxu0 %v9719_v7  ;;  %v9733_v6 = vpack.c.bf16 %v2294_v56, %v2284_v52  ;;  %v9813_v7 = vpack.c.bf16 %v2296_v47, %v2286_v57  ;;  %v9827_v52 = vpack.c.bf16 %v3133_v45, %v3123_v44  ;;  %v3122_v56 = vld [vmem:[#allocation2 + $0x1e0] sm:$0xff]  ;;  %v3132_v57 = vld [vmem:[#allocation2 + $0x230] sm:$0xff]  ;;  %v3203_v45 = vld [vmem:[#allocation2 + $0x468] sm:$0xff] }
 0x43d   :  { %9800 = vmatprep.subr.bf16.mxu1 %v9799_v10  ;;  %v9895_v10 = vpack.c.bf16 %v3075_v4, %v3065_v3  ;;  %v3153_v3 = vld [vmem:[#allocation2 + $0x2d8] sm:$0xff]  ;;  %v3194_v44 = vld [vmem:[#allocation2 + $0x420] sm:$0xff] }
 0x43e   :  { %2843 = vmatmul.mubr.f32.vlgmr.msra.gmra.mrb[12].mxu0 %v11986_v19  ;;  %v3145_v4 = vld [vmem:[#allocation2 + $0x298] sm:$0xff]  ;;  %v9831_v53 = vpack.c.bf16 %v3153_v3, %v3143_v2  ;;  %v3214_v2 = vld [vmem:[#allocation2 + $0x4c0] sm:$0xff]  ;;  %v3223_v3 = vld [vmem:[#allocation2 + $0x508] sm:$0xff] }
 0x43f   :  { %2985 = vmatmul.mubr.f32.vlgmr.msra.gmra.mrb[12].mxu1 %v11986_v19  ;;  %9722 = vmatpush1.bf16.msra.mxu0 %v9721_v20  ;;  %v3085_v20 = vld [vmem:[#allocation2 + $0xb8] sm:$0xff] }
 0x440   :  { %9802 = vmatpush1.bf16.msra.mxu1 %v9801_v21  ;;  %9724 = vmatprep.subr.bf16.mxu0 %v9723_v22  ;;  %v3095_v21 = vld [vmem:[#allocation2 + $0x108] sm:$0xff]  ;;  %v9897_v22 = vpack.c.bf16 %v3074_v14, %v3064_v11  ;;  %v3144_v11 = vld [vmem:[#allocation2 + $0x290] sm:$0xff] }
 0x441   :  { %9804 = vmatprep.subr.bf16.mxu1 %v9803_v26  ;;  %2913 = vmatprep.mubr.f32.mxu0 %v14699_v0  ;;  %v9819_v26 = vpack.c.bf16 %v3093_v17, %v3083_v15  ;;  %v9899_v30 = vpack.c.bf16 %v3095_v21, %v3085_v20  ;;  %v3154_v15 = vld [vmem:[#allocation2 + $0x2e0] sm:$0xff]  ;;  %v3163_v17 = vld [vmem:[#allocation2 + $0x328] sm:$0xff]  ;;  %v3165_v20 = vld [vmem:[#allocation2 + $0x338] sm:$0xff] }
 0x442   :  { %3055 = vmatprep.mubr.f32.mxu1 %v14699_v0  ;;  %v3175_v21 = vld [vmem:[#allocation2 + $0x388] sm:$0xff] }
 0x443   :  { %9726 = vmatpush1.bf16.msra.mxu0 %v9725_v32  ;;  %v3115_v32 = vld [vmem:[#allocation2 + $0x1a8] sm:$0xff]  ;;  %v9915_v28 = vpack.c.bf16 %v3175_v21, %v3165_v20  ;;  %v3253_v20 = vld [vmem:[#allocation2 + $0x5f8] sm:$0xff] }
 0x444   :  { %9806 = vmatpush1.bf16.msra.mxu1 %v9805_v33  ;;  %9728 = vmatprep.subr.bf16.mxu0 %v9727_v34  ;;  %v9821_v33 = vpack.c.bf16 %v3092_v24, %v3082_v23  ;;  %v9901_v34 = vpack.c.bf16 %v3094_v27, %v3084_v25  ;;  %v9903_v40 = vpack.c.bf16 %v3115_v32, %v3105_v31  ;;  %v3162_v25 = vld [vmem:[#allocation2 + $0x320] sm:$0xff]  ;;  %v3164_v27 = vld [vmem:[#allocation2 + $0x330] sm:$0xff]  ;;  %v3193_v31 = vld [vmem:[#allocation2 + $0x418] sm:$0xff] }
 0x445   :  { %9808 = vmatprep.subr.bf16.mxu1 %v9807_v39  ;;  %v3104_v39 = vld [vmem:[#allocation2 + $0x150] sm:$0xff]  ;;  %v9913_v23 = vpack.c.bf16 %v3154_v15, %v3144_v11  ;;  %v3185_v32 = vld [vmem:[#allocation2 + $0x3d8] sm:$0xff] }
 0x446   :  { %v3232_v11 = vld [vmem:[#allocation2 + $0x550] sm:$0xff]  ;;  %v3245_v21 = vld [vmem:[#allocation2 + $0x5b8] sm:$0xff] }
 0x447   :  { %9730 = vmatpush1.bf16.msra.mxu0 %v9729_v49  ;;  %v3135_v49 = vld [vmem:[#allocation2 + $0x248] sm:$0xff] }
 0x448   :  { %9810 = vmatpush1.bf16.msra.mxu1 %v9809_v50  ;;  %9732 = vmatprep.subr.bf16.mxu0 %v9731_v51  ;;  %v9825_v50 = vpack.c.bf16 %v3112_v38, %v3102_v36  ;;  %v9905_v51 = vpack.c.bf16 %v3114_v41, %v3104_v39  ;;  %v9907_v47 = vpack.c.bf16 %v3135_v49, %v3125_v48  ;;  %v3182_v38 = vld [vmem:[#allocation2 + $0x3c0] sm:$0xff]  ;;  %v3192_v39 = vld [vmem:[#allocation2 + $0x410] sm:$0xff]  ;;  %v3213_v48 = vld [vmem:[#allocation2 + $0x4b8] sm:$0xff] }
 0x449   :  { %9812 = vmatprep.subr.bf16.mxu1 %v9811_v58  ;;  %v3124_v58 = vld [vmem:[#allocation2 + $0x1f0] sm:$0xff]  ;;  %v3205_v49 = vld [vmem:[#allocation2 + $0x478] sm:$0xff] }
 0x44b   :  { %9734 = vmatpush1.bf16.msra.mxu0 %v9733_v6  ;;  %v3155_v6 = vld [vmem:[#allocation2 + $0x2e8] sm:$0xff] }
 0x44c   :  { %9814 = vmatpush1.bf16.msra.mxu1 %v9813_v7  ;;  %9816 = vmatprep.subr.bf16.mxu0 %v9815_v8  ;;  %v9829_v7 = vpack.c.bf16 %v3132_v57, %v3122_v56  ;;  %v9909_v8 = vpack.c.bf16 %v3134_v1, %v3124_v58  ;;  %v9911_v14 = vpack.c.bf16 %v3155_v6, %v3145_v4  ;;  %v3202_v57 = vld [vmem:[#allocation2 + $0x460] sm:$0xff]  ;;  %v3212_v58 = vld [vmem:[#allocation2 + $0x4b0] sm:$0xff]  ;;  %v3233_v4 = vld [vmem:[#allocation2 + $0x558] sm:$0xff] }
 0x44d   :  { %9896 = vmatprep.subr.bf16.mxu1 %v9895_v10  ;;  %v3152_v10 = vld [vmem:[#allocation2 + $0x2d0] sm:$0xff]  ;;  %v9843_v56 = vpack.c.bf16 %v3213_v48, %v3203_v45  ;;  %v3225_v6 = vld [vmem:[#allocation2 + $0x518] sm:$0xff]  ;;  %v3274_v45 = vld [vmem:[#allocation2 + $0x6a0] sm:$0xff] }
 0x44e   :  { %8277 = vmatmul.mubr.msk.f32.vlgmr.msra.gmra.mrb[12].mxu0 %vm1184_vm5, %v12029_v12  ;;  %v3283_v48 = vld [vmem:[#allocation2 + $0x6e8] sm:$0xff] }
 0x44f   :  { %8278 = vmatmul.mubr.msk.f32.vlgmr.msra.gmra.mrb[12].mxu1 %vm1184_vm5, %v12029_v12  ;;  %9818 = vmatpush1.bf16.msra.mxu0 %v9817_v18  ;;  %v3173_v18 = vld [vmem:[#allocation2 + $0x378] sm:$0xff] }
 0x450   :  { %3580 = vmatprep.mubr.f32.mxu0 %v11982_v13  ;;  %9898 = vmatpush1.bf16.msra.mxu1 %v9897_v22  ;;  %v9833_v22 = vpack.c.bf16 %v3152_v10, %v3142_v9  ;;  %v9835_v24 = vpack.c.bf16 %v3173_v18, %v3163_v17  ;;  %v9847_v9 = vpack.c.bf16 %v3233_v4, %v3223_v3  ;;  %v3222_v10 = vld [vmem:[#allocation2 + $0x500] sm:$0xff]  ;;  %v3243_v18 = vld [vmem:[#allocation2 + $0x5a8] sm:$0xff] }
 0x451   :  { %3722 = vmatprep.mubr.f32.mxu1 %v11982_v13  ;;  %9820 = vmatprep.subr.bf16.mxu0 %v9819_v26  ;;  %v3172_v26 = vld [vmem:[#allocation2 + $0x370] sm:$0xff]  ;;  %v3234_v17 = vld [vmem:[#allocation2 + $0x560] sm:$0xff]  ;;  %v3303_v4 = vld [vmem:[#allocation2 + $0x788] sm:$0xff] }
 0x452   :  { %9900 = vmatprep.subr.bf16.mxu1 %v9899_v30  ;;  %v3183_v30 = vld [vmem:[#allocation2 + $0x3c8] sm:$0xff]  ;;  %v3294_v3 = vld [vmem:[#allocation2 + $0x740] sm:$0xff] }
 0x453   :  { %9822 = vmatpush1.bf16.msra.mxu0 %v9821_v33  ;;  %v3195_v33 = vld [vmem:[#allocation2 + $0x428] sm:$0xff]  ;;  %v9839_v36 = vpack.c.bf16 %v3193_v31, %v3183_v30  ;;  %v3254_v30 = vld [vmem:[#allocation2 + $0x600] sm:$0xff] }
 0x454   :  { %9902 = vmatpush1.bf16.msra.mxu1 %v9901_v34  ;;  %9824 = vmatprep.subr.bf16.mxu0 %v9823_v35  ;;  %v9837_v34 = vpack.c.bf16 %v3172_v26, %v3162_v25  ;;  %v9917_v35 = vpack.c.bf16 %v3174_v29, %v3164_v27  ;;  %v9919_v41 = vpack.c.bf16 %v3195_v33, %v3185_v32  ;;  %v3242_v26 = vld [vmem:[#allocation2 + $0x5a0] sm:$0xff]  ;;  %v3252_v27 = vld [vmem:[#allocation2 + $0x5f0] sm:$0xff]  ;;  %v3263_v31 = vld [vmem:[#allocation2 + $0x648] sm:$0xff] }
 0x455   :  { %9904 = vmatprep.subr.bf16.mxu1 %v9903_v40  ;;  %v3184_v40 = vld [vmem:[#allocation2 + $0x3d0] sm:$0xff]  ;;  %v9851_v25 = vpack.c.bf16 %v3253_v20, %v3243_v18  ;;  %v3273_v32 = vld [vmem:[#allocation2 + $0x698] sm:$0xff]  ;;  %v3314_v18 = vld [vmem:[#allocation2 + $0x7e0] sm:$0xff] }
 0x456   :  { %v3265_v33 = vld [vmem:[#allocation2 + $0x658] sm:$0xff]  ;;  %v3323_v20 = vld [vmem:[#allocation2 + $0x828] sm:$0xff] }
 0x457   :  { %9826 = vmatpush1.bf16.msra.mxu0 %v9825_v50  ;;  %v3215_v50 = vld [vmem:[#allocation2 + $0x4c8] sm:$0xff] }
 0x458   :  { %9906 = vmatpush1.bf16.msra.mxu1 %v9905_v51  ;;  %9828 = vmatprep.subr.bf16.mxu0 %v9827_v52  ;;  %v9841_v51 = vpack.c.bf16 %v3192_v39, %v3182_v38  ;;  %v9921_v52 = vpack.c.bf16 %v3194_v44, %v3184_v40  ;;  %v9923_v1 = vpack.c.bf16 %v3215_v50, %v3205_v49  ;;  %v3262_v39 = vld [vmem:[#allocation2 + $0x640] sm:$0xff]  ;;  %v3272_v40 = vld [vmem:[#allocation2 + $0x690] sm:$0xff]  ;;  %v3293_v49 = vld [vmem:[#allocation2 + $0x738] sm:$0xff] }
 0x459   :  { %9908 = vmatprep.subr.bf16.mxu1 %v9907_v47  ;;  %v3204_v47 = vld [vmem:[#allocation2 + $0x470] sm:$0xff]  ;;  %v9855_v38 = vpack.c.bf16 %v3273_v32, %v3263_v31  ;;  %v3285_v50 = vld [vmem:[#allocation2 + $0x6f8] sm:$0xff]  ;;  %v3334_v32 = vld [vmem:[#allocation2 + $0x880] sm:$0xff] }
 0x45b   :  { %9830 = vmatpush1.bf16.msra.mxu0 %v9829_v7  ;;  %v3235_v7 = vld [vmem:[#allocation2 + $0x568] sm:$0xff] }
 0x45c   :  { %9910 = vmatpush1.bf16.msra.mxu1 %v9909_v8  ;;  %9832 = vmatprep.subr.bf16.mxu0 %v9831_v53  ;;  %v9845_v8 = vpack.c.bf16 %v3212_v58, %v3202_v57  ;;  %v9925_v53 = vpack.c.bf16 %v3214_v2, %v3204_v47  ;;  %v9927_v15 = vpack.c.bf16 %v3235_v7, %v3225_v6  ;;  %v3282_v58 = vld [vmem:[#allocation2 + $0x6e0] sm:$0xff]  ;;  %v3292_v47 = vld [vmem:[#allocation2 + $0x730] sm:$0xff]  ;;  %v3313_v6 = vld [vmem:[#allocation2 + $0x7d8] sm:$0xff] }
 0x45d   :  { %9912 = vmatprep.subr.bf16.mxu1 %v9911_v14  ;;  %v3224_v14 = vld [vmem:[#allocation2 + $0x510] sm:$0xff]  ;;  %v9859_v57 = vpack.c.bf16 %v3293_v49, %v3283_v48  ;;  %v3305_v7 = vld [vmem:[#allocation2 + $0x798] sm:$0xff] }
 0x45e   :  { %v3352_v48 = vld [vmem:[#allocation2 + $0x910] sm:$0xff] }
 0x45f   :  { %9834 = vmatpush1.bf16.msra.mxu0 %v9833_v22  ;;  %v3255_v22 = vld [vmem:[#allocation2 + $0x608] sm:$0xff]  ;;  %v3344_v49 = vld [vmem:[#allocation2 + $0x8d0] sm:$0xff] }
 0x460   :  { %9914 = vmatpush1.bf16.msra.mxu1 %v9913_v23  ;;  %9836 = vmatprep.subr.bf16.mxu0 %v9835_v24  ;;  %v9849_v23 = vpack.c.bf16 %v3232_v11, %v3222_v10  ;;  %v9929_v24 = vpack.c.bf16 %v3234_v17, %v3224_v14  ;;  %v9931_v29 = vpack.c.bf16 %v3255_v22, %v3245_v21  ;;  %v3302_v11 = vld [vmem:[#allocation2 + $0x780] sm:$0xff]  ;;  %v3312_v14 = vld [vmem:[#allocation2 + $0x7d0] sm:$0xff]  ;;  %v3333_v21 = vld [vmem:[#allocation2 + $0x878] sm:$0xff] }
 0x461   :  { %9916 = vmatprep.subr.bf16.mxu1 %v9915_v28  ;;  %v3244_v28 = vld [vmem:[#allocation2 + $0x5b0] sm:$0xff]  ;;  %v9863_v10 = vpack.c.bf16 %v3313_v6, %v3303_v4  ;;  %v3325_v22 = vld [vmem:[#allocation2 + $0x838] sm:$0xff] }
 0x462   :  { %v3372_v4 = vld [vmem:[#allocation2 + $0x9b0] sm:$0xff] }
 0x463   :  { %9838 = vmatpush1.bf16.msra.mxu0 %v9837_v34  ;;  %v3275_v34 = vld [vmem:[#allocation2 + $0x6a8] sm:$0xff] }
 0x464   :  { %9918 = vmatpush1.bf16.msra.mxu1 %v9917_v35  ;;  %9840 = vmatprep.subr.bf16.mxu0 %v9839_v36  ;;  %v9853_v35 = vpack.c.bf16 %v3252_v27, %v3242_v26  ;;  %v9933_v36 = vpack.c.bf16 %v3254_v30, %v3244_v28  ;;  %v9935_v44 = vpack.c.bf16 %v3275_v34, %v3265_v33  ;;  %v3322_v28 = vld [vmem:[#allocation2 + $0x820] sm:$0xff]  ;;  %v3324_v30 = vld [vmem:[#allocation2 + $0x830] sm:$0xff]  ;;  %v3343_v33 = vld [vmem:[#allocation2 + $0x8c8] sm:$0xff] }
 0x465   :  { %9920 = vmatprep.subr.bf16.mxu1 %v9919_v41  ;;  %v3264_v41 = vld [vmem:[#allocation2 + $0x650] sm:$0xff]  ;;  %v9867_v27 = vpack.c.bf16 %v3333_v21, %v3323_v20  ;;  %v3353_v34 = vld [vmem:[#allocation2 + $0x918] sm:$0xff]  ;;  %v3374_v20 = vld [vmem:[#allocation2 + $0x9c0] sm:$0xff] }
 0x466   :  { %v3383_v21 = vld [vmem:[#allocation2 + $0xa08] sm:$0xff] }
 0x467   :  { %9842 = vmatpush1.bf16.msra.mxu0 %v9841_v51  ;;  %v3295_v51 = vld [vmem:[#allocation2 + $0x748] sm:$0xff] }
 0x468   :  { %9922 = vmatpush1.bf16.msra.mxu1 %v9921_v52  ;;  %9844 = vmatprep.subr.bf16.mxu0 %v9843_v56  ;;  %v9857_v52 = vpack.c.bf16 %v3272_v40, %v3262_v39  ;;  %v9937_v56 = vpack.c.bf16 %v3274_v45, %v3264_v41  ;;  %v9939_v2 = vpack.c.bf16 %v3295_v51, %v3285_v50  ;;  %v3342_v40 = vld [vmem:[#allocation2 + $0x8c0] sm:$0xff] }
 0x469   :  { %9924 = vmatprep.subr.bf16.mxu1 %v9923_v1  ;;  %v3284_v1 = vld [vmem:[#allocation2 + $0x6f0] sm:$0xff]  ;;  %v9871_v45 = vpack.c.bf16 %v3353_v34, %v3343_v33  ;;  %v3354_v50 = vld [vmem:[#allocation2 + $0x920] sm:$0xff] }
 0x46b   :  { %9846 = vmatpush1.bf16.msra.mxu0 %v9845_v8  ;;  %v3315_v8 = vld [vmem:[#allocation2 + $0x7e8] sm:$0xff] }
 0x46c   :  { %9926 = vmatpush1.bf16.msra.mxu1 %v9925_v53  ;;  %9848 = vmatprep.subr.bf16.mxu0 %v9847_v9  ;;  %v9861_v53 = vpack.c.bf16 %v3292_v47, %v3282_v58  ;;  %v9941_v9 = vpack.c.bf16 %v3294_v3, %v3284_v1  ;;  %v9943_v17 = vpack.c.bf16 %v3315_v8, %v3305_v7  ;;  %v3365_v58 = vld [vmem:[#allocation2 + $0x978] sm:$0xff]  ;;  %v3362_v3 = vld [vmem:[#allocation2 + $0x960] sm:$0xff] }
 0x46d   :  { %9928 = vmatprep.subr.bf16.mxu1 %v9927_v15  ;;  %v3304_v15 = vld [vmem:[#allocation2 + $0x790] sm:$0xff]  ;;  %v9873_v8 = vpack.c.bf16 %v3352_v48, %v3342_v40  ;;  %v3382_v40 = vld [vmem:[#allocation2 + $0xa00] sm:$0xff] }
 0x46e   :  { %v9945_v26 = vpack.c.bf16 %v3314_v18, %v3304_v15  ;;  %v9877_v18 = vpack.c.bf16 %v3372_v4, %v3362_v3 }
 0x46f   :  { %9850 = vmatpush1.bf16.msra.mxu0 %v9849_v23  ;;  %v3335_v23 = vld [vmem:[#allocation2 + $0x888] sm:$0xff] }
 0x470   :  { %9930 = vmatpush1.bf16.msra.mxu1 %v9929_v24  ;;  %9852 = vmatprep.subr.bf16.mxu0 %v9851_v25  ;;  %v9865_v24 = vpack.c.bf16 %v3312_v14, %v3302_v11  ;;  %v12722_v25 = vld [vmem:[%s14774_s13] sm:$0xff]  ;;  %v9947_v31 = vpack.c.bf16 %v3335_v23, %v3325_v22  ;;  %v3364_v11 = vld [vmem:[#allocation2 + $0x970] sm:$0xff]  ;;  %v3393_v22 = vld [vmem:[#allocation2 + $0xa58] sm:$0xff] }
 0x471   :  { %9932 = vmatprep.subr.bf16.mxu1 %v9931_v29  ;;  %v3332_v29 = vld [vmem:[#allocation2 + $0x870] sm:$0xff]  ;;  %v2309_v41 = vrot.slane %v12722_v25, %v11761_v62 }
 0x472   :  { %v9869_v39 = vpack.c.bf16 %v3332_v29, %v3322_v28  ;;  %v3385_v28 = vld [vmem:[#allocation2 + $0xa18] sm:$0xff]  ;;  %v3395_v29 = vld [vmem:[#allocation2 + $0xa68] sm:$0xff] }
 0x473   :  { %9854 = vmatpush1.bf16.msra.mxu0 %v9853_v35  ;;  %v3345_v35 = vld [vmem:[#allocation2 + $0x8d8] sm:$0xff] }
 0x474   :  { %9934 = vmatpush1.bf16.msra.mxu1 %v9933_v36  ;;  %9856 = vmatprep.subr.bf16.mxu0 %v9855_v38  ;;  %v3355_v36 = vld [vmem:[#allocation2 + $0x928] sm:$0xff]  ;;  %v2305_v38 = vrot.slane %v12722_v25, %v11757_v60 }
 0x475   :  { %9936 = vmatprep.subr.bf16.mxu1 %v9935_v44  ;;  %v9949_v44 = vpack.c.bf16 %v3334_v32, %v3324_v30  ;;  %v12745_v30 = vld [vmem:[%s14775_s17] sm:$0xff] }
 0x476   :  { %v1137_v3 = vrot.slane %v12745_v30, %v11757_v60 }
 0x477   :  { %9858 = vmatpush1.bf16.msra.mxu0 %v9857_v52  ;;  %v9951_v52 = vpack.c.bf16 %v3355_v36, %v3345_v35 }
 0x478   :  { %9938 = vmatpush1.bf16.msra.mxu1 %v9937_v56  ;;  %9860 = vmatprep.subr.bf16.mxu0 %v9859_v57  ;;  %v3363_v56 = vld [vmem:[#allocation2 + $0x968] sm:$0xff]  ;;  %v3373_v57 = vld [vmem:[#allocation2 + $0x9b8] sm:$0xff] }
 0x479   :  { %9940 = vmatprep.subr.bf16.mxu1 %v9939_v2  ;;  %v3375_v2 = vld [vmem:[#allocation2 + $0x9c8] sm:$0xff] }
 0x47b   :  { %9862 = vmatpush1.bf16.msra.mxu0 %v9861_v53 }
 0x47c   :  { %9942 = vmatpush1.bf16.msra.mxu1 %v9941_v9  ;;  %9864 = vmatprep.subr.bf16.mxu0 %v9863_v10  ;;  %v9953_v9 = vpack.c.bf16 %v3354_v50, %v3344_v49  ;;  %v9875_v10 = vpack.c.bf16 %v3373_v57, %v3363_v56  ;;  %v9959_v49 = vpack.c.bf16 %v3395_v29, %v3385_v28  ;;  %v3394_v50 = vld [vmem:[#allocation2 + $0xa60] sm:$0xff]  ;;  %v3413_v56 = vld [vmem:[#allocation2 + $0xaf8] sm:$0xff]  ;;  %v3435_v29 = vld [vmem:[#allocation2 + $0xba8] sm:$0xff] }
 0x47d   :  { %9944 = vmatprep.subr.bf16.mxu1 %v9943_v17  ;;  %v9955_v17 = vpack.c.bf16 %v3375_v2, %v3365_v58  ;;  %v3415_v2 = vld [vmem:[#allocation2 + $0xb08] sm:$0xff]  ;;  %v3425_v28 = vld [vmem:[#allocation2 + $0xb58] sm:$0xff] }
 0x47f   :  { %9866 = vmatpush1.bf16.msra.mxu0 %v9865_v24 }
 0x480   :  { %9946 = vmatpush1.bf16.msra.mxu1 %v9945_v26  ;;  %9868 = vmatprep.subr.bf16.mxu0 %v9867_v27 }
 0x481   :  { %v12728_v51 = vpop.f32.mrb[8].mxu0  ;;  %9948 = vmatprep.subr.bf16.mxu1 %v9947_v31 }
 0x482   :  { %v2489_v47 = vpop.f32.mrb[8].mxu1  ;;  %v12732_v1 = vpop.f32.mrb[9].mxu0 }
 0x483   :  { %v11243_v6 = vadd.f32 %v2489_v47, %v2305_v38  ;;  %v2491_v7 = vpop.f32.mrb[9].mxu1  ;;  %9870 = vmatpush1.bf16.msra.mxu0 %v9869_v39  ;;  %v9957_v38 = vpack.c.bf16 %v3374_v20, %v3364_v11  ;;  %v9879_v39 = vpack.c.bf16 %v3393_v22, %v3383_v21  ;;  %v3405_v47 = vld [vmem:[#allocation2 + $0xab8] sm:$0xff]  ;;  %v3402_v11 = vld [vmem:[#allocation2 + $0xaa0] sm:$0xff] }
 0x484   :  { %v11244_v53 = vadd.f32 %v2491_v7, %v2309_v41  ;;  %9950 = vmatpush1.bf16.msra.mxu1 %v9949_v44  ;;  %9872 = vmatprep.subr.bf16.mxu0 %v9871_v45  ;;  %v3392_v41 = vld [vmem:[#allocation2 + $0xa50] sm:$0xff]  ;;  %v9963_v21 = vpack.c.bf16 %v3415_v2, %v3405_v47  ;;  %v3414_v22 = vld [vmem:[#allocation2 + $0xb00] sm:$0xff] }
 0x485   :  { %v4419_v14 = vsel %vm4418_vm6, %v11243_v6, 0.0  ;;  %v4861_v15 = vsel %vm4860_vm7, %v11243_v6, 0.0  ;;  %9952 = vmatprep.subr.bf16.mxu1 %v9951_v52  ;;  %v3384_v44 = vld [vmem:[#allocation2 + $0xa10] sm:$0xff]  ;;  %v3403_v52 = vld [vmem:[#allocation2 + $0xaa8] sm:$0xff]  ;;  %v9881_v7 = vpack.c.bf16 %v3392_v41, %v3382_v40  ;;  %v3434_v41 = vld [vmem:[#allocation2 + $0xba0] sm:$0xff] }
 0x486   :  { %v4429_v23 = vsel %vm201_vm0, %v4419_v14, 0.0  ;;  %v4871_v24 = vsel %vm201_vm0, %v4861_v15, 0.0  ;;  %v4420_v26 = vsel %vm4418_vm6, %v11244_v53, 0.0  ;;  %v4862_v27 = vsel %vm4860_vm7, %v11244_v53, 0.0  ;;  %v3412_v14 = vld [vmem:[#allocation2 + $0xaf0] sm:$0xff] }
 0x487   :  { %v4430_v31 = vrot.slane %v4429_v23, 4  ;;  %v4872_v32 = vrot.slane %v4871_v24, 4  ;;  %v4436_v33 = vsel %vm201_vm0, %v4420_v26, 0.0  ;;  %v4878_v34 = vsel %vm201_vm0, %v4862_v27, 0.0  ;;  %9874 = vmatpush1.bf16.msra.mxu0 %v9873_v8  ;;  %v3404_v15 = vld [vmem:[#allocation2 + $0xab0] sm:$0xff] }
 0x488   :  { %v4437_v35 = vrot.slane %v4436_v33, 4  ;;  %v4879_v36 = vrot.slane %v4878_v34, 4  ;;  %9954 = vmatpush1.bf16.msra.mxu1 %v9953_v9  ;;  %9876 = vmatprep.subr.bf16.mxu0 %v9875_v10  ;;  %v9961_v9 = vpack.c.bf16 %v3394_v50, %v3384_v44  ;;  %v9883_v10 = vpack.c.bf16 %v3413_v56, %v3403_v52  ;;  %v3424_v40 = vld [vmem:[#allocation2 + $0xb50] sm:$0xff]  ;;  %v3443_v50 = vld [vmem:[#allocation2 + $0xbe8] sm:$0xff]  ;;  %v3453_v52 = vld [vmem:[#allocation2 + $0xc38] sm:$0xff] }
 0x489   :  { %v4431_v45 = vadd.f32 %v4430_v31, %v4429_v23  ;;  %v4873_v48 = vadd.f32 %v4872_v32, %v4871_v24  ;;  %9956 = vmatprep.subr.bf16.mxu1 %v9955_v17  ;;  %v3423_v23 = vld [vmem:[#allocation2 + $0xb48] sm:$0xff]  ;;  %v3433_v24 = vld [vmem:[#allocation2 + $0xb98] sm:$0xff]  ;;  %v11233_v31 = vadd.f32 %v12484_v54, %v1137_v3  ;;  %v9967_v54 = vpack.c.bf16 %v3435_v29, %v3425_v28  ;;  %v3068_v29 = vld [vmem:[#allocation2 + $0x30] sm:$0xff] }
 0x48a   :  { %v4438_v57 = vadd.f32 %v4437_v35, %v4436_v33  ;;  %v4880_v58 = vadd.f32 %v4879_v36, %v4878_v34  ;;  %v9885_v34 = vpack.c.bf16 %v3412_v14, %v3402_v11  ;;  %v3422_v35 = vld [vmem:[#allocation2 + $0xb40] sm:$0xff]  ;;  %v9965_v36 = vpack.c.bf16 %v3414_v22, %v3404_v15  ;;  %v3079_v22 = vld [vmem:[#allocation2 + $0x88] sm:$0xff] }
 0x48b   :  { %v4432_v4 = vrot.slane %v4431_v45, 2  ;;  %v4874_v6 = vrot.slane %v4873_v48, 2  ;;  %9878 = vmatpush1.bf16.msra.mxu0 %v9877_v18  ;;  %v1141_v18 = vrot.slane %v12745_v30, %v11761_v62  ;;  %v3454_v15 = vld [vmem:[#allocation2 + $0xc40] sm:$0xff] }
 0x48c   :  { %v4439_v8 = vrot.slane %v4438_v57, 2  ;;  %v4881_v53 = vrot.slane %v4880_v58, 2  ;;  %9958 = vmatpush1.bf16.msra.mxu1 %v9957_v38  ;;  %9880 = vmatprep.subr.bf16.mxu0 %v9879_v39  ;;  %v9887_v38 = vpack.c.bf16 %v3433_v24, %v3423_v23  ;;  %v3432_v39 = vld [vmem:[#allocation2 + $0xb90] sm:$0xff] }
 0x48d   :  { %v4433_v17 = vadd.f32 %v4432_v4, %v4431_v45  ;;  %v4875_v20 = vadd.f32 %v4874_v6, %v4873_v48  ;;  %9960 = vmatprep.subr.bf16.mxu1 %v9959_v49  ;;  %v11234_v56 = vadd.f32 %v12491_v61, %v1141_v18  ;;  %v9889_v3 = vpack.c.bf16 %v3432_v39, %v3422_v35  ;;  %v3089_v35 = vld [vmem:[#allocation2 + $0xd8] sm:$0xff]  ;;  %v3086_v39 = vld [vmem:[#allocation2 + $0xc0] sm:$0xff] }
 0x48e   :  { %v4440_v26 = vadd.f32 %v4439_v8, %v4438_v57  ;;  %v4882_v27 = vadd.f32 %v4881_v53, %v4880_v58  ;;  %3581 = vmatmul.mubr.f32.vlgmr.msra.gmra.mrb[14].mxu0 %v11986_v19  ;;  %v3445_v57 = vld [vmem:[#allocation2 + $0xbf8] sm:$0xff]  ;;  %v3455_v58 = vld [vmem:[#allocation2 + $0xc48] sm:$0xff]  ;;  %v9969_v4 = vpack.c.bf16 %v3434_v41, %v3424_v40  ;;  %v9891_v8 = vpack.c.bf16 %v3453_v52, %v3443_v50  ;;  %v3442_v53 = vld [vmem:[#allocation2 + $0xbe0] sm:$0xff] }
 0x48f   :  { %v4434_v32 = vrot.slane %v4433_v17, 1  ;;  %v4876_v33 = vrot.slane %v4875_v20, 1  ;;  %3723 = vmatmul.mubr.f32.vlgmr.msra.gmra.mrb[14].mxu1 %v11986_v19  ;;  %9882 = vmatpush1.bf16.msra.mxu0 %v9881_v7  ;;  %v9971_v14 = vpack.c.bf16 %v3455_v58, %v3445_v57  ;;  %v3096_v40 = vld [vmem:[#allocation2 + $0x110] sm:$0xff]  ;;  %v3109_v50 = vld [vmem:[#allocation2 + $0x178] sm:$0xff]  ;;  %v3119_v52 = vld [vmem:[#allocation2 + $0x1c8] sm:$0xff] }
 0x490   :  { %9962 = vmatpush1.bf16.msra.mxu1 %v9961_v9  ;;  %9884 = vmatprep.subr.bf16.mxu0 %v9883_v10  ;;  %v4441_v44 = vrot.slane %v4440_v26, 1  ;;  %v4883_v45 = vrot.slane %v4882_v27, 1  ;;  %v3452_v9 = vld [vmem:[#allocation2 + $0xc30] sm:$0xff] }
 0x491   :  { %v4435_v48 = vadd.f32 %v4434_v32, %v4433_v17  ;;  %v4877_v49 = vadd.f32 %v4876_v33, %v4875_v20  ;;  %9964 = vmatprep.subr.bf16.mxu1 %v9963_v21  ;;  %3651 = vmatprep.mubr.f32.mxu0 %v14699_v0  ;;  %v3444_v10 = vld [vmem:[#allocation2 + $0xbf0] sm:$0xff]  ;;  %v3067_v17 = vld [vmem:[#allocation2 + $0x28] sm:$0xff]  ;;  %v3077_v20 = vld [vmem:[#allocation2 + $0x78] sm:$0xff]  ;;  %v9893_v23 = vpack.c.bf16 %v3452_v9, %v3442_v53 }
 0x492   :  { %3793 = vmatprep.mubr.f32.mxu1 %v14699_v0  ;;  %v4442_v47 = vadd.f32 %v4441_v44, %v4440_v26  ;;  %v4884_v2 = vadd.f32 %v4883_v45, %v4882_v27  ;;  %v3069_v21 = vld [vmem:[#allocation2 + $0x38] sm:$0xff]  ;;  %v9973_v24 = vpack.c.bf16 %v3454_v15, %v3444_v10  ;;  %v9975_v18 = vpack.c.bf16 %v3077_v20, %v3067_v17  ;;  %v3066_v26 = vld [vmem:[#allocation2 + $0x20] sm:$0xff]  ;;  %v3076_v27 = vld [vmem:[#allocation2 + $0x70] sm:$0xff] }
 0x493   :  { %9886 = vmatpush1.bf16.msra.mxu0 %v9885_v34  ;;  %v12759_v6 = vmul.f32 %v11233_v31, %v4435_v48  ;;  %v12761_v7 = vmul.f32 %v11233_v31, %v4877_v49  ;;  %v10055_v28 = vpack.c.bf16 %v3079_v22, %v3069_v21  ;;  %v3078_v31 = vld [vmem:[#allocation2 + $0x80] sm:$0xff]  ;;  %v3087_v32 = vld [vmem:[#allocation2 + $0xc8] sm:$0xff]  ;;  %v3097_v33 = vld [vmem:[#allocation2 + $0x118] sm:$0xff]  ;;  %v9977_v34 = vpack.c.bf16 %v3076_v27, %v3066_v26 }
 0x494   :  { %9966 = vmatpush1.bf16.msra.mxu1 %v9965_v36  ;;  %9888 = vmatprep.subr.bf16.mxu0 %v9887_v38  ;;  %v12763_v61 = vmul.f32 %v11234_v56, %v4442_v47  ;;  %v12765_v11 = vmul.f32 %v11234_v56, %v4884_v2  ;;  %v3099_v36 = vld [vmem:[#allocation2 + $0x128] sm:$0xff]  ;;  %v10057_v38 = vpack.c.bf16 %v3078_v31, %v3068_v29  ;;  %v3088_v41 = vld [vmem:[#allocation2 + $0xd0] sm:$0xff]  ;;  %v3098_v45 = vld [vmem:[#allocation2 + $0x120] sm:$0xff] }
 0x495   :  { %14776 = vst [vmem:[#allocation37_spill] sm:$0xff] %v12761_v7  ;;  %9968 = vmatprep.subr.bf16.mxu1 %v9967_v54  ;;  %v9979_v44 = vpack.c.bf16 %v3097_v33, %v3087_v32  ;;  %v3107_v48 = vld [vmem:[#allocation2 + $0x168] sm:$0xff]  ;;  %v3117_v49 = vld [vmem:[#allocation2 + $0x1b8] sm:$0xff]  ;;  %v10059_v54 = vpack.c.bf16 %v3099_v36, %v3089_v35  ;;  %v9981_v56 = vpack.c.bf16 %v3096_v40, %v3086_v39  ;;  %v3106_v47 = vld [vmem:[#allocation2 + $0x160] sm:$0xff] }
 0x496   :  { %14777 = vst [vmem:[#allocation38_spill] sm:$0xff] %v12765_v11  ;;  %v10061_v57 = vpack.c.bf16 %v3098_v45, %v3088_v41  ;;  %v9983_v58 = vpack.c.bf16 %v3117_v49, %v3107_v48  ;;  %v3116_v2 = vld [vmem:[#allocation2 + $0x1b0] sm:$0xff]  ;;  %v3127_v53 = vld [vmem:[#allocation2 + $0x208] sm:$0xff]  ;;  %v3137_v9 = vld [vmem:[#allocation2 + $0x258] sm:$0xff] }
 0x497   :  { %9890 = vmatpush1.bf16.msra.mxu0 %v9889_v3  ;;  %v3108_v3 = vld [vmem:[#allocation2 + $0x170] sm:$0xff]  ;;  %v3129_v10 = vld [vmem:[#allocation2 + $0x218] sm:$0xff]  ;;  %v9985_v15 = vpack.c.bf16 %v3116_v2, %v3106_v47  ;;  %v9987_v20 = vpack.c.bf16 %v3137_v9, %v3127_v53  ;;  %v3126_v21 = vld [vmem:[#allocation2 + $0x200] sm:$0xff] }
 0x498   :  { %9970 = vmatpush1.bf16.msra.mxu1 %v9969_v4  ;;  %9892 = vmatprep.subr.bf16.mxu0 %v9891_v8  ;;  %v10063_v4 = vpack.c.bf16 %v3119_v52, %v3109_v50  ;;  %v3118_v8 = vld [vmem:[#allocation2 + $0x1c0] sm:$0xff]  ;;  %v3136_v22 = vld [vmem:[#allocation2 + $0x250] sm:$0xff]  ;;  %v3147_v26 = vld [vmem:[#allocation2 + $0x2a8] sm:$0xff] }
 0x499   :  { %9972 = vmatprep.subr.bf16.mxu1 %v9971_v14  ;;  %v3139_v14 = vld [vmem:[#allocation2 + $0x268] sm:$0xff]  ;;  %v10065_v17 = vpack.c.bf16 %v3118_v8, %v3108_v3  ;;  %v3157_v27 = vld [vmem:[#allocation2 + $0x2f8] sm:$0xff]  ;;  %v9989_v31 = vpack.c.bf16 %v3136_v22, %v3126_v21  ;;  %v3156_v35 = vld [vmem:[#allocation2 + $0x2f0] sm:$0xff] }
 0x49a   :  { %v3159_v29 = vld [vmem:[#allocation2 + $0x308] sm:$0xff]  ;;  %v9991_v33 = vpack.c.bf16 %v3157_v27, %v3147_v26  ;;  %v3148_v36 = vld [vmem:[#allocation2 + $0x2b0] sm:$0xff]  ;;  %v3158_v39 = vld [vmem:[#allocation2 + $0x300] sm:$0xff] }
 0x49b   :  { %9894 = vmatpush1.bf16.msra.mxu0 %v9893_v23  ;;  %v3128_v23 = vld [vmem:[#allocation2 + $0x210] sm:$0xff]  ;;  %v3167_v40 = vld [vmem:[#allocation2 + $0x348] sm:$0xff]  ;;  %v3177_v41 = vld [vmem:[#allocation2 + $0x398] sm:$0xff]  ;;  %v10073_v49 = vpack.c.bf16 %v3158_v39, %v3148_v36 }
 0x49c   :  { %9974 = vmatpush1.bf16.msra.mxu1 %v9973_v24  ;;  %9976 = vmatprep.subr.bf16.mxu0 %v9975_v18  ;;  %v10067_v24 = vpack.c.bf16 %v3139_v14, %v3129_v10  ;;  %v3138_v18 = vld [vmem:[#allocation2 + $0x260] sm:$0xff]  ;;  %v3179_v45 = vld [vmem:[#allocation2 + $0x3a8] sm:$0xff]  ;;  %v3176_v52 = vld [vmem:[#allocation2 + $0x390] sm:$0xff] }
 0x49d   :  { %10056 = vmatprep.subr.bf16.mxu1 %v10055_v28  ;;  %v3149_v28 = vld [vmem:[#allocation2 + $0x2b8] sm:$0xff]  ;;  %v10069_v32 = vpack.c.bf16 %v3138_v18, %v3128_v23  ;;  %v3166_v50 = vld [vmem:[#allocation2 + $0x340] sm:$0xff]  ;;  %v3187_v47 = vld [vmem:[#allocation2 + $0x3e8] sm:$0xff] }
 0x49e   :  { %8279 = vmatmul.mubr.msk.f32.vlgmr.msra.gmra.mrb[14].mxu0 %vm1184_vm5, %v12029_v12  ;;  %v3197_v2 = vld [vmem:[#allocation2 + $0x438] sm:$0xff]  ;;  %v9997_v8 = vpack.c.bf16 %v3176_v52, %v3166_v50  ;;  %v3186_v10 = vld [vmem:[#allocation2 + $0x3e0] sm:$0xff]  ;;  %v3196_v14 = vld [vmem:[#allocation2 + $0x430] sm:$0xff] }
 0x49f   :  { %8280 = vmatmul.mubr.msk.f32.vlgmr.msra.gmra.mrb[14].mxu1 %vm1184_vm5, %v12029_v12  ;;  %9978 = vmatpush1.bf16.msra.mxu0 %v9977_v34  ;;  %v3146_v34 = vld [vmem:[#allocation2 + $0x2a0] sm:$0xff]  ;;  %v3189_v3 = vld [vmem:[#allocation2 + $0x3f8] sm:$0xff]  ;;  %v9999_v9 = vpack.c.bf16 %v3197_v2, %v3187_v47  ;;  %v3207_v21 = vld [vmem:[#allocation2 + $0x488] sm:$0xff]  ;;  %v10001_v18 = vpack.c.bf16 %v3196_v14, %v3186_v10 }
 0x4a0   :  { %3864 = vmatprep.mubr.f32.mxu0 %v11982_v13  ;;  %10058 = vmatpush1.bf16.msra.mxu1 %v10057_v38  ;;  %v10071_v38 = vpack.c.bf16 %v3159_v29, %v3149_v28  ;;  %v9993_v48 = vpack.c.bf16 %v3156_v35, %v3146_v34  ;;  %v3217_v22 = vld [vmem:[#allocation2 + $0x4d8] sm:$0xff]  ;;  %v3206_v28 = vld [vmem:[#allocation2 + $0x480] sm:$0xff]  ;;  %v3216_v29 = vld [vmem:[#allocation2 + $0x4d0] sm:$0xff] }
 0x4a1   :  { %4006 = vmatprep.mubr.f32.mxu1 %v11982_v13  ;;  %9980 = vmatprep.subr.bf16.mxu0 %v9979_v44  ;;  %v3169_v44 = vld [vmem:[#allocation2 + $0x358] sm:$0xff]  ;;  %v10003_v27 = vpack.c.bf16 %v3217_v22, %v3207_v21  ;;  %v3227_v34 = vld [vmem:[#allocation2 + $0x528] sm:$0xff]  ;;  %v10005_v39 = vpack.c.bf16 %v3216_v29, %v3206_v28 }
 0x4a2   :  { %10060 = vmatprep.subr.bf16.mxu1 %v10059_v54  ;;  %v9995_v54 = vpack.c.bf16 %v3177_v41, %v3167_v40  ;;  %v3209_v23 = vld [vmem:[#allocation2 + $0x498] sm:$0xff]  ;;  %v3247_v50 = vld [vmem:[#allocation2 + $0x5c8] sm:$0xff] }
 0x4a3   :  { %9982 = vmatpush1.bf16.msra.mxu0 %v9981_v56  ;;  %v3168_v56 = vld [vmem:[#allocation2 + $0x350] sm:$0xff]  ;;  %v3237_v35 = vld [vmem:[#allocation2 + $0x578] sm:$0xff]  ;;  %v3267_v10 = vld [vmem:[#allocation2 + $0x668] sm:$0xff] }
 0x4a4   :  { %10062 = vmatpush1.bf16.msra.mxu1 %v10061_v57  ;;  %9984 = vmatprep.subr.bf16.mxu0 %v9983_v58  ;;  %v10075_v57 = vpack.c.bf16 %v3179_v45, %v3169_v44  ;;  %v3178_v58 = vld [vmem:[#allocation2 + $0x3a0] sm:$0xff]  ;;  %v3229_v36 = vld [vmem:[#allocation2 + $0x538] sm:$0xff]  ;;  %v10007_v41 = vpack.c.bf16 %v3237_v35, %v3227_v34  ;;  %v3236_v45 = vld [vmem:[#allocation2 + $0x570] sm:$0xff] }
 0x4a5   :  { %10064 = vmatprep.subr.bf16.mxu1 %v10063_v4  ;;  %v3199_v4 = vld [vmem:[#allocation2 + $0x448] sm:$0xff]  ;;  %v10077_v53 = vpack.c.bf16 %v3178_v58, %v3168_v56  ;;  %v3226_v44 = vld [vmem:[#allocation2 + $0x520] sm:$0xff]  ;;  %v3257_v52 = vld [vmem:[#allocation2 + $0x618] sm:$0xff] }
 0x4a6   :  { %v3249_v56 = vld [vmem:[#allocation2 + $0x5d8] sm:$0xff]  ;;  %v10009_v58 = vpack.c.bf16 %v3236_v45, %v3226_v44  ;;  %v10011_v2 = vpack.c.bf16 %v3257_v52, %v3247_v50  ;;  %v3287_v28 = vld [vmem:[#allocation2 + $0x708] sm:$0xff]  ;;  %v3298_v45 = vld [vmem:[#allocation2 + $0x760] sm:$0xff] }
 0x4a7   :  { %9986 = vmatpush1.bf16.msra.mxu0 %v9985_v15  ;;  %v3188_v15 = vld [vmem:[#allocation2 + $0x3f0] sm:$0xff]  ;;  %v3277_v14 = vld [vmem:[#allocation2 + $0x6b8] sm:$0xff]  ;;  %v3319_v50 = vld [vmem:[#allocation2 + $0x808] sm:$0xff] }
 0x4a8   :  { %10066 = vmatpush1.bf16.msra.mxu1 %v10065_v17  ;;  %9988 = vmatprep.subr.bf16.mxu0 %v9987_v20  ;;  %v10079_v17 = vpack.c.bf16 %v3199_v4, %v3189_v3  ;;  %v3198_v20 = vld [vmem:[#allocation2 + $0x440] sm:$0xff]  ;;  %v3256_v4 = vld [vmem:[#allocation2 + $0x610] sm:$0xff]  ;;  %v10015_v22 = vpack.c.bf16 %v3277_v14, %v3267_v10  ;;  %v3297_v29 = vld [vmem:[#allocation2 + $0x758] sm:$0xff] }
 0x4a9   :  { %10068 = vmatprep.subr.bf16.mxu1 %v10067_v24  ;;  %v3219_v24 = vld [vmem:[#allocation2 + $0x4e8] sm:$0xff]  ;;  %v10081_v26 = vpack.c.bf16 %v3198_v20, %v3188_v15  ;;  %v3246_v3 = vld [vmem:[#allocation2 + $0x5c0] sm:$0xff]  ;;  %v3269_v15 = vld [vmem:[#allocation2 + $0x678] sm:$0xff]  ;;  %v10019_v35 = vpack.c.bf16 %v3297_v29, %v3287_v28 }
 0x4aa   :  { %v10013_v20 = vpack.c.bf16 %v3256_v4, %v3246_v3  ;;  %v12779_v52 = vld [vmem:[#allocation2 + $0x7a0] sm:$0xff]  ;;  %v1145_v3 = vrot.slane %v12745_v30, %v11974_v5  ;;  %v12790_v10 = vld [vmem:[#allocation2 + $0x858] sm:$0xff]  ;;  %v12812_v28 = vld [vmem:[#allocation2 + $0x948] sm:$0xff] }
 0x4ab   :  { %9990 = vmatpush1.bf16.msra.mxu0 %v9989_v31  ;;  %v3208_v31 = vld [vmem:[#allocation2 + $0x490] sm:$0xff]  ;;  %v12814_v29 = vld [vmem:[#allocation2 + $0x8e0] sm:$0xff] }
 0x4ac   :  { %10070 = vmatpush1.bf16.msra.mxu1 %v10069_v32  ;;  %9992 = vmatprep.subr.bf16.mxu0 %v9991_v33  ;;  %v10083_v32 = vpack.c.bf16 %v3219_v24, %v3209_v23  ;;  %v3218_v33 = vld [vmem:[#allocation2 + $0x4e0] sm:$0xff]  ;;  %v3276_v24 = vld [vmem:[#allocation2 + $0x6b0] sm:$0xff] }
 0x4ad   :  { %10072 = vmatprep.subr.bf16.mxu1 %v10071_v38  ;;  %v3239_v38 = vld [vmem:[#allocation2 + $0x588] sm:$0xff]  ;;  %v10085_v40 = vpack.c.bf16 %v3218_v33, %v3208_v31  ;;  %v3266_v23 = vld [vmem:[#allocation2 + $0x660] sm:$0xff]  ;;  %v3289_v31 = vld [vmem:[#allocation2 + $0x718] sm:$0xff] }
 0x4ae   :  { %v10017_v33 = vpack.c.bf16 %v3276_v24, %v3266_v23  ;;  %v12802_v23 = vld [vmem:[#allocation2 + $0x850] sm:$0xff]  ;;  %v12804_v24 = vld [vmem:[#allocation2 + $0x8a0] sm:$0xff] }
 0x4af   :  { %9994 = vmatpush1.bf16.msra.mxu0 %v9993_v48  ;;  %v3228_v48 = vld [vmem:[#allocation2 + $0x530] sm:$0xff] }
 0x4b0   :  { %10074 = vmatpush1.bf16.msra.mxu1 %v10073_v49  ;;  %9996 = vmatprep.subr.bf16.mxu0 %v9995_v54  ;;  %v10087_v49 = vpack.c.bf16 %v3239_v38, %v3229_v36  ;;  %v3238_v54 = vld [vmem:[#allocation2 + $0x580] sm:$0xff]  ;;  %v3296_v38 = vld [vmem:[#allocation2 + $0x750] sm:$0xff] }
 0x4b1   :  { %10076 = vmatprep.subr.bf16.mxu1 %v10075_v57  ;;  %v3259_v57 = vld [vmem:[#allocation2 + $0x628] sm:$0xff]  ;;  %v10089_v47 = vpack.c.bf16 %v3238_v54, %v3228_v48  ;;  %v3286_v36 = vld [vmem:[#allocation2 + $0x700] sm:$0xff]  ;;  %v3309_v54 = vld [vmem:[#allocation2 + $0x7b8] sm:$0xff] }
 0x4b2   :  { %v3307_v48 = vld [vmem:[#allocation2 + $0x7a8] sm:$0xff] }
 0x4b3   :  { %9998 = vmatpush1.bf16.msra.mxu0 %v9997_v8  ;;  %v3248_v8 = vld [vmem:[#allocation2 + $0x5d0] sm:$0xff] }
 0x4b4   :  { %10078 = vmatpush1.bf16.msra.mxu1 %v10077_v53  ;;  %10000 = vmatprep.subr.bf16.mxu0 %v9999_v9  ;;  %v10091_v53 = vpack.c.bf16 %v3259_v57, %v3249_v56  ;;  %v3258_v9 = vld [vmem:[#allocation2 + $0x620] sm:$0xff]  ;;  %v12782_v56 = vsub.s32 5, %v11754_v59  ;;  %v10021_v57 = vpack.c.bf16 %v3296_v38, %v3286_v36  ;;  %v12825_v36 = vld [vmem:[#allocation2 + $0x988] sm:$0xff]  ;;  %v12827_v38 = vld [vmem:[#allocation2 + $0x9d8] sm:$0xff] }
 0x4b5   :  { %10080 = vmatprep.subr.bf16.mxu1 %v10079_v17  ;;  %v3279_v17 = vld [vmem:[#allocation2 + $0x6c8] sm:$0xff]  ;;  %v10093_v21 = vpack.c.bf16 %v3258_v9, %v3248_v8  ;;  %v3337_v9 = vld [vmem:[#allocation2 + $0x898] sm:$0xff] }
 0x4b6   :  { %14780 = vst [vmem:[#allocation41_spill] sm:$0xff] %v12782_v56 }
 0x4b7   :  { %10002 = vmatpush1.bf16.msra.mxu0 %v10001_v18  ;;  %v3268_v18 = vld [vmem:[#allocation2 + $0x670] sm:$0xff] }
 0x4b8   :  { %10082 = vmatpush1.bf16.msra.mxu1 %v10081_v26  ;;  %10004 = vmatprep.subr.bf16.mxu0 %v10003_v27  ;;  %v10095_v26 = vpack.c.bf16 %v3279_v17, %v3269_v15  ;;  %v3278_v27 = vld [vmem:[#allocation2 + $0x6c0] sm:$0xff]  ;;  %v10103_v17 = vpack.c.bf16 %v3319_v50, %v3309_v54  ;;  %v12840_v50 = vld [vmem:[#allocation2 + $0x9d0] sm:$0xff] }
 0x4b9   :  { %10084 = vmatprep.subr.bf16.mxu1 %v10083_v32  ;;  %v3299_v32 = vld [vmem:[#allocation2 + $0x768] sm:$0xff]  ;;  %v10097_v34 = vpack.c.bf16 %v3278_v27, %v3268_v18  ;;  %v12810_v27 = vld [vmem:[#allocation2 + $0x8f8] sm:$0xff]  ;;  %v12838_v54 = vld [vmem:[#allocation2 + $0x980] sm:$0xff] }
 0x4ba   :  { %v10099_v44 = vpack.c.bf16 %v3299_v32, %v3289_v31  ;;  %v12806_v18 = vld [vmem:[#allocation2 + $0x8e8] sm:$0xff]  ;;  %v12816_v31 = vld [vmem:[#allocation2 + $0x930] sm:$0xff]  ;;  %v10111_v0 = vpack.c.bf16 %v12812_v28, %v12810_v27  ;;  %v12902_v27 = vld [vmem:[#allocation2 + $0xac0] sm:$0xff] }
 0x4bb   :  { %10006 = vmatpush1.bf16.msra.mxu0 %v10005_v39  ;;  %v3288_v39 = vld [vmem:[#allocation2 + $0x710] sm:$0xff] }
 0x4bc   :  { %10086 = vmatpush1.bf16.msra.mxu1 %v10085_v40  ;;  %10008 = vmatprep.subr.bf16.mxu0 %v10007_v41  ;;  %v12774_v40 = vsub.s32 3, %v11754_v59  ;;  %v12777_v41 = vsub.s32 4, %v11754_v59  ;;  %v10101_v4 = vpack.c.bf16 %v3298_v45, %v3288_v39  ;;  %v12829_v39 = vld [vmem:[#allocation2 + $0x998] sm:$0xff]  ;;  %v12834_v45 = vadd.f32 %v12486_v55, %v1145_v3  ;;  %v12904_v28 = vld [vmem:[#allocation2 + $0xb10] sm:$0xff] }
 0x4bd   :  { %10088 = vmatprep.subr.bf16.mxu1 %v10087_v49  ;;  %v3317_v49 = vld [vmem:[#allocation2 + $0x7f8] sm:$0xff] }
 0x4be   :  { %14778 = vst [vmem:[#allocation39_spill] sm:$0xff] %v12774_v40  ;;  %14779 = vst [vmem:[#allocation40_spill] sm:$0xff] %v12777_v41  ;;  %v10023_v8 = vpack.c.bf16 %v3317_v49, %v3307_v48  ;;  %v1149_v14 = vrot.slane %v12745_v30, %v12774_v40  ;;  %v1153_v15 = vrot.slane %v12745_v30, %v12777_v41 }
 0x4bf   :  { %10010 = vmatpush1.bf16.msra.mxu0 %v10009_v58  ;;  %v3316_v58 = vld [vmem:[#allocation2 + $0x7f0] sm:$0xff] }
 0x4c0   :  { %10090 = vmatpush1.bf16.msra.mxu1 %v10089_v47  ;;  %10012 = vmatprep.subr.bf16.mxu0 %v10011_v2  ;;  %v12784_v47 = vld [vmem:[#allocation2 + $0x7b0] sm:$0xff]  ;;  %v12786_v2 = vld [vmem:[#allocation2 + $0x800] sm:$0xff]  ;;  %v12851_v55 = vadd.f32 %v12493_v63, %v1149_v14  ;;  %v12854_v3 = vadd.f32 %v12662_v37, %v1153_v15  ;;  %v2321_v63 = vrot.slane %v12722_v25, %v12777_v41  ;;  %v12892_v41 = vld [vmem:[#allocation2 + $0xad8] sm:$0xff] }
 0x4c1   :  { %10092 = vmatprep.subr.bf16.mxu1 %v10091_v53  ;;  %v3327_v53 = vld [vmem:[#allocation2 + $0x848] sm:$0xff]  ;;  %v10105_v48 = vpack.c.bf16 %v12786_v2, %v12784_v47  ;;  %v2313_v47 = vrot.slane %v12722_v25, %v11974_v5  ;;  %v2317_v37 = vrot.slane %v12722_v25, %v12774_v40  ;;  %v12874_v15 = vld [vmem:[#allocation2 + $0xa70] sm:$0xff] }
 0x4c2   :  { %v10027_v49 = vpack.c.bf16 %v3337_v9, %v3327_v53  ;;  %v12864_v53 = vld [vmem:[#allocation2 + $0xa20] sm:$0xff]  ;;  %v2325_v9 = vrot.slane %v12722_v25, %v12782_v56  ;;  %v10033_v25 = vpack.c.bf16 %v12816_v31, %v12814_v29  ;;  %v10037_v31 = vpack.c.bf16 %v12840_v50, %v12838_v54 }
 0x4c3   :  { %10014 = vmatpush1.bf16.msra.mxu0 %v10013_v20  ;;  %v12796_v20 = vld [vmem:[#allocation2 + $0x8a8] sm:$0xff] }
 0x4c4   :  { %10094 = vmatpush1.bf16.msra.mxu1 %v10093_v21  ;;  %10016 = vmatprep.subr.bf16.mxu0 %v10015_v22  ;;  %v12798_v21 = vld [vmem:[#allocation2 + $0x840] sm:$0xff]  ;;  %v12800_v22 = vld [vmem:[#allocation2 + $0x890] sm:$0xff]  ;;  %v10107_v2 = vpack.c.bf16 %v12796_v20, %v12790_v10  ;;  %v10109_v20 = vpack.c.bf16 %v12804_v24, %v12802_v23  ;;  %v10035_v24 = vpack.c.bf16 %v12827_v38, %v12825_v36 }
 0x4c5   :  { %10096 = vmatprep.subr.bf16.mxu1 %v10095_v26  ;;  %v12808_v26 = vld [vmem:[#allocation2 + $0x938] sm:$0xff]  ;;  %v10029_v14 = vpack.c.bf16 %v12800_v22, %v12798_v21  ;;  %v12876_v10 = vld [vmem:[#allocation2 + $0xa30] sm:$0xff]  ;;  %v12888_v21 = vld [vmem:[#allocation2 + $0xac8] sm:$0xff] }
 0x4c6   :  { %v10031_v32 = vpack.c.bf16 %v12808_v26, %v12806_v18  ;;  %v12890_v22 = vld [vmem:[#allocation2 + $0xb18] sm:$0xff]  ;;  %v12900_v26 = vld [vmem:[#allocation2 + $0xb28] sm:$0xff]  ;;  %v12914_v36 = vld [vmem:[#allocation2 + $0xad0] sm:$0xff] }
 0x4c7   :  { %10018 = vmatpush1.bf16.msra.mxu0 %v10017_v33  ;;  %v10025_v33 = vpack.c.bf16 %v3316_v58, %v12779_v52  ;;  %v12842_v52 = vld [vmem:[#allocation2 + $0x990] sm:$0xff]  ;;  %v12846_v58 = vld [vmem:[#allocation2 + $0xa28] sm:$0xff]  ;;  %v12916_v38 = vld [vmem:[#allocation2 + $0xb20] sm:$0xff] }
 0x4c8   :  { %10098 = vmatpush1.bf16.msra.mxu1 %v10097_v34  ;;  %10020 = vmatprep.subr.bf16.mxu0 %v10019_v35  ;;  %v12821_v34 = vld [vmem:[#allocation2 + $0x8f0] sm:$0xff]  ;;  %v12823_v35 = vld [vmem:[#allocation2 + $0x940] sm:$0xff] }
 0x4c9   :  { %10100 = vmatprep.subr.bf16.mxu1 %v10099_v44  ;;  %v12831_v44 = vld [vmem:[#allocation2 + $0x9e8] sm:$0xff]  ;;  %v10113_v23 = vpack.c.bf16 %v12823_v35, %v12821_v34  ;;  %v10039_v34 = vpack.c.bf16 %v12848_v16, %v12846_v58 }
 0x4ca   :  { %v10115_v18 = vpack.c.bf16 %v12831_v44, %v12829_v39 }
 0x4cb   :  { %10022 = vmatpush1.bf16.msra.mxu0 %v10021_v57  ;;  %v12844_v57 = vld [vmem:[#allocation2 + $0x9e0] sm:$0xff] }
 0x4cc   :  { %10102 = vmatpush1.bf16.msra.mxu1 %v10101_v4  ;;  %10024 = vmatprep.subr.bf16.mxu0 %v10023_v8  ;;  %v12860_v4 = vld [vmem:[#allocation2 + $0xa38] sm:$0xff]  ;;  %v12862_v8 = vld [vmem:[#allocation2 + $0xa88] sm:$0xff] }
 0x4cd   :  { %10104 = vmatprep.subr.bf16.mxu1 %v10103_v17  ;;  %v12878_v17 = vld [vmem:[#allocation2 + $0xa80] sm:$0xff] }
 0x4cf   :  { %10026 = vmatpush1.bf16.msra.mxu0 %v10025_v33 }
 0x4d0   :  { %10106 = vmatpush1.bf16.msra.mxu1 %v10105_v48  ;;  %10028 = vmatprep.subr.bf16.mxu0 %v10027_v49 }
 0x4d1   :  { %v2631_v29 = vpop.f32.mrb[10].mxu0  ;;  %10108 = vmatprep.subr.bf16.mxu1 %v10107_v2 }
 0x4d2   :  { %v11245_v39 = vadd.f32 %v2631_v29, %v2313_v47  ;;  %v2773_v44 = vpop.f32.mrb[10].mxu1  ;;  %v2633_v48 = vpop.f32.mrb[11].mxu0 }
 0x4d3   :  { %v11247_v16 = vadd.f32 %v2773_v44, %v2321_v63  ;;  %v11246_v58 = vadd.f32 %v2633_v48, %v2317_v37  ;;  %v2775_v2 = vpop.f32.mrb[11].mxu1  ;;  %10030 = vmatpush1.bf16.msra.mxu0 %v10029_v14 }
 0x4d4   :  { %v4421_v29 = vsel %vm4418_vm6, %v11245_v39, 0.0  ;;  %v4863_v49 = vsel %vm4860_vm7, %v11245_v39, 0.0  ;;  %v11248_v54 = vadd.f32 %v2775_v2, %v2325_v9  ;;  %10110 = vmatpush1.bf16.msra.mxu1 %v10109_v20  ;;  %10032 = vmatprep.subr.bf16.mxu0 %v10031_v32 }
 0x4d5   :  { %v4443_v37 = vsel %vm201_vm0, %v4421_v29, 0.0  ;;  %v4885_v14 = vsel %vm201_vm0, %v4863_v49, 0.0  ;;  %v4423_v44 = vsel %vm4418_vm6, %v11247_v16, 0.0  ;;  %v4865_v48 = vsel %vm4860_vm7, %v11247_v16, 0.0  ;;  %10112 = vmatprep.subr.bf16.mxu1 %v10111_v0 }
 0x4d6   :  { %v4444_v47 = vrot.slane %v4443_v37, 4  ;;  %v4886_v35 = vrot.slane %v4885_v14, 4  ;;  %v4457_v9 = vsel %vm201_vm0, %v4423_v44, 0.0  ;;  %v4899_v32 = vsel %vm201_vm0, %v4865_v48, 0.0 }
 0x4d7   :  { %v4458_v20 = vrot.slane %v4457_v9, 4  ;;  %v4900_v39 = vrot.slane %v4899_v32, 4  ;;  %v4422_v2 = vsel %vm4418_vm6, %v11246_v58, 0.0  ;;  %v4864_v49 = vsel %vm4860_vm7, %v11246_v58, 0.0  ;;  %10034 = vmatpush1.bf16.msra.mxu0 %v10033_v25 }
 0x4d8   :  { %v4445_v29 = vadd.f32 %v4444_v47, %v4443_v37  ;;  %v4887_v63 = vadd.f32 %v4886_v35, %v4885_v14  ;;  %v4450_v16 = vsel %vm201_vm0, %v4422_v2, 0.0  ;;  %v4892_v0 = vsel %vm201_vm0, %v4864_v49, 0.0  ;;  %10114 = vmatpush1.bf16.msra.mxu1 %v10113_v23  ;;  %10036 = vmatprep.subr.bf16.mxu0 %v10035_v24  ;;  %v3427_v23 = vld [vmem:[#allocation2 + $0xb68] sm:$0xff]  ;;  %v3437_v24 = vld [vmem:[#allocation2 + $0xbb8] sm:$0xff] }
 0x4d9   :  { %v4459_v44 = vadd.f32 %v4458_v20, %v4457_v9  ;;  %v4901_v50 = vadd.f32 %v4900_v39, %v4899_v32  ;;  %v4451_v48 = vrot.slane %v4450_v16, 4  ;;  %v4893_v33 = vrot.slane %v4892_v0, 4  ;;  %10116 = vmatprep.subr.bf16.mxu1 %v10115_v18 }
 0x4da   :  { %v4446_v40 = vrot.slane %v4445_v29, 2  ;;  %v4888_v5 = vrot.slane %v4887_v63, 2  ;;  %v4424_v7 = vsel %vm4418_vm6, %v11248_v54, 0.0  ;;  %v4866_v25 = vsel %vm4860_vm7, %v11248_v54, 0.0 }
 0x4db   :  { %v4460_v35 = vrot.slane %v4459_v44, 2  ;;  %v4902_v58 = vrot.slane %v4901_v50, 2  ;;  %v4452_v47 = vadd.f32 %v4451_v48, %v4450_v16  ;;  %v4894_v37 = vadd.f32 %v4893_v33, %v4892_v0  ;;  %10038 = vmatpush1.bf16.msra.mxu0 %v10037_v31  ;;  %v3429_v33 = vld [vmem:[#allocation2 + $0xb78] sm:$0xff]  ;;  %v3426_v16 = vld [vmem:[#allocation2 + $0xb60] sm:$0xff] }
 0x4dc   :  { %v4447_v14 = vadd.f32 %v4446_v40, %v4445_v29  ;;  %v4889_v9 = vadd.f32 %v4888_v5, %v4887_v63  ;;  %v4464_v32 = vsel %vm201_vm0, %v4424_v7, 0.0  ;;  %v4906_v18 = vsel %vm201_vm0, %v4866_v25, 0.0  ;;  %10040 = vmatprep.subr.bf16.mxu0 %v10039_v34  ;;  %v3439_v29 = vld [vmem:[#allocation2 + $0xbc8] sm:$0xff] }
 0x4dd   :  { %v14781_v20 = vpack.c.bf16 %v12844_v57, %v12842_v52  ;;  %v4461_v39 = vadd.f32 %v4460_v35, %v4459_v44  ;;  %v4903_v54 = vadd.f32 %v4902_v58, %v4901_v50  ;;  %v4453_v2 = vrot.slane %v4452_v47, 2  ;;  %v3436_v52 = vld [vmem:[#allocation2 + $0xbb0] sm:$0xff]  ;;  %v3438_v44 = vld [vmem:[#allocation2 + $0xbc0] sm:$0xff] }
 0x4de   :  { %v4895_v49 = vrot.slane %v4894_v37, 2  ;;  %v14782_v31 = vpack.c.bf16 %v12862_v8, %v12860_v4  ;;  %v4448_v40 = vrot.slane %v4447_v14, 1  ;;  %v4465_v5 = vrot.slane %v4464_v32, 4  ;;  %3865 = vmatmul.mubr.f32.vlgmr.msra.gmra.mrb[16].mxu0 %v11986_v19  ;;  %v3428_v8 = vld [vmem:[#allocation2 + $0xb70] sm:$0xff] }
 0x4df   :  { %10118 = vmatpush1.bf16.msra.mxu1 %v14781_v20  ;;  %v4907_v63 = vrot.slane %v4906_v18, 4  ;;  %v10047_v7 = vpack.c.bf16 %v3437_v24, %v3427_v23  ;;  %v4890_v57 = vrot.slane %v4889_v9, 1  ;;  %v4462_v34 = vrot.slane %v4461_v39, 1 }
 0x4e0   :  { %10120 = vmatprep.subr.bf16.mxu1 %v14782_v31  ;;  %v4904_v0 = vrot.slane %v4903_v54, 1  ;;  %v4454_v50 = vadd.f32 %v4453_v2, %v4452_v47  ;;  %v14783_v4 = vpack.c.bf16 %v12874_v15, %v12864_v53  ;;  %v4449_v48 = vadd.f32 %v4448_v40, %v4447_v14  ;;  %v3447_v2 = vld [vmem:[#allocation2 + $0xc08] sm:$0xff]  ;;  %v3457_v14 = vld [vmem:[#allocation2 + $0xc58] sm:$0xff] }
 0x4e1   :  { %v4896_v25 = vadd.f32 %v4895_v49, %v4894_v37  ;;  %v4466_v35 = vadd.f32 %v4465_v5, %v4464_v32  ;;  %v4908_v58 = vadd.f32 %v4907_v63, %v4906_v18  ;;  %v14784_v23 = vpack.c.bf16 %v12878_v17, %v12876_v10  ;;  %v3449_v31 = vld [vmem:[#allocation2 + $0xc18] sm:$0xff]  ;;  %v3459_v10 = vld [vmem:[#allocation2 + $0xc68] sm:$0xff] }
 0x4e2   :  { %4007 = vmatmul.mubr.f32.vlgmr.msra.gmra.mrb[16].mxu1 %v11986_v19  ;;  %10042 = vmatpush1.bf16.msra.mxu0 %v14783_v4  ;;  %v4463_v24 = vadd.f32 %v4462_v34, %v4461_v39  ;;  %v14785_v47 = vpack.c.bf16 %v12890_v22, %v12888_v21  ;;  %v14786_v20 = vpack.c.bf16 %v12900_v26, %v12892_v41  ;;  %v4455_v37 = vrot.slane %v4454_v50, 1  ;;  %v3446_v39 = vld [vmem:[#allocation2 + $0xc00] sm:$0xff]  ;;  %v3081_v34 = vld [vmem:[#allocation2 + $0x98] sm:$0xff] }
 0x4e3   :  { %10122 = vmatpush1.bf16.msra.mxu1 %v14784_v23  ;;  %v10127_v53 = vpack.c.bf16 %v3439_v29, %v3429_v33  ;;  %v10049_v15 = vpack.c.bf16 %v3436_v52, %v3426_v16  ;;  %v4467_v32 = vrot.slane %v4466_v35, 2  ;;  %v4909_v18 = vrot.slane %v4908_v58, 2  ;;  %v3456_v33 = vld [vmem:[#allocation2 + $0xc50] sm:$0xff]  ;;  %v3458_v52 = vld [vmem:[#allocation2 + $0xc60] sm:$0xff] }
 0x4e4   :  { %10044 = vmatprep.subr.bf16.mxu0 %v14785_v47  ;;  %10124 = vmatprep.subr.bf16.mxu1 %v14786_v20  ;;  %v10129_v49 = vpack.c.bf16 %v3438_v44, %v3428_v8  ;;  %v14787_v17 = vmov 0.0   ;;  %v12977_v21 = vmul.f32 %v12834_v45, %v4449_v48  ;;  %v4891_v22 = vadd.f32 %v4890_v57, %v4889_v9  ;;  %v3071_v57 = vld [vmem:[#allocation2 + $0x48] sm:$0xff] }
 0x4e5   :  { %3935 = vmatprep.mubr.f32.mxu0 %v14787_v17  ;;  %4077 = vmatprep.mubr.f32.mxu1 %v14787_v17  ;;  %v4905_v41 = vadd.f32 %v4904_v0, %v4903_v54  ;;  %v14788_v26 = vpack.c.bf16 %v12904_v28, %v12902_v27  ;;  %v4456_v40 = vadd.f32 %v4455_v37, %v4454_v50  ;;  %v3448_v54 = vld [vmem:[#allocation2 + $0xc10] sm:$0xff]  ;;  %v4897_v27 = vrot.slane %v4896_v25, 1 }
 0x4e6   :  { %v12983_v5 = vmul.f32 %v12854_v3, %v4463_v24  ;;  %v4468_v63 = vadd.f32 %v4467_v32, %v4466_v35  ;;  %v4910_v29 = vadd.f32 %v4909_v18, %v4908_v58  ;;  %v14791_v16 = vpack.c.bf16 %v12916_v38, %v12914_v36  ;;  %v4242_v36 = vld [vmem:[%s14790_s21 + $0x80] sm:$0xff]  ;;  %v4243_v38 = vld [vmem:[%s14790_s21 + $0x88] sm:$0xff]  ;;  %v3080_v24 = vld [vmem:[#allocation2 + $0x90] sm:$0xff] }
 0x4e7   :  { %10046 = vmatpush1.bf16.msra.mxu0 %v14788_v26  ;;  %v10051_v9 = vpack.c.bf16 %v3457_v14, %v3447_v2  ;;  %v10131_v28 = vpack.c.bf16 %v3459_v10, %v3449_v31  ;;  %v12989_v0 = vmul.f32 %v12851_v55, %v4456_v40  ;;  %v14792_v50 = vrot.slane %v12745_v30, %v12782_v56  ;;  %v3101_v2 = vld [vmem:[#allocation2 + $0x138] sm:$0xff]  ;;  %v4244_v18 = vld [vmem:[%s14790_s21 + $0x90] sm:$0xff]  ;;  %v3090_v10 = vld [vmem:[#allocation2 + $0xe0] sm:$0xff] }
 0x4e8   :  { %14789 = vst [vmem:[#allocation42_spill] sm:$0xff] %v12983_v5  ;;  %10126 = vmatpush1.bf16.msra.mxu1 %v14791_v16  ;;  %10048 = vmatprep.subr.bf16.mxu0 %v10047_v7  ;;  %v10053_v8 = vpack.c.bf16 %v3456_v33, %v3446_v39  ;;  %v4469_v7 = vrot.slane %v4468_v63, 1  ;;  %v4911_v44 = vrot.slane %v4910_v29, 1  ;;  %v10133_v48 = vpack.c.bf16 %v3458_v52, %v3448_v54  ;;  %v4229_v26 = vld [vmem:[%s14790_s21 + $0x18] sm:$0xff]  ;;  %v3111_v39 = vld [vmem:[#allocation2 + $0x188] sm:$0xff]  ;;  %v3110_v52 = vld [vmem:[#allocation2 + $0x180] sm:$0xff] }
 0x4e9   :  { %10128 = vmatprep.subr.bf16.mxu1 %v10127_v53  ;;  %v11238_v4 = vadd.f32 %v12669_v43, %v14792_v50  ;;  %v4898_v35 = vadd.f32 %v4897_v27, %v4896_v25  ;;  %v12998_v58 = vmul.f32 %v12854_v3, %v4905_v41  ;;  %v13001_v23 = vmul.f32 %v12834_v45, %v4891_v22  ;;  %v3070_v43 = vld [vmem:[#allocation2 + $0x40] sm:$0xff]  ;;  %v4227_v25 = vld [vmem:[%s14790_s21 + $0x8] sm:$0xff]  ;;  %v4228_v22 = vld [vmem:[%s14790_s21 + $0x10] sm:$0xff] }
 0x4ea   :  { %v10135_v30 = vpack.c.bf16 %v3081_v34, %v3071_v57  ;;  %v4470_v47 = vadd.f32 %v4469_v7, %v4468_v63  ;;  %v4912_v20 = vadd.f32 %v4911_v44, %v4910_v29  ;;  %v13003_v53 = vpack.c.bf16 %v4243_v38, %v4242_v36  ;;  %v3091_v45 = vld [vmem:[#allocation2 + $0xe8] sm:$0xff]  ;;  %v3121_v33 = vld [vmem:[#allocation2 + $0x1d8] sm:$0xff]  ;;  %v4246_v63 = vld [vmem:[%s14790_s21 + $0xa0] sm:$0xff] }
 0x4eb   :  { %10050 = vmatpush1.bf16.msra.mxu0 %v10049_v15  ;;  %14793 = vst [vmem:[#allocation43_spill] sm:$0xff] %v12998_v58  ;;  %14794 = vst [vmem:[#allocation44_spill] sm:$0xff] %v13001_v23  ;;  %v4226_v15 = vld [vmem:[%s14790_s21] sm:$0xff]  ;;  %v13008_v3 = vmul.f32 %v12851_v55, %v4898_v35  ;;  %v10137_v32 = vpack.c.bf16 %v3080_v24, %v3070_v43  ;;  %v3100_v55 = vld [vmem:[#allocation2 + $0x130] sm:$0xff]  ;;  %v10139_v41 = vpack.c.bf16 %v3101_v2, %v3091_v45 }
 0x4ec   :  { %10130 = vmatpush1.bf16.msra.mxu1 %v10129_v49  ;;  %10052 = vmatprep.subr.bf16.mxu0 %v10051_v9  ;;  %v13010_v14 = vmul.f32 %v11238_v4, %v4470_v47  ;;  %v13012_v37 = vmul.f32 %v11238_v4, %v4912_v20  ;;  %v4245_v49 = vld [vmem:[%s14790_s21 + $0x98] sm:$0xff]  ;;  %v13016_v31 = vpack.c.bf16 %v4227_v25, %v4226_v15  ;;  %v4247_v29 = vld [vmem:[%s14790_s21 + $0xa8] sm:$0xff]  ;;  %v3120_v27 = vld [vmem:[#allocation2 + $0x1d0] sm:$0xff] }
 0x4ed   :  { %10132 = vmatprep.subr.bf16.mxu1 %v10131_v28  ;;  %14795 = vst [vmem:[#allocation45_spill] sm:$0xff] %v13008_v3  ;;  %v13023_v40 = vpack.c.bf16 %v4245_v49, %v4244_v18  ;;  %v10141_v16 = vpack.c.bf16 %v3100_v55, %v3090_v10  ;;  %v13031_v9 = vpack.c.bf16 %v4229_v26, %v4228_v22  ;;  %v4230_v28 = vld [vmem:[%s14790_s21 + $0x20] sm:$0xff]  ;;  %v4231_v34 = vld [vmem:[%s14790_s21 + $0x28] sm:$0xff]  ;;  %v3141_v4 = vld [vmem:[#allocation2 + $0x278] sm:$0xff] }
 0x4ee   :  { %14796 = vst [vmem:[#allocation46_spill] sm:$0xff] %v13012_v37  ;;  %v10143_v54 = vpack.c.bf16 %v3121_v33, %v3111_v39  ;;  %v13035_v57 = vpack.c.bf16 %v4247_v29, %v4246_v63  ;;  %v3131_v50 = vld [vmem:[#allocation2 + $0x228] sm:$0xff]  ;;  %v4249_v36 = vld [vmem:[%s14790_s21 + $0xb8] sm:$0xff]  ;;  %v10145_v38 = vpack.c.bf16 %v3120_v27, %v3110_v52  ;;  %v3130_v44 = vld [vmem:[#allocation2 + $0x220] sm:$0xff] }
 0x4ef   :  { %10054 = vmatpush1.bf16.msra.mxu0 %v10053_v8  ;;  %14797 = vst [vmem:[#allocation47_spill] sm:$0xff] %v13023_v40  ;;  %14798 = vst [vmem:[#allocation48_spill] sm:$0xff] %v13031_v9  ;;  %v4248_v8 = vld [vmem:[%s14790_s21 + $0xb0] sm:$0xff]  ;;  %v10147_v7 = vpack.c.bf16 %v3141_v4, %v3131_v50  ;;  %v4233_v43 = vld [vmem:[%s14790_s21 + $0x38] sm:$0xff] }
 0x4f0   :  { %10134 = vmatpush1.bf16.msra.mxu1 %v10133_v48  ;;  %10136 = vmatprep.subr.bf16.mxu0 %v10135_v30  ;;  %14799 = vst [vmem:[#allocation49_spill] sm:$0xff] %v13035_v57  ;;  %v3140_v48 = vld [vmem:[#allocation2 + $0x270] sm:$0xff]  ;;  %v13046_v30 = vpack.c.bf16 %v4249_v36, %v4248_v8  ;;  %v3151_v24 = vld [vmem:[#allocation2 + $0x2c8] sm:$0xff]  ;;  %v3161_v47 = vld [vmem:[#allocation2 + $0x318] sm:$0xff] }
 0x4f1   :  { %10216 = vmatprep.subr.bf16.mxu1 %v13003_v53  ;;  %v4232_v35 = vld [vmem:[%s14790_s21 + $0x30] sm:$0xff]  ;;  %v4250_v20 = vld [vmem:[%s14790_s21 + $0xc0] sm:$0xff]  ;;  %v4251_v15 = vld [vmem:[%s14790_s21 + $0xc8] sm:$0xff]  ;;  %v10149_v25 = vpack.c.bf16 %v3140_v48, %v3130_v44  ;;  %v10151_v2 = vpack.c.bf16 %v3161_v47, %v3151_v24 }
 0x4f2   :  { %8281 = vmatmul.mubr.msk.f32.vlgmr.msra.gmra.mrb[16].mxu0 %vm1184_vm5, %v12029_v12  ;;  %14801 = vst [vmem:[#allocation51_spill] sm:$0xff] %v13046_v30  ;;  %v13052_v45 = vpack.c.bf16 %v4233_v43, %v4232_v35  ;;  %v3160_v18 = vld [vmem:[#allocation2 + $0x310] sm:$0xff]  ;;  %v4234_v49 = vld [vmem:[%s14790_s21 + $0x40] sm:$0xff]  ;;  %v13056_v10 = vpack.c.bf16 %v4251_v15, %v4250_v20  ;;  %v4235_v55 = vld [vmem:[%s14790_s21 + $0x48] sm:$0xff] }
 0x4f3   :  { %8282 = vmatmul.mubr.msk.f32.vlgmr.msra.gmra.mrb[16].mxu1 %vm1184_vm5, %v12029_v12  ;;  %10138 = vmatpush1.bf16.msra.mxu0 %v10137_v32  ;;  %v3150_v32 = vld [vmem:[#allocation2 + $0x2c0] sm:$0xff]  ;;  %v3171_v22 = vld [vmem:[#allocation2 + $0x368] sm:$0xff]  ;;  %v4252_v26 = vld [vmem:[%s14790_s21 + $0xd0] sm:$0xff]  ;;  %v13062_v63 = vpack.c.bf16 %v4235_v55, %v4234_v49 }
 0x4f4   :  { %4148 = vmatprep.mubr.f32.mxu0 %v11982_v13  ;;  %10218 = vmatpush3.bf16.msra.mxu1 %v13016_v31  ;;  %14802 = vst [vmem:[#allocation52_spill] sm:$0xff] %v13052_v45  ;;  %14803 = vst [vmem:[#allocation53_spill] sm:$0xff] %v13056_v10  ;;  %v4253_v39 = vld [vmem:[%s14790_s21 + $0xd8] sm:$0xff]  ;;  %v10153_v33 = vpack.c.bf16 %v3160_v18, %v3150_v32  ;;  %v4236_v52 = vld [vmem:[%s14790_s21 + $0x50] sm:$0xff] }
 0x4f5   :  { %4573 = vmatprep.mubr.f32.mxu1 %v12763_v61  ;;  %10140 = vmatprep.subr.bf16.mxu0 %v10139_v41  ;;  %v13042_v61 = vpack.c.bf16 %v4231_v34, %v4230_v28  ;;  %v3181_v41 = vld [vmem:[#allocation2 + $0x3b8] sm:$0xff]  ;;  %14804 = vst [vmem:[#allocation54_spill] sm:$0xff] %v13062_v63  ;;  %v13066_v27 = vpack.c.bf16 %v4253_v39, %v4252_v26  ;;  %v3191_v34 = vld [vmem:[#allocation2 + $0x408] sm:$0xff]  ;;  %v4254_v4 = vld [vmem:[%s14790_s21 + $0xe0] sm:$0xff] }
 0x4f6   :  { %10220 = vmatprep.subr.bf16.mxu1 %v13023_v40  ;;  %v10155_v29 = vpack.c.bf16 %v3181_v41, %v3171_v22  ;;  %v4237_v28 = vld [vmem:[%s14790_s21 + $0x58] sm:$0xff]  ;;  %v4255_v8 = vld [vmem:[%s14790_s21 + $0xe8] sm:$0xff]  ;;  %v3190_v44 = vld [vmem:[#allocation2 + $0x400] sm:$0xff] }
 0x4f7   :  { %10142 = vmatpush1.bf16.msra.mxu0 %v10141_v16  ;;  %14800 = vst [vmem:[#allocation50_spill] sm:$0xff] %v13042_v61  ;;  %v3170_v16 = vld [vmem:[#allocation2 + $0x360] sm:$0xff]  ;;  %14805 = vst [vmem:[#allocation55_spill] sm:$0xff] %v13066_v27  ;;  %v3201_v50 = vld [vmem:[#allocation2 + $0x458] sm:$0xff]  ;;  %v13076_v43 = vpack.c.bf16 %v4255_v8, %v4254_v4 }
 0x4f8   :  { %10222 = vmatpush3.bf16.msra.mxu1 %v13031_v9  ;;  %10144 = vmatprep.subr.bf16.mxu0 %v10143_v54  ;;  %v3180_v54 = vld [vmem:[#allocation2 + $0x3b0] sm:$0xff]  ;;  %v4238_v35 = vld [vmem:[%s14790_s21 + $0x60] sm:$0xff]  ;;  %v4239_v24 = vld [vmem:[%s14790_s21 + $0x68] sm:$0xff] }
 0x4f9   :  { %10224 = vmatprep.subr.bf16.mxu1 %v13035_v57  ;;  %v10157_v36 = vpack.c.bf16 %v3180_v54, %v3170_v16  ;;  %v3200_v48 = vld [vmem:[#allocation2 + $0x450] sm:$0xff]  ;;  %14807 = vst [vmem:[#allocation57_spill] sm:$0xff] %v13076_v43  ;;  %v3211_v47 = vld [vmem:[#allocation2 + $0x4a8] sm:$0xff]  ;;  %v3221_v20 = vld [vmem:[#allocation2 + $0x4f8] sm:$0xff]  ;;  %v13082_v32 = vpack.c.bf16 %v4239_v24, %v4238_v35 }
 0x4fa   :  { %v4256_v15 = vld [vmem:[%s14790_s21 + $0xf0] sm:$0xff]  ;;  %v10163_v18 = vpack.c.bf16 %v3221_v20, %v3211_v47  ;;  %v3210_v49 = vld [vmem:[#allocation2 + $0x4a0] sm:$0xff]  ;;  %v4241_v26 = vld [vmem:[%s14790_s21 + $0x78] sm:$0xff] }
 0x4fb   :  { %10146 = vmatpush1.bf16.msra.mxu0 %v10145_v38  ;;  %v13072_v38 = vpack.c.bf16 %v4237_v28, %v4236_v52  ;;  %14808 = vst [vmem:[#allocation58_spill] sm:$0xff] %v13082_v32  ;;  %v3220_v55 = vld [vmem:[#allocation2 + $0x4f0] sm:$0xff]  ;;  %v3231_v39 = vld [vmem:[#allocation2 + $0x548] sm:$0xff]  ;;  %v4258_v8 = vld [vmem:[%s14790_s21 + $0x100] sm:$0xff] }
 0x4fc   :  { %10226 = vmatpush3.bf16.msra.mxu1 %v13042_v61  ;;  %10148 = vmatprep.subr.bf16.mxu0 %v10147_v7  ;;  %v10159_v7 = vpack.c.bf16 %v3201_v50, %v3191_v34  ;;  %v4240_v22 = vld [vmem:[%s14790_s21 + $0x70] sm:$0xff]  ;;  %v4275_v16 = vld [vmem:[%s14790_s21 + $0x188] sm:$0xff]  ;;  %v10165_v54 = vpack.c.bf16 %v3220_v55, %v3210_v49  ;;  %v3230_v34 = vld [vmem:[#allocation2 + $0x540] sm:$0xff] }
 0x4fd   :  { %10228 = vmatprep.subr.bf16.mxu1 %v13046_v30  ;;  %14806 = vst [vmem:[#allocation56_spill] sm:$0xff] %v13072_v38  ;;  %v13092_v52 = vpack.c.bf16 %v4241_v26, %v4240_v22  ;;  %v3240_v50 = vld [vmem:[#allocation2 + $0x590] sm:$0xff]  ;;  %v4277_v35 = vld [vmem:[%s14790_s21 + $0x198] sm:$0xff]  ;;  %v3250_v20 = vld [vmem:[#allocation2 + $0x5e0] sm:$0xff] }
 0x4fe   :  { %v10169_v24 = vpack.c.bf16 %v3240_v50, %v3230_v34  ;;  %v4261_v49 = vld [vmem:[%s14790_s21 + $0x118] sm:$0xff]  ;;  %v3271_v55 = vld [vmem:[#allocation2 + $0x688] sm:$0xff]  ;;  %v4278_v26 = vld [vmem:[%s14790_s21 + $0x1a0] sm:$0xff] }
 0x4ff   :  { %10150 = vmatpush1.bf16.msra.mxu0 %v10149_v25  ;;  %v4257_v25 = vld [vmem:[%s14790_s21 + $0xf8] sm:$0xff]  ;;  %14810 = vst [vmem:[#allocation60_spill] sm:$0xff] %v13092_v52  ;;  %v4262_v34 = vld [vmem:[%s14790_s21 + $0x120] sm:$0xff]  ;;  %v13154_v56 = vld [vmem:[%s14774_s13 + $0x8] sm:$0x3] }
 0x500   :  { %10230 = vmatpush3.bf16.msra.mxu1 %v13052_v45  ;;  %10152 = vmatprep.subr.bf16.mxu0 %v10151_v2  ;;  %v10161_v2 = vpack.c.bf16 %v3200_v48, %v3190_v44  ;;  %v13086_v41 = vpack.c.bf16 %v4257_v25, %v4256_v15  ;;  %v3261_v44 = vld [vmem:[#allocation2 + $0x638] sm:$0xff]  ;;  %v4276_v48 = vld [vmem:[%s14790_s21 + $0x190] sm:$0xff]  ;;  %v13156_v23 = vld [vmem:[#allocation2 + $0x868] sm:$0xff] }
 0x501   :  { %10232 = vmatprep.subr.bf16.mxu1 %v13056_v10  ;;  %v3260_v15 = vld [vmem:[#allocation2 + $0x630] sm:$0xff]  ;;  %v3281_v22 = vld [vmem:[#allocation2 + $0x6d8] sm:$0xff]  ;;  %v13191_v37 = vld [vmem:[#allocation2 + $0x9a8] sm:$0xff] }
 0x502   :  { %14809 = vst [vmem:[#allocation59_spill] sm:$0xff] %v13086_v41  ;;  %v4260_v25 = vld [vmem:[%s14790_s21 + $0x110] sm:$0xff]  ;;  %v13158_v58 = vld [vmem:[#allocation2 + $0x8b8] sm:$0xff]  ;;  %v13213_v10 = vld [vmem:[#allocation2 + $0xa48] sm:$0xff] }
 0x503   :  { %10154 = vmatpush1.bf16.msra.mxu0 %v10153_v33  ;;  %v3241_v33 = vld [vmem:[#allocation2 + $0x598] sm:$0xff]  ;;  %v4268_v3 = vld [vmem:[%s14790_s21 + $0x150] sm:$0xff]  ;;  %v4338_v30 = vld [vmem:[%s14790_s21 + $0x380] sm:$0xff] }
 0x504   :  { %10234 = vmatpush3.bf16.msra.mxu1 %v13062_v63  ;;  %10156 = vmatprep.subr.bf16.mxu0 %v10155_v29  ;;  %v4274_v29 = vld [vmem:[%s14790_s21 + $0x180] sm:$0xff]  ;;  %v10167_v28 = vpack.c.bf16 %v3241_v33, %v3231_v39  ;;  %v4279_v39 = vld [vmem:[%s14790_s21 + $0x1a8] sm:$0xff]  ;;  %v10173_v33 = vpack.c.bf16 %v3260_v15, %v3250_v20  ;;  %v3300_v15 = vld [vmem:[#allocation2 + $0x770] sm:$0xff] }
 0x505   :  { %10236 = vmatprep.subr.bf16.mxu1 %v13066_v27  ;;  %v13095_v4 = vpack.c.bf16 %v4275_v16, %v4274_v29  ;;  %v13114_v29 = vpack.c.bf16 %v4261_v49, %v4260_v25  ;;  %v10175_v16 = vpack.c.bf16 %v3281_v22, %v3271_v55  ;;  %v13118_v50 = vpack.c.bf16 %v4279_v39, %v4278_v26  ;;  %v3290_v20 = vld [vmem:[#allocation2 + $0x720] sm:$0xff]  ;;  %v4264_v49 = vld [vmem:[%s14790_s21 + $0x130] sm:$0xff]  ;;  %v4265_v55 = vld [vmem:[%s14790_s21 + $0x138] sm:$0xff] }
 0x506   :  { %v3311_v22 = vld [vmem:[#allocation2 + $0x7c8] sm:$0xff]  ;;  %v3321_v39 = vld [vmem:[#allocation2 + $0x818] sm:$0xff]  ;;  %v4272_v63 = vld [vmem:[%s14790_s21 + $0x170] sm:$0xff] }
 0x507   :  { %10158 = vmatpush1.bf16.msra.mxu0 %v10157_v36  ;;  %14811 = vst [vmem:[#allocation61_spill] sm:$0xff] %v13095_v4  ;;  %v4259_v36 = vld [vmem:[%s14790_s21 + $0x108] sm:$0xff]  ;;  %14814 = vst [vmem:[#allocation64_spill] sm:$0xff] %v13114_v29  ;;  %v4273_v5 = vld [vmem:[%s14790_s21 + $0x178] sm:$0xff] }
 0x508   :  { %10238 = vmatpush3.bf16.msra.mxu1 %v13072_v38  ;;  %10160 = vmatprep.subr.bf16.mxu0 %v10159_v7  ;;  %v3251_v7 = vld [vmem:[#allocation2 + $0x5e8] sm:$0xff]  ;;  %v13102_v47 = vpack.c.bf16 %v4259_v36, %v4258_v8  ;;  %14815 = vst [vmem:[#allocation65_spill] sm:$0xff] %v13118_v50  ;;  %v3301_v36 = vld [vmem:[#allocation2 + $0x778] sm:$0xff]  ;;  %v13199_v38 = vld [vmem:[#allocation2 + $0x9f0] sm:$0xff] }
 0x509   :  { %10240 = vmatprep.subr.bf16.mxu1 %v13076_v43  ;;  %v3291_v8 = vld [vmem:[#allocation2 + $0x728] sm:$0xff]  ;;  %v13197_v43 = vld [vmem:[#allocation2 + $0x9a0] sm:$0xff]  ;;  %v13215_v45 = vld [vmem:[#allocation2 + $0xa98] sm:$0xff] }
 0x50a   :  { %14812 = vst [vmem:[#allocation62_spill] sm:$0xff] %v13102_v47  ;;  %v4340_v61 = vld [vmem:[%s14790_s21 + $0x390] sm:$0xff]  ;;  %v4341_v57 = vld [vmem:[%s14790_s21 + $0x398] sm:$0xff]  ;;  %v13246_v9 = vld [vmem:[#allocation2 + $0xae0] sm:$0xff] }
 0x50b   :  { %10162 = vmatpush1.bf16.msra.mxu0 %v10161_v2  ;;  %v10171_v2 = vpack.c.bf16 %v3261_v44, %v3251_v7  ;;  %v13122_v7 = vsub.s32 6, %v11754_v59  ;;  %v4281_v44 = vld [vmem:[%s14790_s21 + $0x1b8] sm:$0xff] }
 0x50c   :  { %10242 = vmatpush3.bf16.msra.mxu1 %v13082_v32  ;;  %10164 = vmatprep.subr.bf16.mxu0 %v10163_v18  ;;  %v13106_v18 = vpack.c.bf16 %v4277_v35, %v4276_v48  ;;  %v13127_v48 = vsub.s32 7, %v11754_v59  ;;  %v13130_v35 = vld [vmem:[%s14775_s17 + $0x8] sm:$0x3]  ;;  %v4289_v32 = vld [vmem:[%s14790_s21 + $0x1f8] sm:$0xff] }
 0x50d   :  { %10244 = vmatprep.subr.bf16.mxu1 %v13086_v41  ;;  %14816 = vst [vmem:[#allocation66_spill] sm:$0xff] %v13122_v7  ;;  %v4288_v41 = vld [vmem:[%s14790_s21 + $0x1f0] sm:$0xff]  ;;  %v4381_v59 = vld [vmem:[%s14790_s21 + $0x4d8] sm:$0xff] }
 0x50e   :  { %14813 = vst [vmem:[#allocation63_spill] sm:$0xff] %v13106_v18  ;;  %14817 = vst [vmem:[#allocation67_spill] sm:$0xff] %v13127_v48 }
 0x50f   :  { %10166 = vmatpush1.bf16.msra.mxu0 %v10165_v54  ;;  %v3270_v54 = vld [vmem:[#allocation2 + $0x680] sm:$0xff] }
 0x510   :  { %10246 = vmatpush3.bf16.msra.mxu1 %v13092_v52  ;;  %10168 = vmatprep.subr.bf16.mxu0 %v10167_v28  ;;  %v3280_v28 = vld [vmem:[#allocation2 + $0x6d0] sm:$0xff]  ;;  %v13193_v52 = vld [vmem:[#allocation2 + $0x9f8] sm:$0xff] }
 0x511   :  { %10248 = vmatprep.subr.bf16.mxu1 %v13095_v4 }
 0x513   :  { %4574 = vmatmul.mubr.f32.vlgmr.msra.gmra.mrb[18].mxu1 %v12759_v6  ;;  %10170 = vmatpush1.bf16.msra.mxu0 %v10169_v24  ;;  %v4263_v6 = vld [vmem:[%s14790_s21 + $0x128] sm:$0xff]  ;;  %v10177_v24 = vpack.c.bf16 %v3280_v28, %v3270_v54  ;;  %v11358_v28 = vld [vmem:[%s14775_s17] sm:$0xff] }
 0x514   :  { %10250 = vmatpush3.bf16.msra.mxu1 %v13102_v47  ;;  %4643 = vmatprep.mubr.f32.mxu1 %v12989_v0  ;;  %v4280_v0 = vld [vmem:[%s14790_s21 + $0x1b0] sm:$0xff]  ;;  %v13133_v25 = vpack.c.bf16 %v4263_v6, %v4262_v34  ;;  %v4283_v54 = vld [vmem:[%s14790_s21 + $0x1c8] sm:$0xff]  ;;  %v1161_v13 = vrot.slane %v11358_v28, %v13122_v7  ;;  %v4266_v6 = vld [vmem:[%s14790_s21 + $0x140] sm:$0xff] }
 0x515   :  { %10172 = vmatprep.subr.bf16.mxu0 %v10171_v2  ;;  %10252 = vmatprep.subr.bf16.mxu1 %v13106_v18  ;;  %v10179_v2 = vpack.c.bf16 %v3301_v36, %v3291_v8  ;;  %v13138_v26 = vpack.c.bf16 %v4281_v44, %v4280_v0  ;;  %v13146_v34 = vld [vmem:[#allocation2 + $0x810] sm:$0xff]  ;;  %v4267_v8 = vld [vmem:[%s14790_s21 + $0x148] sm:$0xff]  ;;  %v1165_v36 = vrot.slane %v11358_v28, %v13127_v48  ;;  %v4285_v18 = vld [vmem:[%s14790_s21 + $0x1d8] sm:$0xff] }
 0x516   :  { %14818 = vst [vmem:[#allocation68_spill] sm:$0xff] %v13133_v25  ;;  %v1169_v0 = vrot.slane %v13130_v35, %v11757_v60  ;;  %v10181_v44 = vpack.c.bf16 %v3300_v15, %v3290_v20  ;;  %v10183_v28 = vpack.c.bf16 %v3321_v39, %v3311_v22  ;;  %v13167_v20 = vld [vmem:[#allocation2 + $0x8b0] sm:$0xff]  ;;  %v4287_v22 = vld [vmem:[%s14790_s21 + $0x1e8] sm:$0xff]  ;;  %v13180_v39 = vld [vmem:[#allocation2 + $0x900] sm:$0xff]  ;;  %v13185_v4 = vadd.f32 %v12667_v42, %v1161_v13 }
 0x517   :  { %10174 = vmatpush1.bf16.msra.mxu0 %v10173_v33  ;;  %14819 = vst [vmem:[#allocation69_spill] sm:$0xff] %v13138_v26  ;;  %v4282_v33 = vld [vmem:[%s14790_s21 + $0x1c0] sm:$0xff]  ;;  %v13182_v47 = vld [vmem:[#allocation2 + $0x950] sm:$0xff]  ;;  %v13202_v13 = vadd.f32 %v12673_v46, %v1165_v36  ;;  %v13209_v27 = vpack.c.bf16 %v4267_v8, %v4266_v6  ;;  %v4339_v46 = vld [vmem:[%s14790_s21 + $0x388] sm:$0xff]  ;;  %v10187_v6 = vpack.c.bf16 %v13158_v58, %v13156_v23 }
 0x518   :  { %10254 = vmatpush3.bf16.msra.mxu1 %v13114_v29  ;;  %10176 = vmatprep.subr.bf16.mxu0 %v10175_v16  ;;  %v13144_v16 = vld [vmem:[#allocation2 + $0x7c0] sm:$0xff]  ;;  %v4284_v29 = vld [vmem:[%s14790_s21 + $0x1d0] sm:$0xff]  ;;  %v13170_v15 = vpack.c.bf16 %v4283_v54, %v4282_v33  ;;  %v13205_v42 = vadd.f32 %v12728_v51, %v1169_v0 }
 0x519   :  { %10256 = vmatprep.subr.bf16.mxu1 %v13118_v50  ;;  %v13161_v50 = vpack.c.bf16 %v4265_v55, %v4264_v49  ;;  %v13176_v49 = vld [vmem:[#allocation2 + $0x958] sm:$0xff]  ;;  %v4286_v55 = vld [vmem:[%s14790_s21 + $0x1e0] sm:$0xff]  ;;  %v10185_v33 = vpack.c.bf16 %v13146_v34, %v13144_v16  ;;  %v2337_v34 = vrot.slane %v13154_v56, %v11757_v60  ;;  %v13228_v36 = vld [vmem:[#allocation2 + $0xa90] sm:$0xff]  ;;  %v2341_v60 = vrot.slane %v13154_v56, %v11761_v62 }
 0x51a   :  { %14821 = vst [vmem:[#allocation71_spill] sm:$0xff] %v13170_v15  ;;  %v4270_v54 = vld [vmem:[%s14790_s21 + $0x160] sm:$0xff]  ;;  %v13240_v58 = vpack.c.bf16 %v4285_v18, %v4284_v29  ;;  %v13252_v11 = vpack.c.bf16 %v4287_v22, %v4286_v55  ;;  %v10193_v56 = vpack.c.bf16 %v13182_v47, %v13180_v39  ;;  %v13256_v18 = vld [vmem:[#allocation2 + $0xb30] sm:$0xff]  ;;  %v13270_v55 = vld [vmem:[#allocation2 + $0xbd8] sm:$0xff] }
 0x51b   :  { %10178 = vmatpush1.bf16.msra.mxu0 %v10177_v24  ;;  %14820 = vst [vmem:[#allocation70_spill] sm:$0xff] %v13161_v50  ;;  %v13165_v24 = vld [vmem:[#allocation2 + $0x860] sm:$0xff]  ;;  %v4324_v29 = vld [vmem:[%s14790_s21 + $0x310] sm:$0xff] }
 0x51c   :  { %10258 = vmatpush3.bf16.msra.mxu1 %v13133_v25  ;;  %10180 = vmatprep.subr.bf16.mxu0 %v10179_v2  ;;  %v4269_v25 = vld [vmem:[%s14790_s21 + $0x158] sm:$0xff]  ;;  %v13174_v2 = vld [vmem:[#allocation2 + $0x908] sm:$0xff]  ;;  %v11359_v51 = vld [vmem:[%s14774_s13] sm:$0xff]  ;;  %14822 = vst [vmem:[#allocation72_spill] sm:$0xff] %v13240_v58  ;;  %v10189_v23 = vpack.c.bf16 %v13167_v20, %v13165_v24 }
 0x51d   :  { %10260 = vmatprep.subr.bf16.mxu1 %v13138_v26  ;;  %v4271_v26 = vld [vmem:[%s14790_s21 + $0x168] sm:$0xff]  ;;  %v2329_v16 = vrot.slane %v11359_v51, %v13122_v7  ;;  %v13226_v8 = vld [vmem:[#allocation2 + $0xa40] sm:$0xff]  ;;  %v2333_v7 = vrot.slane %v11359_v51, %v13127_v48  ;;  %v13248_v40 = vpack.c.bf16 %v4269_v25, %v4268_v3  ;;  %v4325_v24 = vld [vmem:[%s14790_s21 + $0x318] sm:$0xff]  ;;  %v10195_v3 = vpack.c.bf16 %v13193_v52, %v13191_v37 }
 0x51e   :  { %v4322_v0 = vld [vmem:[%s14790_s21 + $0x300] sm:$0xff]  ;;  %v13260_v20 = vpack.c.bf16 %v4271_v26, %v4270_v54  ;;  %v13264_v25 = vpack.c.bf16 %v4289_v32, %v4288_v41  ;;  %v13274_v26 = vpack.c.bf16 %v4273_v5, %v4272_v63  ;;  %v13278_v32 = vpack.c.bf16 %v4339_v46, %v4338_v30  ;;  %v4343_v41 = vld [vmem:[%s14790_s21 + $0x3a8] sm:$0xff]  ;;  %v13283_v22 = vld [vmem:[#allocation2 + $0xbd0] sm:$0xff] }
 0x51f   :  { %10182 = vmatpush1.bf16.msra.mxu0 %v10181_v44  ;;  %v4323_v44 = vld [vmem:[%s14790_s21 + $0x308] sm:$0xff]  ;;  %v4342_v47 = vld [vmem:[%s14790_s21 + $0x3a0] sm:$0xff]  ;;  %v13292_v63 = vpack.c.bf16 %v4341_v57, %v4340_v61  ;;  %v13298_v48 = vpack.c.bf16 %v4325_v24, %v4324_v29 }
 0x520   :  { %10262 = vmatpush3.bf16.msra.mxu1 %v13161_v50  ;;  %10184 = vmatprep.subr.bf16.mxu0 %v10183_v28  ;;  %v13232_v50 = vld [vmem:[#allocation2 + $0xae8] sm:$0xff]  ;;  %v13234_v28 = vld [vmem:[#allocation2 + $0xb38] sm:$0xff]  ;;  %v13281_v52 = vld [vmem:[#allocation2 + $0xb80] sm:$0xff]  ;;  %v13288_v54 = vpack.c.bf16 %v4323_v44, %v4322_v0  ;;  %v13302_v5 = vpack.c.bf16 %v4343_v41, %v4342_v47 }
 0x521   :  { %10264 = vmatprep.subr.bf16.mxu1 %v13170_v15  ;;  %v10191_v15 = vpack.c.bf16 %v13176_v49, %v13174_v2  ;;  %v13268_v49 = vld [vmem:[#allocation2 + $0xb88] sm:$0xff]  ;;  %v2915_v39 = vpop.f32.mrb[12].mxu0  ;;  %v4326_v30 = vld [vmem:[%s14790_s21 + $0x320] sm:$0xff] }
 0x522   :  { %v4327_v46 = vld [vmem:[%s14790_s21 + $0x328] sm:$0xff]  ;;  %v11249_v51 = vadd.f32 %v2915_v39, %v2329_v16  ;;  %v2917_v37 = vpop.f32.mrb[13].mxu0 }
 0x523   :  { %10186 = vmatpush1.bf16.msra.mxu0 %v10185_v33  ;;  %v11250_v44 = vadd.f32 %v2917_v37, %v2333_v7  ;;  %v13311_v24 = vpack.c.bf16 %v4327_v46, %v4326_v30 }
 0x524   :  { %10266 = vmatpush3.bf16.msra.mxu1 %v13209_v27  ;;  %10188 = vmatprep.subr.bf16.mxu0 %v10187_v6  ;;  %v3057_v6 = vpop.f32.mrb[12].mxu1  ;;  %v4425_v61 = vsel %vm4418_vm6, %v11249_v51, 0.0  ;;  %v4867_v16 = vsel %vm4860_vm7, %v11249_v51, 0.0 }
 0x525   :  { %10268 = vmatprep.subr.bf16.mxu1 %v13240_v58  ;;  %v11251_v0 = vadd.f32 %v3057_v6, %v2337_v34  ;;  %v3059_v58 = vpop.f32.mrb[13].mxu1  ;;  %v4471_v7 = vsel %vm201_vm0, %v4425_v61, 0.0  ;;  %v4913_v34 = vsel %vm201_vm0, %v4867_v16, 0.0  ;;  %v4426_v30 = vsel %vm4418_vm6, %v11250_v44, 0.0 }
 0x526   :  { %v11252_v29 = vadd.f32 %v3059_v58, %v2341_v60  ;;  %v4472_v37 = vrot.slane %v4471_v7, 4  ;;  %v4914_v41 = vrot.slane %v4913_v34, 4  ;;  %v4868_v46 = vsel %vm4860_vm7, %v11250_v44, 0.0 }
 0x527   :  { %10190 = vmatpush1.bf16.msra.mxu0 %v10189_v23  ;;  %v4427_v23 = vsel %vm4418_vm6, %v11251_v0, 0.0  ;;  %v4869_v47 = vsel %vm4860_vm7, %v11251_v0, 0.0  ;;  %v4478_v0 = vsel %vm201_vm0, %v4426_v30, 0.0  ;;  %v4920_v61 = vsel %vm201_vm0, %v4868_v46, 0.0 }
 0x528   :  { %10270 = vmatpush3.bf16.msra.mxu1 %v13248_v40  ;;  %10192 = vmatprep.subr.bf16.mxu0 %v10191_v15  ;;  %v4485_v60 = vsel %vm201_vm0, %v4427_v23, 0.0  ;;  %v4927_v15 = vsel %vm201_vm0, %v4869_v47, 0.0  ;;  %v4473_v51 = vadd.f32 %v4472_v37, %v4471_v7  ;;  %v4915_v6 = vadd.f32 %v4914_v41, %v4913_v34 }
 0x529   :  { %10272 = vmatprep.subr.bf16.mxu1 %v13252_v11  ;;  %v4486_v58 = vrot.slane %v4485_v60, 4  ;;  %v4928_v39 = vrot.slane %v4927_v15, 4  ;;  %v4479_v47 = vrot.slane %v4478_v0, 4  ;;  %v4921_v57 = vrot.slane %v4920_v61, 4 }
 0x52a   :  { %v4474_v33 = vrot.slane %v4473_v51, 2  ;;  %v4916_v2 = vrot.slane %v4915_v6, 2  ;;  %v4870_v44 = vsel %vm4860_vm7, %v11252_v29, 0.0  ;;  %v14824_v30 = vpack.c.bf16 %v13215_v45, %v13213_v10 }
 0x52b   :  { %10194 = vmatpush1.bf16.msra.mxu0 %v10193_v56  ;;  %v4487_v16 = vadd.f32 %v4486_v58, %v4485_v60  ;;  %v4929_v23 = vadd.f32 %v4928_v39, %v4927_v15  ;;  %v4428_v56 = vsel %vm4418_vm6, %v11252_v29, 0.0  ;;  %v4480_v37 = vadd.f32 %v4479_v47, %v4478_v0 }
 0x52c   :  { %10274 = vmatpush3.bf16.msra.mxu1 %v13260_v20  ;;  %10196 = vmatprep.subr.bf16.mxu0 %v10195_v3  ;;  %v4922_v41 = vadd.f32 %v4921_v57, %v4920_v61  ;;  %v14823_v3 = vpack.c.bf16 %v13199_v38, %v13197_v43  ;;  %v4475_v60 = vadd.f32 %v4474_v33, %v4473_v51  ;;  %v4492_v58 = vsel %vm201_vm0, %v4428_v56, 0.0 }
 0x52d   :  { %10276 = vmatprep.subr.bf16.mxu1 %v13264_v25  ;;  %v4488_v7 = vrot.slane %v4487_v16, 2  ;;  %v4930_v34 = vrot.slane %v4929_v23, 2  ;;  %v4917_v15 = vadd.f32 %v4916_v2, %v4915_v6  ;;  %v4934_v39 = vsel %vm201_vm0, %v4870_v44, 0.0 }
 0x52e   :  { %v4481_v0 = vrot.slane %v4480_v37, 2  ;;  %v4923_v57 = vrot.slane %v4922_v41, 2  ;;  %v4476_v38 = vrot.slane %v4475_v60, 1  ;;  %v4493_v33 = vrot.slane %v4492_v58, 4 }
 0x52f   :  { %10198 = vmatpush1.bf16.msra.mxu0 %v14823_v3  ;;  %v4489_v29 = vadd.f32 %v4488_v7, %v4487_v16  ;;  %v4931_v46 = vadd.f32 %v4930_v34, %v4929_v23  ;;  %v4918_v43 = vrot.slane %v4917_v15, 1  ;;  %v4935_v2 = vrot.slane %v4934_v39, 4 }
 0x530   :  { %10278 = vmatpush3.bf16.msra.mxu1 %v13274_v26  ;;  %10200 = vmatprep.subr.bf16.mxu0 %v14824_v30  ;;  %v4482_v61 = vadd.f32 %v4481_v0, %v4480_v37  ;;  %v4924_v47 = vadd.f32 %v4923_v57, %v4922_v41  ;;  %v14825_v45 = vpack.c.bf16 %v13228_v36, %v13226_v8  ;;  %v3451_v37 = vld [vmem:[#allocation2 + $0xc28] sm:$0xff]  ;;  %v3461_v8 = vld [vmem:[#allocation2 + $0xc78] sm:$0xff]  ;;  %v3450_v30 = vld [vmem:[#allocation2 + $0xc20] sm:$0xff] }
 0x531   :  { %10312 = vmatprep.subr.bf16.mxu1 %v13278_v32  ;;  %v4490_v51 = vrot.slane %v4489_v29, 1  ;;  %v4932_v6 = vrot.slane %v4931_v46, 1  ;;  %v4477_v10 = vadd.f32 %v4476_v38, %v4475_v60  ;;  %v4919_v16 = vadd.f32 %v4918_v43, %v4917_v15  ;;  %v4344_v60 = vld [vmem:[%s14790_s21 + $0x3b0] sm:$0xff]  ;;  %v4345_v15 = vld [vmem:[%s14790_s21 + $0x3b8] sm:$0xff] }
 0x532   :  { %4149 = vmatmul.mubr.f32.vlgmr.msra.gmra.mrb[18].mxu0 %v11986_v19  ;;  %v4494_v23 = vadd.f32 %v4493_v33, %v4492_v58  ;;  %v4936_v56 = vadd.f32 %v4935_v2, %v4934_v39  ;;  %v14826_v34 = vpack.c.bf16 %v13234_v28, %v13232_v50  ;;  %v4925_v36 = vrot.slane %v4924_v47, 1  ;;  %v3460_v38 = vld [vmem:[#allocation2 + $0xc70] sm:$0xff]  ;;  %v4329_v33 = vld [vmem:[%s14790_s21 + $0x338] sm:$0xff]  ;;  %v4379_v19 = vld [vmem:[%s14790_s21 + $0x4c8] sm:$0xff] }
 0x533   :  { %4644 = vmatmul.mubr.f32.vlgmr.msra.gmra.mrb[20].mxu1 %v12977_v21  ;;  %10202 = vmatpush1.bf16.msra.mxu0 %v14825_v45  ;;  %v4491_v44 = vadd.f32 %v4490_v51, %v4489_v29  ;;  %v4933_v7 = vadd.f32 %v4932_v6, %v4931_v46  ;;  %v4483_v21 = vrot.slane %v4482_v61, 1  ;;  %v13358_v58 = vmul.f32 %v13185_v4, %v4477_v10  ;;  %v4328_v43 = vld [vmem:[%s14790_s21 + $0x330] sm:$0xff]  ;;  %v4307_v6 = vld [vmem:[%s14790_s21 + $0x288] sm:$0xff] }
 0x534   :  { %10314 = vmatpush3.bf16.msra.mxu1 %v13288_v54  ;;  %10204 = vmatprep.subr.bf16.mxu0 %v14826_v34  ;;  %v4495_v41 = vrot.slane %v4494_v23, 2  ;;  %v4937_v3 = vrot.slane %v4936_v56, 2  ;;  %v13361_v50 = vmul.f32 %v13185_v4, %v4919_v16  ;;  %v14828_v28 = vpack.c.bf16 %v13256_v18, %v13246_v9 }
 0x535   :  { %10316 = vmatprep.subr.bf16.mxu1 %v13292_v63  ;;  %4219 = vmatprep.mubr.f32.mxu0 %v14787_v17  ;;  %v4484_v39 = vadd.f32 %v4483_v21, %v4482_v61  ;;  %v13367_v29 = vmul.f32 %v13205_v42, %v4491_v44  ;;  %v4926_v46 = vadd.f32 %v4925_v36, %v4924_v47  ;;  %v4348_v36 = vld [vmem:[%s14790_s21 + $0x3d0] sm:$0xff] }
 0x536   :  { %14827 = vst [vmem:[#allocation73_spill] sm:$0xff] %v13361_v50  ;;  %v13370_v0 = vmul.f32 %v13205_v42, %v4933_v7  ;;  %v4496_v57 = vadd.f32 %v4495_v41, %v4494_v23  ;;  %v4938_v4 = vadd.f32 %v4937_v3, %v4936_v56  ;;  %v14829_v9 = vpack.c.bf16 %v13270_v55, %v13268_v49  ;;  %v4306_v42 = vld [vmem:[%s14790_s21 + $0x280] sm:$0xff]  ;;  %v4347_v55 = vld [vmem:[%s14790_s21 + $0x3c8] sm:$0xff]  ;;  %v4349_v41 = vld [vmem:[%s14790_s21 + $0x3d8] sm:$0xff] }
 0x537   :  { %10206 = vmatpush1.bf16.msra.mxu0 %v14828_v28  ;;  %v10211_v18 = vpack.c.bf16 %v3461_v8, %v3451_v37  ;;  %v4506_v2 = vmul.f32 %v13202_v13, %v4484_v39  ;;  %v13380_v51 = vpack.c.bf16 %v4345_v15, %v4344_v60  ;;  %v13385_v61 = vmul.f32 %v13202_v13, %v4926_v46  ;;  %v4346_v49 = vld [vmem:[%s14790_s21 + $0x3c0] sm:$0xff]  ;;  %v4291_v7 = vld [vmem:[%s14790_s21 + $0x208] sm:$0xff]  ;;  %v4308_v37 = vld [vmem:[%s14790_s21 + $0x290] sm:$0xff] }
 0x538   :  { %10318 = vmatpush3.bf16.msra.mxu1 %v13298_v48  ;;  %10208 = vmatprep.subr.bf16.mxu0 %v14829_v9  ;;  %v4497_v47 = vrot.slane %v4496_v57, 1  ;;  %v4939_v45 = vrot.slane %v4938_v4, 1  ;;  %v14830_v10 = vrot.slane %v13130_v35, %v11761_v62  ;;  %v14831_v23 = vpack.c.bf16 %v13283_v22, %v13281_v52  ;;  %v4290_v35 = vld [vmem:[%s14790_s21 + $0x200] sm:$0xff]  ;;  %v4331_v22 = vld [vmem:[%s14790_s21 + $0x348] sm:$0xff]  ;;  %v4309_v8 = vld [vmem:[%s14790_s21 + $0x298] sm:$0xff] }
 0x539   :  { %10320 = vmatprep.subr.bf16.mxu1 %v13302_v5  ;;  %4783 = vmatprep.mubr.f32.mxu1 %v4506_v2  ;;  %v10213_v13 = vpack.c.bf16 %v3460_v38, %v3450_v30  ;;  %v13396_v56 = vpack.c.bf16 %v4329_v33, %v4328_v43  ;;  %v13399_v44 = vpack.c.bf16 %v4307_v6, %v4306_v42  ;;  %v4292_v30 = vld [vmem:[%s14790_s21 + $0x210] sm:$0xff]  ;;  %v4293_v46 = vld [vmem:[%s14790_s21 + $0x218] sm:$0xff]  ;;  %v4311_v38 = vld [vmem:[%s14790_s21 + $0x2a8] sm:$0xff] }
 0x53a   :  { %v11242_v16 = vadd.f32 %v12732_v1, %v14830_v10  ;;  %v4330_v1 = vld [vmem:[%s14790_s21 + $0x340] sm:$0xff]  ;;  %v4498_v34 = vadd.f32 %v4497_v47, %v4496_v57  ;;  %v4940_v21 = vadd.f32 %v4939_v45, %v4938_v4  ;;  %v13405_v52 = vpack.c.bf16 %v4347_v55, %v4346_v49  ;;  %v4332_v57 = vld [vmem:[%s14790_s21 + $0x350] sm:$0xff]  ;;  %v4333_v9 = vld [vmem:[%s14790_s21 + $0x358] sm:$0xff] }
 0x53b   :  { %10210 = vmatpush1.bf16.msra.mxu0 %v14831_v23  ;;  %v13416_v15 = vpack.c.bf16 %v4291_v7, %v4290_v35  ;;  %v13420_v28 = vpack.c.bf16 %v4331_v22, %v4330_v1  ;;  %v13422_v39 = vpack.c.bf16 %v4309_v8, %v4308_v37  ;;  %v13428_v4 = vpack.c.bf16 %v4349_v41, %v4348_v36  ;;  %v4350_v43 = vld [vmem:[%s14790_s21 + $0x3e0] sm:$0xff]  ;;  %v4351_v33 = vld [vmem:[%s14790_s21 + $0x3e8] sm:$0xff]  ;;  %v4312_v10 = vld [vmem:[%s14790_s21 + $0x2b0] sm:$0xff] }
 0x53c   :  { %10322 = vmatpush3.bf16.msra.mxu1 %v13311_v24  ;;  %10212 = vmatprep.subr.bf16.mxu0 %v10211_v18  ;;  %v13412_v3 = vmul.f32 %v11242_v16, %v4498_v34  ;;  %v13414_v60 = vmul.f32 %v11242_v16, %v4940_v21  ;;  %v4310_v18 = vld [vmem:[%s14790_s21 + $0x2a0] sm:$0xff]  ;;  %v13439_v2 = vpack.c.bf16 %v4293_v46, %v4292_v30  ;;  %v4295_v55 = vld [vmem:[%s14790_s21 + $0x228] sm:$0xff]  ;;  %v4313_v16 = vld [vmem:[%s14790_s21 + $0x2b8] sm:$0xff] }
 0x53d   :  { %10324 = vmatprep.subr.bf16.mxu1 %v13380_v51  ;;  %v13443_v42 = vpack.c.bf16 %v4333_v9, %v4332_v57  ;;  %v13445_v6 = vpack.c.bf16 %v4311_v38, %v4310_v18  ;;  %v4294_v49 = vld [vmem:[%s14790_s21 + $0x220] sm:$0xff]  ;;  %v13451_v45 = vpack.c.bf16 %v4351_v33, %v4350_v43  ;;  %v4352_v23 = vld [vmem:[%s14790_s21 + $0x3f0] sm:$0xff]  ;;  %v13465_v1 = vpack.c.bf16 %v4313_v16, %v4312_v10  ;;  %v4297_v21 = vld [vmem:[%s14790_s21 + $0x238] sm:$0xff] }
 0x53e   :  { %v4334_v47 = vld [vmem:[%s14790_s21 + $0x360] sm:$0xff]  ;;  %v13459_v35 = vpack.c.bf16 %v4295_v55, %v4294_v49  ;;  %v4296_v34 = vld [vmem:[%s14790_s21 + $0x230] sm:$0xff]  ;;  %v4337_v8 = vld [vmem:[%s14790_s21 + $0x378] sm:$0xff] }
 0x53f   :  { %10214 = vmatpush1.bf16.msra.mxu0 %v10213_v13  ;;  %v4353_v13 = vld [vmem:[%s14790_s21 + $0x3f8] sm:$0xff]  ;;  %v4336_v22 = vld [vmem:[%s14790_s21 + $0x370] sm:$0xff]  ;;  %v4314_v36 = vld [vmem:[%s14790_s21 + $0x2c0] sm:$0xff]  ;;  %v13477_v30 = vpack.c.bf16 %v4297_v21, %v4296_v34 }
 0x540   :  { %10326 = vmatpush3.bf16.msra.mxu1 %v13396_v56  ;;  %10280 = vmatprep.subr.bf16.mxu0 %v13399_v44  ;;  %v13471_v37 = vpack.c.bf16 %v4353_v13, %v4352_v23  ;;  %v4315_v41 = vld [vmem:[%s14790_s21 + $0x2c8] sm:$0xff]  ;;  %v13481_v46 = vpack.c.bf16 %v4337_v8, %v4336_v22  ;;  %v4298_v9 = vld [vmem:[%s14790_s21 + $0x240] sm:$0xff]  ;;  %v4316_v38 = vld [vmem:[%s14790_s21 + $0x2d0] sm:$0xff] }
 0x541   :  { %10328 = vmatprep.subr.bf16.mxu1 %v13405_v52  ;;  %v13483_v57 = vpack.c.bf16 %v4315_v41, %v4314_v36  ;;  %v4299_v18 = vld [vmem:[%s14790_s21 + $0x248] sm:$0xff]  ;;  %v4317_v43 = vld [vmem:[%s14790_s21 + $0x2d8] sm:$0xff]  ;;  %v4300_v49 = vld [vmem:[%s14790_s21 + $0x250] sm:$0xff] }
 0x542   :  { %8283 = vmatmul.mubr.msk.f32.vlgmr.msra.gmra.mrb[18].mxu0 %vm1184_vm5, %v12029_v12  ;;  %14832 = vst [vmem:[#allocation74_spill] sm:$0xff] %v13481_v46  ;;  %v13491_v33 = vpack.c.bf16 %v4299_v18, %v4298_v9  ;;  %v4301_v55 = vld [vmem:[%s14790_s21 + $0x258] sm:$0xff]  ;;  %v4319_v10 = vld [vmem:[%s14790_s21 + $0x2e8] sm:$0xff]  ;;  %v4304_v41 = vld [vmem:[%s14790_s21 + $0x270] sm:$0xff] }
 0x543   :  { %10282 = vmatpush3.bf16.msra.mxu0 %v13416_v15  ;;  %4713 = vmatprep.mubr.f32.mxu0 %v13010_v14  ;;  %v4335_v14 = vld [vmem:[%s14790_s21 + $0x368] sm:$0xff]  ;;  %v13504_v16 = vpack.c.bf16 %v4301_v55, %v4300_v49  ;;  %v4321_v22 = vld [vmem:[%s14790_s21 + $0x2f8] sm:$0xff] }
 0x544   :  { %10330 = vmatpush3.bf16.msra.mxu1 %v13420_v28  ;;  %10284 = vmatprep.subr.bf16.mxu0 %v13422_v39  ;;  %v13463_v7 = vpack.c.bf16 %v4335_v14, %v4334_v47  ;;  %v13498_v47 = vpack.c.bf16 %v4317_v43, %v4316_v38  ;;  %v4318_v14 = vld [vmem:[%s14790_s21 + $0x2e0] sm:$0xff]  ;;  %v4303_v34 = vld [vmem:[%s14790_s21 + $0x268] sm:$0xff]  ;;  %v4305_v9 = vld [vmem:[%s14790_s21 + $0x278] sm:$0xff] }
 0x545   :  { %10332 = vmatprep.subr.bf16.mxu1 %v13428_v4  ;;  %v14833_v23 = vld [vmem:[#allocation38_spill] sm:$0xff]  ;;  %v13508_v13 = vpack.c.bf16 %v4319_v10, %v4318_v14  ;;  %v14834_v21 = vld [vmem:[#allocation47_spill] sm:$0xff]  ;;  %v14836_v18 = vld [vmem:[#allocation49_spill] sm:$0xff]  ;;  %v13529_v49 = vpack.c.bf16 %v4305_v9, %v4304_v41 }
 0x546   :  { %v4370_v38 = vld [vmem:[%s14790_s21 + $0x480] sm:$0xff]  ;;  %v4371_v43 = vld [vmem:[%s14790_s21 + $0x488] sm:$0xff]  ;;  %v4356_v41 = vld [vmem:[%s14790_s21 + $0x410] sm:$0xff] }
 0x547   :  { %10286 = vmatpush3.bf16.msra.mxu0 %v13439_v2  ;;  %v14837_v55 = vld [vmem:[#allocation50_spill] sm:$0xff]  ;;  %v13533_v14 = vpack.c.bf16 %v4371_v43, %v4370_v38  ;;  %v4357_v9 = vld [vmem:[%s14790_s21 + $0x418] sm:$0xff]  ;;  %v14847_v12 = vld [vmem:[#allocation59_spill] sm:$0xff] }
 0x548   :  { %10334 = vmatpush3.bf16.msra.mxu1 %v13443_v42  ;;  %10288 = vmatprep.subr.bf16.mxu0 %v13445_v6  ;;  %v4354_v10 = vld [vmem:[%s14790_s21 + $0x400] sm:$0xff]  ;;  %v4375_v43 = vld [vmem:[%s14790_s21 + $0x4a8] sm:$0xff] }
 0x549   :  { %10336 = vmatprep.subr.bf16.mxu1 %v13451_v45  ;;  %v4374_v38 = vld [vmem:[%s14790_s21 + $0x4a0] sm:$0xff] }
 0x54a   :  { %v14849_v50 = vld [vmem:[#allocation37_spill] sm:$0xff] }
 0x54b   :  { %10290 = vmatpush3.bf16.msra.mxu0 %v13459_v35 }
 0x54c   :  { %10338 = vmatpush3.bf16.msra.mxu1 %v13463_v7  ;;  %10292 = vmatprep.subr.bf16.mxu0 %v13465_v1 }
 0x54d   :  { %10340 = vmatprep.subr.bf16.mxu1 %v13471_v37 }
 0x54f   :  { %10294 = vmatpush3.bf16.msra.mxu0 %v13477_v30 }
 0x550   :  { %10342 = vmatpush3.bf16.msra.mxu1 %v13481_v46  ;;  %10296 = vmatprep.subr.bf16.mxu0 %v13483_v57  ;;  %v4366_v46 = vld [vmem:[%s14790_s21 + $0x460] sm:$0xff] }
 0x551   :  { %10376 = vmatprep.subr.bf16.mxu1 %v13003_v53  ;;  %v4302_v53 = vld [vmem:[%s14790_s21 + $0x260] sm:$0xff] }
 0x552   :  { %v13517_v8 = vpack.c.bf16 %v4303_v34, %v4302_v53  ;;  %v14838_v53 = vld [vmem:[#allocation51_spill] sm:$0xff] }
 0x553   :  { %4784 = vmatmul.mubr.f32.vlgmr.msra.gmra.mrb[22].mxu1 %v13358_v58  ;;  %10298 = vmatpush3.bf16.msra.mxu0 %v13491_v33  ;;  %v4320_v58 = vld [vmem:[%s14790_s21 + $0x2f0] sm:$0xff] }
 0x554   :  { %10378 = vmatpush3.bf16.msra.mxu1 %v13016_v31  ;;  %5015 = vmatprep.mubr.f32.mxu1 %v14833_v23  ;;  %v14835_v31 = vld [vmem:[#allocation48_spill] sm:$0xff]  ;;  %v13521_v36 = vpack.c.bf16 %v4321_v22, %v4320_v58  ;;  %v4355_v23 = vld [vmem:[%s14790_s21 + $0x408] sm:$0xff] }
 0x555   :  { %10300 = vmatprep.subr.bf16.mxu0 %v13498_v47  ;;  %10380 = vmatprep.subr.bf16.mxu1 %v14834_v21  ;;  %v4372_v34 = vld [vmem:[%s14790_s21 + $0x490] sm:$0xff]  ;;  %v4373_v21 = vld [vmem:[%s14790_s21 + $0x498] sm:$0xff]  ;;  %v13541_v58 = vpack.c.bf16 %v4355_v23, %v4354_v10  ;;  %v13555_v10 = vpack.c.bf16 %v4357_v9, %v4356_v41  ;;  %v14842_v23 = vld [vmem:[#allocation54_spill] sm:$0xff] }
 0x556   :  { %v14839_v22 = vld [vmem:[#allocation52_spill] sm:$0xff] }
 0x557   :  { %10302 = vmatpush3.bf16.msra.mxu0 %v13504_v16  ;;  %v14844_v41 = vld [vmem:[#allocation56_spill] sm:$0xff] }
 0x558   :  { %10382 = vmatpush3.bf16.msra.mxu1 %v14835_v31  ;;  %10304 = vmatprep.subr.bf16.mxu0 %v13508_v13  ;;  %v13545_v31 = vpack.c.bf16 %v4373_v21, %v4372_v34  ;;  %v4358_v34 = vld [vmem:[%s14790_s21 + $0x420] sm:$0xff]  ;;  %v4359_v21 = vld [vmem:[%s14790_s21 + $0x428] sm:$0xff] }
 0x559   :  { %10384 = vmatprep.subr.bf16.mxu1 %v14836_v18  ;;  %v14840_v18 = vld [vmem:[#allocation53_spill] sm:$0xff] }
 0x55b   :  { %10306 = vmatpush3.bf16.msra.mxu0 %v13517_v8 }
 0x55c   :  { %10386 = vmatpush3.bf16.msra.mxu1 %v14837_v55  ;;  %10308 = vmatprep.subr.bf16.mxu0 %v13521_v36  ;;  %v14841_v55 = vld [vmem:[#allocation42_spill] sm:$0xff] }
 0x55d   :  { %10388 = vmatprep.subr.bf16.mxu1 %v14838_v53  ;;  %v13559_v53 = vpack.c.bf16 %v4375_v43, %v4374_v38  ;;  %v4360_v38 = vld [vmem:[%s14790_s21 + $0x430] sm:$0xff]  ;;  %v4361_v43 = vld [vmem:[%s14790_s21 + $0x438] sm:$0xff] }
 0x55f   :  { %10310 = vmatpush3.bf16.msra.mxu0 %v13529_v49 }
 0x560   :  { %10390 = vmatpush3.bf16.msra.mxu1 %v14839_v22  ;;  %10344 = vmatprep.subr.bf16.mxu0 %v13533_v14  ;;  %v14843_v22 = vld [vmem:[#allocation55_spill] sm:$0xff] }
 0x561   :  { %10392 = vmatprep.subr.bf16.mxu1 %v14840_v18  ;;  %v4376_v18 = vld [vmem:[%s14790_s21 + $0x4b0] sm:$0xff] }
 0x562   :  { %4714 = vmatmul.mubr.f32.vlgmr.msra.gmra.mrb[20].mxu0 %v14841_v55  ;;  %v4377_v55 = vld [vmem:[%s14790_s21 + $0x4b8] sm:$0xff] }
 0x563   :  { %10346 = vmatpush3.bf16.msra.mxu0 %v13541_v58  ;;  %4853 = vmatprep.mubr.f32.mxu0 %v13412_v3  ;;  %v13567_v3 = vpack.c.bf16 %v4359_v21, %v4358_v34  ;;  %v13571_v9 = vpack.c.bf16 %v4377_v55, %v4376_v18  ;;  %v13579_v34 = vpack.c.bf16 %v4361_v43, %v4360_v38  ;;  %v14846_v21 = vld [vmem:[#allocation58_spill] sm:$0xff]  ;;  %v14848_v38 = vld [vmem:[#allocation60_spill] sm:$0xff] }
 0x564   :  { %10394 = vmatpush3.bf16.msra.mxu1 %v14842_v23  ;;  %10348 = vmatprep.subr.bf16.mxu0 %v13545_v31  ;;  %v14845_v23 = vld [vmem:[#allocation57_spill] sm:$0xff]  ;;  %v4364_v43 = vld [vmem:[%s14790_s21 + $0x450] sm:$0xff] }
 0x565   :  { %10396 = vmatprep.subr.bf16.mxu1 %v14843_v22  ;;  %v4378_v22 = vld [vmem:[%s14790_s21 + $0x4c0] sm:$0xff] }
 0x566   :  { %v13583_v18 = vpack.c.bf16 %v4379_v19, %v4378_v22  ;;  %v4362_v55 = vld [vmem:[%s14790_s21 + $0x440] sm:$0xff]  ;;  %v4383_v22 = vld [vmem:[%s14790_s21 + $0x4e8] sm:$0xff] }
 0x567   :  { %10350 = vmatpush3.bf16.msra.mxu0 %v13555_v10 }
 0x568   :  { %10398 = vmatpush3.bf16.msra.mxu1 %v14844_v41  ;;  %10352 = vmatprep.subr.bf16.mxu0 %v13559_v53  ;;  %v4363_v41 = vld [vmem:[%s14790_s21 + $0x448] sm:$0xff] }
 0x569   :  { %10400 = vmatprep.subr.bf16.mxu1 %v14845_v23  ;;  %v4380_v23 = vld [vmem:[%s14790_s21 + $0x4d0] sm:$0xff]  ;;  %v13591_v62 = vpack.c.bf16 %v4363_v41, %v4362_v55  ;;  %v14850_v41 = vld [vmem:[#allocation46_spill] sm:$0xff] }
 0x56a   :  { %v13598_v19 = vpack.c.bf16 %v4381_v59, %v4380_v23  ;;  %v4385_v23 = vld [vmem:[%s14790_s21 + $0x4f8] sm:$0xff] }
 0x56b   :  { %10354 = vmatpush3.bf16.msra.mxu0 %v13567_v3 }
 0x56c   :  { %10402 = vmatpush3.bf16.msra.mxu1 %v14846_v21  ;;  %10356 = vmatprep.subr.bf16.mxu0 %v13571_v9  ;;  %v4365_v21 = vld [vmem:[%s14790_s21 + $0x458] sm:$0xff] }
 0x56d   :  { %10404 = vmatprep.subr.bf16.mxu1 %v14847_v12  ;;  %v4382_v12 = vld [vmem:[%s14790_s21 + $0x4e0] sm:$0xff]  ;;  %v13604_v55 = vpack.c.bf16 %v4365_v21, %v4364_v43 }
 0x56f   :  { %10358 = vmatpush3.bf16.msra.mxu0 %v13579_v34 }
 0x570   :  { %10406 = vmatpush3.bf16.msra.mxu1 %v14848_v38  ;;  %10360 = vmatprep.subr.bf16.mxu0 %v13583_v18  ;;  %v13608_v38 = vpack.c.bf16 %v4383_v22, %v4382_v12 }
 0x571   :  { %10440 = vmatprep.subr.bf16.mxu1 %v13399_v44  ;;  %v4367_v44 = vld [vmem:[%s14790_s21 + $0x468] sm:$0xff]  ;;  %v13612_v59 = vpop.f32.mrb[14].mxu0 }
 0x572   :  { %14851 = vst [vmem:[#allocation38_spill] sm:$0xff] %v13612_v59  ;;  %v13618_v43 = vpop.f32.mrb[14].mxu1  ;;  %v13620_v21 = vpop.f32.mrb[15].mxu0  ;;  %v10369_v12 = vpack.c.bf16 %v4367_v44, %v4366_v46  ;;  %v4369_v59 = vld [vmem:[%s14790_s21 + $0x478] sm:$0xff] }
 0x573   :  { %5016 = vmatmul.mubr.f32.vlgmr.msra.gmra.mrb[24].mxu1 %v14849_v50  ;;  %10362 = vmatpush3.bf16.msra.mxu0 %v13591_v62  ;;  %v4384_v50 = vld [vmem:[%s14790_s21 + $0x4f0] sm:$0xff]  ;;  %v14852_v46 = vld [vmem:[#allocation61_spill] sm:$0xff] }
 0x574   :  { %10442 = vmatpush3.bf16.msra.mxu1 %v13416_v15  ;;  %5155 = vmatprep.mubr.f32.mxu1 %v14850_v41  ;;  %v13622_v15 = vpop.f32.mrb[15].mxu1  ;;  %v10371_v22 = vpack.c.bf16 %v4385_v23, %v4384_v50  ;;  %v4368_v41 = vld [vmem:[%s14790_s21 + $0x470] sm:$0xff]  ;;  %v14854_v44 = vld [vmem:[#allocation45_spill] sm:$0xff] }
 0x575   :  { %10364 = vmatprep.subr.bf16.mxu0 %v13598_v19  ;;  %10444 = vmatprep.subr.bf16.mxu1 %v13422_v39  ;;  %v10373_v39 = vpack.c.bf16 %v4369_v59, %v4368_v41  ;;  %v13743_v59 = vld [vmem:[%s14867_s25 + $0xd0] sm:$0xf] }
 0x577   :  { %10366 = vmatpush3.bf16.msra.mxu0 %v13604_v55 }
 0x578   :  { %10446 = vmatpush3.bf16.msra.mxu1 %v13439_v2  ;;  %10368 = vmatprep.subr.bf16.mxu0 %v13608_v38  ;;  %v14853_v2 = vld [vmem:[#allocation62_spill] sm:$0xff] }
 0x579   :  { %10448 = vmatprep.subr.bf16.mxu1 %v13445_v6  ;;  %v14855_v6 = vld [vmem:[#allocation63_spill] sm:$0xff] }
 0x57b   :  { %10370 = vmatpush3.bf16.msra.mxu0 %v10369_v12 }
 0x57c   :  { %10450 = vmatpush3.bf16.msra.mxu1 %v13459_v35  ;;  %10372 = vmatprep.subr.bf16.mxu0 %v10371_v22  ;;  %v14856_v35 = vld [vmem:[#allocation64_spill] sm:$0xff] }
 0x57d   :  { %10452 = vmatprep.subr.bf16.mxu1 %v13465_v1  ;;  %v14857_v1 = vld [vmem:[#allocation65_spill] sm:$0xff] }
 0x57f   :  { %10374 = vmatpush3.bf16.msra.mxu0 %v10373_v39 }
 0x580   :  { %10454 = vmatpush3.bf16.msra.mxu1 %v13477_v30  ;;  %10408 = vmatprep.subr.bf16.mxu0 %v14852_v46  ;;  %v14858_v30 = vld [vmem:[#allocation68_spill] sm:$0xff] }
 0x581   :  { %10456 = vmatprep.subr.bf16.mxu1 %v13483_v57  ;;  %v14860_v57 = vld [vmem:[#allocation70_spill] sm:$0xff] }
 0x582   :  { %4854 = vmatmul.mubr.f32.vlgmr.msra.gmra.mrb[22].mxu0 %v13367_v29  ;;  %v14859_v29 = vld [vmem:[#allocation69_spill] sm:$0xff] }
 0x583   :  { %10410 = vmatpush3.bf16.msra.mxu0 %v14853_v2  ;;  %5085 = vmatprep.mubr.f32.mxu0 %v14854_v44 }
 0x584   :  { %10458 = vmatpush3.bf16.msra.mxu1 %v13491_v33  ;;  %10412 = vmatprep.subr.bf16.mxu0 %v14855_v6  ;;  %v14861_v33 = vld [vmem:[#allocation71_spill] sm:$0xff] }
 0x585   :  { %10460 = vmatprep.subr.bf16.mxu1 %v13498_v47  ;;  %v14862_v47 = vld [vmem:[#allocation43_spill] sm:$0xff] }
 0x587   :  { %10414 = vmatpush3.bf16.msra.mxu0 %v14856_v35 }
 0x588   :  { %10462 = vmatpush3.bf16.msra.mxu1 %v13504_v16  ;;  %10416 = vmatprep.subr.bf16.mxu0 %v14857_v1  ;;  %v14863_v16 = vld [vmem:[#allocation72_spill] sm:$0xff] }
 0x589   :  { %10464 = vmatprep.subr.bf16.mxu1 %v13508_v13  ;;  %v4396_v13 = vld [vmem:[%s14867_s25 + $0x50] sm:$0xff] }
 0x58b   :  { %10418 = vmatpush3.bf16.msra.mxu0 %v14858_v30 }
 0x58c   :  { %10466 = vmatpush3.bf16.msra.mxu1 %v13517_v8  ;;  %10420 = vmatprep.subr.bf16.mxu0 %v14859_v29 }
 0x58d   :  { %10468 = vmatprep.subr.bf16.mxu1 %v13521_v36 }
 0x58f   :  { %10422 = vmatpush3.bf16.msra.mxu0 %v14860_v57 }
 0x590   :  { %10470 = vmatpush3.bf16.msra.mxu1 %v13529_v49  ;;  %10424 = vmatprep.subr.bf16.mxu0 %v14861_v33 }
 0x591   :  { %10504 = vmatprep.subr.bf16.mxu1 %v13533_v14  ;;  %v4392_v14 = vld [vmem:[%s14867_s25 + $0x30] sm:$0xff] }
 0x593   :  { %5156 = vmatmul.mubr.f32.vlgmr.msra.gmra.mrb[26].mxu1 %v14862_v47  ;;  %10426 = vmatpush3.bf16.msra.mxu0 %v13209_v27 }
 0x594   :  { %10506 = vmatpush3.bf16.msra.mxu1 %v13541_v58  ;;  %5295 = vmatprep.mubr.f32.mxu1 %v13414_v60  ;;  %v4402_v58 = vld [vmem:[%s14867_s25 + $0x80] sm:$0xff] }
 0x595   :  { %10428 = vmatprep.subr.bf16.mxu0 %v14863_v16  ;;  %10508 = vmatprep.subr.bf16.mxu1 %v13545_v31  ;;  %v13721_v31 = vld [vmem:[%s14867_s25 + $0xa8] sm:$0xf] }
 0x597   :  { %10430 = vmatpush3.bf16.msra.mxu0 %v13248_v40  ;;  %v14864_v40 = vld [vmem:[#allocation44_spill] sm:$0xff] }
 0x598   :  { %10510 = vmatpush3.bf16.msra.mxu1 %v13555_v10  ;;  %10432 = vmatprep.subr.bf16.mxu0 %v13252_v11  ;;  %v14866_v11 = vld [vmem:[#allocation73_spill] sm:$0xff] }
 0x599   :  { %10512 = vmatprep.subr.bf16.mxu1 %v13559_v53  ;;  %v13723_v53 = vpack.c.bf16 %v4402_v58, %v4392_v14  ;;  %v13757_v58 = vld [vmem:[%s14867_s25 + $0xb8] sm:$0xf] }
 0x59b   :  { %10434 = vmatpush3.bf16.msra.mxu0 %v13260_v20 }
 0x59c   :  { %10514 = vmatpush3.bf16.msra.mxu1 %v13567_v3  ;;  %10436 = vmatprep.subr.bf16.mxu0 %v13264_v25  ;;  %v13726_v3 = vld [vmem:[%s14867_s25 + $0xd8] sm:$0xf] }
 0x59d   :  { %10516 = vmatprep.subr.bf16.mxu1 %v13571_v9  ;;  %v4389_v9 = vld [vmem:[%s14867_s25 + $0x18] sm:$0xff] }
 0x59f   :  { %10438 = vmatpush3.bf16.msra.mxu0 %v13274_v26 }
 0x5a0   :  { %10518 = vmatpush3.bf16.msra.mxu1 %v13579_v34  ;;  %10472 = vmatprep.subr.bf16.mxu0 %v13278_v32 }
 0x5a1   :  { %10520 = vmatprep.subr.bf16.mxu1 %v13583_v18  ;;  %v4399_v18 = vld [vmem:[%s14867_s25 + $0x68] sm:$0xff] }
 0x5a2   :  { %5086 = vmatmul.mubr.f32.vlgmr.msra.gmra.mrb[24].mxu0 %v14864_v40 }
 0x5a3   :  { %10474 = vmatpush3.bf16.msra.mxu0 %v13288_v54  ;;  %5225 = vmatprep.mubr.f32.mxu0 %v13385_v61 }
 0x5a4   :  { %10522 = vmatpush3.bf16.msra.mxu1 %v13591_v62  ;;  %10476 = vmatprep.subr.bf16.mxu0 %v13292_v63  ;;  %v14865_v62 = vld [vmem:[#allocation74_spill] sm:$0xff] }
 0x5a5   :  { %10524 = vmatprep.subr.bf16.mxu1 %v13598_v19  ;;  %v13736_v19 = vld [vmem:[%s14867_s25 + $0xa0] sm:$0xf] }
 0x5a7   :  { %10478 = vmatpush3.bf16.msra.mxu0 %v13298_v48 }
 0x5a8   :  { %10526 = vmatpush3.bf16.msra.mxu1 %v13604_v55  ;;  %10480 = vmatprep.subr.bf16.mxu0 %v13302_v5  ;;  %v13738_v55 = vpack.c.bf16 %v4399_v18, %v4389_v9  ;;  %v4401_v9 = vld [vmem:[%s14867_s25 + $0x78] sm:$0xff]  ;;  %v4400_v18 = vld [vmem:[%s14867_s25 + $0x70] sm:$0xff] }
 0x5a9   :  { %10528 = vmatprep.subr.bf16.mxu1 %v13608_v38 }
 0x5ab   :  { %10482 = vmatpush3.bf16.msra.mxu0 %v13311_v24 }
 0x5ac   :  { %10530 = vmatpush3.bf16.msra.mxu1 %v10369_v12  ;;  %10484 = vmatprep.subr.bf16.mxu0 %v13380_v51 }
 0x5ad   :  { %10532 = vmatprep.subr.bf16.mxu1 %v10371_v22 }
 0x5af   :  { %10486 = vmatpush3.bf16.msra.mxu0 %v13396_v56 }
 0x5b0   :  { %10534 = vmatpush3.bf16.msra.mxu1 %v10373_v39  ;;  %10488 = vmatprep.subr.bf16.mxu0 %v13405_v52 }
 0x5b3   :  { %5296 = vmatmul.mubr.f32.vlgmr.msra.gmra.mrb[28].mxu1 %v13370_v0  ;;  %10490 = vmatpush3.bf16.msra.mxu0 %v13420_v28  ;;  %v4387_v28 = vld [vmem:[%s14867_s25 + $0x8] sm:$0xff] }
 0x5b4   :  { %10492 = vmatprep.subr.bf16.mxu0 %v13428_v4  ;;  %5624 = vmatprep.mubr.f32.mxu1 %v14787_v17  ;;  %v4397_v4 = vld [vmem:[%s14867_s25 + $0x58] sm:$0xff] }
 0x5b7   :  { %10494 = vmatpush3.bf16.msra.mxu0 %v13443_v42  ;;  %v4393_v42 = vld [vmem:[%s14867_s25 + $0x38] sm:$0xff] }
 0x5b8   :  { %10496 = vmatprep.subr.bf16.mxu0 %v13451_v45  ;;  %v10535_v45 = vpack.c.bf16 %v4397_v4, %v4387_v28 }
 0x5bb   :  { %10498 = vmatpush3.bf16.msra.mxu0 %v13463_v7  ;;  %v4403_v7 = vld [vmem:[%s14867_s25 + $0x88] sm:$0xff] }
 0x5bc   :  { %10500 = vmatprep.subr.bf16.mxu0 %v13471_v37  ;;  %v4386_v37 = vld [vmem:[%s14867_s25] sm:$0xff]  ;;  %v13714_v36 = vpack.c.bf16 %v4403_v7, %v4393_v42 }
 0x5bd   :  { %v13716_v49 = vpack.c.bf16 %v4396_v13, %v4386_v37  ;;  %v4398_v7 = vld [vmem:[%s14867_s25 + $0x60] sm:$0xff] }
 0x5be   :  { %10548 = vmatprep.subr.bf16.mxu1 %v13714_v36 }
 0x5bf   :  { %10502 = vmatpush3.bf16.msra.mxu0 %v14865_v62  ;;  %10550 = vmatpush1.bf16.msra.mxu1 %v13723_v53 }
 0x5c0   :  { %10536 = vmatprep.subr.bf16.mxu0 %v10535_v45  ;;  %8293 = vmatprep.subr.msk.mxu1 %vm5316_vm8, %v13726_v3 }
 0x5c2   :  { %5226 = vmatmul.mubr.f32.vlgmr.msra.gmra.mrb[26].mxu0 %v14866_v11 }
 0x5c3   :  { %5411 = vmatprep.mubr.f32.mxu0 %v14787_v17  ;;  %10538 = vmatpush1.bf16.msra.mxu0 %v13716_v49 }
 0x5c4   :  { %8284 = vmatprep.subr.msk.mxu0 %vm5316_vm8, %v13721_v31  ;;  %8294 = vmatpush1.msk.msra.mxu1 %vm5316_vm8, %v13743_v59 }
 0x5c5   :  { %v13696_v27 = vpop.f32.mrb[16].mxu0  ;;  %10556 = vmatprep.subr.bf16.mxu1 %v10535_v45  ;;  %v4388_v45 = vld [vmem:[%s14867_s25 + $0x10] sm:$0xff] }
 0x5c6   :  { %v13698_v48 = vpop.f32.mrb[16].mxu1  ;;  %v13700_v20 = vpop.f32.mrb[17].mxu0  ;;  %v13752_v13 = vpack.c.bf16 %v4398_v7, %v4388_v45  ;;  %v6257_v45 = vld [vmem:[%s14868_s29 + $0x30] sm:$0xff]  ;;  %v6260_v7 = vld [vmem:[%s14868_s29 + $0x48] sm:$0xff] }
 0x5c7   :  { %v13702_v25 = vpop.f32.mrb[17].mxu1  ;;  %8285 = vmatpush1.msk.msra.mxu0 %vm5316_vm8, %v13736_v19 }
 0x5c8   :  { %10540 = vmatprep.subr.bf16.mxu0 %v13738_v55 }
 0x5e6   :  { %v8358_v26 = vpop.f32.mrb[18].mxu1 }
 0x5e7   :  { %v8359_v32 = vpop.f32.mrb[19].mxu1 }
 0x5e8   :  { %v8360_v54 = vadd.f32 %v8359_v32, %v8358_v26 }
 0x606   :  { %v8393_v5 = vpop.f32.mrb[20].mxu1 }
 0x607   :  { %v8394_v63 = vpop.f32.mrb[21].mxu1 }
 0x608   :  { %v8395_v24 = vadd.f32 %v8394_v63, %v8393_v5 }
 0x60a   :  { %v4646_v0 = vadd.f32 %v8395_v24, %v8360_v54 }
 0x615   :  { %v13704_v51 = vpop.f32.mrb[18].mxu0 }
 0x616   :  { %v13706_v61 = vpop.f32.mrb[19].mxu0 }
 0x626   :  { %v8463_v56 = vpop.f32.mrb[22].mxu1 }
 0x627   :  { %v8464_v52 = vpop.f32.mrb[23].mxu1 }
 0x628   :  { %v8465_v60 = vadd.f32 %v8464_v52, %v8463_v56 }
 0x635   :  { %v8428_v8 = vpop.f32.mrb[20].mxu0 }
 0x636   :  { %v8429_v10 = vpop.f32.mrb[21].mxu0 }
 0x637   :  { %v8430_v34 = vadd.f32 %v8429_v10, %v8428_v8  ;;  %v4391_v10 = vld [vmem:[%s14867_s25 + $0x28] sm:$0xff] }
 0x639   :  { %v4716_v38 = vadd.f32 %v8430_v34, %v4646_v0  ;;  %v4390_v34 = vld [vmem:[%s14867_s25 + $0x20] sm:$0xff] }
 0x63b   :  { %v4786_v50 = vadd.f32 %v8465_v60, %v4716_v38  ;;  %v13772_v38 = vld [vmem:[%s14867_s25 + $0xb0] sm:$0xf] }
 0x646   :  { %v8533_v23 = vpop.f32.mrb[24].mxu1 }
 0x647   :  { %v8534_v12 = vpop.f32.mrb[25].mxu1 }
 0x648   :  { %v8535_v22 = vadd.f32 %v8534_v12, %v8533_v23  ;;  %v10545_v23 = vpack.c.bf16 %v4400_v18, %v4390_v34  ;;  %v4405_v12 = vld [vmem:[%s14867_s25 + $0x98] sm:$0xff]  ;;  %v6328_v34 = vld [vmem:[%s14868_s29 + $0x268] sm:$0xff]  ;;  %v10581_v18 = vpack.c.bf16 %v6260_v7, %v6257_v45  ;;  %v6303_v45 = vld [vmem:[%s14868_s29 + $0x1a0] sm:$0xff] }
 0x655   :  { %v8498_v41 = vpop.f32.mrb[22].mxu0 }
 0x656   :  { %v8499_v39 = vpop.f32.mrb[23].mxu0 }
 0x657   :  { %v8500_v46 = vadd.f32 %v8499_v39, %v8498_v41  ;;  %v4404_v41 = vld [vmem:[%s14867_s25 + $0x90] sm:$0xff] }
 0x659   :  { %v4856_v2 = vadd.f32 %v8500_v46, %v4786_v50  ;;  %v10543_v50 = vpack.c.bf16 %v4401_v9, %v4391_v10  ;;  %v6274_v10 = vld [vmem:[%s14868_s29 + $0xb8] sm:$0xff]  ;;  %v6325_v9 = vld [vmem:[%s14868_s29 + $0x250] sm:$0xff] }
 0x65b   :  { %v4859_v5 = vmul.f32 0.125, %v4856_v2  ;;  %v4415_v2 = vld [vmem:[%s14867_s25 + $0xe8] sm:$0xf] }
 0x666   :  { %v8603_v44 = vpop.f32.mrb[26].mxu1 }
 0x667   :  { %v8604_v6 = vpop.f32.mrb[27].mxu1 }
 0x668   :  { %v8605_v35 = vadd.f32 %v8604_v6, %v8603_v44  ;;  %v4414_v44 = vld [vmem:[%s14867_s25 + $0xe0] sm:$0xf]  ;;  %v6301_v6 = vld [vmem:[%s14868_s29 + $0x190] sm:$0xff] }
 0x675   :  { %v8568_v1 = vpop.f32.mrb[24].mxu0 }
 0x676   :  { %v8569_v30 = vpop.f32.mrb[25].mxu0 }
 0x677   :  { %v8570_v29 = vadd.f32 %v8569_v30, %v8568_v1  ;;  %v6253_v1 = vld [vmem:[%s14868_s29 + $0x10] sm:$0xff]  ;;  %v6256_v30 = vld [vmem:[%s14868_s29 + $0x28] sm:$0xff] }
 0x679   :  { %v5088_v57 = vadd.f32 %v8570_v29, %v8535_v22  ;;  %v4394_v22 = vld [vmem:[%s14867_s25 + $0x40] sm:$0xff] }
 0x67a   :  { %v10553_v46 = vpack.c.bf16 %v4404_v41, %v4394_v22  ;;  %v6307_v29 = vld [vmem:[%s14868_s29 + $0x1c0] sm:$0xff]  ;;  %v6273_v22 = vld [vmem:[%s14868_s29 + $0xb0] sm:$0xff] }
 0x67b   :  { %v5158_v33 = vadd.f32 %v8605_v35, %v5088_v57  ;;  %v6304_v35 = vld [vmem:[%s14868_s29 + $0x1a8] sm:$0xff]  ;;  %v6310_v57 = vld [vmem:[%s14868_s29 + $0x1d8] sm:$0xff]  ;;  %v6331_v41 = vld [vmem:[%s14868_s29 + $0x280] sm:$0xff] }
 0x686   :  { %v8673_v47 = vpop.f32.mrb[28].mxu1 }
 0x687   :  { %v8674_v16 = vpop.f32.mrb[29].mxu1 }
 0x688   :  { %v8675_v40 = vadd.f32 %v8674_v16, %v8673_v47  ;;  %v10897_v47 = vpack.c.bf16 %v6256_v30, %v6253_v1  ;;  %v10899_v16 = vpack.c.bf16 %v6310_v57, %v6307_v29  ;;  %v6276_v1 = vld [vmem:[%s14868_s29 + $0xc8] sm:$0xff]  ;;  %v6279_v30 = vld [vmem:[%s14868_s29 + $0xe0] sm:$0xff] }
 0x689   :  { %v10591_v57 = vpack.c.bf16 %v6279_v30, %v6276_v1  ;;  %v6330_v1 = vld [vmem:[%s14868_s29 + $0x278] sm:$0xff]  ;;  %v6333_v30 = vld [vmem:[%s14868_s29 + $0x290] sm:$0xff] }
 0x695   :  { %v8638_v62 = vpop.f32.mrb[26].mxu0 }
 0x696   :  { %v8639_v11 = vpop.f32.mrb[27].mxu0 }
 0x697   :  { %v8640_v26 = vadd.f32 %v8639_v11, %v8638_v62  ;;  %v6262_v62 = vld [vmem:[%s14868_s29 + $0x58] sm:$0xff]  ;;  %v6316_v11 = vld [vmem:[%s14868_s29 + $0x208] sm:$0xff] }
 0x699   :  { %v5228_v32 = vadd.f32 %v8640_v26, %v5158_v33  ;;  %v10895_v33 = vpack.c.bf16 %v6304_v35, %v6301_v6  ;;  %v6252_v26 = vld [vmem:[%s14868_s29 + $0x8] sm:$0xff] }
 0x69a   :  { %v6272_v6 = vld [vmem:[%s14868_s29 + $0xa8] sm:$0xff] }
 0x69b   :  { %v5298_v54 = vadd.f32 %v8675_v40, %v5228_v32  ;;  %v6259_v40 = vld [vmem:[%s14868_s29 + $0x40] sm:$0xff] }
 0x69c   :  { %v10901_v32 = vpack.c.bf16 %v6262_v62, %v6259_v40  ;;  %v6285_v40 = vld [vmem:[%s14868_s29 + $0x110] sm:$0xff] }
 0x69d   :  { %v5301_v63 = vmul.f32 0.125, %v5298_v54  ;;  %v6255_v54 = vld [vmem:[%s14868_s29 + $0x20] sm:$0xff] }
 0x69f   :  { %v5302_v24 = vmax.f32 %v4859_v5, %v5301_v63 }
 0x6a1   :  { %v5303_v0 = vsub.f32 %v4859_v5, %v5302_v24  ;;  %v5306_v56 = vsub.f32 %v5301_v63, %v5302_v24  ;;  %v6251_v5 = vld [vmem:[%s14868_s29] sm:$0xff]  ;;  %v6254_v63 = vld [vmem:[%s14868_s29 + $0x18] sm:$0xff] }
 0x6a3   :  { %v5304_v52 = vmul.f32 1.442695, %v5303_v0  ;;  %v5307_v60 = vmul.f32 1.442695, %v5306_v56  ;;  %v6258_v0 = vld [vmem:[%s14868_s29 + $0x38] sm:$0xff]  ;;  %v6265_v56 = vld [vmem:[%s14868_s29 + $0x70] sm:$0xff] }
 0x6a5   :  { %11352 = vpow2.f32 %v5304_v52  ;;  %v6268_v52 = vld [vmem:[%s14868_s29 + $0x88] sm:$0xff] }
 0x6a6   :  { %11354 = vpow2.f32 %v5307_v60  ;;  %v6261_v60 = vld [vmem:[%s14868_s29 + $0x50] sm:$0xff] }
 0x6af   :  { %v11353_v28 = vpop.eup %11352 }
 0x6b0   :  { %v11355_v4 = vpop.eup %11354 }
 0x6b1   :  { %v5309_v42 = vadd.f32 %v11355_v4, %v11353_v28 }
 0x6b3   :  { %11356 = vrcp.f32 %v5309_v42  ;;  %v10577_v42 = vpack.c.bf16 %v6254_v63, %v6251_v5 }
 0x6bd   :  { %v11357_v37 = vpop.eup %11356 }
 0x6be   :  { %v5311_v8 = vmul.f32 %v11357_v37, %v11353_v28  ;;  %v13754_v14 = vmul.f32 %v11357_v37, %v11355_v4  ;;  %v6319_v28 = vld [vmem:[%s14868_s29 + $0x220] sm:$0xff]  ;;  %v6322_v4 = vld [vmem:[%s14868_s29 + $0x238] sm:$0xff]  ;;  %v10579_v37 = vpack.c.bf16 %v6261_v60, %v6258_v0 }
 0x6bf   :  { %v6290_v0 = vld [vmem:[%s14868_s29 + $0x138] sm:$0xff] }
 0x6c0   :  { %8286 = vmatmul.mubr.msk.f32.vlgmr.msra.gmra.mrb[28].mxu0 %vm5312_vm9, %v5311_v8  ;;  %8295 = vmatmul.mubr.msk.f32.vlgmr.msra.gmra.mrb[30].mxu1 %vm5312_vm9, %v5311_v8 }
 0x6c1   :  { %10542 = vmatpush1.bf16.msra.mxu0 %v13752_v13  ;;  %10558 = vmatpush1.bf16.msra.mxu1 %v13716_v49  ;;  %v4411_v49 = vld [vmem:[%s14867_s25 + $0xc8] sm:$0xf] }
 0x6c2   :  { %8287 = vmatprep.subr.msk.mxu0 %vm5316_vm8, %v13757_v58  ;;  %8299 = vmatprep.subr.msk.mxu1 %vm5316_vm8, %v13721_v31  ;;  %v4395_v31 = vld [vmem:[%s14867_s25 + $0x48] sm:$0xff] }
 0x6c3   :  { %5482 = vmatprep.mubr.f32.mxu0 %v14787_v17  ;;  %5860 = vmatprep.mubr.f32.mxu1 %v14787_v17  ;;  %v10551_v39 = vpack.c.bf16 %v4405_v12, %v4395_v31  ;;  %v10911_v31 = vpack.c.bf16 %v6328_v34, %v6325_v9  ;;  %v6277_v12 = vld [vmem:[%s14868_s29 + $0xd0] sm:$0xff]  ;;  %v6308_v34 = vld [vmem:[%s14868_s29 + $0x1c8] sm:$0xff] }
 0x6c4   :  { %v6305_v9 = vld [vmem:[%s14868_s29 + $0x1b0] sm:$0xff] }
 0x6c5   :  { %8288 = vmatpush1.msk.msra.mxu0 %vm5316_vm8, %v13772_v38  ;;  %8300 = vmatpush1.msk.msra.mxu1 %vm5316_vm8, %v13736_v19  ;;  %v4410_v19 = vld [vmem:[%s14867_s25 + $0xc0] sm:$0xf] }
 0x6c6   :  { %8289 = vmatmul.mubr.msk.f32.vlgmr.msra.gmra.mrb[30].mxu0 %vm5312_vm9, %v5311_v8  ;;  %10544 = vmatprep.subr.bf16.mxu0 %v10543_v50 }
 0x6c7   :  { %8301 = vmatmul.mubr.msk.f32.vlgmr.msra.gmra.mrb[32].mxu1 %vm5312_vm9, %v13754_v14  ;;  %10564 = vmatprep.subr.bf16.mxu1 %v10543_v50  ;;  %v6266_v50 = vld [vmem:[%s14868_s29 + $0x78] sm:$0xff] }
 0x6c8   :  { %10546 = vmatpush1.bf16.msra.mxu0 %v10545_v23  ;;  %10566 = vmatpush1.bf16.msra.mxu1 %v10545_v23 }
 0x6c9   :  { %8290 = vmatprep.subr.msk.mxu0 %vm5316_vm8, %v4411_v49  ;;  %8305 = vmatprep.subr.msk.mxu1 %vm5316_vm8, %v4411_v49  ;;  %v6270_v49 = vld [vmem:[%s14868_s29 + $0x98] sm:$0xff] }
 0x6ca   :  { %5553 = vmatprep.mubr.f32.mxu0 %v14787_v17  ;;  %6002 = vmatprep.mubr.f32.mxu1 %v14787_v17 }
 0x6cc   :  { %8291 = vmatpush1.msk.msra.mxu0 %vm5316_vm8, %v4410_v19  ;;  %8306 = vmatpush1.msk.msra.mxu1 %vm5316_vm8, %v4410_v19  ;;  %v6334_v19 = vld [vmem:[%s14868_s29 + $0x298] sm:$0xff] }
 0x6cd   :  { %8292 = vmatmul.mubr.msk.f32.vlgmr.msra.gmra.mrb[32].mxu0 %vm5312_vm9, %v5311_v8  ;;  %10552 = vmatprep.subr.bf16.mxu0 %v10551_v39  ;;  %v10915_v35 = vpack.c.bf16 %v6334_v19, %v6331_v41  ;;  %v6317_v41 = vld [vmem:[%s14868_s29 + $0x210] sm:$0xff]  ;;  %v6320_v19 = vld [vmem:[%s14868_s29 + $0x228] sm:$0xff] }
 0x6ce   :  { %8307 = vmatmul.mubr.msk.f32.vlgmr.msra.gmra.mrb[34].mxu1 %vm5312_vm9, %v13754_v14  ;;  %10572 = vmatprep.subr.bf16.mxu1 %v10551_v39 }
 0x6cf   :  { %10554 = vmatpush1.bf16.msra.mxu0 %v10553_v46  ;;  %10574 = vmatpush1.bf16.msra.mxu1 %v10553_v46 }
 0x6d0   :  { %8296 = vmatprep.subr.msk.mxu0 %vm5316_vm8, %v4415_v2  ;;  %8311 = vmatprep.subr.msk.mxu1 %vm5316_vm8, %v4415_v2  ;;  %v10587_v2 = vpack.c.bf16 %v6273_v22, %v6270_v49  ;;  %v6314_v49 = vld [vmem:[%s14868_s29 + $0x1f8] sm:$0xff] }
 0x6d1   :  { %5695 = vmatprep.mubr.f32.mxu0 %v14787_v17  ;;  %6144 = vmatprep.mubr.f32.mxu1 %v14787_v17 }
 0x6d3   :  { %8297 = vmatpush1.msk.msra.mxu0 %vm5316_vm8, %v4414_v44  ;;  %8312 = vmatpush1.msk.msra.mxu1 %vm5316_vm8, %v4414_v44  ;;  %v6269_v44 = vld [vmem:[%s14868_s29 + $0x90] sm:$0xff] }
 0x6d4   :  { %8298 = vmatmul.mubr.msk.f32.vlgmr.msra.gmra.mrb[34].mxu0 %vm5312_vm9, %v5311_v8  ;;  %10560 = vmatprep.subr.bf16.mxu0 %v13738_v55  ;;  %v6313_v55 = vld [vmem:[%s14868_s29 + $0x1f0] sm:$0xff]  ;;  %v10907_v8 = vpack.c.bf16 %v6322_v4, %v6319_v28  ;;  %v10589_v29 = vpack.c.bf16 %v6272_v6, %v6269_v44  ;;  %v6323_v6 = vld [vmem:[%s14868_s29 + $0x240] sm:$0xff] }
 0x6d5   :  { %8313 = vmatmul.mubr.msk.f32.vlgmr.msra.gmra.mrb[36].mxu1 %vm5312_vm9, %v13754_v14  ;;  %10562 = vmatpush1.bf16.msra.mxu0 %v13752_v13  ;;  %v10903_v24 = vpack.c.bf16 %v6316_v11, %v6313_v55  ;;  %v6264_v13 = vld [vmem:[%s14868_s29 + $0x68] sm:$0xff]  ;;  %v6281_v11 = vld [vmem:[%s14868_s29 + $0xf0] sm:$0xff] }
 0x6d6   :  { %8302 = vmatprep.subr.msk.mxu0 %vm5316_vm8, %v13757_v58  ;;  %5931 = vmatprep.mubr.f32.mxu0 %v14787_v17  ;;  %v6271_v58 = vld [vmem:[%s14868_s29 + $0xa0] sm:$0xff]  ;;  %v6293_v4 = vld [vmem:[%s14868_s29 + $0x150] sm:$0xff] }
 0x6d7   :  { %10896 = vmatprep.subr.bf16.mxu1 %v10895_v33  ;;  %v10909_v23 = vpack.c.bf16 %v6274_v10, %v6271_v58  ;;  %v6275_v33 = vld [vmem:[%s14868_s29 + $0xc0] sm:$0xff]  ;;  %v6309_v58 = vld [vmem:[%s14868_s29 + $0x1d0] sm:$0xff] }
 0x6d8   :  { %10898 = vmatpush3.bf16.msra.mxu1 %v10897_v47  ;;  %v6278_v47 = vld [vmem:[%s14868_s29 + $0xd8] sm:$0xff] }
 0x6d9   :  { %8303 = vmatpush1.msk.msra.mxu0 %vm5316_vm8, %v13772_v38  ;;  %10900 = vmatprep.subr.bf16.mxu1 %v10899_v16  ;;  %v6263_v38 = vld [vmem:[%s14868_s29 + $0x60] sm:$0xff]  ;;  %v6282_v16 = vld [vmem:[%s14868_s29 + $0xf8] sm:$0xff]  ;;  %v10593_v62 = vpack.c.bf16 %v6278_v47, %v6275_v33  ;;  %v6329_v33 = vld [vmem:[%s14868_s29 + $0x270] sm:$0xff] }
 0x6da   :  { %8304 = vmatmul.mubr.msk.f32.vlgmr.msra.gmra.mrb[36].mxu0 %vm5312_vm9, %v13754_v14  ;;  %10568 = vmatprep.subr.bf16.mxu0 %v13714_v36  ;;  %v10575_v36 = vpack.c.bf16 %v6255_v54, %v6252_v26  ;;  %v10585_v39 = vpack.c.bf16 %v6266_v50, %v6263_v38  ;;  %v10595_v55 = vpack.c.bf16 %v6285_v40, %v6282_v16  ;;  %v6284_v26 = vld [vmem:[%s14868_s29 + $0x108] sm:$0xff]  ;;  %v6291_v54 = vld [vmem:[%s14868_s29 + $0x140] sm:$0xff] }
 0x6db   :  { %10570 = vmatpush1.bf16.msra.mxu0 %v13723_v53  ;;  %6073 = vmatprep.mubr.f32.mxu0 %v14787_v17  ;;  %v10905_v53 = vpack.c.bf16 %v6268_v52, %v6265_v56  ;;  %v10597_v5 = vpack.c.bf16 %v6284_v26, %v6281_v11  ;;  %v6294_v56 = vld [vmem:[%s14868_s29 + $0x158] sm:$0xff]  ;;  %v6297_v52 = vld [vmem:[%s14868_s29 + $0x170] sm:$0xff]  ;;  %v6315_v38 = vld [vmem:[%s14868_s29 + $0x200] sm:$0xff]  ;;  %v10613_v50 = vpack.c.bf16 %v6308_v34, %v6305_v9 }
 0x6dc   :  { %8308 = vmatprep.subr.msk.mxu0 %vm5316_vm8, %v13726_v3  ;;  %10902 = vmatpush3.bf16.msra.mxu1 %v10901_v32  ;;  %v6267_v3 = vld [vmem:[%s14868_s29 + $0x80] sm:$0xff]  ;;  %v6288_v32 = vld [vmem:[%s14868_s29 + $0x128] sm:$0xff]  ;;  %v10603_v28 = vpack.c.bf16 %v6297_v52, %v6294_v56  ;;  %v6289_v56 = vld [vmem:[%s14868_s29 + $0x130] sm:$0xff] }
 0x6dd   :  { %10904 = vmatprep.subr.bf16.mxu1 %v10903_v24  ;;  %v10599_v63 = vpack.c.bf16 %v6291_v54, %v6288_v32  ;;  %v6287_v24 = vld [vmem:[%s14868_s29 + $0x120] sm:$0xff]  ;;  %v6332_v47 = vld [vmem:[%s14868_s29 + $0x288] sm:$0xff]  ;;  %v6337_v54 = vld [vmem:[%s14868_s29 + $0x2b0] sm:$0xff] }
 0x6de   :  { %v10601_v60 = vpack.c.bf16 %v6290_v0, %v6287_v24  ;;  %v6283_v16 = vld [vmem:[%s14868_s29 + $0x100] sm:$0xff]  ;;  %v10629_v40 = vpack.c.bf16 %v6332_v47, %v6329_v33  ;;  %v6338_v0 = vld [vmem:[%s14868_s29 + $0x2b8] sm:$0xff]  ;;  %v6292_v52 = vld [vmem:[%s14868_s29 + $0x148] sm:$0xff] }
 0x6df   :  { %8309 = vmatpush1.msk.msra.mxu0 %vm5316_vm8, %v13743_v59  ;;  %v10583_v59 = vpack.c.bf16 %v6267_v3, %v6264_v13  ;;  %v6302_v13 = vld [vmem:[%s14868_s29 + $0x198] sm:$0xff]  ;;  %v6339_v11 = vld [vmem:[%s14868_s29 + $0x2c0] sm:$0xff]  ;;  %v6348_v9 = vld [vmem:[%s14868_s29 + $0x308] sm:$0xff] }
 0x6e0   :  { %8310 = vmatmul.mubr.msk.f32.vlgmr.msra.gmra.mrb[38].mxu0 %vm5312_vm9, %v13754_v14  ;;  %10576 = vmatprep.subr.bf16.mxu0 %v10575_v36  ;;  %v6280_v14 = vld [vmem:[%s14868_s29 + $0xe8] sm:$0xff]  ;;  %v6351_v34 = vld [vmem:[%s14868_s29 + $0x320] sm:$0xff] }
 0x6e1   :  { %10578 = vmatpush1.bf16.msra.mxu0 %v10577_v42  ;;  %10906 = vmatpush3.bf16.msra.mxu1 %v10905_v53  ;;  %v10913_v46 = vpack.c.bf16 %v6280_v14, %v6277_v12  ;;  %v6296_v36 = vld [vmem:[%s14868_s29 + $0x168] sm:$0xff]  ;;  %v6321_v12 = vld [vmem:[%s14868_s29 + $0x230] sm:$0xff] }
 0x6e2   :  { %10580 = vmatprep.subr.bf16.mxu0 %v10579_v37  ;;  %10908 = vmatprep.subr.bf16.mxu1 %v10907_v8  ;;  %v6300_v42 = vld [vmem:[%s14868_s29 + $0x188] sm:$0xff]  ;;  %v10605_v7 = vpack.c.bf16 %v6296_v36, %v6293_v4  ;;  %v6299_v37 = vld [vmem:[%s14868_s29 + $0x180] sm:$0xff]  ;;  %v6306_v8 = vld [vmem:[%s14868_s29 + $0x1b8] sm:$0xff] }
 0x6e3   :  { %v10607_v53 = vpack.c.bf16 %v6303_v45, %v6300_v42  ;;  %v10609_v10 = vpack.c.bf16 %v6302_v13, %v6299_v37  ;;  %v10611_v3 = vpack.c.bf16 %v6309_v58, %v6306_v8  ;;  %v6342_v4 = vld [vmem:[%s14868_s29 + $0x2d8] sm:$0xff]  ;;  %v6345_v36 = vld [vmem:[%s14868_s29 + $0x2f0] sm:$0xff]  ;;  %v6343_v42 = vld [vmem:[%s14868_s29 + $0x2e0] sm:$0xff] }
 0x6e4   :  { %v10635_v45 = vpack.c.bf16 %v6345_v36, %v6342_v4  ;;  %v6344_v37 = vld [vmem:[%s14868_s29 + $0x2e8] sm:$0xff]  ;;  %v6295_v58 = vld [vmem:[%s14868_s29 + $0x160] sm:$0xff] }
 0x6e5   :  { %10582 = vmatpush1.bf16.msra.mxu0 %v10581_v18  ;;  %10910 = vmatpush3.bf16.msra.mxu1 %v10909_v23  ;;  %v6312_v18 = vld [vmem:[%s14868_s29 + $0x1e8] sm:$0xff] }
 0x6e6   :  { %10584 = vmatprep.subr.bf16.mxu0 %v10583_v59  ;;  %10912 = vmatprep.subr.bf16.mxu1 %v10911_v31  ;;  %v10615_v23 = vpack.c.bf16 %v6315_v38, %v6312_v18  ;;  %v6311_v59 = vld [vmem:[%s14868_s29 + $0x1e0] sm:$0xff]  ;;  %v6318_v31 = vld [vmem:[%s14868_s29 + $0x218] sm:$0xff]  ;;  %v6397_v18 = vld [vmem:[%s14868_s29 + $0x490] sm:$0xff]  ;;  %v10639_v38 = vpack.c.bf16 %v6351_v34, %v6348_v9 }
 0x6e7   :  { %v10617_v14 = vpack.c.bf16 %v6314_v49, %v6311_v59  ;;  %v10619_v22 = vpack.c.bf16 %v6321_v12, %v6318_v31  ;;  %v3462_v59 = vld [vmem:[%s14869_s3] sm:$0xff]  ;;  %v14870_v49 = vld [vmem:[#allocation31_spill] sm:$0xff] }
 0x6e8   :  { %v3469_v31 = vrot.slane %v3462_v59, %v14870_v49  ;;  %v14871_v12 = vld [vmem:[#allocation38_spill] sm:$0xff]  ;;  %v14877_v33 = vld [vmem:[#allocation39_spill] sm:$0xff] }
 0x6e9   :  { %10586 = vmatpush1.bf16.msra.mxu0 %v10585_v39  ;;  %10914 = vmatpush3.bf16.msra.mxu1 %v10913_v46  ;;  %v6324_v39 = vld [vmem:[%s14868_s29 + $0x248] sm:$0xff]  ;;  %v6327_v46 = vld [vmem:[%s14868_s29 + $0x260] sm:$0xff]  ;;  %v3481_v47 = vrot.slane %v3462_v59, %v14877_v33 }
 0x6ea   :  { %10588 = vmatprep.subr.bf16.mxu0 %v10587_v2  ;;  %10916 = vmatprep.subr.bf16.mxu1 %v10915_v35  ;;  %v10621_v2 = vpack.c.bf16 %v6320_v19, %v6317_v41  ;;  %v10623_v44 = vpack.c.bf16 %v6327_v46, %v6324_v39  ;;  %v6326_v35 = vld [vmem:[%s14868_s29 + $0x258] sm:$0xff]  ;;  %v14874_v46 = vld [vmem:[#allocation66_spill] sm:$0xff] }
 0x6eb   :  { %v14873_v19 = vld [vmem:[#allocation32_spill] sm:$0xff] }
 0x6ec   :  { %v3473_v39 = vrot.slane %v3462_v59, %v14873_v19 }
 0x6ed   :  { %10590 = vmatpush1.bf16.msra.mxu0 %v10589_v29  ;;  %v10625_v29 = vpack.c.bf16 %v6326_v35, %v6323_v6 }
 0x6ee   :  { %10592 = vmatprep.subr.bf16.mxu0 %v10591_v57  ;;  %v10627_v57 = vpack.c.bf16 %v6333_v30, %v6330_v1 }
 0x6f1   :  { %10594 = vmatpush1.bf16.msra.mxu0 %v10593_v62  ;;  %v6286_v62 = vld [vmem:[%s14868_s29 + $0x118] sm:$0xff] }
 0x6f2   :  { %10596 = vmatprep.subr.bf16.mxu0 %v10595_v55  ;;  %v6336_v55 = vld [vmem:[%s14868_s29 + $0x2a8] sm:$0xff]  ;;  %v10917_v26 = vpack.c.bf16 %v6286_v62, %v6283_v16 }
 0x6f3   :  { %v10631_v32 = vpack.c.bf16 %v6339_v11, %v6336_v55  ;;  %v11256_v11 = vadd.f32 %v13622_v15, %v3481_v47 }
 0x6f4   :  { %10918 = vmatpush3.bf16.msra.mxu1 %v10917_v26 }
 0x6f5   :  { %10598 = vmatpush1.bf16.msra.mxu0 %v10597_v5  ;;  %v6340_v5 = vld [vmem:[%s14868_s29 + $0x2c8] sm:$0xff] }
 0x6f6   :  { %10600 = vmatprep.subr.bf16.mxu0 %v10599_v63  ;;  %v6335_v63 = vld [vmem:[%s14868_s29 + $0x2a0] sm:$0xff]  ;;  %v10919_v24 = vpack.c.bf16 %v6340_v5, %v6337_v54 }
 0x6f8   :  { %10920 = vmatprep.subr.bf16.mxu1 %v10919_v24 }
 0x6f9   :  { %10602 = vmatpush1.bf16.msra.mxu0 %v10601_v60  ;;  %v10633_v60 = vpack.c.bf16 %v6338_v0, %v6335_v63 }
 0x6fa   :  { %10604 = vmatprep.subr.bf16.mxu0 %v10603_v28  ;;  %v10921_v28 = vpack.c.bf16 %v6292_v52, %v6289_v56  ;;  %v5705_v56 = vsel %vm4418_vm6, %v11256_v11, 0.0 }
 0x6fc   :  { %10922 = vmatpush3.bf16.msra.mxu1 %v10921_v28 }
 0x6fd   :  { %10606 = vmatpush1.bf16.msra.mxu0 %v10605_v7  ;;  %v6346_v7 = vld [vmem:[%s14868_s29 + $0x2f8] sm:$0xff] }
 0x6fe   :  { %10608 = vmatprep.subr.bf16.mxu0 %v10607_v53  ;;  %v6341_v53 = vld [vmem:[%s14868_s29 + $0x2d0] sm:$0xff]  ;;  %v10923_v13 = vpack.c.bf16 %v6346_v7, %v6343_v42 }
 0x6ff   :  { %v10637_v8 = vpack.c.bf16 %v6344_v37, %v6341_v53  ;;  %v14879_v53 = vld [vmem:[#allocation41_spill] sm:$0xff] }
 0x700   :  { %10924 = vmatprep.subr.bf16.mxu1 %v10923_v13  ;;  %v3489_v37 = vrot.slane %v3462_v59, %v14879_v53 }
 0x701   :  { %10610 = vmatpush1.bf16.msra.mxu0 %v10609_v10  ;;  %v6298_v10 = vld [vmem:[%s14868_s29 + $0x178] sm:$0xff] }
 0x702   :  { %10612 = vmatprep.subr.bf16.mxu0 %v10611_v3  ;;  %v10925_v3 = vpack.c.bf16 %v6298_v10, %v6295_v58  ;;  %v6154_v58 = vsel %vm4860_vm7, %v11256_v11, 0.0 }
 0x704   :  { %10926 = vmatpush3.bf16.msra.mxu1 %v10925_v3 }
 0x705   :  { %10614 = vmatpush1.bf16.msra.mxu0 %v10613_v50  ;;  %v6400_v50 = vld [vmem:[%s14868_s29 + $0x4a8] sm:$0xff] }
 0x706   :  { %10616 = vmatprep.subr.bf16.mxu0 %v10615_v23  ;;  %v10927_v23 = vpack.c.bf16 %v6400_v50, %v6397_v18 }
 0x708   :  { %10928 = vmatprep.subr.bf16.mxu1 %v10927_v23 }
 0x709   :  { %10618 = vmatpush1.bf16.msra.mxu0 %v10617_v14  ;;  %v11253_v14 = vadd.f32 %v14871_v12, %v3469_v31  ;;  %v6182_v31 = vsel %vm201_vm0, %v6154_v58, 0.0 }
 0x70a   :  { %10620 = vmatprep.subr.bf16.mxu0 %v10619_v22  ;;  %v14872_v22 = vld [vmem:[#allocation33_spill] sm:$0xff] }
 0x70b   :  { %v3477_v41 = vrot.slane %v3462_v59, %v14872_v22  ;;  %v5702_v1 = vsel %vm4418_vm6, %v11253_v14, 0.0  ;;  %v11258_v22 = vadd.f32 %v13700_v20, %v3489_v37 }
 0x70d   :  { %10622 = vmatpush1.bf16.msra.mxu0 %v10621_v2  ;;  %v3493_v2 = vrot.slane %v3462_v59, %v14874_v46  ;;  %v11255_v30 = vadd.f32 %v13618_v43, %v3477_v41  ;;  %v5707_v20 = vsel %vm4418_vm6, %v11258_v22, 0.0 }
 0x70e   :  { %10624 = vmatprep.subr.bf16.mxu0 %v10623_v44  ;;  %v14875_v44 = vld [vmem:[#allocation67_spill] sm:$0xff] }
 0x70f   :  { %v3497_v6 = vrot.slane %v3462_v59, %v14875_v44  ;;  %v13942_v16 = vadd.f32 %v13698_v48, %v3493_v2  ;;  %v5704_v43 = vsel %vm4418_vm6, %v11255_v30, 0.0  ;;  %v6153_v48 = vsel %vm4860_vm7, %v11255_v30, 0.0 }
 0x710   :  { %v5726_v5 = vsel %vm201_vm0, %v5704_v43, 0.0  ;;  %v6175_v24 = vsel %vm201_vm0, %v6153_v48, 0.0  ;;  %v6183_v44 = vrot.slane %v6182_v31, 4  ;;  %v6156_v43 = vsel %vm4860_vm7, %v11258_v22, 0.0 }
 0x711   :  { %10626 = vmatpush1.bf16.msra.mxu0 %v10625_v29  ;;  %v11254_v29 = vadd.f32 %v13620_v21, %v3473_v39  ;;  %v13946_v62 = vadd.f32 %v13702_v25, %v3497_v6  ;;  %v5708_v25 = vsel %vm4418_vm6, %v13942_v16, 0.0  ;;  %v5727_v28 = vrot.slane %v5726_v5, 4 }
 0x712   :  { %10628 = vmatprep.subr.bf16.mxu0 %v10627_v57  ;;  %v6151_v57 = vsel %vm4860_vm7, %v11253_v14, 0.0  ;;  %v5754_v52 = vsel %vm201_vm0, %v5708_v25, 0.0  ;;  %v6176_v3 = vrot.slane %v6175_v24, 4  ;;  %v13997_v48 = vadd.f32 %v6183_v44, %v6182_v31 }
 0x713   :  { %v6161_v55 = vsel %vm201_vm0, %v6151_v57, 0.0  ;;  %v5703_v21 = vsel %vm4418_vm6, %v11254_v29, 0.0  ;;  %v5709_v15 = vsel %vm4418_vm6, %v13946_v62, 0.0  ;;  %v5755_v10 = vrot.slane %v5754_v52, 4 }
 0x714   :  { %v6162_v54 = vrot.slane %v6161_v55, 4  ;;  %v5719_v63 = vsel %vm201_vm0, %v5703_v21, 0.0  ;;  %v5761_v36 = vsel %vm201_vm0, %v5709_v15, 0.0  ;;  %v5728_v34 = vadd.f32 %v5727_v28, %v5726_v5 }
 0x715   :  { %10630 = vmatpush1.bf16.msra.mxu0 %v10629_v40  ;;  %v5712_v40 = vsel %vm201_vm0, %v5702_v1, 0.0  ;;  %v5720_v4 = vrot.slane %v5719_v63, 4  ;;  %v5762_v9 = vrot.slane %v5761_v36, 4  ;;  %v13981_v39 = vadd.f32 %v6176_v3, %v6175_v24 }
 0x716   :  { %10632 = vmatprep.subr.bf16.mxu0 %v10631_v32  ;;  %v5713_v26 = vrot.slane %v5712_v40, 4  ;;  %v6152_v32 = vsel %vm4860_vm7, %v11254_v29, 0.0  ;;  %v6163_v42 = vadd.f32 %v6162_v54, %v6161_v55  ;;  %v5729_v30 = vrot.slane %v5728_v34, 2 }
 0x717   :  { %v6168_v0 = vsel %vm201_vm0, %v6152_v32, 0.0  ;;  %v5721_v18 = vadd.f32 %v5720_v4, %v5719_v63  ;;  %v5763_v46 = vadd.f32 %v5762_v9, %v5761_v36  ;;  %v5747_v5 = vsel %vm201_vm0, %v5707_v20, 0.0 }
 0x718   :  { %v6169_v13 = vrot.slane %v6168_v0, 4  ;;  %v6164_v41 = vrot.slane %v6163_v42, 2  ;;  %v6157_v58 = vsel %vm4860_vm7, %v13942_v16, 0.0 }
 0x719   :  { %10634 = vmatpush1.bf16.msra.mxu0 %v10633_v60  ;;  %v5714_v60 = vadd.f32 %v5713_v26, %v5712_v40  ;;  %v5722_v1 = vrot.slane %v5721_v18, 2  ;;  %v5764_v11 = vrot.slane %v5763_v46, 2  ;;  %v6178_v26 = vrot.slane %v13981_v39, 2 }
 0x71a   :  { %10636 = vmatprep.subr.bf16.mxu0 %v10635_v45  ;;  %v14878_v45 = vld [vmem:[#allocation40_spill] sm:$0xff]  ;;  %v6170_v14 = vadd.f32 %v6169_v13, %v6168_v0  ;;  %v13991_v40 = vadd.f32 %v6164_v41, %v6163_v42  ;;  %v6196_v0 = vsel %vm201_vm0, %v6156_v43, 0.0  ;;  %v5748_v42 = vrot.slane %v5747_v5, 4 }
 0x71b   :  { %v3485_v7 = vrot.slane %v3462_v59, %v14878_v45  ;;  %v5715_v50 = vrot.slane %v5714_v60, 2  ;;  %v5756_v59 = vadd.f32 %v5755_v10, %v5754_v52  ;;  %v5723_v54 = vadd.f32 %v5722_v1, %v5721_v18 }
 0x71c   :  { %v6171_v55 = vrot.slane %v6170_v14, 2  ;;  %v6166_v52 = vrot.slane %v13991_v40, 1  ;;  %v5765_v36 = vadd.f32 %v5764_v11, %v5763_v46  ;;  %v6197_v53 = vrot.slane %v6196_v0, 4 }
 0x71d   :  { %10638 = vmatpush1.bf16.msra.mxu0 %v10637_v8  ;;  %v5733_v8 = vsel %vm201_vm0, %v5705_v56, 0.0  ;;  %v11257_v12 = vadd.f32 %v13696_v27, %v3485_v7  ;;  %v5716_v6 = vadd.f32 %v5715_v50, %v5714_v60  ;;  %v5757_v47 = vrot.slane %v5756_v59, 2 }
 0x71e   :  { %10640 = vmatprep.subr.bf16.mxu0 %v10639_v38  ;;  %v3463_v38 = vld [vmem:[%s14869_s3 + $0x8] sm:$0x3]  ;;  %v5734_v23 = vrot.slane %v5733_v8, 4  ;;  %v5724_v7 = vrot.slane %v5723_v54, 1  ;;  %v5766_v50 = vrot.slane %v5765_v36, 1  ;;  %v6203_v46 = vsel %vm201_vm0, %v6157_v58, 0.0 }
 0x71f   :  { %v3501_v2 = vrot.slane %v3463_v38, %v14870_v49  ;;  %v5706_v57 = vsel %vm4418_vm6, %v11257_v12, 0.0  ;;  %v6155_v27 = vsel %vm4860_vm7, %v11257_v12, 0.0  ;;  %v3505_v33 = vrot.slane %v3463_v38, %v14873_v19 }
 0x720   :  { %v5735_v29 = vadd.f32 %v5734_v23, %v5733_v8  ;;  %v5740_v32 = vsel %vm201_vm0, %v5706_v57, 0.0  ;;  %v6189_v25 = vsel %vm201_vm0, %v6155_v27, 0.0  ;;  %v5717_v15 = vrot.slane %v5716_v6, 1 }
 0x721   :  { %v11261_v21 = vadd.f32 %v13704_v51, %v3501_v2  ;;  %v11262_v63 = vadd.f32 %v13706_v61, %v3505_v33  ;;  %v5758_v56 = vadd.f32 %v5757_v47, %v5756_v59  ;;  %v5730_v51 = vadd.f32 %v5729_v30, %v5728_v34 }
 0x722   :  { %v5736_v24 = vrot.slane %v5735_v29, 2  ;;  %v5741_v60 = vrot.slane %v5740_v32, 4  ;;  %v6190_v28 = vrot.slane %v6189_v25, 4  ;;  %v6172_v61 = vadd.f32 %v6171_v55, %v6170_v14 }
 0x723   :  { %v5710_v4 = vsel %vm4418_vm6, %v11261_v21, 0.0  ;;  %v6159_v45 = vsel %vm4860_vm7, %v11261_v21, 0.0  ;;  %v5711_v37 = vsel %vm4418_vm6, %v11262_v63, 0.0  ;;  %v5718_v13 = vadd.f32 %v5717_v15, %v5716_v6 }
 0x724   :  { %v5737_v8 = vadd.f32 %v5736_v24, %v5735_v29  ;;  %v5768_v10 = vsel %vm201_vm0, %v5710_v4, 0.0  ;;  %v6160_v3 = vsel %vm4860_vm7, %v11262_v63, 0.0  ;;  %v5759_v9 = vrot.slane %v5758_v56, 1 }
 0x725   :  { %v5742_v34 = vadd.f32 %v5741_v60, %v5740_v32  ;;  %v6191_v18 = vadd.f32 %v6190_v28, %v6189_v25  ;;  %v6217_v38 = vsel %vm201_vm0, %v6159_v45, 0.0  ;;  %v5749_v23 = vadd.f32 %v5748_v42, %v5747_v5 }
 0x726   :  { %v5775_v31 = vsel %vm201_vm0, %v5711_v37, 0.0  ;;  %v5725_v12 = vadd.f32 %v5724_v7, %v5723_v54  ;;  %v5731_v14 = vrot.slane %v5730_v51, 1  ;;  %v6198_v59 = vadd.f32 %v6197_v53, %v6196_v0 }
 0x727   :  { %v5769_v22 = vrot.slane %v5768_v10, 4  ;;  %v6224_v16 = vsel %vm201_vm0, %v6160_v3, 0.0  ;;  %v5738_v41 = vrot.slane %v5737_v8, 1  ;;  %v6158_v2 = vsel %vm4860_vm7, %v13946_v62, 0.0 }
 0x728   :  { %v6218_v44 = vrot.slane %v6217_v38, 4  ;;  %v5760_v6 = vadd.f32 %v5759_v9, %v5758_v56  ;;  %v5776_v1 = vrot.slane %v5775_v31, 4  ;;  %v5767_v57 = vadd.f32 %v5766_v50, %v5765_v36  ;;  %v6352_v50 = vld [vmem:[%s14868_s29 + $0x328] sm:$0xff] }
 0x729   :  { %v5743_v27 = vrot.slane %v5742_v34, 2  ;;  %v6192_v33 = vrot.slane %v6191_v18, 2  ;;  %v6225_v20 = vrot.slane %v6224_v16, 4  ;;  %v5750_v11 = vrot.slane %v5749_v23, 2 }
 0x72a   :  { %v5770_v32 = vadd.f32 %v5769_v22, %v5768_v10  ;;  %v6199_v35 = vrot.slane %v6198_v59, 2  ;;  %v6204_v62 = vrot.slane %v6203_v46, 4  ;;  %v6210_v5 = vsel %vm201_vm0, %v6158_v2, 0.0  ;;  %v6350_v10 = vld [vmem:[%s14868_s29 + $0x318] sm:$0xff]  ;;  %v6403_v22 = vld [vmem:[%s14868_s29 + $0x4c0] sm:$0xff] }
 0x72b   :  { %v6219_v63 = vadd.f32 %v6218_v44, %v6217_v38  ;;  %v6173_v15 = vrot.slane %v6172_v61, 1  ;;  %v5777_v24 = vadd.f32 %v5776_v1, %v5775_v31  ;;  %v6167_v0 = vadd.f32 %v6166_v52, %v13991_v40  ;;  %v6349_v38 = vld [vmem:[%s14868_s29 + $0x310] sm:$0xff] }
 0x72c   :  { %v5744_v56 = vadd.f32 %v5743_v27, %v5742_v34  ;;  %v14033_v60 = vadd.f32 %v6178_v26, %v13981_v39  ;;  %v6226_v28 = vadd.f32 %v6225_v20, %v6224_v16  ;;  %v5732_v4 = vadd.f32 %v5731_v14, %v5730_v51  ;;  %v6347_v51 = vld [vmem:[%s14868_s29 + $0x300] sm:$0xff]  ;;  %v6406_v16 = vld [vmem:[%s14868_s29 + $0x4d8] sm:$0xff]  ;;  %v6356_v27 = vld [vmem:[%s14868_s29 + $0x348] sm:$0xff] }
 0x72d   :  { %v6193_v36 = vadd.f32 %v6192_v33, %v6191_v18  ;;  %v5751_v42 = vadd.f32 %v5750_v11, %v5749_v23  ;;  %v6211_v45 = vrot.slane %v6210_v5, 4  ;;  %v5739_v53 = vadd.f32 %v5738_v41, %v5737_v8  ;;  %v6354_v23 = vld [vmem:[%s14868_s29 + $0x338] sm:$0xff]  ;;  %v6355_v11 = vld [vmem:[%s14868_s29 + $0x340] sm:$0xff] }
 0x72e   :  { %v6200_v37 = vadd.f32 %v6199_v35, %v6198_v59  ;;  %v5771_v40 = vrot.slane %v5770_v32, 2  ;;  %v14035_v52 = vadd.f32 %v6204_v62, %v6203_v46  ;;  %v6174_v26 = vadd.f32 %v6173_v15, %v6172_v61  ;;  %v6357_v61 = vld [vmem:[%s14868_s29 + $0x350] sm:$0xff]  ;;  %v6358_v35 = vld [vmem:[%s14868_s29 + $0x358] sm:$0xff] }
 0x72f   :  { %v6220_v3 = vrot.slane %v6219_v63, 2  ;;  %v5745_v18 = vrot.slane %v5744_v56, 1  ;;  %v5778_v31 = vrot.slane %v5777_v24, 2  ;;  %v6194_v14 = vrot.slane %v6193_v36, 1 }
 0x730   :  { %v5752_v59 = vrot.slane %v5751_v42, 1  ;;  %v6227_v41 = vrot.slane %v6226_v28, 2  ;;  %v14049_v46 = vadd.f32 %v6211_v45, %v6210_v5  ;;  %v6201_v44 = vrot.slane %v6200_v37, 1  ;;  %v6360_v5 = vld [vmem:[%s14868_s29 + $0x368] sm:$0xff] }
 0x731   :  { %v6221_v33 = vadd.f32 %v6220_v3, %v6219_v63  ;;  %v5746_v20 = vadd.f32 %v5745_v18, %v5744_v56  ;;  %v5779_v62 = vadd.f32 %v5778_v31, %v5777_v24  ;;  %v6412_v45 = vld [vmem:[%s14868_s29 + $0x508] sm:$0xff]  ;;  %v6361_v18 = vld [vmem:[%s14868_s29 + $0x370] sm:$0xff] }
 0x733   :  { %v5780_v3 = vrot.slane %v5779_v62, 1 }
 0x793   :  { %v5413_v30 = vpop.f32.mrb[28].mxu0  ;;  %v5626_v29 = vpop.f32.mrb[30].mxu1 }
 0x794   :  { %v5782_v47 = vmul.f32 %v5718_v13, %v5413_v30  ;;  %v14024_v55 = vmul.f32 %v5760_v6, %v5626_v29  ;;  %v5415_v43 = vpop.f32.mrb[29].mxu0  ;;  %v5628_v21 = vpop.f32.mrb[31].mxu1  ;;  %v5772_v6 = vadd.f32 %v5771_v40, %v5770_v32  ;;  %v10641_v30 = vpack.c.bf16 %v6350_v10, %v6347_v51  ;;  %v6359_v51 = vld [vmem:[%s14868_s29 + $0x360] sm:$0xff]  ;;  %v6362_v10 = vld [vmem:[%s14868_s29 + $0x378] sm:$0xff] }
 0x795   :  { %v5783_v25 = vmul.f32 %v5725_v12, %v5415_v43  ;;  %v14026_v54 = vmul.f32 %v5767_v57, %v5628_v21  ;;  %v10929_v29 = vpack.c.bf16 %v6352_v50, %v6349_v38  ;;  %v6353_v57 = vld [vmem:[%s14868_s29 + $0x330] sm:$0xff]  ;;  %v10643_v43 = vpack.c.bf16 %v6357_v61, %v6354_v23  ;;  %v6364_v38 = vld [vmem:[%s14868_s29 + $0x388] sm:$0xff]  ;;  %v6366_v50 = vld [vmem:[%s14868_s29 + $0x398] sm:$0xff] }
 0x796   :  { %v10931_v21 = vpack.c.bf16 %v6406_v16, %v6403_v22  ;;  %v5753_v32 = vadd.f32 %v5752_v59, %v5751_v42  ;;  %v6202_v40 = vadd.f32 %v6201_v44, %v6200_v37  ;;  %v10645_v24 = vpack.c.bf16 %v6356_v27, %v6353_v57  ;;  %v6418_v59 = vld [vmem:[%s14868_s29 + $0x538] sm:$0xff]  ;;  %v6368_v57 = vld [vmem:[%s14868_s29 + $0x3a8] sm:$0xff] }
 0x799   :  { %v5484_v7 = vpop.f32.mrb[30].mxu0 }
 0x79a   :  { %v14037_v13 = vmul.f32 %v5732_v4, %v5484_v7  ;;  %v5862_v58 = vpop.f32.mrb[32].mxu1  ;;  %v5486_v39 = vpop.f32.mrb[31].mxu0  ;;  %v6409_v4 = vld [vmem:[%s14868_s29 + $0x4f0] sm:$0xff]  ;;  %v6185_v7 = vrot.slane %v13997_v48, 2 }
 0x79b   :  { %v6231_v9 = vmul.f32 %v6167_v0, %v5862_v58  ;;  %v14041_v34 = vmul.f32 %v5739_v53, %v5486_v39  ;;  %v5864_v8 = vpop.f32.mrb[33].mxu1  ;;  %v6363_v0 = vld [vmem:[%s14868_s29 + $0x380] sm:$0xff]  ;;  %v5773_v58 = vrot.slane %v5772_v6, 1  ;;  %v10933_v39 = vpack.c.bf16 %v6358_v35, %v6355_v11  ;;  %v6370_v11 = vld [vmem:[%s14868_s29 + $0x3b8] sm:$0xff]  ;;  %v6372_v35 = vld [vmem:[%s14868_s29 + $0x3c8] sm:$0xff] }
 0x79c   :  { %v6232_v12 = vmul.f32 %v6174_v26, %v5864_v8  ;;  %v6222_v26 = vrot.slane %v6221_v33, 1  ;;  %v10935_v8 = vpack.c.bf16 %v6412_v45, %v6409_v4  ;;  %v6186_v61 = vadd.f32 %v6185_v7, %v13997_v48  ;;  %v6421_v4 = vld [vmem:[%s14868_s29 + $0x550] sm:$0xff]  ;;  %v6424_v45 = vld [vmem:[%s14868_s29 + $0x568] sm:$0xff] }
 0x79d   :  { %v6241_v2 = vadd.f32 %v6231_v9, %v5782_v47  ;;  %v6195_v47 = vadd.f32 %v6194_v14, %v6193_v36  ;;  %v10647_v9 = vpack.c.bf16 %v6363_v0, %v6360_v5  ;;  %v6415_v14 = vld [vmem:[%s14868_s29 + $0x520] sm:$0xff]  ;;  %v5774_v16 = vadd.f32 %v5773_v58, %v5772_v6 }
 0x79e   :  { %v6242_v1 = vadd.f32 %v6232_v12, %v5783_v25  ;;  %v6228_v25 = vadd.f32 %v6227_v41, %v6226_v28  ;;  %v6369_v12 = vld [vmem:[%s14868_s29 + $0x3b0] sm:$0xff]  ;;  %v6206_v41 = vrot.slane %v14035_v52, 2  ;;  %v6223_v44 = vadd.f32 %v6222_v26, %v6221_v33  ;;  %v6375_v0 = vld [vmem:[%s14868_s29 + $0x3e0] sm:$0xff]  ;;  %v6376_v26 = vld [vmem:[%s14868_s29 + $0x3e8] sm:$0xff] }
 0x79f   :  { %v5781_v48 = vadd.f32 %v5780_v3, %v5779_v62  ;;  %v6180_v6 = vrot.slane %v14033_v60, 1  ;;  %v6371_v58 = vld [vmem:[%s14868_s29 + $0x3c0] sm:$0xff] }
 0x7a0   :  { %v5555_v15 = vpop.f32.mrb[32].mxu0  ;;  %6795 = vmatprep.mubr.f32.mxu0 %v6242_v1  ;;  %7150 = vmatprep.mubr.f32.mxu1 %v6242_v1  ;;  %v6229_v31 = vrot.slane %v6228_v25, 1  ;;  %v10649_v1 = vpack.c.bf16 %v6362_v10, %v6359_v51  ;;  %v6378_v10 = vld [vmem:[%s14868_s29 + $0x3f8] sm:$0xff] }
 0x7a1   :  { %v5786_v63 = vmul.f32 %v5746_v20, %v5555_v15  ;;  %v6004_v56 = vpop.f32.mrb[34].mxu1  ;;  %v5557_v53 = vpop.f32.mrb[33].mxu0  ;;  %6796 = vmatmul.mubr.f32.vlgmr.msra.gmra.mrb[40].mxu0 %v6241_v2  ;;  %7151 = vmatmul.mubr.f32.vlgmr.msra.gmra.mrb[38].mxu1 %v6241_v2  ;;  %v6213_v2 = vrot.slane %v14049_v46, 2  ;;  %v10651_v20 = vpack.c.bf16 %v6369_v12, %v6366_v50  ;;  %v6181_v51 = vadd.f32 %v6180_v6, %v14033_v60  ;;  %v6377_v60 = vld [vmem:[%s14868_s29 + $0x3f0] sm:$0xff] }
 0x7a2   :  { %v6235_v36 = vmul.f32 %v6195_v47, %v6004_v56  ;;  %v5787_v42 = vmul.f32 %v5753_v32, %v5557_v53  ;;  %v6006_v28 = vpop.f32.mrb[35].mxu1  ;;  %10642 = vmatpush1.bf16.msra.mxu0 %v10641_v30  ;;  %10930 = vmatpush3.bf16.msra.mxu1 %v10929_v29  ;;  %v10937_v30 = vpack.c.bf16 %v6364_v38, %v6361_v18  ;;  %v6365_v29 = vld [vmem:[%s14868_s29 + $0x390] sm:$0xff]  ;;  %v6187_v32 = vrot.slane %v6186_v61, 1  ;;  %v6430_v18 = vld [vmem:[%s14868_s29 + $0x598] sm:$0xff] }
 0x7a3   :  { %v6236_v37 = vmul.f32 %v6202_v40, %v6006_v28  ;;  %10644 = vmatprep.subr.bf16.mxu0 %v10643_v43  ;;  %10932 = vmatprep.subr.bf16.mxu1 %v10931_v21  ;;  %v10939_v43 = vpack.c.bf16 %v6418_v59, %v6415_v14  ;;  %v6367_v21 = vld [vmem:[%s14868_s29 + $0x3a0] sm:$0xff]  ;;  %v6230_v47 = vadd.f32 %v6229_v31, %v6228_v25  ;;  %v6380_v59 = vld [vmem:[%s14868_s29 + $0x408] sm:$0xff] }
 0x7a4   :  { %v14065_v23 = vadd.f32 %v6235_v36, %v5786_v63  ;;  %v6207_v56 = vadd.f32 %v6206_v41, %v14035_v52  ;;  %v6214_v53 = vadd.f32 %v6213_v2, %v14049_v46  ;;  %v10941_v25 = vpack.c.bf16 %v6370_v11, %v6367_v21  ;;  %v6373_v52 = vld [vmem:[%s14868_s29 + $0x3d0] sm:$0xff]  ;;  %v6379_v41 = vld [vmem:[%s14868_s29 + $0x400] sm:$0xff]  ;;  %v6382_v2 = vld [vmem:[%s14868_s29 + $0x418] sm:$0xff] }
 0x7a5   :  { %v14071_v22 = vadd.f32 %v6236_v37, %v5787_v42  ;;  %v10655_v42 = vpack.c.bf16 %v6375_v0, %v6372_v35  ;;  %v10943_v28 = vpack.c.bf16 %v6424_v45, %v6421_v4  ;;  %v6188_v3 = vadd.f32 %v6187_v32, %v6186_v61  ;;  %v6383_v11 = vld [vmem:[%s14868_s29 + $0x420] sm:$0xff]  ;;  %v6390_v32 = vld [vmem:[%s14868_s29 + $0x458] sm:$0xff]  ;;  %v6393_v45 = vld [vmem:[%s14868_s29 + $0x470] sm:$0xff] }
 0x7a6   :  { %10646 = vmatpush1.bf16.msra.mxu0 %v10645_v24  ;;  %10934 = vmatpush3.bf16.msra.mxu1 %v10933_v39  ;;  %v10653_v24 = vpack.c.bf16 %v6368_v57, %v6365_v29  ;;  %v6374_v39 = vld [vmem:[%s14868_s29 + $0x3d8] sm:$0xff]  ;;  %v10945_v12 = vpack.c.bf16 %v6376_v26, %v6373_v52  ;;  %v6208_v14 = vrot.slane %v6207_v56, 1  ;;  %v6215_v61 = vrot.slane %v6214_v53, 1  ;;  %v6387_v57 = vld [vmem:[%s14868_s29 + $0x440] sm:$0xff]  ;;  %v6396_v52 = vld [vmem:[%s14868_s29 + $0x488] sm:$0xff] }
 0x7a7   :  { %v5697_v27 = vpop.f32.mrb[34].mxu0  ;;  %10648 = vmatprep.subr.bf16.mxu0 %v10647_v9  ;;  %10936 = vmatprep.subr.bf16.mxu1 %v10935_v8  ;;  %v6381_v9 = vld [vmem:[%s14868_s29 + $0x410] sm:$0xff]  ;;  %v6427_v8 = vld [vmem:[%s14868_s29 + $0x580] sm:$0xff]  ;;  %v10657_v31 = vpack.c.bf16 %v6374_v39, %v6371_v58  ;;  %v10949_v21 = vpack.c.bf16 %v6382_v2, %v6379_v41  ;;  %v6404_v41 = vld [vmem:[%s14868_s29 + $0x4c8] sm:$0xff] }
 0x7a8   :  { %v5790_v5 = vmul.f32 %v5774_v16, %v5697_v27  ;;  %v6146_v33 = vpop.f32.mrb[36].mxu1  ;;  %v5699_v15 = vpop.f32.mrb[35].mxu0  ;;  %v10947_v29 = vpack.c.bf16 %v6430_v18, %v6427_v8  ;;  %v6433_v27 = vld [vmem:[%s14868_s29 + $0x5b0] sm:$0xff]  ;;  %v6391_v39 = vld [vmem:[%s14868_s29 + $0x460] sm:$0xff]  ;;  %v6398_v18 = vld [vmem:[%s14868_s29 + $0x498] sm:$0xff] }
 0x7a9   :  { %v6239_v62 = vmul.f32 %v6223_v44, %v6146_v33  ;;  %v5791_v7 = vmul.f32 %v5781_v48, %v5699_v15  ;;  %v6148_v63 = vpop.f32.mrb[37].mxu1  ;;  %v6384_v44 = vld [vmem:[%s14868_s29 + $0x428] sm:$0xff]  ;;  %v6399_v26 = vld [vmem:[%s14868_s29 + $0x4a0] sm:$0xff] }
 0x7aa   :  { %v6240_v40 = vmul.f32 %v6230_v47, %v6148_v63  ;;  %10650 = vmatpush1.bf16.msra.mxu0 %v10649_v1  ;;  %10938 = vmatpush3.bf16.msra.mxu1 %v10937_v30  ;;  %v10659_v30 = vpack.c.bf16 %v6381_v9, %v6378_v10  ;;  %v6436_v48 = vld [vmem:[%s14868_s29 + $0x5c8] sm:$0xff]  ;;  %v10663_v33 = vpack.c.bf16 %v6387_v57, %v6384_v44  ;;  %v6385_v47 = vld [vmem:[%s14868_s29 + $0x430] sm:$0xff]  ;;  %v6451_v44 = vld [vmem:[%s14868_s29 + $0x640] sm:$0xff] }
 0x7ab   :  { %v14087_v36 = vadd.f32 %v6239_v62, %v5790_v5  ;;  %10652 = vmatprep.subr.bf16.mxu0 %v10651_v20  ;;  %10940 = vmatprep.subr.bf16.mxu1 %v10939_v43  ;;  %v6209_v20 = vadd.f32 %v6208_v14, %v6207_v56  ;;  %v10661_v43 = vpack.c.bf16 %v6380_v59, %v6377_v60  ;;  %v6439_v62 = vld [vmem:[%s14868_s29 + $0x5e0] sm:$0xff]  ;;  %v6496_v10 = vld [vmem:[%s14868_s29 + $0x7a8] sm:$0xff]  ;;  %v6502_v60 = vld [vmem:[%s14868_s29 + $0x7d8] sm:$0xff] }
 0x7ac   :  { %v14092_v46 = vadd.f32 %v6240_v40, %v5791_v7  ;;  %v6216_v5 = vadd.f32 %v6215_v61, %v6214_v53  ;;  %v10951_v15 = vpack.c.bf16 %v6436_v48, %v6433_v27  ;;  %v6442_v7 = vld [vmem:[%s14868_s29 + $0x5f8] sm:$0xff]  ;;  %v10671_v9 = vpack.c.bf16 %v6399_v26, %v6396_v52  ;;  %v6499_v14 = vld [vmem:[%s14868_s29 + $0x7c0] sm:$0xff]  ;;  %v6401_v61 = vld [vmem:[%s14868_s29 + $0x4b0] sm:$0xff] }
 0x7ad   :  { %v5933_v37 = vpop.f32.mrb[36].mxu0  ;;  %v10963_v57 = vpack.c.bf16 %v6502_v60, %v6499_v14  ;;  %v6411_v27 = vld [vmem:[%s14868_s29 + $0x500] sm:$0xff]  ;;  %v6505_v48 = vld [vmem:[%s14868_s29 + $0x7f0] sm:$0xff]  ;;  %v6422_v26 = vld [vmem:[%s14868_s29 + $0x558] sm:$0xff] }
 0x7ae   :  { %v6233_v38 = vmul.f32 %v6181_v51, %v5933_v37  ;;  %v5935_v50 = vpop.f32.mrb[37].mxu0  ;;  %10654 = vmatpush1.bf16.msra.mxu0 %v10653_v24  ;;  %10942 = vmatpush3.bf16.msra.mxu1 %v10941_v25  ;;  %v6389_v24 = vld [vmem:[%s14868_s29 + $0x450] sm:$0xff]  ;;  %v6392_v25 = vld [vmem:[%s14868_s29 + $0x468] sm:$0xff]  ;;  %v6419_v52 = vld [vmem:[%s14868_s29 + $0x540] sm:$0xff] }
 0x7af   :  { %v6234_v16 = vmul.f32 %v6188_v3, %v5935_v50  ;;  %10656 = vmatprep.subr.bf16.mxu0 %v10655_v42  ;;  %10944 = vmatprep.subr.bf16.mxu1 %v10943_v28  ;;  %v10667_v42 = vpack.c.bf16 %v6393_v45, %v6390_v32  ;;  %v10955_v28 = vpack.c.bf16 %v6442_v7, %v6439_v62  ;;  %v6493_v51 = vld [vmem:[%s14868_s29 + $0x790] sm:$0xff]  ;;  %v6395_v3 = vld [vmem:[%s14868_s29 + $0x480] sm:$0xff]  ;;  %v6448_v50 = vld [vmem:[%s14868_s29 + $0x628] sm:$0xff] }
 0x7b0   :  { %v14105_v1 = vadd.f32 %v6233_v38, %v14037_v13  ;;  %v6386_v13 = vld [vmem:[%s14868_s29 + $0x438] sm:$0xff]  ;;  %v10959_v8 = vpack.c.bf16 %v6496_v10, %v6493_v51  ;;  %v6445_v38 = vld [vmem:[%s14868_s29 + $0x610] sm:$0xff]  ;;  %v10673_v59 = vpack.c.bf16 %v6398_v18, %v6395_v3  ;;  %v6416_v62 = vld [vmem:[%s14868_s29 + $0x528] sm:$0xff] }
 0x7b1   :  { %v6244_v6 = vadd.f32 %v6234_v16, %v14041_v34  ;;  %v6388_v34 = vld [vmem:[%s14868_s29 + $0x448] sm:$0xff]  ;;  %v10665_v53 = vpack.c.bf16 %v6386_v13, %v6383_v11  ;;  %v10961_v16 = vpack.c.bf16 %v6448_v50, %v6445_v38  ;;  %v6410_v11 = vld [vmem:[%s14868_s29 + $0x4f8] sm:$0xff]  ;;  %v6413_v45 = vld [vmem:[%s14868_s29 + $0x510] sm:$0xff]  ;;  %v10689_v38 = vpack.c.bf16 %v6422_v26, %v6419_v52 }
 0x7b2   :  { %10658 = vmatpush1.bf16.msra.mxu0 %v10657_v31  ;;  %10946 = vmatpush3.bf16.msra.mxu1 %v10945_v12  ;;  %v10953_v40 = vpack.c.bf16 %v6388_v34, %v6385_v47  ;;  %v6402_v31 = vld [vmem:[%s14868_s29 + $0x4b8] sm:$0xff]  ;;  %v6405_v12 = vld [vmem:[%s14868_s29 + $0x4d0] sm:$0xff]  ;;  %v6511_v34 = vld [vmem:[%s14868_s29 + $0x820] sm:$0xff] }
 0x7b3   :  { %v6075_v35 = vpop.f32.mrb[38].mxu0  ;;  %6866 = vmatprep.mubr.f32.mxu0 %v6244_v6  ;;  %7220 = vmatprep.mubr.f32.mxu1 %v6244_v6  ;;  %v10675_v2 = vpack.c.bf16 %v6405_v12, %v6402_v31  ;;  %v6508_v6 = vld [vmem:[%s14868_s29 + $0x808] sm:$0xff]  ;;  %v6417_v47 = vld [vmem:[%s14868_s29 + $0x530] sm:$0xff]  ;;  %v6514_v32 = vld [vmem:[%s14868_s29 + $0x838] sm:$0xff] }
 0x7b4   :  { %v6237_v0 = vmul.f32 %v6209_v20, %v6075_v35  ;;  %v6077_v4 = vpop.f32.mrb[39].mxu0  ;;  %10660 = vmatprep.subr.bf16.mxu0 %v10659_v30  ;;  %10948 = vmatprep.subr.bf16.mxu1 %v10947_v29  ;;  %v6454_v30 = vld [vmem:[%s14868_s29 + $0x658] sm:$0xff]  ;;  %v6408_v29 = vld [vmem:[%s14868_s29 + $0x4e8] sm:$0xff]  ;;  %v10677_v20 = vpack.c.bf16 %v6404_v41, %v6401_v61  ;;  %v10967_v35 = vpack.c.bf16 %v6508_v6, %v6505_v48  ;;  %v6425_v31 = vld [vmem:[%s14868_s29 + $0x570] sm:$0xff] }
 0x7b5   :  { %v6238_v63 = vmul.f32 %v6216_v5, %v6077_v4  ;;  %v10679_v13 = vpack.c.bf16 %v6411_v27, %v6408_v29  ;;  %v6457_v5 = vld [vmem:[%s14868_s29 + $0x670] sm:$0xff]  ;;  %v6426_v3 = vld [vmem:[%s14868_s29 + $0x578] sm:$0xff]  ;;  %v6428_v12 = vld [vmem:[%s14868_s29 + $0x588] sm:$0xff] }
 0x7b6   :  { %v14120_v56 = vadd.f32 %v6237_v0, %v14024_v55  ;;  %10662 = vmatpush1.bf16.msra.mxu0 %v10661_v43  ;;  %10950 = vmatpush3.bf16.msra.mxu1 %v10949_v21  ;;  %v6394_v55 = vld [vmem:[%s14868_s29 + $0x478] sm:$0xff]  ;;  %v10965_v43 = vpack.c.bf16 %v6454_v30, %v6451_v44  ;;  %v6407_v21 = vld [vmem:[%s14868_s29 + $0x4e0] sm:$0xff]  ;;  %v6432_v61 = vld [vmem:[%s14868_s29 + $0x5a8] sm:$0xff]  ;;  %v10693_v30 = vpack.c.bf16 %v6428_v12, %v6425_v31 }
 0x7b7   :  { %v14125_v58 = vadd.f32 %v6238_v63, %v14026_v54  ;;  %10664 = vmatprep.subr.bf16.mxu0 %v10663_v33  ;;  %10952 = vmatprep.subr.bf16.mxu1 %v10951_v15  ;;  %v10669_v54 = vpack.c.bf16 %v6392_v25, %v6389_v24  ;;  %v10957_v37 = vpack.c.bf16 %v6394_v55, %v6391_v39  ;;  %v6460_v33 = vld [vmem:[%s14868_s29 + $0x688] sm:$0xff]  ;;  %v6414_v15 = vld [vmem:[%s14868_s29 + $0x518] sm:$0xff]  ;;  %v6423_v25 = vld [vmem:[%s14868_s29 + $0x560] sm:$0xff] }
 0x7b8   :  { %v10681_v0 = vpack.c.bf16 %v6410_v11, %v6407_v21  ;;  %v10969_v4 = vpack.c.bf16 %v6460_v33, %v6457_v5  ;;  %v10683_v7 = vpack.c.bf16 %v6417_v47, %v6414_v15  ;;  %v10971_v63 = vpack.c.bf16 %v6514_v32, %v6511_v34  ;;  %v6420_v24 = vld [vmem:[%s14868_s29 + $0x548] sm:$0xff]  ;;  %v6526_v18 = vld [vmem:[%s14868_s29 + $0x898] sm:$0xff]  ;;  %v6435_v41 = vld [vmem:[%s14868_s29 + $0x5c0] sm:$0xff] }
 0x7b9   :  { %v10685_v39 = vpack.c.bf16 %v6416_v62, %v6413_v45  ;;  %v10687_v51 = vpack.c.bf16 %v6423_v25, %v6420_v24  ;;  %v6532_v44 = vld [vmem:[%s14868_s29 + $0x8c8] sm:$0xff]  ;;  %v6434_v27 = vld [vmem:[%s14868_s29 + $0x5b8] sm:$0xff]  ;;  %v10695_v48 = vpack.c.bf16 %v6435_v41, %v6432_v61  ;;  %v6441_v11 = vld [vmem:[%s14868_s29 + $0x5f0] sm:$0xff] }
 0x7ba   :  { %10666 = vmatpush1.bf16.msra.mxu0 %v10665_v53  ;;  %10954 = vmatpush3.bf16.msra.mxu1 %v10953_v40  ;;  %v6463_v53 = vld [vmem:[%s14868_s29 + $0x6a0] sm:$0xff]  ;;  %v6466_v40 = vld [vmem:[%s14868_s29 + $0x6b8] sm:$0xff]  ;;  %v6437_v15 = vld [vmem:[%s14868_s29 + $0x5d0] sm:$0xff] }
 0x7bb   :  { %10668 = vmatprep.subr.bf16.mxu0 %v10667_v42  ;;  %10956 = vmatprep.subr.bf16.mxu1 %v10955_v28  ;;  %v6517_v42 = vld [vmem:[%s14868_s29 + $0x850] sm:$0xff]  ;;  %v6520_v28 = vld [vmem:[%s14868_s29 + $0x868] sm:$0xff]  ;;  %v10973_v55 = vpack.c.bf16 %v6466_v40, %v6463_v53  ;;  %v6438_v21 = vld [vmem:[%s14868_s29 + $0x5d8] sm:$0xff] }
 0x7bc   :  { %v10975_v10 = vpack.c.bf16 %v6520_v28, %v6517_v42  ;;  %v6440_v47 = vld [vmem:[%s14868_s29 + $0x5e8] sm:$0xff]  ;;  %v10699_v34 = vpack.c.bf16 %v6441_v11, %v6438_v21  ;;  %v6447_v62 = vld [vmem:[%s14868_s29 + $0x620] sm:$0xff]  ;;  %v6446_v28 = vld [vmem:[%s14868_s29 + $0x618] sm:$0xff] }
 0x7bd   :  { %v6444_v45 = vld [vmem:[%s14868_s29 + $0x608] sm:$0xff]  ;;  %v10701_v53 = vpack.c.bf16 %v6440_v47, %v6437_v15  ;;  %v6443_v42 = vld [vmem:[%s14868_s29 + $0x600] sm:$0xff]  ;;  %v6450_v52 = vld [vmem:[%s14868_s29 + $0x638] sm:$0xff] }
 0x7be   :  { %10670 = vmatpush1.bf16.msra.mxu0 %v10669_v54  ;;  %10958 = vmatpush3.bf16.msra.mxu1 %v10957_v37  ;;  %v6469_v54 = vld [vmem:[%s14868_s29 + $0x6d0] sm:$0xff]  ;;  %v6472_v37 = vld [vmem:[%s14868_s29 + $0x6e8] sm:$0xff]  ;;  %v10703_v24 = vpack.c.bf16 %v6447_v62, %v6444_v45  ;;  %v6459_v12 = vld [vmem:[%s14868_s29 + $0x680] sm:$0xff] }
 0x7bf   :  { %10672 = vmatprep.subr.bf16.mxu0 %v10671_v9  ;;  %10960 = vmatprep.subr.bf16.mxu1 %v10959_v8  ;;  %v6429_v9 = vld [vmem:[%s14868_s29 + $0x590] sm:$0xff]  ;;  %v6523_v8 = vld [vmem:[%s14868_s29 + $0x880] sm:$0xff]  ;;  %v10977_v50 = vpack.c.bf16 %v6472_v37, %v6469_v54  ;;  %v10705_v54 = vpack.c.bf16 %v6446_v28, %v6443_v42  ;;  %v6456_v31 = vld [vmem:[%s14868_s29 + $0x668] sm:$0xff] }
 0x7c0   :  { %v10691_v14 = vpack.c.bf16 %v6429_v9, %v6426_v3  ;;  %v10979_v60 = vpack.c.bf16 %v6526_v18, %v6523_v8  ;;  %v6453_v26 = vld [vmem:[%s14868_s29 + $0x650] sm:$0xff]  ;;  %v6452_v9 = vld [vmem:[%s14868_s29 + $0x648] sm:$0xff]  ;;  %v6547_v8 = vld [vmem:[%s14868_s29 + $0x940] sm:$0xff]  ;;  %v10711_v61 = vpack.c.bf16 %v6459_v12, %v6456_v31 }
 0x7c1   :  { %7221 = vmatmul.mubr.f32.vlgmr.msra.gmra.mrb[40].mxu1 %v14105_v1  ;;  %v6449_v3 = vld [vmem:[%s14868_s29 + $0x630] sm:$0xff]  ;;  %v10707_v18 = vpack.c.bf16 %v6453_v26, %v6450_v52  ;;  %v6455_v41 = vld [vmem:[%s14868_s29 + $0x660] sm:$0xff]  ;;  %v6464_v21 = vld [vmem:[%s14868_s29 + $0x6a8] sm:$0xff] }
 0x7c2   :  { %10674 = vmatpush1.bf16.msra.mxu0 %v10673_v59  ;;  %10962 = vmatpush3.bf16.msra.mxu1 %v10961_v16  ;;  %v6475_v59 = vld [vmem:[%s14868_s29 + $0x700] sm:$0xff]  ;;  %v6478_v16 = vld [vmem:[%s14868_s29 + $0x718] sm:$0xff]  ;;  %v6613_v15 = vld [vmem:[%s14868_s29 + $0xb50] sm:$0xff] }
 0x7c3   :  { %7290 = vmatprep.mubr.f32.mxu1 %v14071_v22  ;;  %10676 = vmatprep.subr.bf16.mxu0 %v10675_v2  ;;  %v6529_v2 = vld [vmem:[%s14868_s29 + $0x8b0] sm:$0xff]  ;;  %v10981_v29 = vpack.c.bf16 %v6478_v16, %v6475_v59  ;;  %v10709_v59 = vpack.c.bf16 %v6452_v9, %v6449_v3  ;;  %v6559_v11 = vld [vmem:[%s14868_s29 + $0x9a0] sm:$0xff]  ;;  %v6616_v47 = vld [vmem:[%s14868_s29 + $0xb68] sm:$0xff] }
 0x7c4   :  { %10964 = vmatprep.subr.bf16.mxu1 %v10963_v57  ;;  %v6431_v57 = vld [vmem:[%s14868_s29 + $0x5a0] sm:$0xff]  ;;  %v10983_v6 = vpack.c.bf16 %v6532_v44, %v6529_v2  ;;  %v6553_v2 = vld [vmem:[%s14868_s29 + $0x970] sm:$0xff]  ;;  %v6470_v45 = vld [vmem:[%s14868_s29 + $0x6d8] sm:$0xff] }
 0x7c5   :  { %v10697_v5 = vpack.c.bf16 %v6434_v27, %v6431_v57  ;;  %v6607_v57 = vld [vmem:[%s14868_s29 + $0xb20] sm:$0xff]  ;;  %v6610_v27 = vld [vmem:[%s14868_s29 + $0xb38] sm:$0xff]  ;;  %v6565_v62 = vld [vmem:[%s14868_s29 + $0x9d0] sm:$0xff] }
 0x7c6   :  { %10678 = vmatpush1.bf16.msra.mxu0 %v10677_v20  ;;  %10966 = vmatpush3.bf16.msra.mxu1 %v10965_v43  ;;  %v6481_v20 = vld [vmem:[%s14868_s29 + $0x730] sm:$0xff]  ;;  %v6484_v43 = vld [vmem:[%s14868_s29 + $0x748] sm:$0xff]  ;;  %v6571_v26 = vld [vmem:[%s14868_s29 + $0xa00] sm:$0xff] }
 0x7c7   :  { %10680 = vmatprep.subr.bf16.mxu0 %v10679_v13  ;;  %10968 = vmatprep.subr.bf16.mxu1 %v10967_v35  ;;  %v6535_v13 = vld [vmem:[%s14868_s29 + $0x8e0] sm:$0xff]  ;;  %v6538_v35 = vld [vmem:[%s14868_s29 + $0x8f8] sm:$0xff]  ;;  %v10985_v33 = vpack.c.bf16 %v6484_v43, %v6481_v20  ;;  %v6461_v43 = vld [vmem:[%s14868_s29 + $0x690] sm:$0xff] }
 0x7c8   :  { %v10987_v32 = vpack.c.bf16 %v6538_v35, %v6535_v13  ;;  %v11003_v13 = vpack.c.bf16 %v6610_v27, %v6607_v57  ;;  %v6562_v35 = vld [vmem:[%s14868_s29 + $0x9b8] sm:$0xff]  ;;  %v6476_v52 = vld [vmem:[%s14868_s29 + $0x708] sm:$0xff]  ;;  %v6625_v3 = vld [vmem:[%s14868_s29 + $0xbb0] sm:$0xff] }
 0x7c9   :  { %v6628_v9 = vld [vmem:[%s14868_s29 + $0xbc8] sm:$0xff]  ;;  %v6482_v31 = vld [vmem:[%s14868_s29 + $0x738] sm:$0xff]  ;;  %v6577_v12 = vld [vmem:[%s14868_s29 + $0xa30] sm:$0xff] }
 0x7ca   :  { %10682 = vmatpush1.bf16.msra.mxu0 %v10681_v0  ;;  %10970 = vmatpush3.bf16.msra.mxu1 %v10969_v4  ;;  %v6487_v0 = vld [vmem:[%s14868_s29 + $0x760] sm:$0xff]  ;;  %v6490_v4 = vld [vmem:[%s14868_s29 + $0x778] sm:$0xff] }
 0x7cb   :  { %10684 = vmatprep.subr.bf16.mxu0 %v10683_v7  ;;  %10972 = vmatprep.subr.bf16.mxu1 %v10971_v63  ;;  %v6589_v7 = vld [vmem:[%s14868_s29 + $0xa90] sm:$0xff]  ;;  %v6592_v63 = vld [vmem:[%s14868_s29 + $0xaa8] sm:$0xff]  ;;  %v10989_v40 = vpack.c.bf16 %v6490_v4, %v6487_v0  ;;  %v6467_v4 = vld [vmem:[%s14868_s29 + $0x6c0] sm:$0xff] }
 0x7cc   :  { %v10991_v25 = vpack.c.bf16 %v6592_v63, %v6589_v7  ;;  %v11007_v7 = vpack.c.bf16 %v6616_v47, %v6613_v15  ;;  %v6568_v63 = vld [vmem:[%s14868_s29 + $0x9e8] sm:$0xff]  ;;  %v10721_v42 = vpack.c.bf16 %v6470_v45, %v6467_v4  ;;  %v6586_v27 = vld [vmem:[%s14868_s29 + $0xa78] sm:$0xff]  ;;  %v6637_v15 = vld [vmem:[%s14868_s29 + $0xc10] sm:$0xff] }
 0x7cd   :  { %v11009_v28 = vpack.c.bf16 %v6568_v63, %v6565_v62  ;;  %v6640_v47 = vld [vmem:[%s14868_s29 + $0xc28] sm:$0xff]  ;;  %v6694_v4 = vld [vmem:[%s14868_s29 + $0xdd8] sm:$0xff] }
 0x7ce   :  { %10686 = vmatpush1.bf16.msra.mxu0 %v10685_v39  ;;  %10974 = vmatpush3.bf16.msra.mxu1 %v10973_v55  ;;  %v6541_v39 = vld [vmem:[%s14868_s29 + $0x910] sm:$0xff]  ;;  %v6544_v55 = vld [vmem:[%s14868_s29 + $0x928] sm:$0xff]  ;;  %v11025_v62 = vpack.c.bf16 %v6640_v47, %v6637_v15 }
 0x7cf   :  { %10688 = vmatprep.subr.bf16.mxu0 %v10687_v51  ;;  %10976 = vmatprep.subr.bf16.mxu1 %v10975_v10  ;;  %v6595_v51 = vld [vmem:[%s14868_s29 + $0xac0] sm:$0xff]  ;;  %v6598_v10 = vld [vmem:[%s14868_s29 + $0xad8] sm:$0xff]  ;;  %v10993_v37 = vpack.c.bf16 %v6544_v55, %v6541_v39  ;;  %v6473_v55 = vld [vmem:[%s14868_s29 + $0x6f0] sm:$0xff] }
 0x7d0   :  { %v6500_v63 = vld [vmem:[%s14868_s29 + $0x7c8] sm:$0xff]  ;;  %v6521_v47 = vld [vmem:[%s14868_s29 + $0x870] sm:$0xff] }
 0x7d2   :  { %10690 = vmatpush1.bf16.msra.mxu0 %v10689_v38  ;;  %10978 = vmatpush3.bf16.msra.mxu1 %v10977_v50  ;;  %v10995_v38 = vpack.c.bf16 %v6598_v10, %v6595_v51  ;;  %v6550_v50 = vld [vmem:[%s14868_s29 + $0x958] sm:$0xff] }
 0x7d3   :  { %10692 = vmatprep.subr.bf16.mxu0 %v10691_v14  ;;  %10980 = vmatprep.subr.bf16.mxu1 %v10979_v60  ;;  %v6601_v14 = vld [vmem:[%s14868_s29 + $0xaf0] sm:$0xff]  ;;  %v6604_v60 = vld [vmem:[%s14868_s29 + $0xb08] sm:$0xff]  ;;  %v10997_v16 = vpack.c.bf16 %v6550_v50, %v6547_v8  ;;  %v6574_v10 = vld [vmem:[%s14868_s29 + $0xa18] sm:$0xff]  ;;  %v10725_v8 = vpack.c.bf16 %v6476_v52, %v6473_v55 }
 0x7d4   :  { %v10999_v44 = vpack.c.bf16 %v6604_v60, %v6601_v14  ;;  %v6479_v50 = vld [vmem:[%s14868_s29 + $0x720] sm:$0xff]  ;;  %v11015_v14 = vpack.c.bf16 %v6628_v9, %v6625_v3  ;;  %v6580_v60 = vld [vmem:[%s14868_s29 + $0xa48] sm:$0xff] }
 0x7d5   :  { %v6700_v55 = vld [vmem:[%s14868_s29 + $0xe08] sm:$0xff] }
 0x7d6   :  { %10694 = vmatpush1.bf16.msra.mxu0 %v10693_v30  ;;  %10982 = vmatpush3.bf16.msra.mxu1 %v10981_v29  ;;  %v6556_v30 = vld [vmem:[%s14868_s29 + $0x988] sm:$0xff]  ;;  %v6462_v29 = vld [vmem:[%s14868_s29 + $0x698] sm:$0xff] }
 0x7d7   :  { %10696 = vmatprep.subr.bf16.mxu0 %v10695_v48  ;;  %10984 = vmatprep.subr.bf16.mxu1 %v10983_v6  ;;  %v11001_v6 = vpack.c.bf16 %v6556_v30, %v6553_v2  ;;  %v11017_v2 = vpack.c.bf16 %v6580_v60, %v6577_v12  ;;  %v6485_v30 = vld [vmem:[%s14868_s29 + $0x750] sm:$0xff]  ;;  %v6652_v9 = vld [vmem:[%s14868_s29 + $0xc88] sm:$0xff] }
 0x7d8   :  { %v6509_v60 = vld [vmem:[%s14868_s29 + $0x810] sm:$0xff] }
 0x7da   :  { %10698 = vmatpush1.bf16.msra.mxu0 %v10697_v5  ;;  %10986 = vmatpush3.bf16.msra.mxu1 %v10985_v33  ;;  %v6468_v5 = vld [vmem:[%s14868_s29 + $0x6c8] sm:$0xff]  ;;  %v6471_v33 = vld [vmem:[%s14868_s29 + $0x6e0] sm:$0xff] }
 0x7db   :  { %10700 = vmatprep.subr.bf16.mxu0 %v10699_v34  ;;  %10988 = vmatprep.subr.bf16.mxu1 %v10987_v32  ;;  %v10717_v34 = vpack.c.bf16 %v6464_v21, %v6461_v43  ;;  %v11005_v32 = vpack.c.bf16 %v6562_v35, %v6559_v11  ;;  %v10719_v0 = vpack.c.bf16 %v6471_v33, %v6468_v5  ;;  %v6688_v43 = vld [vmem:[%s14868_s29 + $0xda8] sm:$0xff]  ;;  %v6491_v35 = vld [vmem:[%s14868_s29 + $0x780] sm:$0xff]  ;;  %v6494_v5 = vld [vmem:[%s14868_s29 + $0x798] sm:$0xff] }
 0x7dc   :  { %v10737_v45 = vpack.c.bf16 %v6494_v5, %v6491_v35  ;;  %v6718_v35 = vld [vmem:[%s14868_s29 + $0xe98] sm:$0xff] }
 0x7de   :  { %10702 = vmatpush1.bf16.msra.mxu0 %v10701_v53  ;;  %10990 = vmatpush3.bf16.msra.mxu1 %v10989_v40  ;;  %v6474_v53 = vld [vmem:[%s14868_s29 + $0x6f8] sm:$0xff]  ;;  %v6477_v40 = vld [vmem:[%s14868_s29 + $0x710] sm:$0xff] }
 0x7df   :  { %10704 = vmatprep.subr.bf16.mxu0 %v10703_v24  ;;  %10992 = vmatprep.subr.bf16.mxu1 %v10991_v25  ;;  %v6619_v24 = vld [vmem:[%s14868_s29 + $0xb80] sm:$0xff]  ;;  %v6622_v25 = vld [vmem:[%s14868_s29 + $0xb98] sm:$0xff]  ;;  %v10723_v39 = vpack.c.bf16 %v6477_v40, %v6474_v53 }
 0x7e0   :  { %v11011_v51 = vpack.c.bf16 %v6622_v25, %v6619_v24  ;;  %v6643_v53 = vld [vmem:[%s14868_s29 + $0xc40] sm:$0xff]  ;;  %v6646_v25 = vld [vmem:[%s14868_s29 + $0xc58] sm:$0xff] }
 0x7e1   :  { %6867 = vmatmul.mubr.f32.vlgmr.msra.gmra.mrb[40].mxu0 %v14105_v1  ;;  %7291 = vmatmul.mubr.f32.vlgmr.msra.gmra.mrb[42].mxu1 %v14065_v23  ;;  %v6458_v1 = vld [vmem:[%s14868_s29 + $0x678] sm:$0xff] }
 0x7e2   :  { %10706 = vmatpush1.bf16.msra.mxu0 %v10705_v54  ;;  %6937 = vmatprep.mubr.f32.mxu0 %v14071_v22  ;;  %v6465_v22 = vld [vmem:[%s14868_s29 + $0x6b0] sm:$0xff]  ;;  %v10713_v48 = vpack.c.bf16 %v6458_v1, %v6455_v41  ;;  %v6480_v54 = vld [vmem:[%s14868_s29 + $0x728] sm:$0xff]  ;;  %v6634_v41 = vld [vmem:[%s14868_s29 + $0xbf8] sm:$0xff]  ;;  %v10729_v1 = vpack.c.bf16 %v6482_v31, %v6479_v50 }
 0x7e3   :  { %10994 = vmatpush3.bf16.msra.mxu1 %v10993_v37  ;;  %7360 = vmatprep.mubr.f32.mxu1 %v14125_v58  ;;  %v10715_v20 = vpack.c.bf16 %v6465_v22, %v6462_v29  ;;  %v6483_v37 = vld [vmem:[%s14868_s29 + $0x740] sm:$0xff]  ;;  %v6488_v29 = vld [vmem:[%s14868_s29 + $0x768] sm:$0xff]  ;;  %v6706_v50 = vld [vmem:[%s14868_s29 + $0xe38] sm:$0xff] }
 0x7e4   :  { %10708 = vmatprep.subr.bf16.mxu0 %v10707_v18  ;;  %10996 = vmatprep.subr.bf16.mxu1 %v10995_v38  ;;  %v11013_v18 = vpack.c.bf16 %v6574_v10, %v6571_v26  ;;  %v10727_v38 = vpack.c.bf16 %v6483_v37, %v6480_v54  ;;  %v6583_v22 = vld [vmem:[%s14868_s29 + $0xa60] sm:$0xff]  ;;  %v10733_v21 = vpack.c.bf16 %v6488_v29, %v6485_v30  ;;  %v6506_v54 = vld [vmem:[%s14868_s29 + $0x7f8] sm:$0xff]  ;;  %v6649_v37 = vld [vmem:[%s14868_s29 + $0xc70] sm:$0xff] }
 0x7e5   :  { %v11021_v11 = vpack.c.bf16 %v6586_v27, %v6583_v22  ;;  %v11029_v26 = vpack.c.bf16 %v6646_v25, %v6643_v53  ;;  %v6503_v10 = vld [vmem:[%s14868_s29 + $0x7e0] sm:$0xff]  ;;  %v11033_v12 = vpack.c.bf16 %v6652_v9, %v6649_v37  ;;  %v6712_v30 = vld [vmem:[%s14868_s29 + $0xe68] sm:$0xff]  ;;  %v6533_v9 = vld [vmem:[%s14868_s29 + $0x8d0] sm:$0xff] }
 0x7e6   :  { %10710 = vmatpush1.bf16.msra.mxu0 %v10709_v59  ;;  %v6486_v59 = vld [vmem:[%s14868_s29 + $0x758] sm:$0xff]  ;;  %v10745_v31 = vpack.c.bf16 %v6506_v54, %v6503_v10  ;;  %v6515_v27 = vld [vmem:[%s14868_s29 + $0x840] sm:$0xff] }
 0x7e7   :  { %10998 = vmatpush3.bf16.msra.mxu1 %v10997_v16  ;;  %10712 = vmatprep.subr.bf16.mxu0 %v10711_v61  ;;  %v6489_v16 = vld [vmem:[%s14868_s29 + $0x770] sm:$0xff]  ;;  %v6631_v61 = vld [vmem:[%s14868_s29 + $0xbe0] sm:$0xff]  ;;  %v6730_v10 = vld [vmem:[%s14868_s29 + $0xef8] sm:$0xff] }
 0x7e8   :  { %11000 = vmatprep.subr.bf16.mxu1 %v10999_v44  ;;  %v10731_v44 = vpack.c.bf16 %v6489_v16, %v6486_v59  ;;  %v11019_v57 = vpack.c.bf16 %v6634_v41, %v6631_v61  ;;  %v6512_v59 = vld [vmem:[%s14868_s29 + $0x828] sm:$0xff]  ;;  %v6655_v16 = vld [vmem:[%s14868_s29 + $0xca0] sm:$0xff]  ;;  %v6658_v41 = vld [vmem:[%s14868_s29 + $0xcb8] sm:$0xff] }
 0x7e9   :  { %v10749_v29 = vpack.c.bf16 %v6512_v59, %v6509_v60  ;;  %v11037_v22 = vpack.c.bf16 %v6658_v41, %v6655_v16  ;;  %v6527_v25 = vld [vmem:[%s14868_s29 + $0x8a0] sm:$0xff]  ;;  %v6546_v41 = vld [vmem:[%s14868_s29 + $0x938] sm:$0xff] }
 0x7ea   :  { %10714 = vmatpush1.bf16.msra.mxu0 %v10713_v48  ;;  %v6492_v48 = vld [vmem:[%s14868_s29 + $0x788] sm:$0xff]  ;;  %v6539_v16 = vld [vmem:[%s14868_s29 + $0x900] sm:$0xff] }
 0x7eb   :  { %11002 = vmatpush3.bf16.msra.mxu1 %v11001_v6  ;;  %10716 = vmatprep.subr.bf16.mxu0 %v10715_v20  ;;  %v6495_v6 = vld [vmem:[%s14868_s29 + $0x7a0] sm:$0xff]  ;;  %v6685_v20 = vld [vmem:[%s14868_s29 + $0xd90] sm:$0xff] }
 0x7ec   :  { %11004 = vmatprep.subr.bf16.mxu1 %v11003_v13  ;;  %v10735_v13 = vpack.c.bf16 %v6495_v6, %v6492_v48  ;;  %v11023_v33 = vpack.c.bf16 %v6688_v43, %v6685_v20  ;;  %v6518_v48 = vld [vmem:[%s14868_s29 + $0x858] sm:$0xff]  ;;  %v6661_v6 = vld [vmem:[%s14868_s29 + $0xcd0] sm:$0xff]  ;;  %v6664_v43 = vld [vmem:[%s14868_s29 + $0xce8] sm:$0xff] }
 0x7ed   :  { %v10753_v5 = vpack.c.bf16 %v6518_v48, %v6515_v27 }
 0x7ee   :  { %10718 = vmatpush1.bf16.msra.mxu0 %v10717_v34  ;;  %v6498_v34 = vld [vmem:[%s14868_s29 + $0x7b8] sm:$0xff] }
 0x7ef   :  { %11006 = vmatpush3.bf16.msra.mxu1 %v11005_v32  ;;  %10720 = vmatprep.subr.bf16.mxu0 %v10719_v0  ;;  %v6501_v32 = vld [vmem:[%s14868_s29 + $0x7d0] sm:$0xff]  ;;  %v6691_v0 = vld [vmem:[%s14868_s29 + $0xdc0] sm:$0xff] }
 0x7f0   :  { %11008 = vmatprep.subr.bf16.mxu1 %v11007_v7  ;;  %v6497_v7 = vld [vmem:[%s14868_s29 + $0x7b0] sm:$0xff]  ;;  %v10739_v40 = vpack.c.bf16 %v6501_v32, %v6498_v34  ;;  %v11027_v24 = vpack.c.bf16 %v6694_v4, %v6691_v0  ;;  %v6524_v34 = vld [vmem:[%s14868_s29 + $0x888] sm:$0xff]  ;;  %v6667_v32 = vld [vmem:[%s14868_s29 + $0xd00] sm:$0xff] }
 0x7f1   :  { %v10741_v52 = vpack.c.bf16 %v6500_v63, %v6497_v7  ;;  %v6670_v4 = vld [vmem:[%s14868_s29 + $0xd18] sm:$0xff]  ;;  %v6721_v7 = vld [vmem:[%s14868_s29 + $0xeb0] sm:$0xff]  ;;  %v6724_v63 = vld [vmem:[%s14868_s29 + $0xec8] sm:$0xff]  ;;  %v10757_v53 = vpack.c.bf16 %v6524_v34, %v6521_v47 }
 0x7f2   :  { %10722 = vmatpush1.bf16.msra.mxu0 %v10721_v42  ;;  %v6504_v42 = vld [vmem:[%s14868_s29 + $0x7e8] sm:$0xff]  ;;  %v6563_v47 = vld [vmem:[%s14868_s29 + $0x9c0] sm:$0xff]  ;;  %v6566_v34 = vld [vmem:[%s14868_s29 + $0x9d8] sm:$0xff] }
 0x7f3   :  { %11010 = vmatpush3.bf16.msra.mxu1 %v11009_v28  ;;  %10724 = vmatprep.subr.bf16.mxu0 %v10723_v39  ;;  %v6507_v28 = vld [vmem:[%s14868_s29 + $0x800] sm:$0xff]  ;;  %v6697_v39 = vld [vmem:[%s14868_s29 + $0xdf0] sm:$0xff] }
 0x7f4   :  { %11012 = vmatprep.subr.bf16.mxu1 %v11011_v51  ;;  %v10743_v51 = vpack.c.bf16 %v6507_v28, %v6504_v42  ;;  %v11031_v3 = vpack.c.bf16 %v6700_v55, %v6697_v39  ;;  %v6530_v42 = vld [vmem:[%s14868_s29 + $0x8b8] sm:$0xff]  ;;  %v6673_v28 = vld [vmem:[%s14868_s29 + $0xd30] sm:$0xff]  ;;  %v11047_v39 = vpack.c.bf16 %v6724_v63, %v6721_v7  ;;  %v6676_v55 = vld [vmem:[%s14868_s29 + $0xd48] sm:$0xff] }
 0x7f5   :  { %v10761_v54 = vpack.c.bf16 %v6530_v42, %v6527_v25  ;;  %v11049_v37 = vpack.c.bf16 %v6676_v55, %v6673_v28  ;;  %v6572_v7 = vld [vmem:[%s14868_s29 + $0xa08] sm:$0xff]  ;;  %v6575_v25 = vld [vmem:[%s14868_s29 + $0xa20] sm:$0xff]  ;;  %v6578_v42 = vld [vmem:[%s14868_s29 + $0xa38] sm:$0xff] }
 0x7f6   :  { %10726 = vmatpush1.bf16.msra.mxu0 %v10725_v8  ;;  %v6510_v8 = vld [vmem:[%s14868_s29 + $0x818] sm:$0xff]  ;;  %v6576_v63 = vld [vmem:[%s14868_s29 + $0xa28] sm:$0xff]  ;;  %v10793_v55 = vpack.c.bf16 %v6578_v42, %v6575_v25 }
 0x7f7   :  { %11014 = vmatpush3.bf16.msra.mxu1 %v11013_v18  ;;  %10728 = vmatprep.subr.bf16.mxu0 %v10727_v38  ;;  %v6513_v18 = vld [vmem:[%s14868_s29 + $0x830] sm:$0xff]  ;;  %v6703_v38 = vld [vmem:[%s14868_s29 + $0xe20] sm:$0xff]  ;;  %v6582_v28 = vld [vmem:[%s14868_s29 + $0xa58] sm:$0xff] }
 0x7f8   :  { %11016 = vmatprep.subr.bf16.mxu1 %v11015_v14  ;;  %v10747_v14 = vpack.c.bf16 %v6513_v18, %v6510_v8  ;;  %v11035_v61 = vpack.c.bf16 %v6706_v50, %v6703_v38  ;;  %v6536_v8 = vld [vmem:[%s14868_s29 + $0x8e8] sm:$0xff]  ;;  %v6679_v18 = vld [vmem:[%s14868_s29 + $0xd60] sm:$0xff]  ;;  %v6682_v50 = vld [vmem:[%s14868_s29 + $0xd78] sm:$0xff] }
 0x7f9   :  { %v11053_v60 = vpack.c.bf16 %v6682_v50, %v6679_v18  ;;  %v6594_v18 = vld [vmem:[%s14868_s29 + $0xab8] sm:$0xff] }
 0x7fa   :  { %10730 = vmatpush1.bf16.msra.mxu0 %v10729_v1  ;;  %v6516_v1 = vld [vmem:[%s14868_s29 + $0x848] sm:$0xff] }
 0x7fb   :  { %11018 = vmatpush3.bf16.msra.mxu1 %v11017_v2  ;;  %10732 = vmatprep.subr.bf16.mxu0 %v10731_v44  ;;  %v6519_v2 = vld [vmem:[%s14868_s29 + $0x860] sm:$0xff]  ;;  %v6709_v44 = vld [vmem:[%s14868_s29 + $0xe50] sm:$0xff] }
 0x7fc   :  { %11020 = vmatprep.subr.bf16.mxu1 %v11019_v57  ;;  %v10751_v57 = vpack.c.bf16 %v6519_v2, %v6516_v1  ;;  %v11039_v20 = vpack.c.bf16 %v6712_v30, %v6709_v44  ;;  %v6549_v1 = vld [vmem:[%s14868_s29 + $0x950] sm:$0xff] }
 0x7fd   :  { %v10771_v44 = vpack.c.bf16 %v6549_v1, %v6546_v41  ;;  %v6545_v30 = vld [vmem:[%s14868_s29 + $0x930] sm:$0xff]  ;;  %v6599_v41 = vld [vmem:[%s14868_s29 + $0xae0] sm:$0xff]  ;;  %v6602_v1 = vld [vmem:[%s14868_s29 + $0xaf8] sm:$0xff] }
 0x7fe   :  { %10734 = vmatpush1.bf16.msra.mxu0 %v10733_v21  ;;  %v6522_v21 = vld [vmem:[%s14868_s29 + $0x878] sm:$0xff] }
 0x7ff   :  { %11022 = vmatpush3.bf16.msra.mxu1 %v11021_v11  ;;  %10736 = vmatprep.subr.bf16.mxu0 %v10735_v13  ;;  %v6525_v11 = vld [vmem:[%s14868_s29 + $0x890] sm:$0xff]  ;;  %v6715_v13 = vld [vmem:[%s14868_s29 + $0xe80] sm:$0xff] }
 0x800   :  { %11024 = vmatprep.subr.bf16.mxu1 %v11023_v33  ;;  %v11041_v33 = vpack.c.bf16 %v6664_v43, %v6661_v6  ;;  %v10755_v15 = vpack.c.bf16 %v6525_v11, %v6522_v21  ;;  %v11043_v0 = vpack.c.bf16 %v6718_v35, %v6715_v13  ;;  %v6551_v6 = vld [vmem:[%s14868_s29 + $0x960] sm:$0xff]  ;;  %v6558_v43 = vld [vmem:[%s14868_s29 + $0x998] sm:$0xff]  ;;  %v6561_v21 = vld [vmem:[%s14868_s29 + $0x9b0] sm:$0xff] }
 0x801   :  { %v10779_v11 = vpack.c.bf16 %v6561_v21, %v6558_v43  ;;  %v6557_v13 = vld [vmem:[%s14868_s29 + $0x990] sm:$0xff]  ;;  %v6560_v35 = vld [vmem:[%s14868_s29 + $0x9a8] sm:$0xff]  ;;  %v6611_v43 = vld [vmem:[%s14868_s29 + $0xb40] sm:$0xff] }
 0x802   :  { %7361 = vmatmul.mubr.f32.vlgmr.msra.gmra.mrb[44].mxu1 %v14120_v56  ;;  %10738 = vmatpush1.bf16.msra.mxu0 %v10737_v45  ;;  %v6528_v45 = vld [vmem:[%s14868_s29 + $0x8a8] sm:$0xff]  ;;  %v6614_v21 = vld [vmem:[%s14868_s29 + $0xb58] sm:$0xff] }
 0x803   :  { %11026 = vmatpush3.bf16.msra.mxu1 %v11025_v62  ;;  %7430 = vmatprep.mubr.f32.mxu1 %v14092_v46  ;;  %v6531_v62 = vld [vmem:[%s14868_s29 + $0x8c0] sm:$0xff] }
 0x804   :  { %10740 = vmatprep.subr.bf16.mxu0 %v10739_v40  ;;  %11028 = vmatprep.subr.bf16.mxu1 %v11027_v24  ;;  %v11045_v40 = vpack.c.bf16 %v6670_v4, %v6667_v32  ;;  %v10759_v24 = vpack.c.bf16 %v6531_v62, %v6528_v45  ;;  %v6570_v32 = vld [vmem:[%s14868_s29 + $0x9f8] sm:$0xff]  ;;  %v10785_v4 = vpack.c.bf16 %v6566_v34, %v6563_v47  ;;  %v6569_v62 = vld [vmem:[%s14868_s29 + $0x9f0] sm:$0xff] }
 0x806   :  { %10742 = vmatpush1.bf16.msra.mxu0 %v10741_v52  ;;  %v6534_v52 = vld [vmem:[%s14868_s29 + $0x8d8] sm:$0xff] }
 0x807   :  { %11030 = vmatpush3.bf16.msra.mxu1 %v11029_v26  ;;  %10744 = vmatprep.subr.bf16.mxu0 %v10743_v51  ;;  %v6537_v26 = vld [vmem:[%s14868_s29 + $0x8f0] sm:$0xff]  ;;  %v6727_v51 = vld [vmem:[%s14868_s29 + $0xee0] sm:$0xff] }
 0x808   :  { %11032 = vmatprep.subr.bf16.mxu1 %v11031_v3  ;;  %v10763_v3 = vpack.c.bf16 %v6537_v26, %v6534_v52  ;;  %v11051_v38 = vpack.c.bf16 %v6730_v10, %v6727_v51  ;;  %v6581_v26 = vld [vmem:[%s14868_s29 + $0xa50] sm:$0xff]  ;;  %v6584_v51 = vld [vmem:[%s14868_s29 + $0xa68] sm:$0xff] }
 0x809   :  { %v6588_v10 = vld [vmem:[%s14868_s29 + $0xa88] sm:$0xff] }
 0x80a   :  { %10746 = vmatpush1.bf16.msra.mxu0 %v10745_v31  ;;  %v6540_v31 = vld [vmem:[%s14868_s29 + $0x908] sm:$0xff] }
 0x80b   :  { %11034 = vmatpush3.bf16.msra.mxu1 %v11033_v12  ;;  %10748 = vmatprep.subr.bf16.mxu0 %v10747_v14  ;;  %v6543_v12 = vld [vmem:[%s14868_s29 + $0x920] sm:$0xff]  ;;  %v10765_v14 = vpack.c.bf16 %v6536_v8, %v6533_v9  ;;  %v6590_v8 = vld [vmem:[%s14868_s29 + $0xa98] sm:$0xff] }
 0x80c   :  { %11036 = vmatprep.subr.bf16.mxu1 %v11035_v61  ;;  %v10767_v59 = vpack.c.bf16 %v6543_v12, %v6540_v31  ;;  %v6542_v61 = vld [vmem:[%s14868_s29 + $0x918] sm:$0xff]  ;;  %v6587_v9 = vld [vmem:[%s14868_s29 + $0xa80] sm:$0xff]  ;;  %v6593_v12 = vld [vmem:[%s14868_s29 + $0xab0] sm:$0xff] }
 0x80d   :  { %v10769_v2 = vpack.c.bf16 %v6542_v61, %v6539_v16  ;;  %v10801_v50 = vpack.c.bf16 %v6590_v8, %v6587_v9 }
 0x80e   :  { %10750 = vmatpush1.bf16.msra.mxu0 %v10749_v29  ;;  %v6548_v29 = vld [vmem:[%s14868_s29 + $0x948] sm:$0xff] }
 0x80f   :  { %11038 = vmatpush3.bf16.msra.mxu1 %v11037_v22  ;;  %10752 = vmatprep.subr.bf16.mxu0 %v10751_v57  ;;  %v6552_v22 = vld [vmem:[%s14868_s29 + $0x968] sm:$0xff]  ;;  %v6555_v57 = vld [vmem:[%s14868_s29 + $0x980] sm:$0xff]  ;;  %v10773_v27 = vpack.c.bf16 %v6548_v29, %v6545_v30  ;;  %v10809_v30 = vpack.c.bf16 %v6602_v1, %v6599_v41  ;;  %v6662_v1 = vld [vmem:[%s14868_s29 + $0xcd8] sm:$0xff] }
 0x810   :  { %11040 = vmatprep.subr.bf16.mxu1 %v11039_v20  ;;  %v10775_v48 = vpack.c.bf16 %v6555_v57, %v6552_v22  ;;  %v6554_v20 = vld [vmem:[%s14868_s29 + $0x978] sm:$0xff]  ;;  %v6605_v22 = vld [vmem:[%s14868_s29 + $0xb10] sm:$0xff]  ;;  %v6608_v57 = vld [vmem:[%s14868_s29 + $0xb28] sm:$0xff] }
 0x811   :  { %v6659_v41 = vld [vmem:[%s14868_s29 + $0xcc0] sm:$0xff] }
 0x812   :  { %10754 = vmatpush1.bf16.msra.mxu0 %v10753_v5  ;;  %v6564_v5 = vld [vmem:[%s14868_s29 + $0x9c8] sm:$0xff] }
 0x813   :  { %11042 = vmatpush3.bf16.msra.mxu1 %v11041_v33  ;;  %10756 = vmatprep.subr.bf16.mxu0 %v10755_v15  ;;  %v10781_v33 = vpack.c.bf16 %v6560_v35, %v6557_v13  ;;  %v10817_v13 = vpack.c.bf16 %v6614_v21, %v6611_v43  ;;  %v6671_v43 = vld [vmem:[%s14868_s29 + $0xd20] sm:$0xff]  ;;  %v6674_v21 = vld [vmem:[%s14868_s29 + $0xd38] sm:$0xff] }
 0x814   :  { %11044 = vmatprep.subr.bf16.mxu1 %v11043_v0  ;;  %v6573_v0 = vld [vmem:[%s14868_s29 + $0xa10] sm:$0xff] }
 0x815   :  { %v10787_v45 = vpack.c.bf16 %v6573_v0, %v6570_v32  ;;  %v6623_v32 = vld [vmem:[%s14868_s29 + $0xba0] sm:$0xff]  ;;  %v6626_v0 = vld [vmem:[%s14868_s29 + $0xbb8] sm:$0xff] }
 0x816   :  { %10758 = vmatpush1.bf16.msra.mxu0 %v10757_v53  ;;  %v6579_v53 = vld [vmem:[%s14868_s29 + $0xa40] sm:$0xff] }
 0x817   :  { %11046 = vmatpush3.bf16.msra.mxu1 %v11045_v40  ;;  %10760 = vmatprep.subr.bf16.mxu0 %v10759_v24  ;;  %v10789_v40 = vpack.c.bf16 %v6572_v7, %v6569_v62  ;;  %v10791_v24 = vpack.c.bf16 %v6579_v53, %v6576_v63  ;;  %v10825_v62 = vpack.c.bf16 %v6626_v0, %v6623_v32  ;;  %v6629_v63 = vld [vmem:[%s14868_s29 + $0xbd0] sm:$0xff]  ;;  %v6632_v53 = vld [vmem:[%s14868_s29 + $0xbe8] sm:$0xff]  ;;  %v6687_v32 = vld [vmem:[%s14868_s29 + $0xda0] sm:$0xff] }
 0x818   :  { %11048 = vmatprep.subr.bf16.mxu1 %v11047_v39  ;;  %v6585_v39 = vld [vmem:[%s14868_s29 + $0xa70] sm:$0xff]  ;;  %v10829_v25 = vpack.c.bf16 %v6632_v53, %v6629_v63 }
 0x819   :  { %v10795_v52 = vpack.c.bf16 %v6585_v39, %v6582_v28  ;;  %v6635_v28 = vld [vmem:[%s14868_s29 + $0xc00] sm:$0xff]  ;;  %v6638_v39 = vld [vmem:[%s14868_s29 + $0xc18] sm:$0xff]  ;;  %v6693_v63 = vld [vmem:[%s14868_s29 + $0xdd0] sm:$0xff] }
 0x81a   :  { %10762 = vmatpush1.bf16.msra.mxu0 %v10761_v54  ;;  %v6591_v54 = vld [vmem:[%s14868_s29 + $0xaa0] sm:$0xff]  ;;  %v6689_v53 = vld [vmem:[%s14868_s29 + $0xdb0] sm:$0xff] }
 0x81b   :  { %11050 = vmatpush3.bf16.msra.mxu1 %v11049_v37  ;;  %10764 = vmatprep.subr.bf16.mxu0 %v10763_v3  ;;  %v10797_v37 = vpack.c.bf16 %v6584_v51, %v6581_v26  ;;  %v10799_v3 = vpack.c.bf16 %v6591_v54, %v6588_v10  ;;  %v10833_v26 = vpack.c.bf16 %v6638_v39, %v6635_v28  ;;  %v6641_v10 = vld [vmem:[%s14868_s29 + $0xc30] sm:$0xff]  ;;  %v6644_v54 = vld [vmem:[%s14868_s29 + $0xc48] sm:$0xff] }
 0x81c   :  { %11052 = vmatprep.subr.bf16.mxu1 %v11051_v38  ;;  %v6597_v38 = vld [vmem:[%s14868_s29 + $0xad0] sm:$0xff]  ;;  %v10837_v9 = vpack.c.bf16 %v6644_v54, %v6641_v10 }
 0x81d   :  { %v10803_v31 = vpack.c.bf16 %v6597_v38, %v6594_v18  ;;  %v6647_v18 = vld [vmem:[%s14868_s29 + $0xc60] sm:$0xff]  ;;  %v6650_v38 = vld [vmem:[%s14868_s29 + $0xc78] sm:$0xff] }
 0x81e   :  { %10766 = vmatpush1.bf16.msra.mxu0 %v10765_v14  ;;  %v6596_v14 = vld [vmem:[%s14868_s29 + $0xac8] sm:$0xff] }
 0x81f   :  { %11054 = vmatpush3.bf16.msra.mxu1 %v11053_v60  ;;  %10768 = vmatprep.subr.bf16.mxu0 %v10767_v59  ;;  %v6600_v60 = vld [vmem:[%s14868_s29 + $0xae8] sm:$0xff]  ;;  %v6603_v59 = vld [vmem:[%s14868_s29 + $0xb00] sm:$0xff]  ;;  %v10805_v16 = vpack.c.bf16 %v6596_v14, %v6593_v12  ;;  %v10841_v12 = vpack.c.bf16 %v6650_v38, %v6647_v18  ;;  %v6653_v14 = vld [vmem:[%s14868_s29 + $0xc90] sm:$0xff] }
 0x820   :  { %v10807_v61 = vpack.c.bf16 %v6603_v59, %v6600_v60  ;;  %v6656_v60 = vld [vmem:[%s14868_s29 + $0xca8] sm:$0xff]  ;;  %v6663_v59 = vld [vmem:[%s14868_s29 + $0xce0] sm:$0xff]  ;;  %v7450_v38 = vld [vmem:[%s14880_s8 + $0x58] sm:$0xff] }
 0x821   :  { %6938 = vmatmul.mubr.f32.vlgmr.msra.gmra.mrb[40].mxu0 %v14065_v23  ;;  %v10777_v23 = vpack.c.bf16 %v6554_v20, %v6551_v6  ;;  %v10813_v6 = vpack.c.bf16 %v6608_v57, %v6605_v22  ;;  %v6665_v22 = vld [vmem:[%s14868_s29 + $0xcf0] sm:$0xff]  ;;  %v6668_v57 = vld [vmem:[%s14868_s29 + $0xd08] sm:$0xff]  ;;  %v6699_v18 = vld [vmem:[%s14868_s29 + $0xe00] sm:$0xff] }
 0x822   :  { %7431 = vmatmul.mubr.f32.vlgmr.msra.gmra.mrb[46].mxu1 %v14087_v36  ;;  %10770 = vmatpush1.bf16.msra.mxu0 %v10769_v2  ;;  %v6606_v2 = vld [vmem:[%s14868_s29 + $0xb18] sm:$0xff] }
 0x823   :  { %7008 = vmatprep.mubr.f32.mxu0 %v14125_v58  ;;  %10772 = vmatprep.subr.bf16.mxu0 %v10771_v44  ;;  %v6567_v58 = vld [vmem:[%s14868_s29 + $0x9e0] sm:$0xff]  ;;  %v6609_v44 = vld [vmem:[%s14868_s29 + $0xb30] sm:$0xff] }
 0x824   :  { %v10783_v15 = vpack.c.bf16 %v6567_v58, %v6564_v5  ;;  %v10811_v29 = vpack.c.bf16 %v6609_v44, %v6606_v2  ;;  %v6617_v5 = vld [vmem:[%s14868_s29 + $0xb70] sm:$0xff]  ;;  %v6620_v58 = vld [vmem:[%s14868_s29 + $0xb88] sm:$0xff]  ;;  %v6666_v2 = vld [vmem:[%s14868_s29 + $0xcf8] sm:$0xff] }
 0x825   :  { %v10821_v47 = vpack.c.bf16 %v6620_v58, %v6617_v5  ;;  %v6669_v44 = vld [vmem:[%s14868_s29 + $0xd10] sm:$0xff]  ;;  %v10857_v58 = vpack.c.bf16 %v6674_v21, %v6671_v43  ;;  %v6708_v43 = vld [vmem:[%s14868_s29 + $0xe48] sm:$0xff]  ;;  %v6711_v21 = vld [vmem:[%s14868_s29 + $0xe60] sm:$0xff] }
 0x826   :  { %10774 = vmatpush1.bf16.msra.mxu0 %v10773_v27  ;;  %v6612_v27 = vld [vmem:[%s14868_s29 + $0xb48] sm:$0xff] }
 0x827   :  { %10776 = vmatprep.subr.bf16.mxu0 %v10775_v48  ;;  %v6615_v48 = vld [vmem:[%s14868_s29 + $0xb60] sm:$0xff] }
 0x828   :  { %v10815_v20 = vpack.c.bf16 %v6615_v48, %v6612_v27  ;;  %v6672_v27 = vld [vmem:[%s14868_s29 + $0xd28] sm:$0xff]  ;;  %v6675_v48 = vld [vmem:[%s14868_s29 + $0xd40] sm:$0xff] }
 0x82a   :  { %10778 = vmatpush1.bf16.msra.mxu0 %v10777_v23  ;;  %v6618_v23 = vld [vmem:[%s14868_s29 + $0xb78] sm:$0xff] }
 0x82b   :  { %10780 = vmatprep.subr.bf16.mxu0 %v10779_v11  ;;  %v6621_v11 = vld [vmem:[%s14868_s29 + $0xb90] sm:$0xff] }
 0x82c   :  { %v10819_v35 = vpack.c.bf16 %v6621_v11, %v6618_v23  ;;  %v6678_v11 = vld [vmem:[%s14868_s29 + $0xd58] sm:$0xff] }
 0x82e   :  { %10782 = vmatpush1.bf16.msra.mxu0 %v10781_v33  ;;  %v6624_v33 = vld [vmem:[%s14868_s29 + $0xba8] sm:$0xff] }
 0x82f   :  { %10784 = vmatprep.subr.bf16.mxu0 %v10783_v15  ;;  %v6627_v15 = vld [vmem:[%s14868_s29 + $0xbc0] sm:$0xff] }
 0x830   :  { %v10823_v34 = vpack.c.bf16 %v6627_v15, %v6624_v33  ;;  %v6677_v15 = vld [vmem:[%s14868_s29 + $0xd50] sm:$0xff] }
 0x832   :  { %10786 = vmatpush1.bf16.msra.mxu0 %v10785_v4  ;;  %v6630_v4 = vld [vmem:[%s14868_s29 + $0xbd8] sm:$0xff] }
 0x833   :  { %10788 = vmatprep.subr.bf16.mxu0 %v10787_v45  ;;  %v6633_v45 = vld [vmem:[%s14868_s29 + $0xbf0] sm:$0xff] }
 0x834   :  { %v10827_v7 = vpack.c.bf16 %v6633_v45, %v6630_v4  ;;  %v6683_v45 = vld [vmem:[%s14868_s29 + $0xd80] sm:$0xff] }
 0x836   :  { %10790 = vmatpush1.bf16.msra.mxu0 %v10789_v40  ;;  %v6636_v40 = vld [vmem:[%s14868_s29 + $0xc08] sm:$0xff] }
 0x837   :  { %10792 = vmatprep.subr.bf16.mxu0 %v10791_v24  ;;  %v6639_v24 = vld [vmem:[%s14868_s29 + $0xc20] sm:$0xff] }
 0x838   :  { %v10831_v42 = vpack.c.bf16 %v6639_v24, %v6636_v40  ;;  %v6692_v40 = vld [vmem:[%s14868_s29 + $0xdc8] sm:$0xff] }
 0x839   :  { %v7440_v24 = vld [vmem:[%s14880_s8 + $0x8] sm:$0xff] }
 0x83a   :  { %10794 = vmatpush1.bf16.msra.mxu0 %v10793_v55  ;;  %v6642_v55 = vld [vmem:[%s14868_s29 + $0xc38] sm:$0xff] }
 0x83b   :  { %10796 = vmatprep.subr.bf16.mxu0 %v10795_v52  ;;  %v6645_v52 = vld [vmem:[%s14868_s29 + $0xc50] sm:$0xff] }
 0x83c   :  { %v10835_v51 = vpack.c.bf16 %v6645_v52, %v6642_v55  ;;  %v7441_v55 = vld [vmem:[%s14880_s8 + $0x10] sm:$0xff]  ;;  %v7444_v52 = vld [vmem:[%s14880_s8 + $0x28] sm:$0xff] }
 0x83e   :  { %10798 = vmatpush1.bf16.msra.mxu0 %v10797_v37  ;;  %v6648_v37 = vld [vmem:[%s14868_s29 + $0xc68] sm:$0xff] }
 0x83f   :  { %10800 = vmatprep.subr.bf16.mxu0 %v10799_v3  ;;  %v6651_v3 = vld [vmem:[%s14868_s29 + $0xc80] sm:$0xff] }
 0x840   :  { %v10839_v8 = vpack.c.bf16 %v6651_v3, %v6648_v37  ;;  %v7443_v37 = vld [vmem:[%s14880_s8 + $0x20] sm:$0xff]  ;;  %v7445_v3 = vld [vmem:[%s14880_s8 + $0x30] sm:$0xff] }
 0x842   :  { %10802 = vmatpush1.bf16.msra.mxu0 %v10801_v50  ;;  %v6654_v50 = vld [vmem:[%s14868_s29 + $0xc98] sm:$0xff] }
 0x843   :  { %10804 = vmatprep.subr.bf16.mxu0 %v10803_v31  ;;  %v6657_v31 = vld [vmem:[%s14868_s29 + $0xcb0] sm:$0xff] }
 0x846   :  { %10806 = vmatpush1.bf16.msra.mxu0 %v10805_v16  ;;  %v10845_v16 = vpack.c.bf16 %v6656_v60, %v6653_v14  ;;  %v7447_v14 = vld [vmem:[%s14880_s8 + $0x40] sm:$0xff]  ;;  %v7449_v60 = vld [vmem:[%s14880_s8 + $0x50] sm:$0xff] }
 0x847   :  { %10808 = vmatprep.subr.bf16.mxu0 %v10807_v61 }
 0x84a   :  { %10810 = vmatpush1.bf16.msra.mxu0 %v10809_v30  ;;  %v10849_v30 = vpack.c.bf16 %v6662_v1, %v6659_v41  ;;  %v6702_v41 = vld [vmem:[%s14868_s29 + $0xe18] sm:$0xff]  ;;  %v6705_v1 = vld [vmem:[%s14868_s29 + $0xe30] sm:$0xff] }
 0x84b   :  { %10812 = vmatprep.subr.bf16.mxu0 %v10811_v29  ;;  %v10851_v29 = vpack.c.bf16 %v6669_v44, %v6666_v2  ;;  %v11065_v2 = vpack.c.bf16 %v7449_v60, %v7447_v14 }
 0x84e   :  { %10814 = vmatpush1.bf16.msra.mxu0 %v10813_v6  ;;  %v10853_v6 = vpack.c.bf16 %v6668_v57, %v6665_v22  ;;  %v7451_v22 = vld [vmem:[%s14880_s8 + $0x60] sm:$0xff]  ;;  %v7453_v57 = vld [vmem:[%s14880_s8 + $0x70] sm:$0xff] }
 0x84f   :  { %10816 = vmatprep.subr.bf16.mxu0 %v10815_v20  ;;  %v10855_v20 = vpack.c.bf16 %v6675_v48, %v6672_v27  ;;  %v10875_v27 = vpack.c.bf16 %v6705_v1, %v6702_v41  ;;  %v6704_v48 = vld [vmem:[%s14868_s29 + $0xe28] sm:$0xff] }
 0x850   :  { %v6728_v1 = vld [vmem:[%s14868_s29 + $0xee8] sm:$0xff] }
 0x852   :  { %10818 = vmatpush1.bf16.msra.mxu0 %v10817_v13  ;;  %v6681_v13 = vld [vmem:[%s14868_s29 + $0xd70] sm:$0xff] }
 0x853   :  { %10820 = vmatprep.subr.bf16.mxu0 %v10819_v35  ;;  %v10859_v33 = vpack.c.bf16 %v6681_v13, %v6678_v11  ;;  %v6707_v13 = vld [vmem:[%s14868_s29 + $0xe40] sm:$0xff] }
 0x856   :  { %10822 = vmatpush1.bf16.msra.mxu0 %v10821_v47  ;;  %v6680_v47 = vld [vmem:[%s14868_s29 + $0xd68] sm:$0xff] }
 0x857   :  { %10824 = vmatprep.subr.bf16.mxu0 %v10823_v34  ;;  %v6684_v34 = vld [vmem:[%s14868_s29 + $0xd88] sm:$0xff]  ;;  %v10861_v0 = vpack.c.bf16 %v6680_v47, %v6677_v15  ;;  %v10879_v15 = vpack.c.bf16 %v6711_v21, %v6708_v43  ;;  %v6710_v47 = vld [vmem:[%s14868_s29 + $0xe58] sm:$0xff] }
 0x858   :  { %v10863_v4 = vpack.c.bf16 %v6687_v32, %v6684_v34  ;;  %v7460_v34 = vld [vmem:[%s14880_s8 + $0xa8] sm:$0xff]  ;;  %v7462_v32 = vld [vmem:[%s14880_s8 + $0xb8] sm:$0xff] }
 0x859   :  { %v7476_v43 = vld [vmem:[%s14880_s8 + $0x128] sm:$0xff] }
 0x85a   :  { %10826 = vmatpush1.bf16.msra.mxu0 %v10825_v62  ;;  %v6686_v62 = vld [vmem:[%s14868_s29 + $0xd98] sm:$0xff] }
 0x85b   :  { %10828 = vmatprep.subr.bf16.mxu0 %v10827_v7  ;;  %v6690_v7 = vld [vmem:[%s14868_s29 + $0xdb8] sm:$0xff]  ;;  %v10865_v28 = vpack.c.bf16 %v6686_v62, %v6683_v45  ;;  %v10881_v62 = vpack.c.bf16 %v6710_v47, %v6707_v13  ;;  %v7475_v13 = vld [vmem:[%s14880_s8 + $0x120] sm:$0xff]  ;;  %v7480_v47 = vld [vmem:[%s14880_s8 + $0x148] sm:$0xff] }
 0x85e   :  { %10830 = vmatpush1.bf16.msra.mxu0 %v10829_v25  ;;  %v7442_v25 = vld [vmem:[%s14880_s8 + $0x18] sm:$0xff] }
 0x85f   :  { %10832 = vmatprep.subr.bf16.mxu0 %v10831_v42  ;;  %v7439_v42 = vld [vmem:[%s14880_s8] sm:$0xff]  ;;  %v11055_v39 = vpack.c.bf16 %v7442_v25, %v7440_v24  ;;  %v6716_v25 = vld [vmem:[%s14868_s29 + $0xe88] sm:$0xff] }
 0x860   :  { %v11057_v10 = vpack.c.bf16 %v7441_v55, %v7439_v42  ;;  %v7464_v42 = vld [vmem:[%s14880_s8 + $0xc8] sm:$0xff]  ;;  %v6723_v55 = vld [vmem:[%s14868_s29 + $0xec0] sm:$0xff] }
 0x861   :  { %7009 = vmatmul.mubr.f32.vlgmr.msra.gmra.mrb[40].mxu0 %v14120_v56  ;;  %v10843_v56 = vpack.c.bf16 %v6657_v31, %v6654_v50  ;;  %11056 = vmatprep.subr.bf16.mxu1 %v11055_v39  ;;  %v11061_v50 = vpack.c.bf16 %v7445_v3, %v7443_v37  ;;  %v10869_v31 = vpack.c.bf16 %v6692_v40, %v6689_v53  ;;  %v7459_v53 = vld [vmem:[%s14880_s8 + $0xa0] sm:$0xff]  ;;  %v7461_v40 = vld [vmem:[%s14880_s8 + $0xb0] sm:$0xff]  ;;  %v6720_v39 = vld [vmem:[%s14868_s29 + $0xea8] sm:$0xff] }
 0x862   :  { %10834 = vmatpush1.bf16.msra.mxu0 %v10833_v26  ;;  %7079 = vmatprep.mubr.f32.mxu0 %v14092_v46  ;;  %v6660_v46 = vld [vmem:[%s14868_s29 + $0xcc8] sm:$0xff]  ;;  %v7446_v26 = vld [vmem:[%s14880_s8 + $0x38] sm:$0xff]  ;;  %v7465_v37 = vld [vmem:[%s14880_s8 + $0xd0] sm:$0xff]  ;;  %v10887_v3 = vpack.c.bf16 %v6723_v55, %v6720_v39 }
 0x863   :  { %10836 = vmatprep.subr.bf16.mxu0 %v10835_v51  ;;  %v10847_v61 = vpack.c.bf16 %v6663_v59, %v6660_v46  ;;  %v10867_v51 = vpack.c.bf16 %v6693_v63, %v6690_v7  ;;  %v11059_v54 = vpack.c.bf16 %v7446_v26, %v7444_v52  ;;  %11058 = vmatpush1.bf16.msra.mxu1 %v11057_v10  ;;  %v6698_v59 = vld [vmem:[%s14868_s29 + $0xdf8] sm:$0xff]  ;;  %v6713_v7 = vld [vmem:[%s14868_s29 + $0xe70] sm:$0xff] }
 0x864   :  { %v11075_v63 = vpack.c.bf16 %v7462_v32, %v7460_v34  ;;  %v11077_v52 = vpack.c.bf16 %v7461_v40, %v7459_v53  ;;  %v10885_v26 = vpack.c.bf16 %v6716_v25, %v6713_v7  ;;  %v7482_v34 = vld [vmem:[%s14880_s8 + $0x158] sm:$0xff]  ;;  %v7481_v7 = vld [vmem:[%s14880_s8 + $0x150] sm:$0xff] }
 0x865   :  { %11060 = vmatprep.subr.bf16.mxu1 %v11059_v54  ;;  %v7463_v54 = vld [vmem:[%s14880_s8 + $0xc0] sm:$0xff]  ;;  %v7486_v53 = vld [vmem:[%s14880_s8 + $0x178] sm:$0xff]  ;;  %v8040_v25 = vld [vmem:[%s14881_s14 + $0x30] sm:$0xff] }
 0x866   :  { %10838 = vmatpush1.bf16.msra.mxu0 %v10837_v9  ;;  %v7448_v9 = vld [vmem:[%s14880_s8 + $0x48] sm:$0xff]  ;;  %v7485_v39 = vld [vmem:[%s14880_s8 + $0x170] sm:$0xff]  ;;  %v8041_v55 = vld [vmem:[%s14881_s14 + $0x38] sm:$0xff] }
 0x867   :  { %10840 = vmatprep.subr.bf16.mxu0 %v10839_v8  ;;  %v6696_v8 = vld [vmem:[%s14868_s29 + $0xde8] sm:$0xff]  ;;  %11062 = vmatpush1.bf16.msra.mxu1 %v11061_v50  ;;  %v6726_v50 = vld [vmem:[%s14868_s29 + $0xed8] sm:$0xff] }
 0x868   :  { %v10871_v46 = vpack.c.bf16 %v6699_v18, %v6696_v8  ;;  %v7468_v8 = vld [vmem:[%s14880_s8 + $0xe8] sm:$0xff]  ;;  %v7470_v18 = vld [vmem:[%s14880_s8 + $0xf8] sm:$0xff] }
 0x86a   :  { %10842 = vmatpush1.bf16.msra.mxu0 %v10841_v12  ;;  %v6695_v12 = vld [vmem:[%s14868_s29 + $0xde0] sm:$0xff] }
 0x86b   :  { %10844 = vmatprep.subr.bf16.mxu0 %v10843_v56  ;;  %v11063_v56 = vpack.c.bf16 %v7450_v38, %v7448_v9  ;;  %v10873_v44 = vpack.c.bf16 %v6698_v59, %v6695_v12  ;;  %v6722_v9 = vld [vmem:[%s14868_s29 + $0xeb8] sm:$0xff]  ;;  %v11083_v59 = vpack.c.bf16 %v7470_v18, %v7468_v8 }
 0x86c   :  { %v7494_v8 = vld [vmem:[%s14880_s8 + $0x1b8] sm:$0xff] }
 0x86d   :  { %11064 = vmatprep.subr.bf16.mxu1 %v11063_v56  ;;  %v11081_v56 = vpack.c.bf16 %v7465_v37, %v7463_v54  ;;  %v7487_v37 = vld [vmem:[%s14880_s8 + $0x180] sm:$0xff] }
 0x86e   :  { %10846 = vmatpush1.bf16.msra.mxu0 %v10845_v16  ;;  %v7452_v16 = vld [vmem:[%s14880_s8 + $0x68] sm:$0xff]  ;;  %11066 = vmatpush1.bf16.msra.mxu1 %v11065_v2 }
 0x86f   :  { %10848 = vmatprep.subr.bf16.mxu0 %v10847_v61  ;;  %v7454_v61 = vld [vmem:[%s14880_s8 + $0x78] sm:$0xff]  ;;  %v7472_v2 = vld [vmem:[%s14880_s8 + $0x108] sm:$0xff] }
 0x872   :  { %10850 = vmatpush1.bf16.msra.mxu0 %v10849_v30  ;;  %v6701_v30 = vld [vmem:[%s14868_s29 + $0xe10] sm:$0xff] }
 0x873   :  { %10852 = vmatprep.subr.bf16.mxu0 %v10851_v29  ;;  %v11067_v29 = vpack.c.bf16 %v7454_v61, %v7452_v16  ;;  %v10877_v11 = vpack.c.bf16 %v6704_v48, %v6701_v30  ;;  %v7467_v16 = vld [vmem:[%s14880_s8 + $0xe0] sm:$0xff]  ;;  %v7469_v61 = vld [vmem:[%s14880_s8 + $0xf0] sm:$0xff] }
 0x874   :  { %v8708_v23 = vpop.f32.mrb[38].mxu1  ;;  %v7473_v48 = vld [vmem:[%s14880_s8 + $0x110] sm:$0xff] }
 0x875   :  { %v8709_v35 = vpop.f32.mrb[39].mxu1  ;;  %11068 = vmatprep.subr.bf16.mxu1 %v11067_v29  ;;  %v11085_v29 = vpack.c.bf16 %v7469_v61, %v7467_v16 }
 0x876   :  { %10854 = vmatpush1.bf16.msra.mxu0 %v10853_v6  ;;  %v14428_v5 = vadd.f32 %v8709_v35, %v8708_v23  ;;  %v7456_v6 = vld [vmem:[%s14880_s8 + $0x88] sm:$0xff]  ;;  %v11069_v23 = vpack.c.bf16 %v7453_v57, %v7451_v22 }
 0x877   :  { %10856 = vmatprep.subr.bf16.mxu0 %v10855_v20  ;;  %v7458_v20 = vld [vmem:[%s14880_s8 + $0x98] sm:$0xff] }
 0x878   :  { %v11071_v35 = vpack.c.bf16 %v7458_v20, %v7456_v6  ;;  %11070 = vmatpush1.bf16.msra.mxu1 %v11069_v23  ;;  %v8034_v6 = vld [vmem:[%s14881_s14] sm:$0xff]  ;;  %v8035_v20 = vld [vmem:[%s14881_s14 + $0x8] sm:$0xff] }
 0x879   :  { %v11216_v23 = vpack.c.bf16 %v8035_v20, %v8034_v6 }
 0x87a   :  { %10858 = vmatpush1.bf16.msra.mxu0 %v10857_v58  ;;  %v7455_v58 = vld [vmem:[%s14880_s8 + $0x80] sm:$0xff]  ;;  %11072 = vmatprep.subr.bf16.mxu1 %v11071_v35  ;;  %v7477_v35 = vld [vmem:[%s14880_s8 + $0x130] sm:$0xff] }
 0x87b   :  { %10860 = vmatprep.subr.bf16.mxu0 %v10859_v33  ;;  %v7457_v33 = vld [vmem:[%s14880_s8 + $0x90] sm:$0xff]  ;;  %v11093_v32 = vpack.c.bf16 %v7477_v35, %v7475_v13  ;;  %v7506_v13 = vld [vmem:[%s14880_s8 + $0x218] sm:$0xff] }
 0x87c   :  { %v11073_v45 = vpack.c.bf16 %v7457_v33, %v7455_v58  ;;  %v14882_v58 = vmov 0.0|0.0   ;;  %v8037_v33 = vld [vmem:[%s14881_s14 + $0x18] sm:$0xff] }
 0x87e   :  { %10862 = vmatpush1.bf16.msra.mxu0 %v10861_v0  ;;  %v6714_v0 = vld [vmem:[%s14868_s29 + $0xe78] sm:$0xff]  ;;  %11074 = vmatpush1.bf16.msra.mxu1 %v11073_v45  ;;  %v11095_v45 = vpack.c.bf16 %v7482_v34, %v7480_v47  ;;  %v8120_v34 = vld [vmem:[%s11643_s27] sm:$0xff] }
 0x87f   :  { %10864 = vmatprep.subr.bf16.mxu0 %v10863_v4  ;;  %v6717_v4 = vld [vmem:[%s14868_s29 + $0xe90] sm:$0xff]  ;;  %11076 = vmatprep.subr.bf16.mxu1 %v11075_v63  ;;  %v7484_v63 = vld [vmem:[%s14880_s8 + $0x168] sm:$0xff] }
 0x880   :  { %v10883_v24 = vpack.c.bf16 %v6717_v4, %v6714_v0  ;;  %v8038_v4 = vld [vmem:[%s14881_s14 + $0x20] sm:$0xff] }
 0x882   :  { %10866 = vmatpush1.bf16.msra.mxu0 %v10865_v28  ;;  %v7466_v28 = vld [vmem:[%s14880_s8 + $0xd8] sm:$0xff]  ;;  %11078 = vmatpush1.bf16.msra.mxu1 %v11077_v52  ;;  %v7488_v52 = vld [vmem:[%s14880_s8 + $0x188] sm:$0xff] }
 0x883   :  { %10868 = vmatprep.subr.bf16.mxu0 %v10867_v51  ;;  %v6719_v51 = vld [vmem:[%s14868_s29 + $0xea0] sm:$0xff]  ;;  %v11079_v10 = vpack.c.bf16 %v7466_v28, %v7464_v42  ;;  %v11099_v42 = vpack.c.bf16 %v7486_v53, %v7484_v63  ;;  %v7508_v53 = vld [vmem:[%s14880_s8 + $0x228] sm:$0xff] }
 0x884   :  { %v10889_v60 = vpack.c.bf16 %v6722_v9, %v6719_v51  ;;  %v7483_v28 = vld [vmem:[%s14880_s8 + $0x160] sm:$0xff]  ;;  %v7492_v9 = vld [vmem:[%s14880_s8 + $0x1a8] sm:$0xff] }
 0x885   :  { %11080 = vmatprep.subr.bf16.mxu1 %v11079_v10  ;;  %v11101_v51 = vpack.c.bf16 %v7485_v39, %v7483_v28  ;;  %v11225_v10 = vpack.c.bf16 %v8041_v55, %v8040_v25  ;;  %v14884_v25 = vld [vmem:[#allocation34_spill] sm:$0xff]  ;;  %v14885_v39 = vld [vmem:[#allocation35_spill] sm:$0xff] }
 0x886   :  { %10870 = vmatpush1.bf16.msra.mxu0 %v10869_v31  ;;  %v6729_v31 = vld [vmem:[%s14868_s29 + $0xef0] sm:$0xff]  ;;  %11082 = vmatpush1.bf16.msra.mxu1 %v11081_v56  ;;  %v7498_v56 = vld [vmem:[%s14880_s8 + $0x1d8] sm:$0xff] }
 0x887   :  { %10872 = vmatprep.subr.bf16.mxu0 %v10871_v46  ;;  %v6725_v46 = vld [vmem:[%s14868_s29 + $0xed0] sm:$0xff]  ;;  %v10891_v41 = vpack.c.bf16 %v6729_v31, %v6726_v50  ;;  %11084 = vmatprep.subr.bf16.mxu1 %v11083_v59  ;;  %v7491_v50 = vld [vmem:[%s14880_s8 + $0x1a0] sm:$0xff] }
 0x888   :  { %v10893_v22 = vpack.c.bf16 %v6728_v1, %v6725_v46  ;;  %v7493_v31 = vld [vmem:[%s14880_s8 + $0x1b0] sm:$0xff]  ;;  %v7495_v46 = vld [vmem:[%s14880_s8 + $0x1c0] sm:$0xff] }
 0x889   :  { %v7497_v59 = vld [vmem:[%s14880_s8 + $0x1d0] sm:$0xff] }
 0x88a   :  { %10874 = vmatpush1.bf16.msra.mxu0 %v10873_v44  ;;  %v7474_v44 = vld [vmem:[%s14880_s8 + $0x118] sm:$0xff]  ;;  %11086 = vmatpush1.bf16.msra.mxu1 %v11085_v29 }
 0x88b   :  { %10876 = vmatprep.subr.bf16.mxu0 %v10875_v27  ;;  %v11087_v57 = vpack.c.bf16 %v7474_v44, %v7472_v2  ;;  %v7471_v27 = vld [vmem:[%s14880_s8 + $0x100] sm:$0xff] }
 0x88c   :  { %v11089_v21 = vpack.c.bf16 %v7473_v48, %v7471_v27  ;;  %v7500_v27 = vld [vmem:[%s14880_s8 + $0x1e8] sm:$0xff]  ;;  %v7502_v48 = vld [vmem:[%s14880_s8 + $0x1f8] sm:$0xff] }
 0x88d   :  { %11088 = vmatprep.subr.bf16.mxu1 %v11087_v57  ;;  %v11115_v20 = vpack.c.bf16 %v7502_v48, %v7500_v27  ;;  %v7714_v27 = vld [vmem:[%s14886_s19 + $0x40] sm:$0xff]  ;;  %v7715_v48 = vld [vmem:[%s14886_s19 + $0x48] sm:$0xff] }
 0x88e   :  { %10878 = vmatpush1.bf16.msra.mxu0 %v10877_v11  ;;  %v8036_v11 = vld [vmem:[%s14881_s14 + $0x10] sm:$0xff]  ;;  %11090 = vmatpush1.bf16.msra.mxu1 %v11089_v21 }
 0x88f   :  { %10880 = vmatprep.subr.bf16.mxu0 %v10879_v15  ;;  %v11219_v0 = vpack.c.bf16 %v8037_v33, %v8036_v11 }
 0x892   :  { %10882 = vmatpush1.bf16.msra.mxu0 %v10881_v62  ;;  %v7479_v62 = vld [vmem:[%s14880_s8 + $0x140] sm:$0xff] }
 0x893   :  { %10884 = vmatprep.subr.bf16.mxu0 %v10883_v24  ;;  %v11097_v40 = vpack.c.bf16 %v7481_v7, %v7479_v62  ;;  %v7503_v7 = vld [vmem:[%s14880_s8 + $0x200] sm:$0xff] }
 0x894   :  { %v8743_v38 = vpop.f32.mrb[40].mxu1 }
 0x895   :  { %v8744_v12 = vpop.f32.mrb[41].mxu1 }
 0x896   :  { %v8745_v14 = vadd.f32 %v8744_v12, %v8743_v38  ;;  %10886 = vmatpush1.bf16.msra.mxu0 %v10885_v26  ;;  %v7490_v26 = vld [vmem:[%s14880_s8 + $0x198] sm:$0xff]  ;;  %v11107_v38 = vpack.c.bf16 %v7494_v8, %v7492_v9  ;;  %v7496_v12 = vld [vmem:[%s14880_s8 + $0x1c8] sm:$0xff]  ;;  %v7511_v9 = vld [vmem:[%s14880_s8 + $0x240] sm:$0xff] }
 0x897   :  { %10888 = vmatprep.subr.bf16.mxu0 %v10887_v3  ;;  %v11103_v54 = vpack.c.bf16 %v7490_v26, %v7488_v52  ;;  %v7489_v3 = vld [vmem:[%s14880_s8 + $0x190] sm:$0xff]  ;;  %v7507_v26 = vld [vmem:[%s14880_s8 + $0x220] sm:$0xff] }
 0x898   :  { %v14499_v30 = vadd.f32 %v8745_v14, %v14428_v5  ;;  %v7478_v5 = vld [vmem:[%s14880_s8 + $0x138] sm:$0xff]  ;;  %v11105_v18 = vpack.c.bf16 %v7489_v3, %v7487_v37  ;;  %v11109_v14 = vpack.c.bf16 %v7493_v31, %v7491_v50  ;;  %v7513_v8 = vld [vmem:[%s14880_s8 + $0x250] sm:$0xff] }
 0x899   :  { %v11091_v15 = vpack.c.bf16 %v7478_v5, %v7476_v43  ;;  %v7499_v43 = vld [vmem:[%s14880_s8 + $0x1e0] sm:$0xff]  ;;  %v7501_v5 = vld [vmem:[%s14880_s8 + $0x1f0] sm:$0xff]  ;;  %v11129_v50 = vpack.c.bf16 %v7513_v8, %v7511_v9 }
 0x89a   :  { %10890 = vmatpush1.bf16.msra.mxu0 %v10889_v60  ;;  %v11111_v60 = vpack.c.bf16 %v7498_v56, %v7496_v12  ;;  %v7515_v12 = vld [vmem:[%s14880_s8 + $0x260] sm:$0xff]  ;;  %v7517_v56 = vld [vmem:[%s14880_s8 + $0x270] sm:$0xff] }
 0x89b   :  { %10892 = vmatprep.subr.bf16.mxu0 %v10891_v41  ;;  %11092 = vmatprep.subr.bf16.mxu1 %v11091_v15  ;;  %v11113_v41 = vpack.c.bf16 %v7497_v59, %v7495_v46  ;;  %v14883_v15 = vld [vmem:[#allocation36_spill] sm:$0xff]  ;;  %v7707_v46 = vld [vmem:[%s14886_s19 + $0x8] sm:$0xff] }
 0x89c   :  { %11094 = vmatpush1.bf16.msra.mxu1 %v11093_v32  ;;  %v8121_v32 = vld [vmem:[%s11643_s27 + $0x8] sm:$0xff] }
 0x89d   :  { %11096 = vmatprep.subr.bf16.mxu1 %v11095_v45  ;;  %v8123_v45 = vld [vmem:[%s11643_s27 + $0x18] sm:$0xff] }
 0x89e   :  { %10894 = vmatpush1.bf16.msra.mxu0 %v10893_v22 }
 0x89f   :  { %11215 = vmatprep.subr.bf16.mxu0 %v14882_v58 }
 0x8a0   :  { %11098 = vmatpush1.bf16.msra.mxu1 %v11097_v40  ;;  %v7510_v40 = vld [vmem:[%s14880_s8 + $0x238] sm:$0xff] }
 0x8a1   :  { %7080 = vmatmul.mubr.f32.vlgmr.msra.gmra.mrb[40].mxu0 %v14087_v36  ;;  %v8039_v36 = vld [vmem:[%s14881_s14 + $0x28] sm:$0xff]  ;;  %11100 = vmatprep.subr.bf16.mxu1 %v11099_v42  ;;  %v11123_v52 = vpack.c.bf16 %v7510_v40, %v7508_v53  ;;  %v7826_v53 = vld [vmem:[%s14888_s6 + $0x18] sm:$0xff] }
 0x8a2   :  { %11217 = vmatpush3.bf16.msra.mxu0 %v11216_v23  ;;  %8881 = vmatprep.mubr.msk.f32.mxu0 %vm11453_vm10, %v14787_v17  ;;  %v11222_v24 = vpack.c.bf16 %v8039_v36, %v8038_v4  ;;  %v11117_v23 = vpack.c.bf16 %v7501_v5, %v7499_v43  ;;  %v8122_v4 = vld [vmem:[%s11643_s27 + $0x10] sm:$0xff]  ;;  %v7717_v43 = vld [vmem:[%s14886_s19 + $0x58] sm:$0xff]  ;;  %s14889_s27 = sld [smem:[#allocation17_spill]] }
 0x8a3   :  { %11218 = vmatprep.subr.bf16.mxu0 %v14882_v58  ;;  %v11231_v62 = vpack.c.bf16 %v8123_v45, %v8122_v4  ;;  %v7505_v36 = vld [vmem:[%s14880_s8 + $0x210] sm:$0xff]  ;;  %v7723_v4 = vld [vmem:[%s14886_s19 + $0x88] sm:$0xff] }
 0x8a4   :  { %11102 = vmatpush1.bf16.msra.mxu1 %v11101_v51  ;;  %v11121_v28 = vpack.c.bf16 %v7505_v36, %v7503_v7  ;;  %v7509_v51 = vld [vmem:[%s14880_s8 + $0x230] sm:$0xff]  ;;  %v7725_v7 = vld [vmem:[%s14886_s19 + $0x98] sm:$0xff] }
 0x8a5   :  { %11104 = vmatprep.subr.bf16.mxu1 %v11103_v54  ;;  %v7514_v54 = vld [vmem:[%s14880_s8 + $0x258] sm:$0xff]  ;;  %v11125_v37 = vpack.c.bf16 %v7509_v51, %v7507_v26  ;;  %v7692_v26 = vld [vmem:[%s14891_s2] sm:$0x3] }
 0x8a6   :  { %11220 = vmatpush3.bf16.msra.mxu0 %v11219_v0  ;;  %v11228_v0 = vpack.c.bf16 %v8121_v32, %v8120_v34  ;;  %v7721_v34 = vld [vmem:[%s14886_s19 + $0x78] sm:$0xff]  ;;  %v7701_v9 = vrot.slane %v7692_v26, %v14873_v19 }
 0x8a7   :  { %11221 = vmatprep.subr.bf16.mxu0 %v14882_v58 }
 0x8a8   :  { %11106 = vmatpush1.bf16.msra.mxu1 %v11105_v18  ;;  %v7516_v18 = vld [vmem:[%s14880_s8 + $0x268] sm:$0xff] }
 0x8a9   :  { %11108 = vmatprep.subr.bf16.mxu1 %v11107_v38  ;;  %v7518_v38 = vld [vmem:[%s14880_s8 + $0x278] sm:$0xff] }
 0x8aa   :  { %11223 = vmatpush3.bf16.msra.mxu0 %v11222_v24  ;;  %v11131_v31 = vpack.c.bf16 %v7518_v38, %v7516_v18  ;;  %v7697_v18 = vrot.slane %v7692_v26, %v14870_v49  ;;  %v7823_v38 = vld [vmem:[%s14888_s6] sm:$0xff]  ;;  %v7938_v26 = vld [vmem:[%s14894_s11 + $0x30] sm:$0xff] }
 0x8ab   :  { %11224 = vmatprep.subr.bf16.mxu0 %v14882_v58 }
 0x8ac   :  { %11110 = vmatpush1.bf16.msra.mxu1 %v11109_v14  ;;  %v11133_v14 = vpack.c.bf16 %v7517_v56, %v7515_v12  ;;  %v7828_v12 = vld [vmem:[%s14888_s6 + $0x28] sm:$0xff]  ;;  %v7830_v56 = vld [vmem:[%s14888_s6 + $0x38] sm:$0xff] }
 0x8ad   :  { %11112 = vmatprep.subr.bf16.mxu1 %v11111_v60  ;;  %v7706_v60 = vld [vmem:[%s14886_s19] sm:$0xff] }
 0x8ae   :  { %11226 = vmatpush3.bf16.msra.mxu0 %v11225_v10  ;;  %v7512_v10 = vld [vmem:[%s14880_s8 + $0x248] sm:$0xff]  ;;  %v11136_v59 = vpack.c.bf16 %v7707_v46, %v7706_v60 }
 0x8af   :  { %11227 = vmatprep.subr.bf16.mxu0 %v14882_v58  ;;  %v11127_v3 = vpack.c.bf16 %v7514_v54, %v7512_v10 }
 0x8b0   :  { %11114 = vmatpush1.bf16.msra.mxu1 %v11113_v41 }
 0x8b1   :  { %11116 = vmatprep.subr.bf16.mxu1 %v11115_v20  ;;  %v7716_v20 = vld [vmem:[%s14886_s19 + $0x50] sm:$0xff] }
 0x8b2   :  { %v11151_v5 = vpack.c.bf16 %v7717_v43, %v7716_v20  ;;  %v7838_v43 = vld [vmem:[%s14888_s6 + $0x78] sm:$0xff] }
 0x8b4   :  { %v8778_v16 = vpop.f32.mrb[42].mxu1  ;;  %11118 = vmatpush1.bf16.msra.mxu1 %v11117_v23  ;;  %v7719_v23 = vld [vmem:[%s14886_s19 + $0x68] sm:$0xff] }
 0x8b5   :  { %v8779_v61 = vpop.f32.mrb[43].mxu1 }
 0x8b6   :  { %v8780_v1 = vadd.f32 %v8779_v61, %v8778_v16  ;;  %v7708_v16 = vld [vmem:[%s14886_s19 + $0x10] sm:$0xff]  ;;  %v7709_v61 = vld [vmem:[%s14886_s19 + $0x18] sm:$0xff] }
 0x8b7   :  { %v11139_v41 = vpack.c.bf16 %v7709_v61, %v7708_v16  ;;  %v7827_v16 = vld [vmem:[%s14888_s6 + $0x20] sm:$0xff]  ;;  %v7829_v61 = vld [vmem:[%s14888_s6 + $0x30] sm:$0xff] }
 0x8b8   :  { %v7293_v2 = vadd.f32 %v8780_v1, %v14499_v30  ;;  %v7504_v30 = vld [vmem:[%s14880_s8 + $0x208] sm:$0xff]  ;;  %v7710_v1 = vld [vmem:[%s14886_s19 + $0x20] sm:$0xff] }
 0x8b9   :  { %v11119_v33 = vpack.c.bf16 %v7506_v13, %v7504_v30  ;;  %v8322_v30 = vld [vmem:[%s14887_s24] ss:$0 sm:$0xff] }
 0x8bb   :  { %11120 = vmatprep.subr.bf16.mxu1 %v11119_v33 }
 0x8d5   :  { %v8813_v44 = vpop.f32.mrb[44].mxu1 }
 0x8d6   :  { %v8814_v29 = vpop.f32.mrb[45].mxu1 }
 0x8d7   :  { %v8815_v22 = vadd.f32 %v8814_v29, %v8813_v44  ;;  %v7712_v29 = vld [vmem:[%s14886_s19 + $0x30] sm:$0xff] }
 0x8d9   :  { %v7363_v57 = vadd.f32 %v8815_v22, %v7293_v2  ;;  %v7711_v2 = vld [vmem:[%s14886_s19 + $0x28] sm:$0xff]  ;;  %v7713_v22 = vld [vmem:[%s14886_s19 + $0x38] sm:$0xff] }
 0x8da   :  { %v11142_v44 = vpack.c.bf16 %v7711_v2, %v7710_v1  ;;  %v7834_v1 = vld [vmem:[%s14888_s6 + $0x58] sm:$0xff]  ;;  %v11171_v2 = vpack.c.bf16 %v7829_v61, %v7827_v16  ;;  %v7950_v16 = vld [vmem:[%s14894_s11 + $0x90] sm:$0xff] }
 0x8db   :  { %v7951_v61 = vld [vmem:[%s14894_s11 + $0x98] sm:$0xff] }
 0x8f5   :  { %v8848_v6 = vpop.f32.mrb[46].mxu1 }
 0x8f6   :  { %v8849_v21 = vpop.f32.mrb[47].mxu1 }
 0x8f7   :  { %v8850_v11 = vadd.f32 %v8849_v21, %v8848_v6  ;;  %v11148_v6 = vpack.c.bf16 %v7715_v48, %v7714_v27  ;;  %v7718_v21 = vld [vmem:[%s14886_s19 + $0x60] sm:$0xff] }
 0x8f8   :  { %v8324_v27 = vld [vmem:[%s11648_s30] ss:$0 sm:$0xff]  ;;  %s14895_s30 = sld [smem:[#allocation23_spill]] }
 0x8f9   :  { %v7433_v35 = vadd.f32 %v8850_v11, %v7363_v57  ;;  %v11145_v57 = vpack.c.bf16 %v7713_v22, %v7712_v29  ;;  %v11154_v11 = vpack.c.bf16 %v7719_v23, %v7718_v21  ;;  %v7831_v29 = vld [vmem:[%s14888_s6 + $0x40] sm:$0xff]  ;;  %v7833_v22 = vld [vmem:[%s14888_s6 + $0x50] sm:$0xff] }
 0x8fa   :  { %v7835_v21 = vld [vmem:[%s14888_s6 + $0x60] sm:$0xff]  ;;  %v7837_v23 = vld [vmem:[%s14888_s6 + $0x70] sm:$0xff] }
 0x8fb   :  { %v7438_v47 = vadd.f32 %v7433_v35, %v14883_v15 }
 0x8fd   :  { %8882 = vmatmul.mubr.msk.f32.vlgmr.msra.gmra.mrb[42].mxu0 %vm1184_vm5, %v7438_v47 }
 0x8fe   :  { %8892 = vmatprep.mubr.msk.f32.mxu0 %vm11453_vm10, %v14787_v17  ;;  %11229 = vmatpush3.bf16.msra.mxu0 %v11228_v0  ;;  %v7722_v0 = vld [vmem:[%s14886_s19 + $0x80] sm:$0xff] }
 0x8ff   :  { %11230 = vmatprep.subr.bf16.mxu0 %v14882_v58  ;;  %v11160_v45 = vpack.c.bf16 %v7723_v4, %v7722_v0 }
 0x902   :  { %11232 = vmatpush3.bf16.msra.mxu0 %v11231_v62  ;;  %v7724_v62 = vld [vmem:[%s14886_s19 + $0x90] sm:$0xff] }
 0x903   :  { %v11163_v36 = vpack.c.bf16 %v7725_v7, %v7724_v62  ;;  %v7932_v7 = vld [vmem:[%s14894_s11] sm:$0xff] }
 0x974   :  { %v7081_v63 = vpop.f32.mrb[40].mxu0 }
 0x975   :  { %v7083_v24 = vpop.f32.mrb[41].mxu0  ;;  %v7436_v55 = vadd.f32 %v7081_v63, %v14885_v39  ;;  %v7824_v63 = vld [vmem:[%s14888_s6 + $0x8] sm:$0xff] }
 0x976   :  { %v7437_v42 = vadd.f32 %v7083_v24, %v14884_v25  ;;  %v11165_v40 = vpack.c.bf16 %v7826_v53, %v7824_v63  ;;  %v7519_v24 = vld [vmem:[%s14889_s27] sm:$0x3] }
 0x977   :  { %v7524_v25 = vrot.slane %v7519_v24, %v14870_v49  ;;  %v8318_v63 = vld [vmem:[%s14895_s30] ss:$0 sm:$0xff] }
 0x978   :  { %7598 = vmatprep.mubr.f32.mxu1 %v7437_v42  ;;  %v7678_v42 = vld [vmem:[%s14890_s4] sm:$0x3] }
 0x979   :  { %7599 = vmatmul.mubr.f32.vlgmr.msra.gmra.mrb[48].mxu1 %v7436_v55  ;;  %v7687_v54 = vrot.slane %v7678_v42, %v14873_v19 }
 0x97a   :  { %11122 = vmatpush1.bf16.msra.mxu1 %v11121_v28  ;;  %7669 = vmatprep.mubr.f32.mxu1 %v14787_v17  ;;  %v7528_v28 = vrot.slane %v7519_v24, %v14873_v19 }
 0x97b   :  { %11124 = vmatprep.subr.bf16.mxu1 %v11123_v52  ;;  %v7683_v52 = vrot.slane %v7678_v42, %v14870_v49  ;;  %v7935_v42 = vld [vmem:[%s14894_s11 + $0x18] sm:$0xff] }
 0x97e   :  { %11126 = vmatpush1.bf16.msra.mxu1 %v11125_v37 }
 0x97f   :  { %11128 = vmatprep.subr.bf16.mxu1 %v11127_v3 }
 0x982   :  { %11130 = vmatpush1.bf16.msra.mxu1 %v11129_v50  ;;  %v7825_v50 = vld [vmem:[%s14888_s6 + $0x10] sm:$0xff] }
 0x983   :  { %11132 = vmatprep.subr.bf16.mxu1 %v11131_v31  ;;  %v11167_v60 = vpack.c.bf16 %v7825_v50, %v7823_v38  ;;  %v7944_v38 = vld [vmem:[%s14894_s11 + $0x60] sm:$0xff]  ;;  %v7945_v50 = vld [vmem:[%s14894_s11 + $0x68] sm:$0xff] }
 0x986   :  { %11134 = vmatpush1.bf16.msra.mxu1 %v11133_v14 }
 0x987   :  { %11135 = vmatprep.subr.bf16.mxu1 %v14882_v58 }
 0x989   :  { %8314 = vmatmul.mubr.msk.f32.vlgmr.msra.gmra.mrb[48].mxu1 %vm1184_vm5, %v7438_v47  ;;  %v7720_v47 = vld [vmem:[%s14886_s19 + $0x70] sm:$0xff] }
 0x98a   :  { %11137 = vmatpush1.bf16.msra.mxu1 %v11136_v59  ;;  %v11157_v32 = vpack.c.bf16 %v7721_v34, %v7720_v47  ;;  %v11169_v59 = vpack.c.bf16 %v7830_v56, %v7828_v12  ;;  %v8315_v34 = vld [vmem:[%s14892_s7] ss:$0 sm:$0xff]  ;;  %v7946_v12 = vld [vmem:[%s14894_s11 + $0x70] sm:$0xff]  ;;  %v7947_v56 = vld [vmem:[%s14894_s11 + $0x78] sm:$0xff] }
 0x98b   :  { %11138 = vmatprep.subr.bf16.mxu1 %v14882_v58 }
 0x98e   :  { %11140 = vmatpush1.bf16.msra.mxu1 %v11139_v41  ;;  %v7832_v41 = vld [vmem:[%s14888_s6 + $0x48] sm:$0xff] }
 0x98f   :  { %11141 = vmatprep.subr.bf16.mxu1 %v14882_v58 }
 0x992   :  { %11143 = vmatpush1.bf16.msra.mxu1 %v11142_v44  ;;  %v11173_v44 = vpack.c.bf16 %v7834_v1, %v7832_v41  ;;  %v11213_v41 = vpack.c.bf16 %v7951_v61, %v7950_v16  ;;  %v7843_v1 = vld [vmem:[%s14896_s15] sm:$0x3] }
 0x993   :  { %11144 = vmatprep.subr.bf16.mxu1 %v14882_v58 }
 0x996   :  { %11146 = vmatpush1.bf16.msra.mxu1 %v11145_v57  ;;  %v11175_v57 = vpack.c.bf16 %v7833_v22, %v7831_v29 }
 0x997   :  { %11147 = vmatprep.subr.bf16.mxu1 %v14882_v58 }
 0x99a   :  { %11149 = vmatpush1.bf16.msra.mxu1 %v11148_v6 }
 0x99b   :  { %11150 = vmatprep.subr.bf16.mxu1 %v14882_v58 }
 0x99e   :  { %11152 = vmatpush1.bf16.msra.mxu1 %v11151_v5 }
 0x99f   :  { %11153 = vmatprep.subr.bf16.mxu1 %v14882_v58 }
 0x9a2   :  { %11155 = vmatpush1.bf16.msra.mxu1 %v11154_v11  ;;  %v11179_v11 = vpack.c.bf16 %v7837_v23, %v7835_v21 }
 0x9a3   :  { %11156 = vmatprep.subr.bf16.mxu1 %v14882_v58 }
 0x9a6   :  { %11158 = vmatpush1.bf16.msra.mxu1 %v11157_v32 }
 0x9a7   :  { %11159 = vmatprep.subr.bf16.mxu1 %v14882_v58 }
 0x9aa   :  { %11161 = vmatpush1.bf16.msra.mxu1 %v11160_v45  ;;  %v8317_v45 = vld [vmem:[%s14893_s10] ss:$0 sm:$0xff] }
 0x9ab   :  { %11162 = vmatprep.subr.bf16.mxu1 %v14882_v58 }
 0x9ae   :  { %11164 = vmatpush1.bf16.msra.mxu1 %v11163_v36  ;;  %v7933_v36 = vld [vmem:[%s14894_s11 + $0x8] sm:$0xff] }
 0x9af   :  { %11166 = vmatprep.subr.bf16.mxu1 %v11165_v40  ;;  %v11186_v40 = vpack.c.bf16 %v7933_v36, %v7932_v7 }
 0x9d0   :  { %v8115_v13 = vpop.f32.mrb[42].mxu0 }
 0x9d1   :  { %v8116_v35 = vadd.f32 %v8322_v30, %v8115_v13  ;;  %v8883_v33 = vpop.f32.mrb[43].mxu0  ;;  %v7840_v30 = vld [vmem:[%s14888_s6 + $0x88] sm:$0xff]  ;;  %v7842_v13 = vld [vmem:[%s14888_s6 + $0x98] sm:$0xff] }
 0x9d2   :  { %v7839_v33 = vld [vmem:[%s14888_s6 + $0x80] sm:$0xff] }
 0x9d3   :  { %v8119_v15 = vmax.f32 %v8116_v35, 0.0  ;;  %v11181_v35 = vpack.c.bf16 %v7842_v13, %v7840_v30 }
 0x9d5   :  { %8893 = vmatmul.mubr.msk.f32.vlgmr.msra.gmra.mrb[44].mxu0 %vm361_vm4, %v8119_v15  ;;  %v7841_v15 = vld [vmem:[%s14888_s6 + $0x90] sm:$0xff] }
 0x9d6   :  { %v11183_v47 = vpack.c.bf16 %v7841_v15, %v7839_v33 }
 0xa5c   :  { %v7671_v39 = vpop.f32.mrb[48].mxu1 }
 0xa5d   :  { %v11263_v55 = vadd.f32 %v7671_v39, %v7524_v25  ;;  %v7673_v51 = vpop.f32.mrb[49].mxu1  ;;  %v7934_v25 = vld [vmem:[%s14894_s11 + $0x10] sm:$0xff]  ;;  %v7936_v39 = vld [vmem:[%s14894_s11 + $0x20] sm:$0xff] }
 0xa5e   :  { %v11264_v10 = vadd.f32 %v7673_v51, %v7528_v28  ;;  %v11189_v28 = vpack.c.bf16 %v7935_v42, %v7934_v25  ;;  %v7939_v51 = vld [vmem:[%s14894_s11 + $0x38] sm:$0xff] }
 0xa5f   :  { %v7676_v37 = vmax.f32 %v11263_v55, 0.0  ;;  %v7937_v55 = vld [vmem:[%s14894_s11 + $0x28] sm:$0xff] }
 0xa60   :  { %v7677_v3 = vmax.f32 %v11264_v10, 0.0  ;;  %v11195_v10 = vpack.c.bf16 %v7939_v51, %v7938_v26 }
 0xa61   :  { %v7690_v8 = vmul.f32 %v7683_v52, %v7676_v37  ;;  %v11192_v52 = vpack.c.bf16 %v7937_v55, %v7936_v39  ;;  %v7941_v37 = vld [vmem:[%s14894_s11 + $0x48] sm:$0xff] }
 0xa62   :  { %v7691_v31 = vmul.f32 %v7687_v54, %v7677_v3  ;;  %v7940_v54 = vld [vmem:[%s14894_s11 + $0x40] sm:$0xff] }
 0xa63   :  { %v7704_v46 = vadd.f32 %v7697_v18, %v7690_v8  ;;  %v11198_v3 = vpack.c.bf16 %v7941_v37, %v7940_v54  ;;  %v7943_v8 = vld [vmem:[%s14894_s11 + $0x58] sm:$0xff] }
 0xa64   :  { %v7705_v14 = vadd.f32 %v7701_v9, %v7691_v31  ;;  %v7942_v9 = vld [vmem:[%s14894_s11 + $0x50] sm:$0xff]  ;;  %v11204_v31 = vpack.c.bf16 %v7945_v50, %v7944_v38 }
 0xa65   :  { %v11201_v18 = vpack.c.bf16 %v7943_v8, %v7942_v9 }
 0xa66   :  { %8316 = vmatprep.mubr.msk.f32.mxu1 %vm361_vm4, %v7705_v14  ;;  %v11207_v14 = vpack.c.bf16 %v7947_v56, %v7946_v12 }
 0xa67   :  { %7801 = vmatmul.mubr.f32.vlgmr.msra.gmra.mrb[50].mxu1 %v7704_v46  ;;  %v7949_v46 = vld [vmem:[%s14894_s11 + $0x88] sm:$0xff] }
 0xa68   :  { %11168 = vmatpush1.bf16.msra.mxu1 %v11167_v60  ;;  %7923 = vmatprep.mubr.f32.mxu1 %v14787_v17  ;;  %v7836_v17 = vld [vmem:[%s14888_s6 + $0x68] sm:$0xff]  ;;  %v7948_v60 = vld [vmem:[%s14894_s11 + $0x80] sm:$0xff] }
 0xa69   :  { %11170 = vmatprep.subr.bf16.mxu1 %v11169_v59  ;;  %v11177_v5 = vpack.c.bf16 %v7838_v43, %v7836_v17  ;;  %v11210_v59 = vpack.c.bf16 %v7949_v46, %v7948_v60 }
 0xa6c   :  { %11172 = vmatpush1.bf16.msra.mxu1 %v11171_v2  ;;  %v7848_v2 = vrot.slane %v7843_v1, %v14870_v49 }
 0xa6d   :  { %11174 = vmatprep.subr.bf16.mxu1 %v11173_v44  ;;  %v7852_v44 = vrot.slane %v7843_v1, %v14873_v19 }
 0xa70   :  { %11176 = vmatpush1.bf16.msra.mxu1 %v11175_v57 }
 0xa71   :  { %11178 = vmatprep.subr.bf16.mxu1 %v11177_v5 }
 0xa74   :  { %11180 = vmatpush1.bf16.msra.mxu1 %v11179_v11 }
 0xa75   :  { %11182 = vmatprep.subr.bf16.mxu1 %v11181_v35 }
 0xa78   :  { %11184 = vmatpush1.bf16.msra.mxu1 %v11183_v47 }
 0xa79   :  { %11185 = vmatprep.subr.bf16.mxu1 %v14882_v58 }
 0xaa8   :  { %v8200_v48 = vpop.f32.mrb[44].mxu0 }
 0xaa9   :  { %v8201_v6 = vadd.f32 %v8324_v27, %v8200_v48  ;;  %v8894_v20 = vpop.f32.mrb[45].mxu0 }
 0xaab   :  { %8204 = vst [vmem:[#allocation5] sm:$0x3] %v8201_v6 }
 0xb3a   :  { %v7802_v32 = vpop.f32.mrb[50].mxu1 }
 0xb3b   :  { %v7803_v0 = vadd.f32 %v8315_v34, %v7802_v32  ;;  %v7804_v4 = vpop.f32.mrb[51].mxu1 }
 0xb3d   :  { %v7806_v62 = vmax.f32 %v7803_v0, 0.0 }
 0xb3f   :  { %v7814_v53 = vmul.f32 %v8317_v45, %v7806_v62 }
 0xb41   :  { %v7822_v24 = vadd.f32 %v8318_v63, %v7814_v53 }
 0xb43   :  { %8319 = vmatmul.mubr.msk.f32.vlgmr.msra.gmra.mrb[52].mxu1 %vm7855_vm11, %v7822_v24 }
 0xb44   :  { %11187 = vmatpush1.bf16.msra.mxu1 %v11186_v40 }
 0xb45   :  { %11188 = vmatprep.subr.bf16.mxu1 %v14882_v58 }
 0xb48   :  { %11190 = vmatpush1.bf16.msra.mxu1 %v11189_v28 }
 0xb49   :  { %11191 = vmatprep.subr.bf16.mxu1 %v14882_v58 }
 0xb4c   :  { %11193 = vmatpush1.bf16.msra.mxu1 %v11192_v52 }
 0xb4d   :  { %11194 = vmatprep.subr.bf16.mxu1 %v14882_v58 }
 0xb50   :  { %11196 = vmatpush1.bf16.msra.mxu1 %v11195_v10 }
 0xb51   :  { %11197 = vmatprep.subr.bf16.mxu1 %v14882_v58 }
 0xb54   :  { %11199 = vmatpush1.bf16.msra.mxu1 %v11198_v3 }
 0xb55   :  { %11200 = vmatprep.subr.bf16.mxu1 %v14882_v58 }
 0xb58   :  { %11202 = vmatpush1.bf16.msra.mxu1 %v11201_v18 }
 0xb59   :  { %11203 = vmatprep.subr.bf16.mxu1 %v14882_v58 }
 0xb5c   :  { %11205 = vmatpush1.bf16.msra.mxu1 %v11204_v31 }
 0xb5d   :  { %11206 = vmatprep.subr.bf16.mxu1 %v14882_v58 }
 0xb60   :  { %11208 = vmatpush1.bf16.msra.mxu1 %v11207_v14 }
 0xb61   :  { %11209 = vmatprep.subr.bf16.mxu1 %v14882_v58 }
 0xb64   :  { %11211 = vmatpush1.bf16.msra.mxu1 %v11210_v59 }
 0xb65   :  { %11212 = vmatprep.subr.bf16.mxu1 %v14882_v58 }
 0xb68   :  { %11214 = vmatpush1.bf16.msra.mxu1 %v11213_v41 }
 0xc16   :  { %v7925_v29 = vpop.f32.mrb[52].mxu1 }
 0xc17   :  { %v7926_v22 = vadd.f32 %v7925_v29, %v7848_v2  ;;  %v7927_v57 = vpop.f32.mrb[53].mxu1 }
 0xc18   :  { %v7928_v27 = vadd.f32 %v7927_v57, %v7852_v44 }
 0xc19   :  { %v7930_v6 = vmax.f32 %v7926_v22, 0.0 }
 0xc1a   :  { %v7931_v48 = vmax.f32 %v7928_v27, 0.0 }
 0xc1c   :  { %8321 = vmatprep.mubr.msk.f32.mxu1 %vm361_vm4, %v7931_v48 }
 0xc1d   :  { %8027 = vmatmul.mubr.f32.vlgmr.msra.gmra.mrb[54].mxu1 %v7930_v6 }
 0xc1e   :  { %11393 = shalt.err (!%p11390_p12)
}
 0xc1f   :  { %s11394_s23 = scalar_lea.hbm %s11658_s20, 32 }
 0xc20   :  { %p11395_p13 = scmp.ne.s32.totalorder %s11658_s20, %s11394_s23  ;;  %p11398_p0 = scmp.lt.u32.totalorder %s11394_s23, %s11658_s20 }
 0xc22   :  { %p11400_p1 = pnand %p11398_p0, %p11395_p13 }
 0xc24   :  { %11403 = shalt.err (!%p11400_p1)
}
 0xc25   :  { %s14897_s26 = sld [smem:[#allocation27_spill]]  ;;  %vm8032_vm12 = vcmask 205824  }
 0xc26   :  { %8216 = dma.vmem_to_hbm [thread:$0]  %s8214_s18, 32, %s11658_s20, [#allocation4]  }
 0xc2b   :  { %v8320_v49 = vld [vmem:[%s14897_s26] ss:$0 sm:$0xff] }
 0xcf0   :  { %v8028_v19 = vpop.f32.mrb[54].mxu1 }
 0xcf1   :  { %v8029_v58 = vadd.f32 %v8320_v49, %v8028_v19  ;;  %v8030_v20 = vpop.f32.mrb[55].mxu1 }
 0xcf3   :  { %8033 = vst.msk [vmem:[%s11653_s12] sm:$0x3] %vm8032_vm12, %v8029_v58 }
 0xcf4   :  { %11406 = dma.done.wait [#allocation4], 32  }
 0xcf5   :  { %11407 = vsyncadd [#allocation4], 4294967264 }
 0xcf6   :  { %8222 = vsyncpa [#allocation3], 1 }
 0xcf7   :  { %8223 = vsyncpa [#allocation4], 1 }

</bundles_post_ra>
